<compile_context>
chip_gen: v6e
topology: v6e:2x2x1
jax: 0.10.0
libtpu: 0.0.40
codegen_flags: <defaults>
</compile_context>

<pallas_src>
import jax
import jax.numpy as jnp
import numpy as np
from jax import lax
from jax.experimental import pallas as pl
from jax.experimental.pallas import tpu as pltpu

# ---- small model config, consistent with convolutionNet's constructor ----
INPUT_HEIGHT = 16          # module global input_height (scaled down for the demo)
INPUT_WIDTH = 16           # module global input_width
NUM_CLASSES = 30           # module global num_of_classes
NUM_IN = (4, 8)            # num_of_input_layers
NUM_OUT = (8, 16)          # num_of_output_layers
FILTER = 3                 # filter_size
STRIDE = 1                 # conv stride
PAD = 1                    # padding
POOL = 2                   # pooling_size
POOL_STRIDE = 2            # pooling_stride
FC1_HIDDEN = 5000          # nn.Linear(fc1_input_size, 5000)

LANE = 128                                  # lane-dense padding target
CIN1 = 8                                    # conv1 input channels zero-padded 4 -> 8
H1, W1 = INPUT_HEIGHT, INPUT_WIDTH          # conv1 output spatial (k=3, pad=1, stride=1)
H2, W2 = H1 // POOL, W1 // POOL             # 8x8 : pooled1 = conv2 spatial
HP2, WP2 = H2 // POOL, W2 // POOL           # 4x4 : pooled2
FC1_IN = HP2 * WP2 * NUM_OUT[1]             # 256 = fc1_input_size
HID_PAD = 5120                              # fc1 hidden 5000 zero-padded to 2*2560
HID_BLK = HID_PAD // 2                      # one hidden block per grid step / TensorCore


# ---------------------------- Pallas kernels ----------------------------

def fused_conv_kernel(xw_ref, w1_ref, b1_ref, w2_ref, b2_ref, o_ref, c2im_ref):
    """layer1 (conv+ReLU+2x2 maxpool) and layer2 (conv+ReLU+2x2 maxpool), whole batch.

    xw_ref  : (N, H1+2, W1, 3*CIN1)  bf16  width-direction im2col of the padded input
    w1_ref  : (3, 3*CIN1, 128)       bf16  conv1 weights, one (kw,cin)->cout slab per kh
    b1_ref  : (1, 128)               f32
    w2_ref  : (3, 3*128, 128)        bf16  conv2 weights, one (kw,cin)->cout slab per kh
    b2_ref  : (1, 128)               f32
    o_ref   : (N, HP2*WP2, 16)       f32   pooled layer-2 output, (spatial, channel) order
    c2im_ref: (N, H2+2, W2, 3*128)   f32   scratch: zero-padded width-im2col of pooled1

    The conv is 3 kh-shifted matmuls per layer (height taps in-kernel, width taps
    folded into the lane dim), so no patch tensor ever touches HBM.
    """
    nb = xw_ref.shape[0]
    c2im_ref[...] = jnp.zeros_like(c2im_ref)          # zero border = conv2 spatial padding
    b1 = b1_ref[...]
    b2 = b2_ref[...]

    # ---------------- layer 1 ----------------
    for n in range(nb):
        for half in range(2):                          # 8 conv rows per chunk -> small live set
            h0 = half * (H1 // 2)
            acc = jnp.zeros((8 * W1, LANE), jnp.float32)
            for kh in range(FILTER):
                lhs = xw_ref[n, h0 + kh:h0 + kh + 8, :, :]            # (8, W1, 3*CIN1)
                acc = acc + jnp.dot(lhs.reshape(8 * W1, FILTER * CIN1),
                                    w1_ref[kh], preferred_element_type=jnp.float32)
            acc = jnp.maximum(acc + b1, 0.0)                          # bias + ReLU
            ph = acc.reshape(4, 2, W1, LANE)
            ph = jnp.maximum(ph[:, 0], ph[:, 1])                      # pool rows -> (4, W1, 128)
            r0 = 1 + half * (H2 // 2)                                 # padded row of this chunk
            for jp in range(W2):                                      # pool cols + scatter into
                v = jnp.maximum(ph[:, 2 * jp, :], ph[:, 2 * jp + 1, :])   # conv2's width-im2col
                for kw in range(FILTER):
                    j = jp + 1 - kw                                   # conv2 output col fed by jp
                    if 0 <= j < W2:
                        c2im_ref[n, r0:r0 + 4, j, kw * LANE:(kw + 1) * LANE] = v

    # ---------------- layer 2 ----------------
    for half in range(2):                              # 4 conv rows per chunk (whole batch)
        h0 = half * (H2 // 2)
        acc = jnp.zeros((nb * 4 * W2, LANE), jnp.float32)
        for kh in range(FILTER):
            lhs = c2im_ref[:, h0 + kh:h0 + kh + 4, :, :].astype(jnp.bfloat16)  # (N,4,W2,384)
            acc = acc + jnp.dot(lhs.reshape(nb * 4 * W2, FILTER * LANE),
                                w2_ref[kh], preferred_element_type=jnp.float32)
        acc = jnp.maximum(acc + b2, 0.0)                              # bias + ReLU
        p2 = acc.reshape(nb, 2, 2, W2, LANE)
        p2 = jnp.maximum(p2[:, :, 0], p2[:, :, 1])                    # pool rows -> (N, 2, W2, 128)
        for wp in range(WP2):                                         # pool cols + flatten-order store
            col = jnp.maximum(p2[:, :, 2 * wp, :], p2[:, :, 2 * wp + 1, :])   # (N, 2, 128)
            for hl in range(2):
                s = (half * 2 + hl) * WP2 + wp
                o_ref[:, s, :] = col[:, hl, :NUM_OUT[1]]


def fc_kernel(x_ref, w1_ref, b1_ref, w2_ref, b2_ref, o_ref):
    # One hidden-dim block per grid step, marked "parallel": on v7x each TensorCore
    # streams half of fc1/fc2 (bf16) and writes its own partial logits block.
    x = x_ref[...].astype(jnp.bfloat16)
    h = jnp.dot(x, w1_ref[...], preferred_element_type=jnp.float32) + b1_ref[...]
    p = jnp.dot(h.astype(jnp.bfloat16), w2_ref[...], preferred_element_type=jnp.float32)
    o_ref[0] = p + b2_ref[0]          # fc2 bias is folded into block 0 only (block 1 is zeros)


# ------------------------------ wrappers --------------------------------

def fused_conv_call(xw, w1, b1, w2, b2, n):
    return pl.pallas_call(
        fused_conv_kernel,
        out_shape=jax.ShapeDtypeStruct((n, HP2 * WP2, NUM_OUT[1]), jnp.float32),
        grid_spec=pltpu.PrefetchScalarGridSpec(
            num_scalar_prefetch=0, grid=(1,),
            in_specs=[pl.BlockSpec(xw.shape, lambda i: (0, 0, 0, 0)),
                      pl.BlockSpec(w1.shape, lambda i: (0, 0, 0)),
                      pl.BlockSpec(b1.shape, lambda i: (0, 0)),
                      pl.BlockSpec(w2.shape, lambda i: (0, 0, 0)),
                      pl.BlockSpec(b2.shape, lambda i: (0, 0))],
            out_specs=pl.BlockSpec((n, HP2 * WP2, NUM_OUT[1]), lambda i: (0, 0, 0)),
            scratch_shapes=[pltpu.VMEM((n, H2 + 2, W2, FILTER * LANE), jnp.float32)]),
        compiler_params=pltpu.CompilerParams(
            dimension_semantics=("arbitrary",),
            vmem_limit_bytes=32 * 1024 * 1024),
    )(xw, w1, b1, w2, b2)


def fc_call(flat, w1, b1, w2, b2_blocks):
    n, f = flat.shape
    return pl.pallas_call(
        fc_kernel,
        out_shape=jax.ShapeDtypeStruct((2, n, LANE), jnp.float32),
        grid_spec=pltpu.PrefetchScalarGridSpec(
            num_scalar_prefetch=0, grid=(2,),
            in_specs=[pl.BlockSpec((n, f), lambda j: (0, 0)),
                      pl.BlockSpec((f, HID_BLK), lambda j: (0, j)),
                      pl.BlockSpec((1, HID_BLK), lambda j: (0, j)),
                      pl.BlockSpec((HID_BLK, LANE), lambda j: (j, 0)),
                      pl.BlockSpec((1, 1, LANE), lambda j: (j, 0, 0))],
            out_specs=pl.BlockSpec((1, n, LANE), lambda j: (j, 0, 0))),
        compiler_params=pltpu.CompilerParams(
            dimension_semantics=("parallel",),
            vmem_limit_bytes=32 * 1024 * 1024),
    )(flat, w1, b1, w2, b2_blocks)


# -------------------------- params / packing ----------------------------

def init_params(key):
    ks = jax.random.split(key, 8)
    k = FILTER
    # PyTorch layouts: conv weight OIHW, linear weight (out_features, in_features)
    return {
        "conv1_w": 0.1 * jax.random.normal(ks[0], (NUM_OUT[0], NUM_IN[0], k, k), jnp.float32),
        "conv1_b": 0.1 * jax.random.normal(ks[1], (NUM_OUT[0],), jnp.float32),
        "conv2_w": 0.1 * jax.random.normal(ks[2], (NUM_OUT[1], NUM_IN[1], k, k), jnp.float32),
        "conv2_b": 0.1 * jax.random.normal(ks[3], (NUM_OUT[1],), jnp.float32),
        "fc1_w": 0.02 * jax.random.normal(ks[4], (FC1_HIDDEN, FC1_IN), jnp.float32),
        "fc1_b": 0.02 * jax.random.normal(ks[5], (FC1_HIDDEN,), jnp.float32),
        "fc2_w": 0.02 * jax.random.normal(ks[6], (NUM_CLASSES, FC1_HIDDEN), jnp.float32),
        "fc2_b": 0.02 * jax.random.normal(ks[7], (NUM_CLASSES,), jnp.float32),
    }


def prepare_params(params):
    """One-time weight packing: transposes/pads/casts happen here, NOT per forward."""
    k = FILTER
    # conv weights OIHW -> (kh, kw, cin, cout), cin/cout zero-padded, one slab per kh.
    w1 = jnp.transpose(params["conv1_w"], (2, 3, 1, 0))
    w1 = jnp.pad(w1, ((0, 0), (0, 0), (0, CIN1 - NUM_IN[0]), (0, LANE - NUM_OUT[0])))
    w1 = w1.reshape(k, k * CIN1, LANE).astype(jnp.bfloat16)
    b1 = jnp.pad(params["conv1_b"], (0, LANE - NUM_OUT[0])).reshape(1, LANE).astype(jnp.float32)

    w2 = jnp.transpose(params["conv2_w"], (2, 3, 1, 0))
    w2 = jnp.pad(w2, ((0, 0), (0, 0), (0, LANE - NUM_IN[1]), (0, LANE - NUM_OUT[1])))
    w2 = w2.reshape(k, k * LANE, LANE).astype(jnp.bfloat16)
    b2 = jnp.pad(params["conv2_b"], (0, LANE - NUM_OUT[1])).reshape(1, LANE).astype(jnp.float32)

    # fc1: permute the input-feature axis from PyTorch (channel, spatial) order to the
    # conv kernel's natural (spatial, channel) flatten order; pad hidden 5000 -> 5120; bf16.
    s, c = HP2 * WP2, NUM_OUT[1]
    fc1_wt = params["fc1_w"].T.reshape(c, s, FC1_HIDDEN).transpose(1, 0, 2).reshape(s * c, FC1_HIDDEN)
    fc1_wt = jnp.pad(fc1_wt, ((0, 0), (0, HID_PAD - FC1_HIDDEN))).astype(jnp.bfloat16)
    fc1_b = jnp.pad(params["fc1_b"], (0, HID_PAD - FC1_HIDDEN)).reshape(1, HID_PAD).astype(jnp.float32)

    fc2_wt = jnp.pad(params["fc2_w"].T,
                     ((0, HID_PAD - FC1_HIDDEN), (0, LANE - NUM_CLASSES))).astype(jnp.bfloat16)
    fc2_b = jnp.pad(params["fc2_b"], (0, LANE - NUM_CLASSES)).reshape(1, 1, LANE).astype(jnp.float32)
    fc2_b_blocks = jnp.concatenate([fc2_b, jnp.zeros_like(fc2_b)], axis=0)   # bias only on block 0

    return {"conv1_wm": w1, "conv1_bm": b1, "conv2_wm": w2, "conv2_bm": b2,
            "fc1_wt": fc1_wt, "fc1_b": fc1_b, "fc2_wt": fc2_wt, "fc2_b_blocks": fc2_b_blocks}


# ------------------------------- forward --------------------------------

@jax.jit
def convolution_net_forward(prep, x_nchw):
    """Pallas forward of convolutionNet.  x_nchw: (N, 4, 16, 16) float32."""
    n = x_nchw.shape[0]
    # NCHW -> NHWC, spatial zero-pad for conv1, channel pad 4->8, width-direction im2col
    # (lane index = kw*CIN1 + cin).  Height taps are applied inside the kernel.
    x = jnp.transpose(x_nchw, (0, 2, 3, 1))
    xp = jnp.pad(x, ((0, 0), (PAD, PAD), (PAD, PAD), (0, CIN1 - NUM_IN[0]))).astype(jnp.bfloat16)
    xw = jnp.concatenate([xp[:, :, kw:kw + W1, :] for kw in range(FILTER)], axis=-1)

    out2 = fused_conv_call(xw, prep["conv1_wm"], prep["conv1_bm"],
                           prep["conv2_wm"], prep["conv2_bm"], n)     # (n, 16, 16) f32
    # TODO(synk): nn.Dropout2d is treated as identity (inference mode).
    flat = out2.reshape(n, FC1_IN)                                    # (spatial, channel) order

    part = fc_call(flat, prep["fc1_wt"], prep["fc1_b"], prep["fc2_wt"], prep["fc2_b_blocks"])
    logits = part[0] + part[1]                                        # sum per-TensorCore partials
    return logits[:, :NUM_CLASSES]


def reference_forward(params, x_nchw):
    """Pure-JAX/XLA f32 reference matching the PyTorch forward exactly."""
    dn = ("NCHW", "OIHW", "NCHW")
    y = lax.conv_general_dilated(x_nchw, params["conv1_w"], (STRIDE, STRIDE),
                                 [(PAD, PAD), (PAD, PAD)], dimension_numbers=dn)
    y = jnp.maximum(y + params["conv1_b"][None, :, None, None], 0.0)
    y = lax.reduce_window(y, -jnp.inf, lax.max, (1, 1, POOL, POOL),
                          (1, 1, POOL_STRIDE, POOL_STRIDE), "VALID")
    y = lax.conv_general_dilated(y, params["conv2_w"], (STRIDE, STRIDE),
                                 [(PAD, PAD), (PAD, PAD)], dimension_numbers=dn)
    y = jnp.maximum(y + params["conv2_b"][None, :, None, None], 0.0)
    y = lax.reduce_window(y, -jnp.inf, lax.max, (1, 1, POOL, POOL),
                          (1, 1, POOL_STRIDE, POOL_STRIDE), "VALID")
    flat = y.reshape(y.shape[0], -1)
    h = flat @ params["fc1_w"].T + params["fc1_b"]
    return h @ params["fc2_w"].T + params["fc2_b"]


if __name__ == "__main__":
    key = jax.random.PRNGKey(0)
    pkey, xkey = jax.random.split(key)
    params = init_params(pkey)
    prep = prepare_params(params)      # one-time weight packing (outside the jitted forward)
    x = jax.random.normal(xkey, (2, NUM_IN[0], INPUT_HEIGHT, INPUT_WIDTH), jnp.float32)

    out = convolution_net_forward(prep, x)
    out = jax.block_until_ready(out)
    assert out.shape == (2, NUM_CLASSES)

    ref = reference_forward(params, x)
    # bf16 operands on the conv and FC paths -> loose tolerance vs the f32 reference.
    np.testing.assert_allclose(np.asarray(out), np.asarray(ref), rtol=2e-2, atol=2e-2)

    print("KERNEL_OK")
</pallas_src>

<mosaic_0001>
module attributes {stable_mosaic.version = 11 : i64} {
  func.func @fc_kernel(%arg0: i32, %arg1: memref<2x256xf32, #tpu.memory_space<vmem>>, %arg2: memref<256x2560xbf16, #tpu.memory_space<vmem>>, %arg3: memref<1x2560xf32, #tpu.memory_space<vmem>>, %arg4: memref<2560x128xbf16, #tpu.memory_space<vmem>>, %arg5: memref<1x1x128xf32, #tpu.memory_space<vmem>>, %arg6: memref<1x2x128xf32, #tpu.memory_space<vmem>>) attributes {dimension_semantics = [#tpu.dimension_semantics<parallel>], iteration_bounds = array<i64: 2>, scalar_prefetch = 0 : i64, scratch_operands = 0 : i64, tpu.core_type = #tpu.core_type<tc>, window_params = [{pipeline_mode = #tpu.pipeline_mode<synchronous>, transform_indices = @transform_0, window_bounds = array<i64: 2, 256>}, {transform_indices = @transform_1, window_bounds = array<i64: 256, 2560>}, {transform_indices = @transform_2, window_bounds = array<i64: 1, 2560>}, {transform_indices = @transform_3, window_bounds = array<i64: 2560, 128>}, {transform_indices = @transform_4, window_bounds = array<i64: 1, 1, 128>}, {transform_indices = @transform_5, window_bounds = array<i64: 1, 2, 128>}]} {
    %c0 = arith.constant 0 : index
    %c0_0 = arith.constant 0 : index
    %0 = vector.load %arg1[%c0, %c0_0] : memref<2x256xf32, #tpu.memory_space<vmem>>, vector<2x256xf32>
    %1 = arith.truncf %0 : vector<2x256xf32> to vector<2x256xbf16>
    %c0_1 = arith.constant 0 : index
    %c0_2 = arith.constant 0 : index
    %2 = vector.load %arg2[%c0_1, %c0_2] : memref<256x2560xbf16, #tpu.memory_space<vmem>>, vector<256x2560xbf16>
    %cst = arith.constant dense<0.000000e+00> : vector<2x2560xf32>
    %3 = tpu.matmul %1, %2, %cst {dimension_numbers = #tpu.dot_dimension_numbers<[1], [0], [0], [1], [0, 0, 1, 1], [], []>} : vector<2x256xbf16>, vector<256x2560xbf16>, vector<2x2560xf32> -> vector<2x2560xf32>
    %c0_3 = arith.constant 0 : index
    %c0_4 = arith.constant 0 : index
    %4 = vector.load %arg3[%c0_3, %c0_4] : memref<1x2560xf32, #tpu.memory_space<vmem>>, vector<1x2560xf32>
    %5 = vector.broadcast %4 : vector<1x2560xf32> to vector<2x2560xf32>
    %6 = arith.addf %3, %5 : vector<2x2560xf32>
    %7 = arith.truncf %6 : vector<2x2560xf32> to vector<2x2560xbf16>
    %c0_5 = arith.constant 0 : index
    %c0_6 = arith.constant 0 : index
    %8 = vector.load %arg4[%c0_5, %c0_6] : memref<2560x128xbf16, #tpu.memory_space<vmem>>, vector<2560x128xbf16>
    %cst_7 = arith.constant dense<0.000000e+00> : vector<2x128xf32>
    %9 = tpu.matmul %7, %8, %cst_7 {dimension_numbers = #tpu.dot_dimension_numbers<[1], [0], [0], [1], [0, 0, 1, 1], [], []>} : vector<2x2560xbf16>, vector<2560x128xbf16>, vector<2x128xf32> -> vector<2x128xf32>
    %c0_8 = arith.constant 0 : index
    %c0_9 = arith.constant 0 : index
    %c0_10 = arith.constant 0 : index
    %10 = vector.load %arg5[%c0_8, %c0_9, %c0_10] : memref<1x1x128xf32, #tpu.memory_space<vmem>>, vector<1x1x128xf32>
    %11 = vector.shape_cast %10 : vector<1x1x128xf32> to vector<1x128xf32>
    %12 = vector.broadcast %11 : vector<1x128xf32> to vector<2x128xf32>
    %13 = arith.addf %9, %12 : vector<2x128xf32>
    %c0_11 = arith.constant 0 : index
    %c0_12 = arith.constant 0 : index
    %c0_13 = arith.constant 0 : index
    %14 = vector.load %arg6[%c0_11, %c0_12, %c0_13] : memref<1x2x128xf32, #tpu.memory_space<vmem>>, vector<1x2x128xf32>
    %15 = vector.shape_cast %14 : vector<1x2x128xf32> to vector<2x128xf32>
    %16 = vector.shape_cast %13 : vector<2x128xf32> to vector<1x2x128xf32>
    tpu.vector_store %arg6[%c0_11, %c0_12, %c0_13], %16 {strides = array<i32>} : memref<1x2x128xf32, #tpu.memory_space<vmem>>, vector<1x2x128xf32>,
    return
  }
  func.func @transform_0(%arg0: i32) -> (i32, i32) {
    %c0_i32 = arith.constant 0 : i32
    %c0_i32_0 = arith.constant 0 : i32
    %c0_i32_1 = arith.constant 0 : i32
    return %c0_i32, %c0_i32_0 : i32, i32
  }
  func.func @transform_1(%arg0: i32) -> (i32, i32) {
    %c0_i32 = arith.constant 0 : i32
    %c0_i32_0 = arith.constant 0 : i32
    return %c0_i32, %arg0 : i32, i32
  }
  func.func @transform_2(%arg0: i32) -> (i32, i32) {
    %c0_i32 = arith.constant 0 : i32
    %c0_i32_0 = arith.constant 0 : i32
    return %c0_i32, %arg0 : i32, i32
  }
  func.func @transform_3(%arg0: i32) -> (i32, i32) {
    %c0_i32 = arith.constant 0 : i32
    %c0_i32_0 = arith.constant 0 : i32
    return %arg0, %c0_i32 : i32, i32
  }
  func.func @transform_4(%arg0: i32) -> (i32, i32, i32) {
    %c0_i32 = arith.constant 0 : i32
    %c0_i32_0 = arith.constant 0 : i32
    %c0_i32_1 = arith.constant 0 : i32
    return %arg0, %c0_i32, %c0_i32_0 : i32, i32, i32
  }
  func.func @transform_5(%arg0: i32) -> (i32, i32, i32) {
    %c0_i32 = arith.constant 0 : i32
    %c0_i32_0 = arith.constant 0 : i32
    %c0_i32_1 = arith.constant 0 : i32
    return %arg0, %c0_i32, %c0_i32_0 : i32, i32, i32
  }
}

module attributes {stable_mosaic.version = 11 : i64} {
  func.func @fused_conv_kernel(%arg0: i32, %arg1: memref<2x18x16x24xbf16, #tpu.memory_space<vmem>>, %arg2: memref<3x24x128xbf16, #tpu.memory_space<vmem>>, %arg3: memref<1x128xf32, #tpu.memory_space<vmem>>, %arg4: memref<3x384x128xbf16, #tpu.memory_space<vmem>>, %arg5: memref<1x128xf32, #tpu.memory_space<vmem>>, %arg6: memref<2x16x16xf32, #tpu.memory_space<vmem>>, %arg7: memref<2x10x8x384xf32, #tpu.memory_space<vmem>>) attributes {dimension_semantics = [#tpu.dimension_semantics<arbitrary>], iteration_bounds = array<i64: 1>, scalar_prefetch = 0 : i64, scratch_operands = 1 : i64, tpu.core_type = #tpu.core_type<tc>, window_params = [{pipeline_mode = #tpu.pipeline_mode<synchronous>, transform_indices = @transform_0, window_bounds = array<i64: 2, 18, 16, 24>}, {pipeline_mode = #tpu.pipeline_mode<synchronous>, transform_indices = @transform_1, window_bounds = array<i64: 3, 24, 128>}, {pipeline_mode = #tpu.pipeline_mode<synchronous>, transform_indices = @transform_2, window_bounds = array<i64: 1, 128>}, {pipeline_mode = #tpu.pipeline_mode<synchronous>, transform_indices = @transform_3, window_bounds = array<i64: 3, 384, 128>}, {pipeline_mode = #tpu.pipeline_mode<synchronous>, transform_indices = @transform_4, window_bounds = array<i64: 1, 128>}, {pipeline_mode = #tpu.pipeline_mode<synchronous>, transform_indices = @transform_5, window_bounds = array<i64: 2, 16, 16>}]} {
    %cst = arith.constant 0.000000e+00 : f32
    %0 = vector.broadcast %cst : f32 to vector<2x10x8x384xf32>
    %c0 = arith.constant 0 : index
    %c0_0 = arith.constant 0 : index
    %c0_1 = arith.constant 0 : index
    %c0_2 = arith.constant 0 : index
    %1 = vector.load %arg7[%c0, %c0_0, %c0_1, %c0_2] : memref<2x10x8x384xf32, #tpu.memory_space<vmem>>, vector<2x10x8x384xf32>
    tpu.vector_store %arg7[%c0, %c0_0, %c0_1, %c0_2], %0 {strides = array<i32>} : memref<2x10x8x384xf32, #tpu.memory_space<vmem>>, vector<2x10x8x384xf32>,
    %c0_3 = arith.constant 0 : index
    %c0_4 = arith.constant 0 : index
    %2 = vector.load %arg3[%c0_3, %c0_4] : memref<1x128xf32, #tpu.memory_space<vmem>>, vector<1x128xf32>
    %c0_5 = arith.constant 0 : index
    %c0_6 = arith.constant 0 : index
    %3 = vector.load %arg5[%c0_5, %c0_6] : memref<1x128xf32, #tpu.memory_space<vmem>>, vector<1x128xf32>
    %cst_7 = arith.constant 0.000000e+00 : f32
    %4 = vector.broadcast %cst_7 : f32 to vector<128x128xf32>
    %c0_8 = arith.constant 0 : index
    %c0_9 = arith.constant 0 : index
    %c0_10 = arith.constant 0 : index
    %c0_11 = arith.constant 0 : index
    %5 = vector.load %arg1[%c0_8, %c0_9, %c0_10, %c0_11] : memref<2x18x16x24xbf16, #tpu.memory_space<vmem>>, vector<1x8x16x24xbf16>
    %6 = vector.shape_cast %5 : vector<1x8x16x24xbf16> to vector<8x16x24xbf16>
    %7 = vector.shape_cast %6 : vector<8x16x24xbf16> to vector<128x24xbf16>
    %c0_12 = arith.constant 0 : index
    %c0_13 = arith.constant 0 : index
    %c0_14 = arith.constant 0 : index
    %8 = vector.load %arg2[%c0_12, %c0_13, %c0_14] : memref<3x24x128xbf16, #tpu.memory_space<vmem>>, vector<1x24x128xbf16>
    %9 = vector.shape_cast %8 : vector<1x24x128xbf16> to vector<24x128xbf16>
    %cst_15 = arith.constant dense<0.000000e+00> : vector<128x128xf32>
    %10 = tpu.matmul %7, %9, %cst_15 {dimension_numbers = #tpu.dot_dimension_numbers<[1], [0], [0], [1], [0, 0, 1, 1], [], []>} : vector<128x24xbf16>, vector<24x128xbf16>, vector<128x128xf32> -> vector<128x128xf32>
    %11 = arith.addf %4, %10 : vector<128x128xf32>
    %c0_16 = arith.constant 0 : index
    %c1 = arith.constant 1 : index
    %c0_17 = arith.constant 0 : index
    %c0_18 = arith.constant 0 : index
    %12 = vector.load %arg1[%c0_16, %c1, %c0_17, %c0_18] : memref<2x18x16x24xbf16, #tpu.memory_space<vmem>>, vector<1x8x16x24xbf16>
    %13 = vector.shape_cast %12 : vector<1x8x16x24xbf16> to vector<8x16x24xbf16>
    %14 = vector.shape_cast %13 : vector<8x16x24xbf16> to vector<128x24xbf16>
    %c1_19 = arith.constant 1 : index
    %c0_20 = arith.constant 0 : index
    %c0_21 = arith.constant 0 : index
    %15 = vector.load %arg2[%c1_19, %c0_20, %c0_21] : memref<3x24x128xbf16, #tpu.memory_space<vmem>>, vector<1x24x128xbf16>
    %16 = vector.shape_cast %15 : vector<1x24x128xbf16> to vector<24x128xbf16>
    %cst_22 = arith.constant dense<0.000000e+00> : vector<128x128xf32>
    %17 = tpu.matmul %14, %16, %cst_22 {dimension_numbers = #tpu.dot_dimension_numbers<[1], [0], [0], [1], [0, 0, 1, 1], [], []>} : vector<128x24xbf16>, vector<24x128xbf16>, vector<128x128xf32> -> vector<128x128xf32>
    %18 = arith.addf %11, %17 : vector<128x128xf32>
    %c0_23 = arith.constant 0 : index
    %c2 = arith.constant 2 : index
    %c0_24 = arith.constant 0 : index
    %c0_25 = arith.constant 0 : index
    %19 = vector.load %arg1[%c0_23, %c2, %c0_24, %c0_25] : memref<2x18x16x24xbf16, #tpu.memory_space<vmem>>, vector<1x8x16x24xbf16>
    %20 = vector.shape_cast %19 : vector<1x8x16x24xbf16> to vector<8x16x24xbf16>
    %21 = vector.shape_cast %20 : vector<8x16x24xbf16> to vector<128x24xbf16>
    %c2_26 = arith.constant 2 : index
    %c0_27 = arith.constant 0 : index
    %c0_28 = arith.constant 0 : index
    %22 = vector.load %arg2[%c2_26, %c0_27, %c0_28] : memref<3x24x128xbf16, #tpu.memory_space<vmem>>, vector<1x24x128xbf16>
    %23 = vector.shape_cast %22 : vector<1x24x128xbf16> to vector<24x128xbf16>
    %cst_29 = arith.constant dense<0.000000e+00> : vector<128x128xf32>
    %24 = tpu.matmul %21, %23, %cst_29 {dimension_numbers = #tpu.dot_dimension_numbers<[1], [0], [0], [1], [0, 0, 1, 1], [], []>} : vector<128x24xbf16>, vector<24x128xbf16>, vector<128x128xf32> -> vector<128x128xf32>
    %25 = arith.addf %18, %24 : vector<128x128xf32>
    %26 = vector.broadcast %2 : vector<1x128xf32> to vector<128x128xf32>
    %27 = arith.addf %25, %26 : vector<128x128xf32>
    %cst_30 = arith.constant 0.000000e+00 : f32
    %28 = vector.broadcast %cst_30 : f32 to vector<128x128xf32>
    %29 = arith.maximumf %27, %28 : vector<128x128xf32>
    %30 = vector.shape_cast %29 : vector<128x128xf32> to vector<4x2x16x128xf32>
    %31 = vector.extract_strided_slice %30 {offsets = [0, 0, 0, 0], sizes = [4, 1, 16, 128], strides = [1, 1, 1, 1]} : vector<4x2x16x128xf32> to vector<4x1x16x128xf32>
    %32 = vector.shape_cast %31 : vector<4x1x16x128xf32> to vector<4x16x128xf32>
    %33 = vector.extract_strided_slice %30 {offsets = [0, 1, 0, 0], sizes = [4, 1, 16, 128], strides = [1, 1, 1, 1]} : vector<4x2x16x128xf32> to vector<4x1x16x128xf32>
    %34 = vector.shape_cast %33 : vector<4x1x16x128xf32> to vector<4x16x128xf32>
    %35 = arith.maximumf %32, %34 : vector<4x16x128xf32>
    %36 = vector.extract_strided_slice %35 {offsets = [0, 0, 0], sizes = [4, 1, 128], strides = [1, 1, 1]} : vector<4x16x128xf32> to vector<4x1x128xf32>
    %37 = vector.shape_cast %36 : vector<4x1x128xf32> to vector<4x128xf32>
    %38 = vector.extract_strided_slice %35 {offsets = [0, 1, 0], sizes = [4, 1, 128], strides = [1, 1, 1]} : vector<4x16x128xf32> to vector<4x1x128xf32>
    %39 = vector.shape_cast %38 : vector<4x1x128xf32> to vector<4x128xf32>
    %40 = arith.maximumf %37, %39 : vector<4x128xf32>
    %c0_31 = arith.constant 0 : index
    %c1_32 = arith.constant 1 : index
    %c1_33 = arith.constant 1 : index
    %c0_34 = arith.constant 0 : index
    %41 = vector.load %arg7[%c0_31, %c1_32, %c1_33, %c0_34] : memref<2x10x8x384xf32, #tpu.memory_space<vmem>>, vector<1x4x1x128xf32>
    %42 = vector.shape_cast %41 : vector<1x4x1x128xf32> to vector<4x128xf32>
    %43 = vector.shape_cast %40 : vector<4x128xf32> to vector<1x4x1x128xf32>
    tpu.vector_store %arg7[%c0_31, %c1_32, %c1_33, %c0_34], %43 {strides = array<i32>} : memref<2x10x8x384xf32, #tpu.memory_space<vmem>>, vector<1x4x1x128xf32>,
    %c0_35 = arith.constant 0 : index
    %c1_36 = arith.constant 1 : index
    %c0_37 = arith.constant 0 : index
    %c128 = arith.constant 128 : index
    %44 = vector.load %arg7[%c0_35, %c1_36, %c0_37, %c128] : memref<2x10x8x384xf32, #tpu.memory_space<vmem>>, vector<1x4x1x128xf32>
    %45 = vector.shape_cast %44 : vector<1x4x1x128xf32> to vector<4x128xf32>
    %46 = vector.shape_cast %40 : vector<4x128xf32> to vector<1x4x1x128xf32>
    tpu.vector_store %arg7[%c0_35, %c1_36, %c0_37, %c128], %46 {strides = array<i32>} : memref<2x10x8x384xf32, #tpu.memory_space<vmem>>, vector<1x4x1x128xf32>,
    %47 = vector.extract_strided_slice %35 {offsets = [0, 2, 0], sizes = [4, 1, 128], strides = [1, 1, 1]} : vector<4x16x128xf32> to vector<4x1x128xf32>
    %48 = vector.shape_cast %47 : vector<4x1x128xf32> to vector<4x128xf32>
    %49 = vector.extract_strided_slice %35 {offsets = [0, 3, 0], sizes = [4, 1, 128], strides = [1, 1, 1]} : vector<4x16x128xf32> to vector<4x1x128xf32>
    %50 = vector.shape_cast %49 : vector<4x1x128xf32> to vector<4x128xf32>
    %51 = arith.maximumf %48, %50 : vector<4x128xf32>
    %c0_38 = arith.constant 0 : index
    %c1_39 = arith.constant 1 : index
    %c2_40 = arith.constant 2 : index
    %c0_41 = arith.constant 0 : index
    %52 = vector.load %arg7[%c0_38, %c1_39, %c2_40, %c0_41] : memref<2x10x8x384xf32, #tpu.memory_space<vmem>>, vector<1x4x1x128xf32>
    %53 = vector.shape_cast %52 : vector<1x4x1x128xf32> to vector<4x128xf32>
    %54 = vector.shape_cast %51 : vector<4x128xf32> to vector<1x4x1x128xf32>
    tpu.vector_store %arg7[%c0_38, %c1_39, %c2_40, %c0_41], %54 {strides = array<i32>} : memref<2x10x8x384xf32, #tpu.memory_space<vmem>>, vector<1x4x1x128xf32>,
    %c0_42 = arith.constant 0 : index
    %c1_43 = arith.constant 1 : index
    %c1_44 = arith.constant 1 : index
    %c128_45 = arith.constant 128 : index
    %55 = vector.load %arg7[%c0_42, %c1_43, %c1_44, %c128_45] : memref<2x10x8x384xf32, #tpu.memory_space<vmem>>, vector<1x4x1x128xf32>
    %56 = vector.shape_cast %55 : vector<1x4x1x128xf32> to vector<4x128xf32>
    %57 = vector.shape_cast %51 : vector<4x128xf32> to vector<1x4x1x128xf32>
    tpu.vector_store %arg7[%c0_42, %c1_43, %c1_44, %c128_45], %57 {strides = array<i32>} : memref<2x10x8x384xf32, #tpu.memory_space<vmem>>, vector<1x4x1x128xf32>,
    %c0_46 = arith.constant 0 : index
    %c1_47 = arith.constant 1 : index
    %c0_48 = arith.constant 0 : index
    %c256 = arith.constant 256 : index
    %58 = vector.load %arg7[%c0_46, %c1_47, %c0_48, %c256] : memref<2x10x8x384xf32, #tpu.memory_space<vmem>>, vector<1x4x1x128xf32>
    %59 = vector.shape_cast %58 : vector<1x4x1x128xf32> to vector<4x128xf32>
    %60 = vector.shape_cast %51 : vector<4x128xf32> to vector<1x4x1x128xf32>
    tpu.vector_store %arg7[%c0_46, %c1_47, %c0_48, %c256], %60 {strides = array<i32>} : memref<2x10x8x384xf32, #tpu.memory_space<vmem>>, vector<1x4x1x128xf32>,
    %61 = vector.extract_strided_slice %35 {offsets = [0, 4, 0], sizes = [4, 1, 128], strides = [1, 1, 1]} : vector<4x16x128xf32> to vector<4x1x128xf32>
    %62 = vector.shape_cast %61 : vector<4x1x128xf32> to vector<4x128xf32>
    %63 = vector.extract_strided_slice %35 {offsets = [0, 5, 0], sizes = [4, 1, 128], strides = [1, 1, 1]} : vector<4x16x128xf32> to vector<4x1x128xf32>
    %64 = vector.shape_cast %63 : vector<4x1x128xf32> to vector<4x128xf32>
    %65 = arith.maximumf %62, %64 : vector<4x128xf32>
    %c0_49 = arith.constant 0 : index
    %c1_50 = arith.constant 1 : index
    %c3 = arith.constant 3 : index
    %c0_51 = arith.constant 0 : index
    %66 = vector.load %arg7[%c0_49, %c1_50, %c3, %c0_51] : memref<2x10x8x384xf32, #tpu.memory_space<vmem>>, vector<1x4x1x128xf32>
    %67 = vector.shape_cast %66 : vector<1x4x1x128xf32> to vector<4x128xf32>
    %68 = vector.shape_cast %65 : vector<4x128xf32> to vector<1x4x1x128xf32>
    tpu.vector_store %arg7[%c0_49, %c1_50, %c3, %c0_51], %68 {strides = array<i32>} : memref<2x10x8x384xf32, #tpu.memory_space<vmem>>, vector<1x4x1x128xf32>,
    %c0_52 = arith.constant 0 : index
    %c1_53 = arith.constant 1 : index
    %c2_54 = arith.constant 2 : index
    %c128_55 = arith.constant 128 : index
    %69 = vector.load %arg7[%c0_52, %c1_53, %c2_54, %c128_55] : memref<2x10x8x384xf32, #tpu.memory_space<vmem>>, vector<1x4x1x128xf32>
    %70 = vector.shape_cast %69 : vector<1x4x1x128xf32> to vector<4x128xf32>
    %71 = vector.shape_cast %65 : vector<4x128xf32> to vector<1x4x1x128xf32>
    tpu.vector_store %arg7[%c0_52, %c1_53, %c2_54, %c128_55], %71 {strides = array<i32>} : memref<2x10x8x384xf32, #tpu.memory_space<vmem>>, vector<1x4x1x128xf32>,
    %c0_56 = arith.constant 0 : index
    %c1_57 = arith.constant 1 : index
    %c1_58 = arith.constant 1 : index
    %c256_59 = arith.constant 256 : index
    %72 = vector.load %arg7[%c0_56, %c1_57, %c1_58, %c256_59] : memref<2x10x8x384xf32, #tpu.memory_space<vmem>>, vector<1x4x1x128xf32>
    %73 = vector.shape_cast %72 : vector<1x4x1x128xf32> to vector<4x128xf32>
    %74 = vector.shape_cast %65 : vector<4x128xf32> to vector<1x4x1x128xf32>
    tpu.vector_store %arg7[%c0_56, %c1_57, %c1_58, %c256_59], %74 {strides = array<i32>} : memref<2x10x8x384xf32, #tpu.memory_space<vmem>>, vector<1x4x1x128xf32>,
    %75 = vector.extract_strided_slice %35 {offsets = [0, 6, 0], sizes = [4, 1, 128], strides = [1, 1, 1]} : vector<4x16x128xf32> to vector<4x1x128xf32>
    %76 = vector.shape_cast %75 : vector<4x1x128xf32> to vector<4x128xf32>
    %77 = vector.extract_strided_slice %35 {offsets = [0, 7, 0], sizes = [4, 1, 128], strides = [1, 1, 1]} : vector<4x16x128xf32> to vector<4x1x128xf32>
    %78 = vector.shape_cast %77 : vector<4x1x128xf32> to vector<4x128xf32>
    %79 = arith.maximumf %76, %78 : vector<4x128xf32>
    %c0_60 = arith.constant 0 : index
    %c1_61 = arith.constant 1 : index
    %c4 = arith.constant 4 : index
    %c0_62 = arith.constant 0 : index
    %80 = vector.load %arg7[%c0_60, %c1_61, %c4, %c0_62] : memref<2x10x8x384xf32, #tpu.memory_space<vmem>>, vector<1x4x1x128xf32>
    %81 = vector.shape_cast %80 : vector<1x4x1x128xf32> to vector<4x128xf32>
    %82 = vector.shape_cast %79 : vector<4x128xf32> to vector<1x4x1x128xf32>
    tpu.vector_store %arg7[%c0_60, %c1_61, %c4, %c0_62], %82 {strides = array<i32>} : memref<2x10x8x384xf32, #tpu.memory_space<vmem>>, vector<1x4x1x128xf32>,
    %c0_63 = arith.constant 0 : index
    %c1_64 = arith.constant 1 : index
    %c3_65 = arith.constant 3 : index
    %c128_66 = arith.constant 128 : index
    %83 = vector.load %arg7[%c0_63, %c1_64, %c3_65, %c128_66] : memref<2x10x8x384xf32, #tpu.memory_space<vmem>>, vector<1x4x1x128xf32>
    %84 = vector.shape_cast %83 : vector<1x4x1x128xf32> to vector<4x128xf32>
    %85 = vector.shape_cast %79 : vector<4x128xf32> to vector<1x4x1x128xf32>
    tpu.vector_store %arg7[%c0_63, %c1_64, %c3_65, %c128_66], %85 {strides = array<i32>} : memref<2x10x8x384xf32, #tpu.memory_space<vmem>>, vector<1x4x1x128xf32>,
    %c0_67 = arith.constant 0 : index
    %c1_68 = arith.constant 1 : index
    %c2_69 = arith.constant 2 : index
    %c256_70 = arith.constant 256 : index
    %86 = vector.load %arg7[%c0_67, %c1_68, %c2_69, %c256_70] : memref<2x10x8x384xf32, #tpu.memory_space<vmem>>, vector<1x4x1x128xf32>
    %87 = vector.shape_cast %86 : vector<1x4x1x128xf32> to vector<4x128xf32>
    %88 = vector.shape_cast %79 : vector<4x128xf32> to vector<1x4x1x128xf32>
    tpu.vector_store %arg7[%c0_67, %c1_68, %c2_69, %c256_70], %88 {strides = array<i32>} : memref<2x10x8x384xf32, #tpu.memory_space<vmem>>, vector<1x4x1x128xf32>,
    %89 = vector.extract_strided_slice %35 {offsets = [0, 8, 0], sizes = [4, 1, 128], strides = [1, 1, 1]} : vector<4x16x128xf32> to vector<4x1x128xf32>
    %90 = vector.shape_cast %89 : vector<4x1x128xf32> to vector<4x128xf32>
    %91 = vector.extract_strided_slice %35 {offsets = [0, 9, 0], sizes = [4, 1, 128], strides = [1, 1, 1]} : vector<4x16x128xf32> to vector<4x1x128xf32>
    %92 = vector.shape_cast %91 : vector<4x1x128xf32> to vector<4x128xf32>
    %93 = arith.maximumf %90, %92 : vector<4x128xf32>
    %c0_71 = arith.constant 0 : index
    %c1_72 = arith.constant 1 : index
    %c5 = arith.constant 5 : index
    %c0_73 = arith.constant 0 : index
    %94 = vector.load %arg7[%c0_71, %c1_72, %c5, %c0_73] : memref<2x10x8x384xf32, #tpu.memory_space<vmem>>, vector<1x4x1x128xf32>
    %95 = vector.shape_cast %94 : vector<1x4x1x128xf32> to vector<4x128xf32>
    %96 = vector.shape_cast %93 : vector<4x128xf32> to vector<1x4x1x128xf32>
    tpu.vector_store %arg7[%c0_71, %c1_72, %c5, %c0_73], %96 {strides = array<i32>} : memref<2x10x8x384xf32, #tpu.memory_space<vmem>>, vector<1x4x1x128xf32>,
    %c0_74 = arith.constant 0 : index
    %c1_75 = arith.constant 1 : index
    %c4_76 = arith.constant 4 : index
    %c128_77 = arith.constant 128 : index
    %97 = vector.load %arg7[%c0_74, %c1_75, %c4_76, %c128_77] : memref<2x10x8x384xf32, #tpu.memory_space<vmem>>, vector<1x4x1x128xf32>
    %98 = vector.shape_cast %97 : vector<1x4x1x128xf32> to vector<4x128xf32>
    %99 = vector.shape_cast %93 : vector<4x128xf32> to vector<1x4x1x128xf32>
    tpu.vector_store %arg7[%c0_74, %c1_75, %c4_76, %c128_77], %99 {strides = array<i32>} : memref<2x10x8x384xf32, #tpu.memory_space<vmem>>, vector<1x4x1x128xf32>,
    %c0_78 = arith.constant 0 : index
    %c1_79 = arith.constant 1 : index
    %c3_80 = arith.constant 3 : index
    %c256_81 = arith.constant 256 : index
    %100 = vector.load %arg7[%c0_78, %c1_79, %c3_80, %c256_81] : memref<2x10x8x384xf32, #tpu.memory_space<vmem>>, vector<1x4x1x128xf32>
    %101 = vector.shape_cast %100 : vector<1x4x1x128xf32> to vector<4x128xf32>
    %102 = vector.shape_cast %93 : vector<4x128xf32> to vector<1x4x1x128xf32>
    tpu.vector_store %arg7[%c0_78, %c1_79, %c3_80, %c256_81], %102 {strides = array<i32>} : memref<2x10x8x384xf32, #tpu.memory_space<vmem>>, vector<1x4x1x128xf32>,
    %103 = vector.extract_strided_slice %35 {offsets = [0, 10, 0], sizes = [4, 1, 128], strides = [1, 1, 1]} : vector<4x16x128xf32> to vector<4x1x128xf32>
    %104 = vector.shape_cast %103 : vector<4x1x128xf32> to vector<4x128xf32>
    %105 = vector.extract_strided_slice %35 {offsets = [0, 11, 0], sizes = [4, 1, 128], strides = [1, 1, 1]} : vector<4x16x128xf32> to vector<4x1x128xf32>
    %106 = vector.shape_cast %105 : vector<4x1x128xf32> to vector<4x128xf32>
    %107 = arith.maximumf %104, %106 : vector<4x128xf32>
    %c0_82 = arith.constant 0 : index
    %c1_83 = arith.constant 1 : index
    %c6 = arith.constant 6 : index
    %c0_84 = arith.constant 0 : index
    %108 = vector.load %arg7[%c0_82, %c1_83, %c6, %c0_84] : memref<2x10x8x384xf32, #tpu.memory_space<vmem>>, vector<1x4x1x128xf32>
    %109 = vector.shape_cast %108 : vector<1x4x1x128xf32> to vector<4x128xf32>
    %110 = vector.shape_cast %107 : vector<4x128xf32> to vector<1x4x1x128xf32>
    tpu.vector_store %arg7[%c0_82, %c1_83, %c6, %c0_84], %110 {strides = array<i32>} : memref<2x10x8x384xf32, #tpu.memory_space<vmem>>, vector<1x4x1x128xf32>,
    %c0_85 = arith.constant 0 : index
    %c1_86 = arith.constant 1 : index
    %c5_87 = arith.constant 5 : index
    %c128_88 = arith.constant 128 : index
    %111 = vector.load %arg7[%c0_85, %c1_86, %c5_87, %c128_88] : memref<2x10x8x384xf32, #tpu.memory_space<vmem>>, vector<1x4x1x128xf32>
    %112 = vector.shape_cast %111 : vector<1x4x1x128xf32> to vector<4x128xf32>
    %113 = vector.shape_cast %107 : vector<4x128xf32> to vector<1x4x1x128xf32>
    tpu.vector_store %arg7[%c0_85, %c1_86, %c5_87, %c128_88], %113 {strides = array<i32>} : memref<2x10x8x384xf32, #tpu.memory_space<vmem>>, vector<1x4x1x128xf32>,
    %c0_89 = arith.constant 0 : index
    %c1_90 = arith.constant 1 : index
    %c4_91 = arith.constant 4 : index
    %c256_92 = arith.constant 256 : index
    %114 = vector.load %arg7[%c0_89, %c1_90, %c4_91, %c256_92] : memref<2x10x8x384xf32, #tpu.memory_space<vmem>>, vector<1x4x1x128xf32>
    %115 = vector.shape_cast %114 : vector<1x4x1x128xf32> to vector<4x128xf32>
    %116 = vector.shape_cast %107 : vector<4x128xf32> to vector<1x4x1x128xf32>
    tpu.vector_store %arg7[%c0_89, %c1_90, %c4_91, %c256_92], %116 {strides = array<i32>} : memref<2x10x8x384xf32, #tpu.memory_space<vmem>>, vector<1x4x1x128xf32>,
    %117 = vector.extract_strided_slice %35 {offsets = [0, 12, 0], sizes = [4, 1, 128], strides = [1, 1, 1]} : vector<4x16x128xf32> to vector<4x1x128xf32>
    %118 = vector.shape_cast %117 : vector<4x1x128xf32> to vector<4x128xf32>
    %119 = vector.extract_strided_slice %35 {offsets = [0, 13, 0], sizes = [4, 1, 128], strides = [1, 1, 1]} : vector<4x16x128xf32> to vector<4x1x128xf32>
    %120 = vector.shape_cast %119 : vector<4x1x128xf32> to vector<4x128xf32>
    %121 = arith.maximumf %118, %120 : vector<4x128xf32>
    %c0_93 = arith.constant 0 : index
    %c1_94 = arith.constant 1 : index
    %c7 = arith.constant 7 : index
    %c0_95 = arith.constant 0 : index
    %122 = vector.load %arg7[%c0_93, %c1_94, %c7, %c0_95] : memref<2x10x8x384xf32, #tpu.memory_space<vmem>>, vector<1x4x1x128xf32>
    %123 = vector.shape_cast %122 : vector<1x4x1x128xf32> to vector<4x128xf32>
    %124 = vector.shape_cast %121 : vector<4x128xf32> to vector<1x4x1x128xf32>
    tpu.vector_store %arg7[%c0_93, %c1_94, %c7, %c0_95], %124 {strides = array<i32>} : memref<2x10x8x384xf32, #tpu.memory_space<vmem>>, vector<1x4x1x128xf32>,
    %c0_96 = arith.constant 0 : index
    %c1_97 = arith.constant 1 : index
    %c6_98 = arith.constant 6 : index
    %c128_99 = arith.constant 128 : index
    %125 = vector.load %arg7[%c0_96, %c1_97, %c6_98, %c128_99] : memref<2x10x8x384xf32, #tpu.memory_space<vmem>>, vector<1x4x1x128xf32>
    %126 = vector.shape_cast %125 : vector<1x4x1x128xf32> to vector<4x128xf32>
    %127 = vector.shape_cast %121 : vector<4x128xf32> to vector<1x4x1x128xf32>
    tpu.vector_store %arg7[%c0_96, %c1_97, %c6_98, %c128_99], %127 {strides = array<i32>} : memref<2x10x8x384xf32, #tpu.memory_space<vmem>>, vector<1x4x1x128xf32>,
    %c0_100 = arith.constant 0 : index
    %c1_101 = arith.constant 1 : index
    %c5_102 = arith.constant 5 : index
    %c256_103 = arith.constant 256 : index
    %128 = vector.load %arg7[%c0_100, %c1_101, %c5_102, %c256_103] : memref<2x10x8x384xf32, #tpu.memory_space<vmem>>, vector<1x4x1x128xf32>
    %129 = vector.shape_cast %128 : vector<1x4x1x128xf32> to vector<4x128xf32>
    %130 = vector.shape_cast %121 : vector<4x128xf32> to vector<1x4x1x128xf32>
    tpu.vector_store %arg7[%c0_100, %c1_101, %c5_102, %c256_103], %130 {strides = array<i32>} : memref<2x10x8x384xf32, #tpu.memory_space<vmem>>, vector<1x4x1x128xf32>,
    %131 = vector.extract_strided_slice %35 {offsets = [0, 14, 0], sizes = [4, 1, 128], strides = [1, 1, 1]} : vector<4x16x128xf32> to vector<4x1x128xf32>
    %132 = vector.shape_cast %131 : vector<4x1x128xf32> to vector<4x128xf32>
    %133 = vector.extract_strided_slice %35 {offsets = [0, 15, 0], sizes = [4, 1, 128], strides = [1, 1, 1]} : vector<4x16x128xf32> to vector<4x1x128xf32>
    %134 = vector.shape_cast %133 : vector<4x1x128xf32> to vector<4x128xf32>
    %135 = arith.maximumf %132, %134 : vector<4x128xf32>
    %c0_104 = arith.constant 0 : index
    %c1_105 = arith.constant 1 : index
    %c7_106 = arith.constant 7 : index
    %c128_107 = arith.constant 128 : index
    %136 = vector.load %arg7[%c0_104, %c1_105, %c7_106, %c128_107] : memref<2x10x8x384xf32, #tpu.memory_space<vmem>>, vector<1x4x1x128xf32>
    %137 = vector.shape_cast %136 : vector<1x4x1x128xf32> to vector<4x128xf32>
    %138 = vector.shape_cast %135 : vector<4x128xf32> to vector<1x4x1x128xf32>
    tpu.vector_store %arg7[%c0_104, %c1_105, %c7_106, %c128_107], %138 {strides = array<i32>} : memref<2x10x8x384xf32, #tpu.memory_space<vmem>>, vector<1x4x1x128xf32>,
    %c0_108 = arith.constant 0 : index
    %c1_109 = arith.constant 1 : index
    %c6_110 = arith.constant 6 : index
    %c256_111 = arith.constant 256 : index
    %139 = vector.load %arg7[%c0_108, %c1_109, %c6_110, %c256_111] : memref<2x10x8x384xf32, #tpu.memory_space<vmem>>, vector<1x4x1x128xf32>
    %140 = vector.shape_cast %139 : vector<1x4x1x128xf32> to vector<4x128xf32>
    %141 = vector.shape_cast %135 : vector<4x128xf32> to vector<1x4x1x128xf32>
    tpu.vector_store %arg7[%c0_108, %c1_109, %c6_110, %c256_111], %141 {strides = array<i32>} : memref<2x10x8x384xf32, #tpu.memory_space<vmem>>, vector<1x4x1x128xf32>,
    %cst_112 = arith.constant 0.000000e+00 : f32
    %142 = vector.broadcast %cst_112 : f32 to vector<128x128xf32>
    %c0_113 = arith.constant 0 : index
    %c8 = arith.constant 8 : index
    %c0_114 = arith.constant 0 : index
    %c0_115 = arith.constant 0 : index
    %143 = vector.load %arg1[%c0_113, %c8, %c0_114, %c0_115] : memref<2x18x16x24xbf16, #tpu.memory_space<vmem>>, vector<1x8x16x24xbf16>
    %144 = vector.shape_cast %143 : vector<1x8x16x24xbf16> to vector<8x16x24xbf16>
    %145 = vector.shape_cast %144 : vector<8x16x24xbf16> to vector<128x24xbf16>
    %c0_116 = arith.constant 0 : index
    %c0_117 = arith.constant 0 : index
    %c0_118 = arith.constant 0 : index
    %146 = vector.load %arg2[%c0_116, %c0_117, %c0_118] : memref<3x24x128xbf16, #tpu.memory_space<vmem>>, vector<1x24x128xbf16>
    %147 = vector.shape_cast %146 : vector<1x24x128xbf16> to vector<24x128xbf16>
    %cst_119 = arith.constant dense<0.000000e+00> : vector<128x128xf32>
    %148 = tpu.matmul %145, %147, %cst_119 {dimension_numbers = #tpu.dot_dimension_numbers<[1], [0], [0], [1], [0, 0, 1, 1], [], []>} : vector<128x24xbf16>, vector<24x128xbf16>, vector<128x128xf32> -> vector<128x128xf32>
    %149 = arith.addf %142, %148 : vector<128x128xf32>
    %c0_120 = arith.constant 0 : index
    %c9 = arith.constant 9 : index
    %c0_121 = arith.constant 0 : index
    %c0_122 = arith.constant 0 : index
    %150 = vector.load %arg1[%c0_120, %c9, %c0_121, %c0_122] : memref<2x18x16x24xbf16, #tpu.memory_space<vmem>>, vector<1x8x16x24xbf16>
    %151 = vector.shape_cast %150 : vector<1x8x16x24xbf16> to vector<8x16x24xbf16>
    %152 = vector.shape_cast %151 : vector<8x16x24xbf16> to vector<128x24xbf16>
    %c1_123 = arith.constant 1 : index
    %c0_124 = arith.constant 0 : index
    %c0_125 = arith.constant 0 : index
    %153 = vector.load %arg2[%c1_123, %c0_124, %c0_125] : memref<3x24x128xbf16, #tpu.memory_space<vmem>>, vector<1x24x128xbf16>
    %154 = vector.shape_cast %153 : vector<1x24x128xbf16> to vector<24x128xbf16>
    %cst_126 = arith.constant dense<0.000000e+00> : vector<128x128xf32>
    %155 = tpu.matmul %152, %154, %cst_126 {dimension_numbers = #tpu.dot_dimension_numbers<[1], [0], [0], [1], [0, 0, 1, 1], [], []>} : vector<128x24xbf16>, vector<24x128xbf16>, vector<128x128xf32> -> vector<128x128xf32>
    %156 = arith.addf %149, %155 : vector<128x128xf32>
    %c0_127 = arith.constant 0 : index
    %c10 = arith.constant 10 : index
    %c0_128 = arith.constant 0 : index
    %c0_129 = arith.constant 0 : index
    %157 = vector.load %arg1[%c0_127, %c10, %c0_128, %c0_129] : memref<2x18x16x24xbf16, #tpu.memory_space<vmem>>, vector<1x8x16x24xbf16>
    %158 = vector.shape_cast %157 : vector<1x8x16x24xbf16> to vector<8x16x24xbf16>
    %159 = vector.shape_cast %158 : vector<8x16x24xbf16> to vector<128x24xbf16>
    %c2_130 = arith.constant 2 : index
    %c0_131 = arith.constant 0 : index
    %c0_132 = arith.constant 0 : index
    %160 = vector.load %arg2[%c2_130, %c0_131, %c0_132] : memref<3x24x128xbf16, #tpu.memory_space<vmem>>, vector<1x24x128xbf16>
    %161 = vector.shape_cast %160 : vector<1x24x128xbf16> to vector<24x128xbf16>
    %cst_133 = arith.constant dense<0.000000e+00> : vector<128x128xf32>
    %162 = tpu.matmul %159, %161, %cst_133 {dimension_numbers = #tpu.dot_dimension_numbers<[1], [0], [0], [1], [0, 0, 1, 1], [], []>} : vector<128x24xbf16>, vector<24x128xbf16>, vector<128x128xf32> -> vector<128x128xf32>
    %163 = arith.addf %156, %162 : vector<128x128xf32>
    %164 = vector.broadcast %2 : vector<1x128xf32> to vector<128x128xf32>
    %165 = arith.addf %163, %164 : vector<128x128xf32>
    %cst_134 = arith.constant 0.000000e+00 : f32
    %166 = vector.broadcast %cst_134 : f32 to vector<128x128xf32>
    %167 = arith.maximumf %165, %166 : vector<128x128xf32>
    %168 = vector.shape_cast %167 : vector<128x128xf32> to vector<4x2x16x128xf32>
    %169 = vector.extract_strided_slice %168 {offsets = [0, 0, 0, 0], sizes = [4, 1, 16, 128], strides = [1, 1, 1, 1]} : vector<4x2x16x128xf32> to vector<4x1x16x128xf32>
    %170 = vector.shape_cast %169 : vector<4x1x16x128xf32> to vector<4x16x128xf32>
    %171 = vector.extract_strided_slice %168 {offsets = [0, 1, 0, 0], sizes = [4, 1, 16, 128], strides = [1, 1, 1, 1]} : vector<4x2x16x128xf32> to vector<4x1x16x128xf32>
    %172 = vector.shape_cast %171 : vector<4x1x16x128xf32> to vector<4x16x128xf32>
    %173 = arith.maximumf %170, %172 : vector<4x16x128xf32>
    %174 = vector.extract_strided_slice %173 {offsets = [0, 0, 0], sizes = [4, 1, 128], strides = [1, 1, 1]} : vector<4x16x128xf32> to vector<4x1x128xf32>
    %175 = vector.shape_cast %174 : vector<4x1x128xf32> to vector<4x128xf32>
    %176 = vector.extract_strided_slice %173 {offsets = [0, 1, 0], sizes = [4, 1, 128], strides = [1, 1, 1]} : vector<4x16x128xf32> to vector<4x1x128xf32>
    %177 = vector.shape_cast %176 : vector<4x1x128xf32> to vector<4x128xf32>
    %178 = arith.maximumf %175, %177 : vector<4x128xf32>
    %c0_135 = arith.constant 0 : index
    %c5_136 = arith.constant 5 : index
    %c1_137 = arith.constant 1 : index
    %c0_138 = arith.constant 0 : index
    %179 = vector.load %arg7[%c0_135, %c5_136, %c1_137, %c0_138] : memref<2x10x8x384xf32, #tpu.memory_space<vmem>>, vector<1x4x1x128xf32>
    %180 = vector.shape_cast %179 : vector<1x4x1x128xf32> to vector<4x128xf32>
    %181 = vector.shape_cast %178 : vector<4x128xf32> to vector<1x4x1x128xf32>
    tpu.vector_store %arg7[%c0_135, %c5_136, %c1_137, %c0_138], %181 {strides = array<i32>} : memref<2x10x8x384xf32, #tpu.memory_space<vmem>>, vector<1x4x1x128xf32>,
    %c0_139 = arith.constant 0 : index
    %c5_140 = arith.constant 5 : index
    %c0_141 = arith.constant 0 : index
    %c128_142 = arith.constant 128 : index
    %182 = vector.load %arg7[%c0_139, %c5_140, %c0_141, %c128_142] : memref<2x10x8x384xf32, #tpu.memory_space<vmem>>, vector<1x4x1x128xf32>
    %183 = vector.shape_cast %182 : vector<1x4x1x128xf32> to vector<4x128xf32>
    %184 = vector.shape_cast %178 : vector<4x128xf32> to vector<1x4x1x128xf32>
    tpu.vector_store %arg7[%c0_139, %c5_140, %c0_141, %c128_142], %184 {strides = array<i32>} : memref<2x10x8x384xf32, #tpu.memory_space<vmem>>, vector<1x4x1x128xf32>,
    %185 = vector.extract_strided_slice %173 {offsets = [0, 2, 0], sizes = [4, 1, 128], strides = [1, 1, 1]} : vector<4x16x128xf32> to vector<4x1x128xf32>
    %186 = vector.shape_cast %185 : vector<4x1x128xf32> to vector<4x128xf32>
    %187 = vector.extract_strided_slice %173 {offsets = [0, 3, 0], sizes = [4, 1, 128], strides = [1, 1, 1]} : vector<4x16x128xf32> to vector<4x1x128xf32>
    %188 = vector.shape_cast %187 : vector<4x1x128xf32> to vector<4x128xf32>
    %189 = arith.maximumf %186, %188 : vector<4x128xf32>
    %c0_143 = arith.constant 0 : index
    %c5_144 = arith.constant 5 : index
    %c2_145 = arith.constant 2 : index
    %c0_146 = arith.constant 0 : index
    %190 = vector.load %arg7[%c0_143, %c5_144, %c2_145, %c0_146] : memref<2x10x8x384xf32, #tpu.memory_space<vmem>>, vector<1x4x1x128xf32>
    %191 = vector.shape_cast %190 : vector<1x4x1x128xf32> to vector<4x128xf32>
    %192 = vector.shape_cast %189 : vector<4x128xf32> to vector<1x4x1x128xf32>
    tpu.vector_store %arg7[%c0_143, %c5_144, %c2_145, %c0_146], %192 {strides = array<i32>} : memref<2x10x8x384xf32, #tpu.memory_space<vmem>>, vector<1x4x1x128xf32>,
    %c0_147 = arith.constant 0 : index
    %c5_148 = arith.constant 5 : index
    %c1_149 = arith.constant 1 : index
    %c128_150 = arith.constant 128 : index
    %193 = vector.load %arg7[%c0_147, %c5_148, %c1_149, %c128_150] : memref<2x10x8x384xf32, #tpu.memory_space<vmem>>, vector<1x4x1x128xf32>
    %194 = vector.shape_cast %193 : vector<1x4x1x128xf32> to vector<4x128xf32>
    %195 = vector.shape_cast %189 : vector<4x128xf32> to vector<1x4x1x128xf32>
    tpu.vector_store %arg7[%c0_147, %c5_148, %c1_149, %c128_150], %195 {strides = array<i32>} : memref<2x10x8x384xf32, #tpu.memory_space<vmem>>, vector<1x4x1x128xf32>,
    %c0_151 = arith.constant 0 : index
    %c5_152 = arith.constant 5 : index
    %c0_153 = arith.constant 0 : index
    %c256_154 = arith.constant 256 : index
    %196 = vector.load %arg7[%c0_151, %c5_152, %c0_153, %c256_154] : memref<2x10x8x384xf32, #tpu.memory_space<vmem>>, vector<1x4x1x128xf32>
    %197 = vector.shape_cast %196 : vector<1x4x1x128xf32> to vector<4x128xf32>
    %198 = vector.shape_cast %189 : vector<4x128xf32> to vector<1x4x1x128xf32>
    tpu.vector_store %arg7[%c0_151, %c5_152, %c0_153, %c256_154], %198 {strides = array<i32>} : memref<2x10x8x384xf32, #tpu.memory_space<vmem>>, vector<1x4x1x128xf32>,
    %199 = vector.extract_strided_slice %173 {offsets = [0, 4, 0], sizes = [4, 1, 128], strides = [1, 1, 1]} : vector<4x16x128xf32> to vector<4x1x128xf32>
    %200 = vector.shape_cast %199 : vector<4x1x128xf32> to vector<4x128xf32>
    %201 = vector.extract_strided_slice %173 {offsets = [0, 5, 0], sizes = [4, 1, 128], strides = [1, 1, 1]} : vector<4x16x128xf32> to vector<4x1x128xf32>
    %202 = vector.shape_cast %201 : vector<4x1x128xf32> to vector<4x128xf32>
    %203 = arith.maximumf %200, %202 : vector<4x128xf32>
    %c0_155 = arith.constant 0 : index
    %c5_156 = arith.constant 5 : index
    %c3_157 = arith.constant 3 : index
    %c0_158 = arith.constant 0 : index
    %204 = vector.load %arg7[%c0_155, %c5_156, %c3_157, %c0_158] : memref<2x10x8x384xf32, #tpu.memory_space<vmem>>, vector<1x4x1x128xf32>
    %205 = vector.shape_cast %204 : vector<1x4x1x128xf32> to vector<4x128xf32>
    %206 = vector.shape_cast %203 : vector<4x128xf32> to vector<1x4x1x128xf32>
    tpu.vector_store %arg7[%c0_155, %c5_156, %c3_157, %c0_158], %206 {strides = array<i32>} : memref<2x10x8x384xf32, #tpu.memory_space<vmem>>, vector<1x4x1x128xf32>,
    %c0_159 = arith.constant 0 : index
    %c5_160 = arith.constant 5 : index
    %c2_161 = arith.constant 2 : index
    %c128_162 = arith.constant 128 : index
    %207 = vector.load %arg7[%c0_159, %c5_160, %c2_161, %c128_162] : memref<2x10x8x384xf32, #tpu.memory_space<vmem>>, vector<1x4x1x128xf32>
    %208 = vector.shape_cast %207 : vector<1x4x1x128xf32> to vector<4x128xf32>
    %209 = vector.shape_cast %203 : vector<4x128xf32> to vector<1x4x1x128xf32>
    tpu.vector_store %arg7[%c0_159, %c5_160, %c2_161, %c128_162], %209 {strides = array<i32>} : memref<2x10x8x384xf32, #tpu.memory_space<vmem>>, vector<1x4x1x128xf32>,
    %c0_163 = arith.constant 0 : index
    %c5_164 = arith.constant 5 : index
    %c1_165 = arith.constant 1 : index
    %c256_166 = arith.constant 256 : index
    %210 = vector.load %arg7[%c0_163, %c5_164, %c1_165, %c256_166] : memref<2x10x8x384xf32, #tpu.memory_space<vmem>>, vector<1x4x1x128xf32>
    %211 = vector.shape_cast %210 : vector<1x4x1x128xf32> to vector<4x128xf32>
    %212 = vector.shape_cast %203 : vector<4x128xf32> to vector<1x4x1x128xf32>
    tpu.vector_store %arg7[%c0_163, %c5_164, %c1_165, %c256_166], %212 {strides = array<i32>} : memref<2x10x8x384xf32, #tpu.memory_space<vmem>>, vector<1x4x1x128xf32>,
    %213 = vector.extract_strided_slice %173 {offsets = [0, 6, 0], sizes = [4, 1, 128], strides = [1, 1, 1]} : vector<4x16x128xf32> to vector<4x1x128xf32>
    %214 = vector.shape_cast %213 : vector<4x1x128xf32> to vector<4x128xf32>
    %215 = vector.extract_strided_slice %173 {offsets = [0, 7, 0], sizes = [4, 1, 128], strides = [1, 1, 1]} : vector<4x16x128xf32> to vector<4x1x128xf32>
    %216 = vector.shape_cast %215 : vector<4x1x128xf32> to vector<4x128xf32>
    %217 = arith.maximumf %214, %216 : vector<4x128xf32>
    %c0_167 = arith.constant 0 : index
    %c5_168 = arith.constant 5 : index
    %c4_169 = arith.constant 4 : index
    %c0_170 = arith.constant 0 : index
    %218 = vector.load %arg7[%c0_167, %c5_168, %c4_169, %c0_170] : memref<2x10x8x384xf32, #tpu.memory_space<vmem>>, vector<1x4x1x128xf32>
    %219 = vector.shape_cast %218 : vector<1x4x1x128xf32> to vector<4x128xf32>
    %220 = vector.shape_cast %217 : vector<4x128xf32> to vector<1x4x1x128xf32>
    tpu.vector_store %arg7[%c0_167, %c5_168, %c4_169, %c0_170], %220 {strides = array<i32>} : memref<2x10x8x384xf32, #tpu.memory_space<vmem>>, vector<1x4x1x128xf32>,
    %c0_171 = arith.constant 0 : index
    %c5_172 = arith.constant 5 : index
    %c3_173 = arith.constant 3 : index
    %c128_174 = arith.constant 128 : index
    %221 = vector.load %arg7[%c0_171, %c5_172, %c3_173, %c128_174] : memref<2x10x8x384xf32, #tpu.memory_space<vmem>>, vector<1x4x1x128xf32>
    %222 = vector.shape_cast %221 : vector<1x4x1x128xf32> to vector<4x128xf32>
    %223 = vector.shape_cast %217 : vector<4x128xf32> to vector<1x4x1x128xf32>
    tpu.vector_store %arg7[%c0_171, %c5_172, %c3_173, %c128_174], %223 {strides = array<i32>} : memref<2x10x8x384xf32, #tpu.memory_space<vmem>>, vector<1x4x1x128xf32>,
    %c0_175 = arith.constant 0 : index
    %c5_176 = arith.constant 5 : index
    %c2_177 = arith.constant 2 : index
    %c256_178 = arith.constant 256 : index
    %224 = vector.load %arg7[%c0_175, %c5_176, %c2_177, %c256_178] : memref<2x10x8x384xf32, #tpu.memory_space<vmem>>, vector<1x4x1x128xf32>
    %225 = vector.shape_cast %224 : vector<1x4x1x128xf32> to vector<4x128xf32>
    %226 = vector.shape_cast %217 : vector<4x128xf32> to vector<1x4x1x128xf32>
    tpu.vector_store %arg7[%c0_175, %c5_176, %c2_177, %c256_178], %226 {strides = array<i32>} : memref<2x10x8x384xf32, #tpu.memory_space<vmem>>, vector<1x4x1x128xf32>,
    %227 = vector.extract_strided_slice %173 {offsets = [0, 8, 0], sizes = [4, 1, 128], strides = [1, 1, 1]} : vector<4x16x128xf32> to vector<4x1x128xf32>
    %228 = vector.shape_cast %227 : vector<4x1x128xf32> to vector<4x128xf32>
    %229 = vector.extract_strided_slice %173 {offsets = [0, 9, 0], sizes = [4, 1, 128], strides = [1, 1, 1]} : vector<4x16x128xf32> to vector<4x1x128xf32>
    %230 = vector.shape_cast %229 : vector<4x1x128xf32> to vector<4x128xf32>
    %231 = arith.maximumf %228, %230 : vector<4x128xf32>
    %c0_179 = arith.constant 0 : index
    %c5_180 = arith.constant 5 : index
    %c5_181 = arith.constant 5 : index
    %c0_182 = arith.constant 0 : index
    %232 = vector.load %arg7[%c0_179, %c5_180, %c5_181, %c0_182] : memref<2x10x8x384xf32, #tpu.memory_space<vmem>>, vector<1x4x1x128xf32>
    %233 = vector.shape_cast %232 : vector<1x4x1x128xf32> to vector<4x128xf32>
    %234 = vector.shape_cast %231 : vector<4x128xf32> to vector<1x4x1x128xf32>
    tpu.vector_store %arg7[%c0_179, %c5_180, %c5_181, %c0_182], %234 {strides = array<i32>} : memref<2x10x8x384xf32, #tpu.memory_space<vmem>>, vector<1x4x1x128xf32>,
    %c0_183 = arith.constant 0 : index
    %c5_184 = arith.constant 5 : index
    %c4_185 = arith.constant 4 : index
    %c128_186 = arith.constant 128 : index
    %235 = vector.load %arg7[%c0_183, %c5_184, %c4_185, %c128_186] : memref<2x10x8x384xf32, #tpu.memory_space<vmem>>, vector<1x4x1x128xf32>
    %236 = vector.shape_cast %235 : vector<1x4x1x128xf32> to vector<4x128xf32>
    %237 = vector.shape_cast %231 : vector<4x128xf32> to vector<1x4x1x128xf32>
    tpu.vector_store %arg7[%c0_183, %c5_184, %c4_185, %c128_186], %237 {strides = array<i32>} : memref<2x10x8x384xf32, #tpu.memory_space<vmem>>, vector<1x4x1x128xf32>,
    %c0_187 = arith.constant 0 : index
    %c5_188 = arith.constant 5 : index
    %c3_189 = arith.constant 3 : index
    %c256_190 = arith.constant 256 : index
    %238 = vector.load %arg7[%c0_187, %c5_188, %c3_189, %c256_190] : memref<2x10x8x384xf32, #tpu.memory_space<vmem>>, vector<1x4x1x128xf32>
    %239 = vector.shape_cast %238 : vector<1x4x1x128xf32> to vector<4x128xf32>
    %240 = vector.shape_cast %231 : vector<4x128xf32> to vector<1x4x1x128xf32>
    tpu.vector_store %arg7[%c0_187, %c5_188, %c3_189, %c256_190], %240 {strides = array<i32>} : memref<2x10x8x384xf32, #tpu.memory_space<vmem>>, vector<1x4x1x128xf32>,
    %241 = vector.extract_strided_slice %173 {offsets = [0, 10, 0], sizes = [4, 1, 128], strides = [1, 1, 1]} : vector<4x16x128xf32> to vector<4x1x128xf32>
    %242 = vector.shape_cast %241 : vector<4x1x128xf32> to vector<4x128xf32>
    %243 = vector.extract_strided_slice %173 {offsets = [0, 11, 0], sizes = [4, 1, 128], strides = [1, 1, 1]} : vector<4x16x128xf32> to vector<4x1x128xf32>
    %244 = vector.shape_cast %243 : vector<4x1x128xf32> to vector<4x128xf32>
    %245 = arith.maximumf %242, %244 : vector<4x128xf32>
    %c0_191 = arith.constant 0 : index
    %c5_192 = arith.constant 5 : index
    %c6_193 = arith.constant 6 : index
    %c0_194 = arith.constant 0 : index
    %246 = vector.load %arg7[%c0_191, %c5_192, %c6_193, %c0_194] : memref<2x10x8x384xf32, #tpu.memory_space<vmem>>, vector<1x4x1x128xf32>
    %247 = vector.shape_cast %246 : vector<1x4x1x128xf32> to vector<4x128xf32>
    %248 = vector.shape_cast %245 : vector<4x128xf32> to vector<1x4x1x128xf32>
    tpu.vector_store %arg7[%c0_191, %c5_192, %c6_193, %c0_194], %248 {strides = array<i32>} : memref<2x10x8x384xf32, #tpu.memory_space<vmem>>, vector<1x4x1x128xf32>,
    %c0_195 = arith.constant 0 : index
    %c5_196 = arith.constant 5 : index
    %c5_197 = arith.constant 5 : index
    %c128_198 = arith.constant 128 : index
    %249 = vector.load %arg7[%c0_195, %c5_196, %c5_197, %c128_198] : memref<2x10x8x384xf32, #tpu.memory_space<vmem>>, vector<1x4x1x128xf32>
    %250 = vector.shape_cast %249 : vector<1x4x1x128xf32> to vector<4x128xf32>
    %251 = vector.shape_cast %245 : vector<4x128xf32> to vector<1x4x1x128xf32>
    tpu.vector_store %arg7[%c0_195, %c5_196, %c5_197, %c128_198], %251 {strides = array<i32>} : memref<2x10x8x384xf32, #tpu.memory_space<vmem>>, vector<1x4x1x128xf32>,
    %c0_199 = arith.constant 0 : index
    %c5_200 = arith.constant 5 : index
    %c4_201 = arith.constant 4 : index
    %c256_202 = arith.constant 256 : index
    %252 = vector.load %arg7[%c0_199, %c5_200, %c4_201, %c256_202] : memref<2x10x8x384xf32, #tpu.memory_space<vmem>>, vector<1x4x1x128xf32>
    %253 = vector.shape_cast %252 : vector<1x4x1x128xf32> to vector<4x128xf32>
    %254 = vector.shape_cast %245 : vector<4x128xf32> to vector<1x4x1x128xf32>
    tpu.vector_store %arg7[%c0_199, %c5_200, %c4_201, %c256_202], %254 {strides = array<i32>} : memref<2x10x8x384xf32, #tpu.memory_space<vmem>>, vector<1x4x1x128xf32>,
    %255 = vector.extract_strided_slice %173 {offsets = [0, 12, 0], sizes = [4, 1, 128], strides = [1, 1, 1]} : vector<4x16x128xf32> to vector<4x1x128xf32>
    %256 = vector.shape_cast %255 : vector<4x1x128xf32> to vector<4x128xf32>
    %257 = vector.extract_strided_slice %173 {offsets = [0, 13, 0], sizes = [4, 1, 128], strides = [1, 1, 1]} : vector<4x16x128xf32> to vector<4x1x128xf32>
    %258 = vector.shape_cast %257 : vector<4x1x128xf32> to vector<4x128xf32>
    %259 = arith.maximumf %256, %258 : vector<4x128xf32>
    %c0_203 = arith.constant 0 : index
    %c5_204 = arith.constant 5 : index
    %c7_205 = arith.constant 7 : index
    %c0_206 = arith.constant 0 : index
    %260 = vector.load %arg7[%c0_203, %c5_204, %c7_205, %c0_206] : memref<2x10x8x384xf32, #tpu.memory_space<vmem>>, vector<1x4x1x128xf32>
    %261 = vector.shape_cast %260 : vector<1x4x1x128xf32> to vector<4x128xf32>
    %262 = vector.shape_cast %259 : vector<4x128xf32> to vector<1x4x1x128xf32>
    tpu.vector_store %arg7[%c0_203, %c5_204, %c7_205, %c0_206], %262 {strides = array<i32>} : memref<2x10x8x384xf32, #tpu.memory_space<vmem>>, vector<1x4x1x128xf32>,
    %c0_207 = arith.constant 0 : index
    %c5_208 = arith.constant 5 : index
    %c6_209 = arith.constant 6 : index
    %c128_210 = arith.constant 128 : index
    %263 = vector.load %arg7[%c0_207, %c5_208, %c6_209, %c128_210] : memref<2x10x8x384xf32, #tpu.memory_space<vmem>>, vector<1x4x1x128xf32>
    %264 = vector.shape_cast %263 : vector<1x4x1x128xf32> to vector<4x128xf32>
    %265 = vector.shape_cast %259 : vector<4x128xf32> to vector<1x4x1x128xf32>
    tpu.vector_store %arg7[%c0_207, %c5_208, %c6_209, %c128_210], %265 {strides = array<i32>} : memref<2x10x8x384xf32, #tpu.memory_space<vmem>>, vector<1x4x1x128xf32>,
    %c0_211 = arith.constant 0 : index
    %c5_212 = arith.constant 5 : index
    %c5_213 = arith.constant 5 : index
    %c256_214 = arith.constant 256 : index
    %266 = vector.load %arg7[%c0_211, %c5_212, %c5_213, %c256_214] : memref<2x10x8x384xf32, #tpu.memory_space<vmem>>, vector<1x4x1x128xf32>
    %267 = vector.shape_cast %266 : vector<1x4x1x128xf32> to vector<4x128xf32>
    %268 = vector.shape_cast %259 : vector<4x128xf32> to vector<1x4x1x128xf32>
    tpu.vector_store %arg7[%c0_211, %c5_212, %c5_213, %c256_214], %268 {strides = array<i32>} : memref<2x10x8x384xf32, #tpu.memory_space<vmem>>, vector<1x4x1x128xf32>,
    %269 = vector.extract_strided_slice %173 {offsets = [0, 14, 0], sizes = [4, 1, 128], strides = [1, 1, 1]} : vector<4x16x128xf32> to vector<4x1x128xf32>
    %270 = vector.shape_cast %269 : vector<4x1x128xf32> to vector<4x128xf32>
    %271 = vector.extract_strided_slice %173 {offsets = [0, 15, 0], sizes = [4, 1, 128], strides = [1, 1, 1]} : vector<4x16x128xf32> to vector<4x1x128xf32>
    %272 = vector.shape_cast %271 : vector<4x1x128xf32> to vector<4x128xf32>
    %273 = arith.maximumf %270, %272 : vector<4x128xf32>
    %c0_215 = arith.constant 0 : index
    %c5_216 = arith.constant 5 : index
    %c7_217 = arith.constant 7 : index
    %c128_218 = arith.constant 128 : index
    %274 = vector.load %arg7[%c0_215, %c5_216, %c7_217, %c128_218] : memref<2x10x8x384xf32, #tpu.memory_space<vmem>>, vector<1x4x1x128xf32>
    %275 = vector.shape_cast %274 : vector<1x4x1x128xf32> to vector<4x128xf32>
    %276 = vector.shape_cast %273 : vector<4x128xf32> to vector<1x4x1x128xf32>
    tpu.vector_store %arg7[%c0_215, %c5_216, %c7_217, %c128_218], %276 {strides = array<i32>} : memref<2x10x8x384xf32, #tpu.memory_space<vmem>>, vector<1x4x1x128xf32>,
    %c0_219 = arith.constant 0 : index
    %c5_220 = arith.constant 5 : index
    %c6_221 = arith.constant 6 : index
    %c256_222 = arith.constant 256 : index
    %277 = vector.load %arg7[%c0_219, %c5_220, %c6_221, %c256_222] : memref<2x10x8x384xf32, #tpu.memory_space<vmem>>, vector<1x4x1x128xf32>
    %278 = vector.shape_cast %277 : vector<1x4x1x128xf32> to vector<4x128xf32>
    %279 = vector.shape_cast %273 : vector<4x128xf32> to vector<1x4x1x128xf32>
    tpu.vector_store %arg7[%c0_219, %c5_220, %c6_221, %c256_222], %279 {strides = array<i32>} : memref<2x10x8x384xf32, #tpu.memory_space<vmem>>, vector<1x4x1x128xf32>,
    %cst_223 = arith.constant 0.000000e+00 : f32
    %280 = vector.broadcast %cst_223 : f32 to vector<128x128xf32>
    %c1_224 = arith.constant 1 : index
    %c0_225 = arith.constant 0 : index
    %c0_226 = arith.constant 0 : index
    %c0_227 = arith.constant 0 : index
    %281 = vector.load %arg1[%c1_224, %c0_225, %c0_226, %c0_227] : memref<2x18x16x24xbf16, #tpu.memory_space<vmem>>, vector<1x8x16x24xbf16>
    %282 = vector.shape_cast %281 : vector<1x8x16x24xbf16> to vector<8x16x24xbf16>
    %283 = vector.shape_cast %282 : vector<8x16x24xbf16> to vector<128x24xbf16>
    %c0_228 = arith.constant 0 : index
    %c0_229 = arith.constant 0 : index
    %c0_230 = arith.constant 0 : index
    %284 = vector.load %arg2[%c0_228, %c0_229, %c0_230] : memref<3x24x128xbf16, #tpu.memory_space<vmem>>, vector<1x24x128xbf16>
    %285 = vector.shape_cast %284 : vector<1x24x128xbf16> to vector<24x128xbf16>
    %cst_231 = arith.constant dense<0.000000e+00> : vector<128x128xf32>
    %286 = tpu.matmul %283, %285, %cst_231 {dimension_numbers = #tpu.dot_dimension_numbers<[1], [0], [0], [1], [0, 0, 1, 1], [], []>} : vector<128x24xbf16>, vector<24x128xbf16>, vector<128x128xf32> -> vector<128x128xf32>
    %287 = arith.addf %280, %286 : vector<128x128xf32>
    %c1_232 = arith.constant 1 : index
    %c1_233 = arith.constant 1 : index
    %c0_234 = arith.constant 0 : index
    %c0_235 = arith.constant 0 : index
    %288 = vector.load %arg1[%c1_232, %c1_233, %c0_234, %c0_235] : memref<2x18x16x24xbf16, #tpu.memory_space<vmem>>, vector<1x8x16x24xbf16>
    %289 = vector.shape_cast %288 : vector<1x8x16x24xbf16> to vector<8x16x24xbf16>
    %290 = vector.shape_cast %289 : vector<8x16x24xbf16> to vector<128x24xbf16>
    %c1_236 = arith.constant 1 : index
    %c0_237 = arith.constant 0 : index
    %c0_238 = arith.constant 0 : index
    %291 = vector.load %arg2[%c1_236, %c0_237, %c0_238] : memref<3x24x128xbf16, #tpu.memory_space<vmem>>, vector<1x24x128xbf16>
    %292 = vector.shape_cast %291 : vector<1x24x128xbf16> to vector<24x128xbf16>
    %cst_239 = arith.constant dense<0.000000e+00> : vector<128x128xf32>
    %293 = tpu.matmul %290, %292, %cst_239 {dimension_numbers = #tpu.dot_dimension_numbers<[1], [0], [0], [1], [0, 0, 1, 1], [], []>} : vector<128x24xbf16>, vector<24x128xbf16>, vector<128x128xf32> -> vector<128x128xf32>
    %294 = arith.addf %287, %293 : vector<128x128xf32>
    %c1_240 = arith.constant 1 : index
    %c2_241 = arith.constant 2 : index
    %c0_242 = arith.constant 0 : index
    %c0_243 = arith.constant 0 : index
    %295 = vector.load %arg1[%c1_240, %c2_241, %c0_242, %c0_243] : memref<2x18x16x24xbf16, #tpu.memory_space<vmem>>, vector<1x8x16x24xbf16>
    %296 = vector.shape_cast %295 : vector<1x8x16x24xbf16> to vector<8x16x24xbf16>
    %297 = vector.shape_cast %296 : vector<8x16x24xbf16> to vector<128x24xbf16>
    %c2_244 = arith.constant 2 : index
    %c0_245 = arith.constant 0 : index
    %c0_246 = arith.constant 0 : index
    %298 = vector.load %arg2[%c2_244, %c0_245, %c0_246] : memref<3x24x128xbf16, #tpu.memory_space<vmem>>, vector<1x24x128xbf16>
    %299 = vector.shape_cast %298 : vector<1x24x128xbf16> to vector<24x128xbf16>
    %cst_247 = arith.constant dense<0.000000e+00> : vector<128x128xf32>
    %300 = tpu.matmul %297, %299, %cst_247 {dimension_numbers = #tpu.dot_dimension_numbers<[1], [0], [0], [1], [0, 0, 1, 1], [], []>} : vector<128x24xbf16>, vector<24x128xbf16>, vector<128x128xf32> -> vector<128x128xf32>
    %301 = arith.addf %294, %300 : vector<128x128xf32>
    %302 = vector.broadcast %2 : vector<1x128xf32> to vector<128x128xf32>
    %303 = arith.addf %301, %302 : vector<128x128xf32>
    %cst_248 = arith.constant 0.000000e+00 : f32
    %304 = vector.broadcast %cst_248 : f32 to vector<128x128xf32>
    %305 = arith.maximumf %303, %304 : vector<128x128xf32>
    %306 = vector.shape_cast %305 : vector<128x128xf32> to vector<4x2x16x128xf32>
    %307 = vector.extract_strided_slice %306 {offsets = [0, 0, 0, 0], sizes = [4, 1, 16, 128], strides = [1, 1, 1, 1]} : vector<4x2x16x128xf32> to vector<4x1x16x128xf32>
    %308 = vector.shape_cast %307 : vector<4x1x16x128xf32> to vector<4x16x128xf32>
    %309 = vector.extract_strided_slice %306 {offsets = [0, 1, 0, 0], sizes = [4, 1, 16, 128], strides = [1, 1, 1, 1]} : vector<4x2x16x128xf32> to vector<4x1x16x128xf32>
    %310 = vector.shape_cast %309 : vector<4x1x16x128xf32> to vector<4x16x128xf32>
    %311 = arith.maximumf %308, %310 : vector<4x16x128xf32>
    %312 = vector.extract_strided_slice %311 {offsets = [0, 0, 0], sizes = [4, 1, 128], strides = [1, 1, 1]} : vector<4x16x128xf32> to vector<4x1x128xf32>
    %313 = vector.shape_cast %312 : vector<4x1x128xf32> to vector<4x128xf32>
    %314 = vector.extract_strided_slice %311 {offsets = [0, 1, 0], sizes = [4, 1, 128], strides = [1, 1, 1]} : vector<4x16x128xf32> to vector<4x1x128xf32>
    %315 = vector.shape_cast %314 : vector<4x1x128xf32> to vector<4x128xf32>
    %316 = arith.maximumf %313, %315 : vector<4x128xf32>
    %c1_249 = arith.constant 1 : index
    %c1_250 = arith.constant 1 : index
    %c1_251 = arith.constant 1 : index
    %c0_252 = arith.constant 0 : index
    %317 = vector.load %arg7[%c1_249, %c1_250, %c1_251, %c0_252] : memref<2x10x8x384xf32, #tpu.memory_space<vmem>>, vector<1x4x1x128xf32>
    %318 = vector.shape_cast %317 : vector<1x4x1x128xf32> to vector<4x128xf32>
    %319 = vector.shape_cast %316 : vector<4x128xf32> to vector<1x4x1x128xf32>
    tpu.vector_store %arg7[%c1_249, %c1_250, %c1_251, %c0_252], %319 {strides = array<i32>} : memref<2x10x8x384xf32, #tpu.memory_space<vmem>>, vector<1x4x1x128xf32>,
    %c1_253 = arith.constant 1 : index
    %c1_254 = arith.constant 1 : index
    %c0_255 = arith.constant 0 : index
    %c128_256 = arith.constant 128 : index
    %320 = vector.load %arg7[%c1_253, %c1_254, %c0_255, %c128_256] : memref<2x10x8x384xf32, #tpu.memory_space<vmem>>, vector<1x4x1x128xf32>
    %321 = vector.shape_cast %320 : vector<1x4x1x128xf32> to vector<4x128xf32>
    %322 = vector.shape_cast %316 : vector<4x128xf32> to vector<1x4x1x128xf32>
    tpu.vector_store %arg7[%c1_253, %c1_254, %c0_255, %c128_256], %322 {strides = array<i32>} : memref<2x10x8x384xf32, #tpu.memory_space<vmem>>, vector<1x4x1x128xf32>,
    %323 = vector.extract_strided_slice %311 {offsets = [0, 2, 0], sizes = [4, 1, 128], strides = [1, 1, 1]} : vector<4x16x128xf32> to vector<4x1x128xf32>
    %324 = vector.shape_cast %323 : vector<4x1x128xf32> to vector<4x128xf32>
    %325 = vector.extract_strided_slice %311 {offsets = [0, 3, 0], sizes = [4, 1, 128], strides = [1, 1, 1]} : vector<4x16x128xf32> to vector<4x1x128xf32>
    %326 = vector.shape_cast %325 : vector<4x1x128xf32> to vector<4x128xf32>
    %327 = arith.maximumf %324, %326 : vector<4x128xf32>
    %c1_257 = arith.constant 1 : index
    %c1_258 = arith.constant 1 : index
    %c2_259 = arith.constant 2 : index
    %c0_260 = arith.constant 0 : index
    %328 = vector.load %arg7[%c1_257, %c1_258, %c2_259, %c0_260] : memref<2x10x8x384xf32, #tpu.memory_space<vmem>>, vector<1x4x1x128xf32>
    %329 = vector.shape_cast %328 : vector<1x4x1x128xf32> to vector<4x128xf32>
    %330 = vector.shape_cast %327 : vector<4x128xf32> to vector<1x4x1x128xf32>
    tpu.vector_store %arg7[%c1_257, %c1_258, %c2_259, %c0_260], %330 {strides = array<i32>} : memref<2x10x8x384xf32, #tpu.memory_space<vmem>>, vector<1x4x1x128xf32>,
    %c1_261 = arith.constant 1 : index
    %c1_262 = arith.constant 1 : index
    %c1_263 = arith.constant 1 : index
    %c128_264 = arith.constant 128 : index
    %331 = vector.load %arg7[%c1_261, %c1_262, %c1_263, %c128_264] : memref<2x10x8x384xf32, #tpu.memory_space<vmem>>, vector<1x4x1x128xf32>
    %332 = vector.shape_cast %331 : vector<1x4x1x128xf32> to vector<4x128xf32>
    %333 = vector.shape_cast %327 : vector<4x128xf32> to vector<1x4x1x128xf32>
    tpu.vector_store %arg7[%c1_261, %c1_262, %c1_263, %c128_264], %333 {strides = array<i32>} : memref<2x10x8x384xf32, #tpu.memory_space<vmem>>, vector<1x4x1x128xf32>,
    %c1_265 = arith.constant 1 : index
    %c1_266 = arith.constant 1 : index
    %c0_267 = arith.constant 0 : index
    %c256_268 = arith.constant 256 : index
    %334 = vector.load %arg7[%c1_265, %c1_266, %c0_267, %c256_268] : memref<2x10x8x384xf32, #tpu.memory_space<vmem>>, vector<1x4x1x128xf32>
    %335 = vector.shape_cast %334 : vector<1x4x1x128xf32> to vector<4x128xf32>
    %336 = vector.shape_cast %327 : vector<4x128xf32> to vector<1x4x1x128xf32>
    tpu.vector_store %arg7[%c1_265, %c1_266, %c0_267, %c256_268], %336 {strides = array<i32>} : memref<2x10x8x384xf32, #tpu.memory_space<vmem>>, vector<1x4x1x128xf32>,
    %337 = vector.extract_strided_slice %311 {offsets = [0, 4, 0], sizes = [4, 1, 128], strides = [1, 1, 1]} : vector<4x16x128xf32> to vector<4x1x128xf32>
    %338 = vector.shape_cast %337 : vector<4x1x128xf32> to vector<4x128xf32>
    %339 = vector.extract_strided_slice %311 {offsets = [0, 5, 0], sizes = [4, 1, 128], strides = [1, 1, 1]} : vector<4x16x128xf32> to vector<4x1x128xf32>
    %340 = vector.shape_cast %339 : vector<4x1x128xf32> to vector<4x128xf32>
    %341 = arith.maximumf %338, %340 : vector<4x128xf32>
    %c1_269 = arith.constant 1 : index
    %c1_270 = arith.constant 1 : index
    %c3_271 = arith.constant 3 : index
    %c0_272 = arith.constant 0 : index
    %342 = vector.load %arg7[%c1_269, %c1_270, %c3_271, %c0_272] : memref<2x10x8x384xf32, #tpu.memory_space<vmem>>, vector<1x4x1x128xf32>
    %343 = vector.shape_cast %342 : vector<1x4x1x128xf32> to vector<4x128xf32>
    %344 = vector.shape_cast %341 : vector<4x128xf32> to vector<1x4x1x128xf32>
    tpu.vector_store %arg7[%c1_269, %c1_270, %c3_271, %c0_272], %344 {strides = array<i32>} : memref<2x10x8x384xf32, #tpu.memory_space<vmem>>, vector<1x4x1x128xf32>,
    %c1_273 = arith.constant 1 : index
    %c1_274 = arith.constant 1 : index
    %c2_275 = arith.constant 2 : index
    %c128_276 = arith.constant 128 : index
    %345 = vector.load %arg7[%c1_273, %c1_274, %c2_275, %c128_276] : memref<2x10x8x384xf32, #tpu.memory_space<vmem>>, vector<1x4x1x128xf32>
    %346 = vector.shape_cast %345 : vector<1x4x1x128xf32> to vector<4x128xf32>
    %347 = vector.shape_cast %341 : vector<4x128xf32> to vector<1x4x1x128xf32>
    tpu.vector_store %arg7[%c1_273, %c1_274, %c2_275, %c128_276], %347 {strides = array<i32>} : memref<2x10x8x384xf32, #tpu.memory_space<vmem>>, vector<1x4x1x128xf32>,
    %c1_277 = arith.constant 1 : index
    %c1_278 = arith.constant 1 : index
    %c1_279 = arith.constant 1 : index
    %c256_280 = arith.constant 256 : index
    %348 = vector.load %arg7[%c1_277, %c1_278, %c1_279, %c256_280] : memref<2x10x8x384xf32, #tpu.memory_space<vmem>>, vector<1x4x1x128xf32>
    %349 = vector.shape_cast %348 : vector<1x4x1x128xf32> to vector<4x128xf32>
    %350 = vector.shape_cast %341 : vector<4x128xf32> to vector<1x4x1x128xf32>
    tpu.vector_store %arg7[%c1_277, %c1_278, %c1_279, %c256_280], %350 {strides = array<i32>} : memref<2x10x8x384xf32, #tpu.memory_space<vmem>>, vector<1x4x1x128xf32>,
    %351 = vector.extract_strided_slice %311 {offsets = [0, 6, 0], sizes = [4, 1, 128], strides = [1, 1, 1]} : vector<4x16x128xf32> to vector<4x1x128xf32>
    %352 = vector.shape_cast %351 : vector<4x1x128xf32> to vector<4x128xf32>
    %353 = vector.extract_strided_slice %311 {offsets = [0, 7, 0], sizes = [4, 1, 128], strides = [1, 1, 1]} : vector<4x16x128xf32> to vector<4x1x128xf32>
    %354 = vector.shape_cast %353 : vector<4x1x128xf32> to vector<4x128xf32>
    %355 = arith.maximumf %352, %354 : vector<4x128xf32>
    %c1_281 = arith.constant 1 : index
    %c1_282 = arith.constant 1 : index
    %c4_283 = arith.constant 4 : index
    %c0_284 = arith.constant 0 : index
    %356 = vector.load %arg7[%c1_281, %c1_282, %c4_283, %c0_284] : memref<2x10x8x384xf32, #tpu.memory_space<vmem>>, vector<1x4x1x128xf32>
    %357 = vector.shape_cast %356 : vector<1x4x1x128xf32> to vector<4x128xf32>
    %358 = vector.shape_cast %355 : vector<4x128xf32> to vector<1x4x1x128xf32>
    tpu.vector_store %arg7[%c1_281, %c1_282, %c4_283, %c0_284], %358 {strides = array<i32>} : memref<2x10x8x384xf32, #tpu.memory_space<vmem>>, vector<1x4x1x128xf32>,
    %c1_285 = arith.constant 1 : index
    %c1_286 = arith.constant 1 : index
    %c3_287 = arith.constant 3 : index
    %c128_288 = arith.constant 128 : index
    %359 = vector.load %arg7[%c1_285, %c1_286, %c3_287, %c128_288] : memref<2x10x8x384xf32, #tpu.memory_space<vmem>>, vector<1x4x1x128xf32>
    %360 = vector.shape_cast %359 : vector<1x4x1x128xf32> to vector<4x128xf32>
    %361 = vector.shape_cast %355 : vector<4x128xf32> to vector<1x4x1x128xf32>
    tpu.vector_store %arg7[%c1_285, %c1_286, %c3_287, %c128_288], %361 {strides = array<i32>} : memref<2x10x8x384xf32, #tpu.memory_space<vmem>>, vector<1x4x1x128xf32>,
    %c1_289 = arith.constant 1 : index
    %c1_290 = arith.constant 1 : index
    %c2_291 = arith.constant 2 : index
    %c256_292 = arith.constant 256 : index
    %362 = vector.load %arg7[%c1_289, %c1_290, %c2_291, %c256_292] : memref<2x10x8x384xf32, #tpu.memory_space<vmem>>, vector<1x4x1x128xf32>
    %363 = vector.shape_cast %362 : vector<1x4x1x128xf32> to vector<4x128xf32>
    %364 = vector.shape_cast %355 : vector<4x128xf32> to vector<1x4x1x128xf32>
    tpu.vector_store %arg7[%c1_289, %c1_290, %c2_291, %c256_292], %364 {strides = array<i32>} : memref<2x10x8x384xf32, #tpu.memory_space<vmem>>, vector<1x4x1x128xf32>,
    %365 = vector.extract_strided_slice %311 {offsets = [0, 8, 0], sizes = [4, 1, 128], strides = [1, 1, 1]} : vector<4x16x128xf32> to vector<4x1x128xf32>
    %366 = vector.shape_cast %365 : vector<4x1x128xf32> to vector<4x128xf32>
    %367 = vector.extract_strided_slice %311 {offsets = [0, 9, 0], sizes = [4, 1, 128], strides = [1, 1, 1]} : vector<4x16x128xf32> to vector<4x1x128xf32>
    %368 = vector.shape_cast %367 : vector<4x1x128xf32> to vector<4x128xf32>
    %369 = arith.maximumf %366, %368 : vector<4x128xf32>
    %c1_293 = arith.constant 1 : index
    %c1_294 = arith.constant 1 : index
    %c5_295 = arith.constant 5 : index
    %c0_296 = arith.constant 0 : index
    %370 = vector.load %arg7[%c1_293, %c1_294, %c5_295, %c0_296] : memref<2x10x8x384xf32, #tpu.memory_space<vmem>>, vector<1x4x1x128xf32>
    %371 = vector.shape_cast %370 : vector<1x4x1x128xf32> to vector<4x128xf32>
    %372 = vector.shape_cast %369 : vector<4x128xf32> to vector<1x4x1x128xf32>
    tpu.vector_store %arg7[%c1_293, %c1_294, %c5_295, %c0_296], %372 {strides = array<i32>} : memref<2x10x8x384xf32, #tpu.memory_space<vmem>>, vector<1x4x1x128xf32>,
    %c1_297 = arith.constant 1 : index
    %c1_298 = arith.constant 1 : index
    %c4_299 = arith.constant 4 : index
    %c128_300 = arith.constant 128 : index
    %373 = vector.load %arg7[%c1_297, %c1_298, %c4_299, %c128_300] : memref<2x10x8x384xf32, #tpu.memory_space<vmem>>, vector<1x4x1x128xf32>
    %374 = vector.shape_cast %373 : vector<1x4x1x128xf32> to vector<4x128xf32>
    %375 = vector.shape_cast %369 : vector<4x128xf32> to vector<1x4x1x128xf32>
    tpu.vector_store %arg7[%c1_297, %c1_298, %c4_299, %c128_300], %375 {strides = array<i32>} : memref<2x10x8x384xf32, #tpu.memory_space<vmem>>, vector<1x4x1x128xf32>,
    %c1_301 = arith.constant 1 : index
    %c1_302 = arith.constant 1 : index
    %c3_303 = arith.constant 3 : index
    %c256_304 = arith.constant 256 : index
    %376 = vector.load %arg7[%c1_301, %c1_302, %c3_303, %c256_304] : memref<2x10x8x384xf32, #tpu.memory_space<vmem>>, vector<1x4x1x128xf32>
    %377 = vector.shape_cast %376 : vector<1x4x1x128xf32> to vector<4x128xf32>
    %378 = vector.shape_cast %369 : vector<4x128xf32> to vector<1x4x1x128xf32>
    tpu.vector_store %arg7[%c1_301, %c1_302, %c3_303, %c256_304], %378 {strides = array<i32>} : memref<2x10x8x384xf32, #tpu.memory_space<vmem>>, vector<1x4x1x128xf32>,
    %379 = vector.extract_strided_slice %311 {offsets = [0, 10, 0], sizes = [4, 1, 128], strides = [1, 1, 1]} : vector<4x16x128xf32> to vector<4x1x128xf32>
    %380 = vector.shape_cast %379 : vector<4x1x128xf32> to vector<4x128xf32>
    %381 = vector.extract_strided_slice %311 {offsets = [0, 11, 0], sizes = [4, 1, 128], strides = [1, 1, 1]} : vector<4x16x128xf32> to vector<4x1x128xf32>
    %382 = vector.shape_cast %381 : vector<4x1x128xf32> to vector<4x128xf32>
    %383 = arith.maximumf %380, %382 : vector<4x128xf32>
    %c1_305 = arith.constant 1 : index
    %c1_306 = arith.constant 1 : index
    %c6_307 = arith.constant 6 : index
    %c0_308 = arith.constant 0 : index
    %384 = vector.load %arg7[%c1_305, %c1_306, %c6_307, %c0_308] : memref<2x10x8x384xf32, #tpu.memory_space<vmem>>, vector<1x4x1x128xf32>
    %385 = vector.shape_cast %384 : vector<1x4x1x128xf32> to vector<4x128xf32>
    %386 = vector.shape_cast %383 : vector<4x128xf32> to vector<1x4x1x128xf32>
    tpu.vector_store %arg7[%c1_305, %c1_306, %c6_307, %c0_308], %386 {strides = array<i32>} : memref<2x10x8x384xf32, #tpu.memory_space<vmem>>, vector<1x4x1x128xf32>,
    %c1_309 = arith.constant 1 : index
    %c1_310 = arith.constant 1 : index
    %c5_311 = arith.constant 5 : index
    %c128_312 = arith.constant 128 : index
    %387 = vector.load %arg7[%c1_309, %c1_310, %c5_311, %c128_312] : memref<2x10x8x384xf32, #tpu.memory_space<vmem>>, vector<1x4x1x128xf32>
    %388 = vector.shape_cast %387 : vector<1x4x1x128xf32> to vector<4x128xf32>
    %389 = vector.shape_cast %383 : vector<4x128xf32> to vector<1x4x1x128xf32>
    tpu.vector_store %arg7[%c1_309, %c1_310, %c5_311, %c128_312], %389 {strides = array<i32>} : memref<2x10x8x384xf32, #tpu.memory_space<vmem>>, vector<1x4x1x128xf32>,
    %c1_313 = arith.constant 1 : index
    %c1_314 = arith.constant 1 : index
    %c4_315 = arith.constant 4 : index
    %c256_316 = arith.constant 256 : index
    %390 = vector.load %arg7[%c1_313, %c1_314, %c4_315, %c256_316] : memref<2x10x8x384xf32, #tpu.memory_space<vmem>>, vector<1x4x1x128xf32>
    %391 = vector.shape_cast %390 : vector<1x4x1x128xf32> to vector<4x128xf32>
    %392 = vector.shape_cast %383 : vector<4x128xf32> to vector<1x4x1x128xf32>
    tpu.vector_store %arg7[%c1_313, %c1_314, %c4_315, %c256_316], %392 {strides = array<i32>} : memref<2x10x8x384xf32, #tpu.memory_space<vmem>>, vector<1x4x1x128xf32>,
    %393 = vector.extract_strided_slice %311 {offsets = [0, 12, 0], sizes = [4, 1, 128], strides = [1, 1, 1]} : vector<4x16x128xf32> to vector<4x1x128xf32>
    %394 = vector.shape_cast %393 : vector<4x1x128xf32> to vector<4x128xf32>
    %395 = vector.extract_strided_slice %311 {offsets = [0, 13, 0], sizes = [4, 1, 128], strides = [1, 1, 1]} : vector<4x16x128xf32> to vector<4x1x128xf32>
    %396 = vector.shape_cast %395 : vector<4x1x128xf32> to vector<4x128xf32>
    %397 = arith.maximumf %394, %396 : vector<4x128xf32>
    %c1_317 = arith.constant 1 : index
    %c1_318 = arith.constant 1 : index
    %c7_319 = arith.constant 7 : index
    %c0_320 = arith.constant 0 : index
    %398 = vector.load %arg7[%c1_317, %c1_318, %c7_319, %c0_320] : memref<2x10x8x384xf32, #tpu.memory_space<vmem>>, vector<1x4x1x128xf32>
    %399 = vector.shape_cast %398 : vector<1x4x1x128xf32> to vector<4x128xf32>
    %400 = vector.shape_cast %397 : vector<4x128xf32> to vector<1x4x1x128xf32>
    tpu.vector_store %arg7[%c1_317, %c1_318, %c7_319, %c0_320], %400 {strides = array<i32>} : memref<2x10x8x384xf32, #tpu.memory_space<vmem>>, vector<1x4x1x128xf32>,
    %c1_321 = arith.constant 1 : index
    %c1_322 = arith.constant 1 : index
    %c6_323 = arith.constant 6 : index
    %c128_324 = arith.constant 128 : index
    %401 = vector.load %arg7[%c1_321, %c1_322, %c6_323, %c128_324] : memref<2x10x8x384xf32, #tpu.memory_space<vmem>>, vector<1x4x1x128xf32>
    %402 = vector.shape_cast %401 : vector<1x4x1x128xf32> to vector<4x128xf32>
    %403 = vector.shape_cast %397 : vector<4x128xf32> to vector<1x4x1x128xf32>
    tpu.vector_store %arg7[%c1_321, %c1_322, %c6_323, %c128_324], %403 {strides = array<i32>} : memref<2x10x8x384xf32, #tpu.memory_space<vmem>>, vector<1x4x1x128xf32>,
    %c1_325 = arith.constant 1 : index
    %c1_326 = arith.constant 1 : index
    %c5_327 = arith.constant 5 : index
    %c256_328 = arith.constant 256 : index
    %404 = vector.load %arg7[%c1_325, %c1_326, %c5_327, %c256_328] : memref<2x10x8x384xf32, #tpu.memory_space<vmem>>, vector<1x4x1x128xf32>
    %405 = vector.shape_cast %404 : vector<1x4x1x128xf32> to vector<4x128xf32>
    %406 = vector.shape_cast %397 : vector<4x128xf32> to vector<1x4x1x128xf32>
    tpu.vector_store %arg7[%c1_325, %c1_326, %c5_327, %c256_328], %406 {strides = array<i32>} : memref<2x10x8x384xf32, #tpu.memory_space<vmem>>, vector<1x4x1x128xf32>,
    %407 = vector.extract_strided_slice %311 {offsets = [0, 14, 0], sizes = [4, 1, 128], strides = [1, 1, 1]} : vector<4x16x128xf32> to vector<4x1x128xf32>
    %408 = vector.shape_cast %407 : vector<4x1x128xf32> to vector<4x128xf32>
    %409 = vector.extract_strided_slice %311 {offsets = [0, 15, 0], sizes = [4, 1, 128], strides = [1, 1, 1]} : vector<4x16x128xf32> to vector<4x1x128xf32>
    %410 = vector.shape_cast %409 : vector<4x1x128xf32> to vector<4x128xf32>
    %411 = arith.maximumf %408, %410 : vector<4x128xf32>
    %c1_329 = arith.constant 1 : index
    %c1_330 = arith.constant 1 : index
    %c7_331 = arith.constant 7 : index
    %c128_332 = arith.constant 128 : index
    %412 = vector.load %arg7[%c1_329, %c1_330, %c7_331, %c128_332] : memref<2x10x8x384xf32, #tpu.memory_space<vmem>>, vector<1x4x1x128xf32>
    %413 = vector.shape_cast %412 : vector<1x4x1x128xf32> to vector<4x128xf32>
    %414 = vector.shape_cast %411 : vector<4x128xf32> to vector<1x4x1x128xf32>
    tpu.vector_store %arg7[%c1_329, %c1_330, %c7_331, %c128_332], %414 {strides = array<i32>} : memref<2x10x8x384xf32, #tpu.memory_space<vmem>>, vector<1x4x1x128xf32>,
    %c1_333 = arith.constant 1 : index
    %c1_334 = arith.constant 1 : index
    %c6_335 = arith.constant 6 : index
    %c256_336 = arith.constant 256 : index
    %415 = vector.load %arg7[%c1_333, %c1_334, %c6_335, %c256_336] : memref<2x10x8x384xf32, #tpu.memory_space<vmem>>, vector<1x4x1x128xf32>
    %416 = vector.shape_cast %415 : vector<1x4x1x128xf32> to vector<4x128xf32>
    %417 = vector.shape_cast %411 : vector<4x128xf32> to vector<1x4x1x128xf32>
    tpu.vector_store %arg7[%c1_333, %c1_334, %c6_335, %c256_336], %417 {strides = array<i32>} : memref<2x10x8x384xf32, #tpu.memory_space<vmem>>, vector<1x4x1x128xf32>,
    %cst_337 = arith.constant 0.000000e+00 : f32
    %418 = vector.broadcast %cst_337 : f32 to vector<128x128xf32>
    %c1_338 = arith.constant 1 : index
    %c8_339 = arith.constant 8 : index
    %c0_340 = arith.constant 0 : index
    %c0_341 = arith.constant 0 : index
    %419 = vector.load %arg1[%c1_338, %c8_339, %c0_340, %c0_341] : memref<2x18x16x24xbf16, #tpu.memory_space<vmem>>, vector<1x8x16x24xbf16>
    %420 = vector.shape_cast %419 : vector<1x8x16x24xbf16> to vector<8x16x24xbf16>
    %421 = vector.shape_cast %420 : vector<8x16x24xbf16> to vector<128x24xbf16>
    %c0_342 = arith.constant 0 : index
    %c0_343 = arith.constant 0 : index
    %c0_344 = arith.constant 0 : index
    %422 = vector.load %arg2[%c0_342, %c0_343, %c0_344] : memref<3x24x128xbf16, #tpu.memory_space<vmem>>, vector<1x24x128xbf16>
    %423 = vector.shape_cast %422 : vector<1x24x128xbf16> to vector<24x128xbf16>
    %cst_345 = arith.constant dense<0.000000e+00> : vector<128x128xf32>
    %424 = tpu.matmul %421, %423, %cst_345 {dimension_numbers = #tpu.dot_dimension_numbers<[1], [0], [0], [1], [0, 0, 1, 1], [], []>} : vector<128x24xbf16>, vector<24x128xbf16>, vector<128x128xf32> -> vector<128x128xf32>
    %425 = arith.addf %418, %424 : vector<128x128xf32>
    %c1_346 = arith.constant 1 : index
    %c9_347 = arith.constant 9 : index
    %c0_348 = arith.constant 0 : index
    %c0_349 = arith.constant 0 : index
    %426 = vector.load %arg1[%c1_346, %c9_347, %c0_348, %c0_349] : memref<2x18x16x24xbf16, #tpu.memory_space<vmem>>, vector<1x8x16x24xbf16>
    %427 = vector.shape_cast %426 : vector<1x8x16x24xbf16> to vector<8x16x24xbf16>
    %428 = vector.shape_cast %427 : vector<8x16x24xbf16> to vector<128x24xbf16>
    %c1_350 = arith.constant 1 : index
    %c0_351 = arith.constant 0 : index
    %c0_352 = arith.constant 0 : index
    %429 = vector.load %arg2[%c1_350, %c0_351, %c0_352] : memref<3x24x128xbf16, #tpu.memory_space<vmem>>, vector<1x24x128xbf16>
    %430 = vector.shape_cast %429 : vector<1x24x128xbf16> to vector<24x128xbf16>
    %cst_353 = arith.constant dense<0.000000e+00> : vector<128x128xf32>
    %431 = tpu.matmul %428, %430, %cst_353 {dimension_numbers = #tpu.dot_dimension_numbers<[1], [0], [0], [1], [0, 0, 1, 1], [], []>} : vector<128x24xbf16>, vector<24x128xbf16>, vector<128x128xf32> -> vector<128x128xf32>
    %432 = arith.addf %425, %431 : vector<128x128xf32>
    %c1_354 = arith.constant 1 : index
    %c10_355 = arith.constant 10 : index
    %c0_356 = arith.constant 0 : index
    %c0_357 = arith.constant 0 : index
    %433 = vector.load %arg1[%c1_354, %c10_355, %c0_356, %c0_357] : memref<2x18x16x24xbf16, #tpu.memory_space<vmem>>, vector<1x8x16x24xbf16>
    %434 = vector.shape_cast %433 : vector<1x8x16x24xbf16> to vector<8x16x24xbf16>
    %435 = vector.shape_cast %434 : vector<8x16x24xbf16> to vector<128x24xbf16>
    %c2_358 = arith.constant 2 : index
    %c0_359 = arith.constant 0 : index
    %c0_360 = arith.constant 0 : index
    %436 = vector.load %arg2[%c2_358, %c0_359, %c0_360] : memref<3x24x128xbf16, #tpu.memory_space<vmem>>, vector<1x24x128xbf16>
    %437 = vector.shape_cast %436 : vector<1x24x128xbf16> to vector<24x128xbf16>
    %cst_361 = arith.constant dense<0.000000e+00> : vector<128x128xf32>
    %438 = tpu.matmul %435, %437, %cst_361 {dimension_numbers = #tpu.dot_dimension_numbers<[1], [0], [0], [1], [0, 0, 1, 1], [], []>} : vector<128x24xbf16>, vector<24x128xbf16>, vector<128x128xf32> -> vector<128x128xf32>
    %439 = arith.addf %432, %438 : vector<128x128xf32>
    %440 = vector.broadcast %2 : vector<1x128xf32> to vector<128x128xf32>
    %441 = arith.addf %439, %440 : vector<128x128xf32>
    %cst_362 = arith.constant 0.000000e+00 : f32
    %442 = vector.broadcast %cst_362 : f32 to vector<128x128xf32>
    %443 = arith.maximumf %441, %442 : vector<128x128xf32>
    %444 = vector.shape_cast %443 : vector<128x128xf32> to vector<4x2x16x128xf32>
    %445 = vector.extract_strided_slice %444 {offsets = [0, 0, 0, 0], sizes = [4, 1, 16, 128], strides = [1, 1, 1, 1]} : vector<4x2x16x128xf32> to vector<4x1x16x128xf32>
    %446 = vector.shape_cast %445 : vector<4x1x16x128xf32> to vector<4x16x128xf32>
    %447 = vector.extract_strided_slice %444 {offsets = [0, 1, 0, 0], sizes = [4, 1, 16, 128], strides = [1, 1, 1, 1]} : vector<4x2x16x128xf32> to vector<4x1x16x128xf32>
    %448 = vector.shape_cast %447 : vector<4x1x16x128xf32> to vector<4x16x128xf32>
    %449 = arith.maximumf %446, %448 : vector<4x16x128xf32>
    %450 = vector.extract_strided_slice %449 {offsets = [0, 0, 0], sizes = [4, 1, 128], strides = [1, 1, 1]} : vector<4x16x128xf32> to vector<4x1x128xf32>
    %451 = vector.shape_cast %450 : vector<4x1x128xf32> to vector<4x128xf32>
    %452 = vector.extract_strided_slice %449 {offsets = [0, 1, 0], sizes = [4, 1, 128], strides = [1, 1, 1]} : vector<4x16x128xf32> to vector<4x1x128xf32>
    %453 = vector.shape_cast %452 : vector<4x1x128xf32> to vector<4x128xf32>
    %454 = arith.maximumf %451, %453 : vector<4x128xf32>
    %c1_363 = arith.constant 1 : index
    %c5_364 = arith.constant 5 : index
    %c1_365 = arith.constant 1 : index
    %c0_366 = arith.constant 0 : index
    %455 = vector.load %arg7[%c1_363, %c5_364, %c1_365, %c0_366] : memref<2x10x8x384xf32, #tpu.memory_space<vmem>>, vector<1x4x1x128xf32>
    %456 = vector.shape_cast %455 : vector<1x4x1x128xf32> to vector<4x128xf32>
    %457 = vector.shape_cast %454 : vector<4x128xf32> to vector<1x4x1x128xf32>
    tpu.vector_store %arg7[%c1_363, %c5_364, %c1_365, %c0_366], %457 {strides = array<i32>} : memref<2x10x8x384xf32, #tpu.memory_space<vmem>>, vector<1x4x1x128xf32>,
    %c1_367 = arith.constant 1 : index
    %c5_368 = arith.constant 5 : index
    %c0_369 = arith.constant 0 : index
    %c128_370 = arith.constant 128 : index
    %458 = vector.load %arg7[%c1_367, %c5_368, %c0_369, %c128_370] : memref<2x10x8x384xf32, #tpu.memory_space<vmem>>, vector<1x4x1x128xf32>
    %459 = vector.shape_cast %458 : vector<1x4x1x128xf32> to vector<4x128xf32>
    %460 = vector.shape_cast %454 : vector<4x128xf32> to vector<1x4x1x128xf32>
    tpu.vector_store %arg7[%c1_367, %c5_368, %c0_369, %c128_370], %460 {strides = array<i32>} : memref<2x10x8x384xf32, #tpu.memory_space<vmem>>, vector<1x4x1x128xf32>,
    %461 = vector.extract_strided_slice %449 {offsets = [0, 2, 0], sizes = [4, 1, 128], strides = [1, 1, 1]} : vector<4x16x128xf32> to vector<4x1x128xf32>
    %462 = vector.shape_cast %461 : vector<4x1x128xf32> to vector<4x128xf32>
    %463 = vector.extract_strided_slice %449 {offsets = [0, 3, 0], sizes = [4, 1, 128], strides = [1, 1, 1]} : vector<4x16x128xf32> to vector<4x1x128xf32>
    %464 = vector.shape_cast %463 : vector<4x1x128xf32> to vector<4x128xf32>
    %465 = arith.maximumf %462, %464 : vector<4x128xf32>
    %c1_371 = arith.constant 1 : index
    %c5_372 = arith.constant 5 : index
    %c2_373 = arith.constant 2 : index
    %c0_374 = arith.constant 0 : index
    %466 = vector.load %arg7[%c1_371, %c5_372, %c2_373, %c0_374] : memref<2x10x8x384xf32, #tpu.memory_space<vmem>>, vector<1x4x1x128xf32>
    %467 = vector.shape_cast %466 : vector<1x4x1x128xf32> to vector<4x128xf32>
    %468 = vector.shape_cast %465 : vector<4x128xf32> to vector<1x4x1x128xf32>
    tpu.vector_store %arg7[%c1_371, %c5_372, %c2_373, %c0_374], %468 {strides = array<i32>} : memref<2x10x8x384xf32, #tpu.memory_space<vmem>>, vector<1x4x1x128xf32>,
    %c1_375 = arith.constant 1 : index
    %c5_376 = arith.constant 5 : index
    %c1_377 = arith.constant 1 : index
    %c128_378 = arith.constant 128 : index
    %469 = vector.load %arg7[%c1_375, %c5_376, %c1_377, %c128_378] : memref<2x10x8x384xf32, #tpu.memory_space<vmem>>, vector<1x4x1x128xf32>
    %470 = vector.shape_cast %469 : vector<1x4x1x128xf32> to vector<4x128xf32>
    %471 = vector.shape_cast %465 : vector<4x128xf32> to vector<1x4x1x128xf32>
    tpu.vector_store %arg7[%c1_375, %c5_376, %c1_377, %c128_378], %471 {strides = array<i32>} : memref<2x10x8x384xf32, #tpu.memory_space<vmem>>, vector<1x4x1x128xf32>,
    %c1_379 = arith.constant 1 : index
    %c5_380 = arith.constant 5 : index
    %c0_381 = arith.constant 0 : index
    %c256_382 = arith.constant 256 : index
    %472 = vector.load %arg7[%c1_379, %c5_380, %c0_381, %c256_382] : memref<2x10x8x384xf32, #tpu.memory_space<vmem>>, vector<1x4x1x128xf32>
    %473 = vector.shape_cast %472 : vector<1x4x1x128xf32> to vector<4x128xf32>
    %474 = vector.shape_cast %465 : vector<4x128xf32> to vector<1x4x1x128xf32>
    tpu.vector_store %arg7[%c1_379, %c5_380, %c0_381, %c256_382], %474 {strides = array<i32>} : memref<2x10x8x384xf32, #tpu.memory_space<vmem>>, vector<1x4x1x128xf32>,
    %475 = vector.extract_strided_slice %449 {offsets = [0, 4, 0], sizes = [4, 1, 128], strides = [1, 1, 1]} : vector<4x16x128xf32> to vector<4x1x128xf32>
    %476 = vector.shape_cast %475 : vector<4x1x128xf32> to vector<4x128xf32>
    %477 = vector.extract_strided_slice %449 {offsets = [0, 5, 0], sizes = [4, 1, 128], strides = [1, 1, 1]} : vector<4x16x128xf32> to vector<4x1x128xf32>
    %478 = vector.shape_cast %477 : vector<4x1x128xf32> to vector<4x128xf32>
    %479 = arith.maximumf %476, %478 : vector<4x128xf32>
    %c1_383 = arith.constant 1 : index
    %c5_384 = arith.constant 5 : index
    %c3_385 = arith.constant 3 : index
    %c0_386 = arith.constant 0 : index
    %480 = vector.load %arg7[%c1_383, %c5_384, %c3_385, %c0_386] : memref<2x10x8x384xf32, #tpu.memory_space<vmem>>, vector<1x4x1x128xf32>
    %481 = vector.shape_cast %480 : vector<1x4x1x128xf32> to vector<4x128xf32>
    %482 = vector.shape_cast %479 : vector<4x128xf32> to vector<1x4x1x128xf32>
    tpu.vector_store %arg7[%c1_383, %c5_384, %c3_385, %c0_386], %482 {strides = array<i32>} : memref<2x10x8x384xf32, #tpu.memory_space<vmem>>, vector<1x4x1x128xf32>,
    %c1_387 = arith.constant 1 : index
    %c5_388 = arith.constant 5 : index
    %c2_389 = arith.constant 2 : index
    %c128_390 = arith.constant 128 : index
    %483 = vector.load %arg7[%c1_387, %c5_388, %c2_389, %c128_390] : memref<2x10x8x384xf32, #tpu.memory_space<vmem>>, vector<1x4x1x128xf32>
    %484 = vector.shape_cast %483 : vector<1x4x1x128xf32> to vector<4x128xf32>
    %485 = vector.shape_cast %479 : vector<4x128xf32> to vector<1x4x1x128xf32>
    tpu.vector_store %arg7[%c1_387, %c5_388, %c2_389, %c128_390], %485 {strides = array<i32>} : memref<2x10x8x384xf32, #tpu.memory_space<vmem>>, vector<1x4x1x128xf32>,
    %c1_391 = arith.constant 1 : index
    %c5_392 = arith.constant 5 : index
    %c1_393 = arith.constant 1 : index
    %c256_394 = arith.constant 256 : index
    %486 = vector.load %arg7[%c1_391, %c5_392, %c1_393, %c256_394] : memref<2x10x8x384xf32, #tpu.memory_space<vmem>>, vector<1x4x1x128xf32>
    %487 = vector.shape_cast %486 : vector<1x4x1x128xf32> to vector<4x128xf32>
    %488 = vector.shape_cast %479 : vector<4x128xf32> to vector<1x4x1x128xf32>
    tpu.vector_store %arg7[%c1_391, %c5_392, %c1_393, %c256_394], %488 {strides = array<i32>} : memref<2x10x8x384xf32, #tpu.memory_space<vmem>>, vector<1x4x1x128xf32>,
    %489 = vector.extract_strided_slice %449 {offsets = [0, 6, 0], sizes = [4, 1, 128], strides = [1, 1, 1]} : vector<4x16x128xf32> to vector<4x1x128xf32>
    %490 = vector.shape_cast %489 : vector<4x1x128xf32> to vector<4x128xf32>
    %491 = vector.extract_strided_slice %449 {offsets = [0, 7, 0], sizes = [4, 1, 128], strides = [1, 1, 1]} : vector<4x16x128xf32> to vector<4x1x128xf32>
    %492 = vector.shape_cast %491 : vector<4x1x128xf32> to vector<4x128xf32>
    %493 = arith.maximumf %490, %492 : vector<4x128xf32>
    %c1_395 = arith.constant 1 : index
    %c5_396 = arith.constant 5 : index
    %c4_397 = arith.constant 4 : index
    %c0_398 = arith.constant 0 : index
    %494 = vector.load %arg7[%c1_395, %c5_396, %c4_397, %c0_398] : memref<2x10x8x384xf32, #tpu.memory_space<vmem>>, vector<1x4x1x128xf32>
    %495 = vector.shape_cast %494 : vector<1x4x1x128xf32> to vector<4x128xf32>
    %496 = vector.shape_cast %493 : vector<4x128xf32> to vector<1x4x1x128xf32>
    tpu.vector_store %arg7[%c1_395, %c5_396, %c4_397, %c0_398], %496 {strides = array<i32>} : memref<2x10x8x384xf32, #tpu.memory_space<vmem>>, vector<1x4x1x128xf32>,
    %c1_399 = arith.constant 1 : index
    %c5_400 = arith.constant 5 : index
    %c3_401 = arith.constant 3 : index
    %c128_402 = arith.constant 128 : index
    %497 = vector.load %arg7[%c1_399, %c5_400, %c3_401, %c128_402] : memref<2x10x8x384xf32, #tpu.memory_space<vmem>>, vector<1x4x1x128xf32>
    %498 = vector.shape_cast %497 : vector<1x4x1x128xf32> to vector<4x128xf32>
    %499 = vector.shape_cast %493 : vector<4x128xf32> to vector<1x4x1x128xf32>
    tpu.vector_store %arg7[%c1_399, %c5_400, %c3_401, %c128_402], %499 {strides = array<i32>} : memref<2x10x8x384xf32, #tpu.memory_space<vmem>>, vector<1x4x1x128xf32>,
    %c1_403 = arith.constant 1 : index
    %c5_404 = arith.constant 5 : index
    %c2_405 = arith.constant 2 : index
    %c256_406 = arith.constant 256 : index
    %500 = vector.load %arg7[%c1_403, %c5_404, %c2_405, %c256_406] : memref<2x10x8x384xf32, #tpu.memory_space<vmem>>, vector<1x4x1x128xf32>
    %501 = vector.shape_cast %500 : vector<1x4x1x128xf32> to vector<4x128xf32>
    %502 = vector.shape_cast %493 : vector<4x128xf32> to vector<1x4x1x128xf32>
    tpu.vector_store %arg7[%c1_403, %c5_404, %c2_405, %c256_406], %502 {strides = array<i32>} : memref<2x10x8x384xf32, #tpu.memory_space<vmem>>, vector<1x4x1x128xf32>,
    %503 = vector.extract_strided_slice %449 {offsets = [0, 8, 0], sizes = [4, 1, 128], strides = [1, 1, 1]} : vector<4x16x128xf32> to vector<4x1x128xf32>
    %504 = vector.shape_cast %503 : vector<4x1x128xf32> to vector<4x128xf32>
    %505 = vector.extract_strided_slice %449 {offsets = [0, 9, 0], sizes = [4, 1, 128], strides = [1, 1, 1]} : vector<4x16x128xf32> to vector<4x1x128xf32>
    %506 = vector.shape_cast %505 : vector<4x1x128xf32> to vector<4x128xf32>
    %507 = arith.maximumf %504, %506 : vector<4x128xf32>
    %c1_407 = arith.constant 1 : index
    %c5_408 = arith.constant 5 : index
    %c5_409 = arith.constant 5 : index
    %c0_410 = arith.constant 0 : index
    %508 = vector.load %arg7[%c1_407, %c5_408, %c5_409, %c0_410] : memref<2x10x8x384xf32, #tpu.memory_space<vmem>>, vector<1x4x1x128xf32>
    %509 = vector.shape_cast %508 : vector<1x4x1x128xf32> to vector<4x128xf32>
    %510 = vector.shape_cast %507 : vector<4x128xf32> to vector<1x4x1x128xf32>
    tpu.vector_store %arg7[%c1_407, %c5_408, %c5_409, %c0_410], %510 {strides = array<i32>} : memref<2x10x8x384xf32, #tpu.memory_space<vmem>>, vector<1x4x1x128xf32>,
    %c1_411 = arith.constant 1 : index
    %c5_412 = arith.constant 5 : index
    %c4_413 = arith.constant 4 : index
    %c128_414 = arith.constant 128 : index
    %511 = vector.load %arg7[%c1_411, %c5_412, %c4_413, %c128_414] : memref<2x10x8x384xf32, #tpu.memory_space<vmem>>, vector<1x4x1x128xf32>
    %512 = vector.shape_cast %511 : vector<1x4x1x128xf32> to vector<4x128xf32>
    %513 = vector.shape_cast %507 : vector<4x128xf32> to vector<1x4x1x128xf32>
    tpu.vector_store %arg7[%c1_411, %c5_412, %c4_413, %c128_414], %513 {strides = array<i32>} : memref<2x10x8x384xf32, #tpu.memory_space<vmem>>, vector<1x4x1x128xf32>,
    %c1_415 = arith.constant 1 : index
    %c5_416 = arith.constant 5 : index
    %c3_417 = arith.constant 3 : index
    %c256_418 = arith.constant 256 : index
    %514 = vector.load %arg7[%c1_415, %c5_416, %c3_417, %c256_418] : memref<2x10x8x384xf32, #tpu.memory_space<vmem>>, vector<1x4x1x128xf32>
    %515 = vector.shape_cast %514 : vector<1x4x1x128xf32> to vector<4x128xf32>
    %516 = vector.shape_cast %507 : vector<4x128xf32> to vector<1x4x1x128xf32>
    tpu.vector_store %arg7[%c1_415, %c5_416, %c3_417, %c256_418], %516 {strides = array<i32>} : memref<2x10x8x384xf32, #tpu.memory_space<vmem>>, vector<1x4x1x128xf32>,
    %517 = vector.extract_strided_slice %449 {offsets = [0, 10, 0], sizes = [4, 1, 128], strides = [1, 1, 1]} : vector<4x16x128xf32> to vector<4x1x128xf32>
    %518 = vector.shape_cast %517 : vector<4x1x128xf32> to vector<4x128xf32>
    %519 = vector.extract_strided_slice %449 {offsets = [0, 11, 0], sizes = [4, 1, 128], strides = [1, 1, 1]} : vector<4x16x128xf32> to vector<4x1x128xf32>
    %520 = vector.shape_cast %519 : vector<4x1x128xf32> to vector<4x128xf32>
    %521 = arith.maximumf %518, %520 : vector<4x128xf32>
    %c1_419 = arith.constant 1 : index
    %c5_420 = arith.constant 5 : index
    %c6_421 = arith.constant 6 : index
    %c0_422 = arith.constant 0 : index
    %522 = vector.load %arg7[%c1_419, %c5_420, %c6_421, %c0_422] : memref<2x10x8x384xf32, #tpu.memory_space<vmem>>, vector<1x4x1x128xf32>
    %523 = vector.shape_cast %522 : vector<1x4x1x128xf32> to vector<4x128xf32>
    %524 = vector.shape_cast %521 : vector<4x128xf32> to vector<1x4x1x128xf32>
    tpu.vector_store %arg7[%c1_419, %c5_420, %c6_421, %c0_422], %524 {strides = array<i32>} : memref<2x10x8x384xf32, #tpu.memory_space<vmem>>, vector<1x4x1x128xf32>,
    %c1_423 = arith.constant 1 : index
    %c5_424 = arith.constant 5 : index
    %c5_425 = arith.constant 5 : index
    %c128_426 = arith.constant 128 : index
    %525 = vector.load %arg7[%c1_423, %c5_424, %c5_425, %c128_426] : memref<2x10x8x384xf32, #tpu.memory_space<vmem>>, vector<1x4x1x128xf32>
    %526 = vector.shape_cast %525 : vector<1x4x1x128xf32> to vector<4x128xf32>
    %527 = vector.shape_cast %521 : vector<4x128xf32> to vector<1x4x1x128xf32>
    tpu.vector_store %arg7[%c1_423, %c5_424, %c5_425, %c128_426], %527 {strides = array<i32>} : memref<2x10x8x384xf32, #tpu.memory_space<vmem>>, vector<1x4x1x128xf32>,
    %c1_427 = arith.constant 1 : index
    %c5_428 = arith.constant 5 : index
    %c4_429 = arith.constant 4 : index
    %c256_430 = arith.constant 256 : index
    %528 = vector.load %arg7[%c1_427, %c5_428, %c4_429, %c256_430] : memref<2x10x8x384xf32, #tpu.memory_space<vmem>>, vector<1x4x1x128xf32>
    %529 = vector.shape_cast %528 : vector<1x4x1x128xf32> to vector<4x128xf32>
    %530 = vector.shape_cast %521 : vector<4x128xf32> to vector<1x4x1x128xf32>
    tpu.vector_store %arg7[%c1_427, %c5_428, %c4_429, %c256_430], %530 {strides = array<i32>} : memref<2x10x8x384xf32, #tpu.memory_space<vmem>>, vector<1x4x1x128xf32>,
    %531 = vector.extract_strided_slice %449 {offsets = [0, 12, 0], sizes = [4, 1, 128], strides = [1, 1, 1]} : vector<4x16x128xf32> to vector<4x1x128xf32>
    %532 = vector.shape_cast %531 : vector<4x1x128xf32> to vector<4x128xf32>
    %533 = vector.extract_strided_slice %449 {offsets = [0, 13, 0], sizes = [4, 1, 128], strides = [1, 1, 1]} : vector<4x16x128xf32> to vector<4x1x128xf32>
    %534 = vector.shape_cast %533 : vector<4x1x128xf32> to vector<4x128xf32>
    %535 = arith.maximumf %532, %534 : vector<4x128xf32>
    %c1_431 = arith.constant 1 : index
    %c5_432 = arith.constant 5 : index
    %c7_433 = arith.constant 7 : index
    %c0_434 = arith.constant 0 : index
    %536 = vector.load %arg7[%c1_431, %c5_432, %c7_433, %c0_434] : memref<2x10x8x384xf32, #tpu.memory_space<vmem>>, vector<1x4x1x128xf32>
    %537 = vector.shape_cast %536 : vector<1x4x1x128xf32> to vector<4x128xf32>
    %538 = vector.shape_cast %535 : vector<4x128xf32> to vector<1x4x1x128xf32>
    tpu.vector_store %arg7[%c1_431, %c5_432, %c7_433, %c0_434], %538 {strides = array<i32>} : memref<2x10x8x384xf32, #tpu.memory_space<vmem>>, vector<1x4x1x128xf32>,
    %c1_435 = arith.constant 1 : index
    %c5_436 = arith.constant 5 : index
    %c6_437 = arith.constant 6 : index
    %c128_438 = arith.constant 128 : index
    %539 = vector.load %arg7[%c1_435, %c5_436, %c6_437, %c128_438] : memref<2x10x8x384xf32, #tpu.memory_space<vmem>>, vector<1x4x1x128xf32>
    %540 = vector.shape_cast %539 : vector<1x4x1x128xf32> to vector<4x128xf32>
    %541 = vector.shape_cast %535 : vector<4x128xf32> to vector<1x4x1x128xf32>
    tpu.vector_store %arg7[%c1_435, %c5_436, %c6_437, %c128_438], %541 {strides = array<i32>} : memref<2x10x8x384xf32, #tpu.memory_space<vmem>>, vector<1x4x1x128xf32>,
    %c1_439 = arith.constant 1 : index
    %c5_440 = arith.constant 5 : index
    %c5_441 = arith.constant 5 : index
    %c256_442 = arith.constant 256 : index
    %542 = vector.load %arg7[%c1_439, %c5_440, %c5_441, %c256_442] : memref<2x10x8x384xf32, #tpu.memory_space<vmem>>, vector<1x4x1x128xf32>
    %543 = vector.shape_cast %542 : vector<1x4x1x128xf32> to vector<4x128xf32>
    %544 = vector.shape_cast %535 : vector<4x128xf32> to vector<1x4x1x128xf32>
    tpu.vector_store %arg7[%c1_439, %c5_440, %c5_441, %c256_442], %544 {strides = array<i32>} : memref<2x10x8x384xf32, #tpu.memory_space<vmem>>, vector<1x4x1x128xf32>,
    %545 = vector.extract_strided_slice %449 {offsets = [0, 14, 0], sizes = [4, 1, 128], strides = [1, 1, 1]} : vector<4x16x128xf32> to vector<4x1x128xf32>
    %546 = vector.shape_cast %545 : vector<4x1x128xf32> to vector<4x128xf32>
    %547 = vector.extract_strided_slice %449 {offsets = [0, 15, 0], sizes = [4, 1, 128], strides = [1, 1, 1]} : vector<4x16x128xf32> to vector<4x1x128xf32>
    %548 = vector.shape_cast %547 : vector<4x1x128xf32> to vector<4x128xf32>
    %549 = arith.maximumf %546, %548 : vector<4x128xf32>
    %c1_443 = arith.constant 1 : index
    %c5_444 = arith.constant 5 : index
    %c7_445 = arith.constant 7 : index
    %c128_446 = arith.constant 128 : index
    %550 = vector.load %arg7[%c1_443, %c5_444, %c7_445, %c128_446] : memref<2x10x8x384xf32, #tpu.memory_space<vmem>>, vector<1x4x1x128xf32>
    %551 = vector.shape_cast %550 : vector<1x4x1x128xf32> to vector<4x128xf32>
    %552 = vector.shape_cast %549 : vector<4x128xf32> to vector<1x4x1x128xf32>
    tpu.vector_store %arg7[%c1_443, %c5_444, %c7_445, %c128_446], %552 {strides = array<i32>} : memref<2x10x8x384xf32, #tpu.memory_space<vmem>>, vector<1x4x1x128xf32>,
    %c1_447 = arith.constant 1 : index
    %c5_448 = arith.constant 5 : index
    %c6_449 = arith.constant 6 : index
    %c256_450 = arith.constant 256 : index
    %553 = vector.load %arg7[%c1_447, %c5_448, %c6_449, %c256_450] : memref<2x10x8x384xf32, #tpu.memory_space<vmem>>, vector<1x4x1x128xf32>
    %554 = vector.shape_cast %553 : vector<1x4x1x128xf32> to vector<4x128xf32>
    %555 = vector.shape_cast %549 : vector<4x128xf32> to vector<1x4x1x128xf32>
    tpu.vector_store %arg7[%c1_447, %c5_448, %c6_449, %c256_450], %555 {strides = array<i32>} : memref<2x10x8x384xf32, #tpu.memory_space<vmem>>, vector<1x4x1x128xf32>,
    %cst_451 = arith.constant 0.000000e+00 : f32
    %556 = vector.broadcast %cst_451 : f32 to vector<64x128xf32>
    %c0_452 = arith.constant 0 : index
    %c0_453 = arith.constant 0 : index
    %c0_454 = arith.constant 0 : index
    %c0_455 = arith.constant 0 : index
    %557 = vector.load %arg7[%c0_452, %c0_453, %c0_454, %c0_455] : memref<2x10x8x384xf32, #tpu.memory_space<vmem>>, vector<2x4x8x384xf32>
    %558 = arith.truncf %557 : vector<2x4x8x384xf32> to vector<2x4x8x384xbf16>
    %559 = vector.shape_cast %558 : vector<2x4x8x384xbf16> to vector<64x384xbf16>
    %c0_456 = arith.constant 0 : index
    %c0_457 = arith.constant 0 : index
    %c0_458 = arith.constant 0 : index
    %560 = vector.load %arg4[%c0_456, %c0_457, %c0_458] : memref<3x384x128xbf16, #tpu.memory_space<vmem>>, vector<1x384x128xbf16>
    %561 = vector.shape_cast %560 : vector<1x384x128xbf16> to vector<384x128xbf16>
    %cst_459 = arith.constant dense<0.000000e+00> : vector<64x128xf32>
    %562 = tpu.matmul %559, %561, %cst_459 {dimension_numbers = #tpu.dot_dimension_numbers<[1], [0], [0], [1], [0, 0, 1, 1], [], []>} : vector<64x384xbf16>, vector<384x128xbf16>, vector<64x128xf32> -> vector<64x128xf32>
    %563 = arith.addf %556, %562 : vector<64x128xf32>
    %c0_460 = arith.constant 0 : index
    %c1_461 = arith.constant 1 : index
    %c0_462 = arith.constant 0 : index
    %c0_463 = arith.constant 0 : index
    %564 = vector.load %arg7[%c0_460, %c1_461, %c0_462, %c0_463] : memref<2x10x8x384xf32, #tpu.memory_space<vmem>>, vector<2x4x8x384xf32>
    %565 = arith.truncf %564 : vector<2x4x8x384xf32> to vector<2x4x8x384xbf16>
    %566 = vector.shape_cast %565 : vector<2x4x8x384xbf16> to vector<64x384xbf16>
    %c1_464 = arith.constant 1 : index
    %c0_465 = arith.constant 0 : index
    %c0_466 = arith.constant 0 : index
    %567 = vector.load %arg4[%c1_464, %c0_465, %c0_466] : memref<3x384x128xbf16, #tpu.memory_space<vmem>>, vector<1x384x128xbf16>
    %568 = vector.shape_cast %567 : vector<1x384x128xbf16> to vector<384x128xbf16>
    %cst_467 = arith.constant dense<0.000000e+00> : vector<64x128xf32>
    %569 = tpu.matmul %566, %568, %cst_467 {dimension_numbers = #tpu.dot_dimension_numbers<[1], [0], [0], [1], [0, 0, 1, 1], [], []>} : vector<64x384xbf16>, vector<384x128xbf16>, vector<64x128xf32> -> vector<64x128xf32>
    %570 = arith.addf %563, %569 : vector<64x128xf32>
    %c0_468 = arith.constant 0 : index
    %c2_469 = arith.constant 2 : index
    %c0_470 = arith.constant 0 : index
    %c0_471 = arith.constant 0 : index
    %571 = vector.load %arg7[%c0_468, %c2_469, %c0_470, %c0_471] : memref<2x10x8x384xf32, #tpu.memory_space<vmem>>, vector<2x4x8x384xf32>
    %572 = arith.truncf %571 : vector<2x4x8x384xf32> to vector<2x4x8x384xbf16>
    %573 = vector.shape_cast %572 : vector<2x4x8x384xbf16> to vector<64x384xbf16>
    %c2_472 = arith.constant 2 : index
    %c0_473 = arith.constant 0 : index
    %c0_474 = arith.constant 0 : index
    %574 = vector.load %arg4[%c2_472, %c0_473, %c0_474] : memref<3x384x128xbf16, #tpu.memory_space<vmem>>, vector<1x384x128xbf16>
    %575 = vector.shape_cast %574 : vector<1x384x128xbf16> to vector<384x128xbf16>
    %cst_475 = arith.constant dense<0.000000e+00> : vector<64x128xf32>
    %576 = tpu.matmul %573, %575, %cst_475 {dimension_numbers = #tpu.dot_dimension_numbers<[1], [0], [0], [1], [0, 0, 1, 1], [], []>} : vector<64x384xbf16>, vector<384x128xbf16>, vector<64x128xf32> -> vector<64x128xf32>
    %577 = arith.addf %570, %576 : vector<64x128xf32>
    %578 = vector.broadcast %3 : vector<1x128xf32> to vector<64x128xf32>
    %579 = arith.addf %577, %578 : vector<64x128xf32>
    %cst_476 = arith.constant 0.000000e+00 : f32
    %580 = vector.broadcast %cst_476 : f32 to vector<64x128xf32>
    %581 = arith.maximumf %579, %580 : vector<64x128xf32>
    %582 = vector.shape_cast %581 : vector<64x128xf32> to vector<2x2x2x8x128xf32>
    %583 = vector.extract_strided_slice %582 {offsets = [0, 0, 0, 0, 0], sizes = [2, 2, 1, 8, 128], strides = [1, 1, 1, 1, 1]} : vector<2x2x2x8x128xf32> to vector<2x2x1x8x128xf32>
    %584 = vector.shape_cast %583 : vector<2x2x1x8x128xf32> to vector<2x2x8x128xf32>
    %585 = vector.extract_strided_slice %582 {offsets = [0, 0, 1, 0, 0], sizes = [2, 2, 1, 8, 128], strides = [1, 1, 1, 1, 1]} : vector<2x2x2x8x128xf32> to vector<2x2x1x8x128xf32>
    %586 = vector.shape_cast %585 : vector<2x2x1x8x128xf32> to vector<2x2x8x128xf32>
    %587 = arith.maximumf %584, %586 : vector<2x2x8x128xf32>
    %588 = vector.extract_strided_slice %587 {offsets = [0, 0, 0, 0], sizes = [2, 2, 1, 128], strides = [1, 1, 1, 1]} : vector<2x2x8x128xf32> to vector<2x2x1x128xf32>
    %589 = vector.shape_cast %588 : vector<2x2x1x128xf32> to vector<2x2x128xf32>
    %590 = vector.extract_strided_slice %587 {offsets = [0, 0, 1, 0], sizes = [2, 2, 1, 128], strides = [1, 1, 1, 1]} : vector<2x2x8x128xf32> to vector<2x2x1x128xf32>
    %591 = vector.shape_cast %590 : vector<2x2x1x128xf32> to vector<2x2x128xf32>
    %592 = arith.maximumf %589, %591 : vector<2x2x128xf32>
    %593 = vector.extract_strided_slice %592 {offsets = [0, 0, 0], sizes = [2, 1, 16], strides = [1, 1, 1]} : vector<2x2x128xf32> to vector<2x1x16xf32>
    %594 = vector.shape_cast %593 : vector<2x1x16xf32> to vector<2x16xf32>
    %c0_477 = arith.constant 0 : index
    %c0_478 = arith.constant 0 : index
    %c0_479 = arith.constant 0 : index
    %595 = vector.load %arg6[%c0_477, %c0_478, %c0_479] : memref<2x16x16xf32, #tpu.memory_space<vmem>>, vector<2x1x16xf32>
    %596 = vector.shape_cast %595 : vector<2x1x16xf32> to vector<2x16xf32>
    %597 = vector.shape_cast %594 : vector<2x16xf32> to vector<2x1x16xf32>
    tpu.vector_store %arg6[%c0_477, %c0_478, %c0_479], %597 {strides = array<i32>} : memref<2x16x16xf32, #tpu.memory_space<vmem>>, vector<2x1x16xf32>,
    %598 = vector.extract_strided_slice %592 {offsets = [0, 1, 0], sizes = [2, 1, 16], strides = [1, 1, 1]} : vector<2x2x128xf32> to vector<2x1x16xf32>
    %599 = vector.shape_cast %598 : vector<2x1x16xf32> to vector<2x16xf32>
    %c0_480 = arith.constant 0 : index
    %c4_481 = arith.constant 4 : index
    %c0_482 = arith.constant 0 : index
    %600 = vector.load %arg6[%c0_480, %c4_481, %c0_482] : memref<2x16x16xf32, #tpu.memory_space<vmem>>, vector<2x1x16xf32>
    %601 = vector.shape_cast %600 : vector<2x1x16xf32> to vector<2x16xf32>
    %602 = vector.shape_cast %599 : vector<2x16xf32> to vector<2x1x16xf32>
    tpu.vector_store %arg6[%c0_480, %c4_481, %c0_482], %602 {strides = array<i32>} : memref<2x16x16xf32, #tpu.memory_space<vmem>>, vector<2x1x16xf32>,
    %603 = vector.extract_strided_slice %587 {offsets = [0, 0, 2, 0], sizes = [2, 2, 1, 128], strides = [1, 1, 1, 1]} : vector<2x2x8x128xf32> to vector<2x2x1x128xf32>
    %604 = vector.shape_cast %603 : vector<2x2x1x128xf32> to vector<2x2x128xf32>
    %605 = vector.extract_strided_slice %587 {offsets = [0, 0, 3, 0], sizes = [2, 2, 1, 128], strides = [1, 1, 1, 1]} : vector<2x2x8x128xf32> to vector<2x2x1x128xf32>
    %606 = vector.shape_cast %605 : vector<2x2x1x128xf32> to vector<2x2x128xf32>
    %607 = arith.maximumf %604, %606 : vector<2x2x128xf32>
    %608 = vector.extract_strided_slice %607 {offsets = [0, 0, 0], sizes = [2, 1, 16], strides = [1, 1, 1]} : vector<2x2x128xf32> to vector<2x1x16xf32>
    %609 = vector.shape_cast %608 : vector<2x1x16xf32> to vector<2x16xf32>
    %c0_483 = arith.constant 0 : index
    %c1_484 = arith.constant 1 : index
    %c0_485 = arith.constant 0 : index
    %610 = vector.load %arg6[%c0_483, %c1_484, %c0_485] : memref<2x16x16xf32, #tpu.memory_space<vmem>>, vector<2x1x16xf32>
    %611 = vector.shape_cast %610 : vector<2x1x16xf32> to vector<2x16xf32>
    %612 = vector.shape_cast %609 : vector<2x16xf32> to vector<2x1x16xf32>
    tpu.vector_store %arg6[%c0_483, %c1_484, %c0_485], %612 {strides = array<i32>} : memref<2x16x16xf32, #tpu.memory_space<vmem>>, vector<2x1x16xf32>,
    %613 = vector.extract_strided_slice %607 {offsets = [0, 1, 0], sizes = [2, 1, 16], strides = [1, 1, 1]} : vector<2x2x128xf32> to vector<2x1x16xf32>
    %614 = vector.shape_cast %613 : vector<2x1x16xf32> to vector<2x16xf32>
    %c0_486 = arith.constant 0 : index
    %c5_487 = arith.constant 5 : index
    %c0_488 = arith.constant 0 : index
    %615 = vector.load %arg6[%c0_486, %c5_487, %c0_488] : memref<2x16x16xf32, #tpu.memory_space<vmem>>, vector<2x1x16xf32>
    %616 = vector.shape_cast %615 : vector<2x1x16xf32> to vector<2x16xf32>
    %617 = vector.shape_cast %614 : vector<2x16xf32> to vector<2x1x16xf32>
    tpu.vector_store %arg6[%c0_486, %c5_487, %c0_488], %617 {strides = array<i32>} : memref<2x16x16xf32, #tpu.memory_space<vmem>>, vector<2x1x16xf32>,
    %618 = vector.extract_strided_slice %587 {offsets = [0, 0, 4, 0], sizes = [2, 2, 1, 128], strides = [1, 1, 1, 1]} : vector<2x2x8x128xf32> to vector<2x2x1x128xf32>
    %619 = vector.shape_cast %618 : vector<2x2x1x128xf32> to vector<2x2x128xf32>
    %620 = vector.extract_strided_slice %587 {offsets = [0, 0, 5, 0], sizes = [2, 2, 1, 128], strides = [1, 1, 1, 1]} : vector<2x2x8x128xf32> to vector<2x2x1x128xf32>
    %621 = vector.shape_cast %620 : vector<2x2x1x128xf32> to vector<2x2x128xf32>
    %622 = arith.maximumf %619, %621 : vector<2x2x128xf32>
    %623 = vector.extract_strided_slice %622 {offsets = [0, 0, 0], sizes = [2, 1, 16], strides = [1, 1, 1]} : vector<2x2x128xf32> to vector<2x1x16xf32>
    %624 = vector.shape_cast %623 : vector<2x1x16xf32> to vector<2x16xf32>
    %c0_489 = arith.constant 0 : index
    %c2_490 = arith.constant 2 : index
    %c0_491 = arith.constant 0 : index
    %625 = vector.load %arg6[%c0_489, %c2_490, %c0_491] : memref<2x16x16xf32, #tpu.memory_space<vmem>>, vector<2x1x16xf32>
    %626 = vector.shape_cast %625 : vector<2x1x16xf32> to vector<2x16xf32>
    %627 = vector.shape_cast %624 : vector<2x16xf32> to vector<2x1x16xf32>
    tpu.vector_store %arg6[%c0_489, %c2_490, %c0_491], %627 {strides = array<i32>} : memref<2x16x16xf32, #tpu.memory_space<vmem>>, vector<2x1x16xf32>,
    %628 = vector.extract_strided_slice %622 {offsets = [0, 1, 0], sizes = [2, 1, 16], strides = [1, 1, 1]} : vector<2x2x128xf32> to vector<2x1x16xf32>
    %629 = vector.shape_cast %628 : vector<2x1x16xf32> to vector<2x16xf32>
    %c0_492 = arith.constant 0 : index
    %c6_493 = arith.constant 6 : index
    %c0_494 = arith.constant 0 : index
    %630 = vector.load %arg6[%c0_492, %c6_493, %c0_494] : memref<2x16x16xf32, #tpu.memory_space<vmem>>, vector<2x1x16xf32>
    %631 = vector.shape_cast %630 : vector<2x1x16xf32> to vector<2x16xf32>
    %632 = vector.shape_cast %629 : vector<2x16xf32> to vector<2x1x16xf32>
    tpu.vector_store %arg6[%c0_492, %c6_493, %c0_494], %632 {strides = array<i32>} : memref<2x16x16xf32, #tpu.memory_space<vmem>>, vector<2x1x16xf32>,
    %633 = vector.extract_strided_slice %587 {offsets = [0, 0, 6, 0], sizes = [2, 2, 1, 128], strides = [1, 1, 1, 1]} : vector<2x2x8x128xf32> to vector<2x2x1x128xf32>
    %634 = vector.shape_cast %633 : vector<2x2x1x128xf32> to vector<2x2x128xf32>
    %635 = vector.extract_strided_slice %587 {offsets = [0, 0, 7, 0], sizes = [2, 2, 1, 128], strides = [1, 1, 1, 1]} : vector<2x2x8x128xf32> to vector<2x2x1x128xf32>
    %636 = vector.shape_cast %635 : vector<2x2x1x128xf32> to vector<2x2x128xf32>
    %637 = arith.maximumf %634, %636 : vector<2x2x128xf32>
    %638 = vector.extract_strided_slice %637 {offsets = [0, 0, 0], sizes = [2, 1, 16], strides = [1, 1, 1]} : vector<2x2x128xf32> to vector<2x1x16xf32>
    %639 = vector.shape_cast %638 : vector<2x1x16xf32> to vector<2x16xf32>
    %c0_495 = arith.constant 0 : index
    %c3_496 = arith.constant 3 : index
    %c0_497 = arith.constant 0 : index
    %640 = vector.load %arg6[%c0_495, %c3_496, %c0_497] : memref<2x16x16xf32, #tpu.memory_space<vmem>>, vector<2x1x16xf32>
    %641 = vector.shape_cast %640 : vector<2x1x16xf32> to vector<2x16xf32>
    %642 = vector.shape_cast %639 : vector<2x16xf32> to vector<2x1x16xf32>
    tpu.vector_store %arg6[%c0_495, %c3_496, %c0_497], %642 {strides = array<i32>} : memref<2x16x16xf32, #tpu.memory_space<vmem>>, vector<2x1x16xf32>,
    %643 = vector.extract_strided_slice %637 {offsets = [0, 1, 0], sizes = [2, 1, 16], strides = [1, 1, 1]} : vector<2x2x128xf32> to vector<2x1x16xf32>
    %644 = vector.shape_cast %643 : vector<2x1x16xf32> to vector<2x16xf32>
    %c0_498 = arith.constant 0 : index
    %c7_499 = arith.constant 7 : index
    %c0_500 = arith.constant 0 : index
    %645 = vector.load %arg6[%c0_498, %c7_499, %c0_500] : memref<2x16x16xf32, #tpu.memory_space<vmem>>, vector<2x1x16xf32>
    %646 = vector.shape_cast %645 : vector<2x1x16xf32> to vector<2x16xf32>
    %647 = vector.shape_cast %644 : vector<2x16xf32> to vector<2x1x16xf32>
    tpu.vector_store %arg6[%c0_498, %c7_499, %c0_500], %647 {strides = array<i32>} : memref<2x16x16xf32, #tpu.memory_space<vmem>>, vector<2x1x16xf32>,
    %cst_501 = arith.constant 0.000000e+00 : f32
    %648 = vector.broadcast %cst_501 : f32 to vector<64x128xf32>
    %c0_502 = arith.constant 0 : index
    %c4_503 = arith.constant 4 : index
    %c0_504 = arith.constant 0 : index
    %c0_505 = arith.constant 0 : index
    %649 = vector.load %arg7[%c0_502, %c4_503, %c0_504, %c0_505] : memref<2x10x8x384xf32, #tpu.memory_space<vmem>>, vector<2x4x8x384xf32>
    %650 = arith.truncf %649 : vector<2x4x8x384xf32> to vector<2x4x8x384xbf16>
    %651 = vector.shape_cast %650 : vector<2x4x8x384xbf16> to vector<64x384xbf16>
    %c0_506 = arith.constant 0 : index
    %c0_507 = arith.constant 0 : index
    %c0_508 = arith.constant 0 : index
    %652 = vector.load %arg4[%c0_506, %c0_507, %c0_508] : memref<3x384x128xbf16, #tpu.memory_space<vmem>>, vector<1x384x128xbf16>
    %653 = vector.shape_cast %652 : vector<1x384x128xbf16> to vector<384x128xbf16>
    %cst_509 = arith.constant dense<0.000000e+00> : vector<64x128xf32>
    %654 = tpu.matmul %651, %653, %cst_509 {dimension_numbers = #tpu.dot_dimension_numbers<[1], [0], [0], [1], [0, 0, 1, 1], [], []>} : vector<64x384xbf16>, vector<384x128xbf16>, vector<64x128xf32> -> vector<64x128xf32>
    %655 = arith.addf %648, %654 : vector<64x128xf32>
    %c0_510 = arith.constant 0 : index
    %c5_511 = arith.constant 5 : index
    %c0_512 = arith.constant 0 : index
    %c0_513 = arith.constant 0 : index
    %656 = vector.load %arg7[%c0_510, %c5_511, %c0_512, %c0_513] : memref<2x10x8x384xf32, #tpu.memory_space<vmem>>, vector<2x4x8x384xf32>
    %657 = arith.truncf %656 : vector<2x4x8x384xf32> to vector<2x4x8x384xbf16>
    %658 = vector.shape_cast %657 : vector<2x4x8x384xbf16> to vector<64x384xbf16>
    %c1_514 = arith.constant 1 : index
    %c0_515 = arith.constant 0 : index
    %c0_516 = arith.constant 0 : index
    %659 = vector.load %arg4[%c1_514, %c0_515, %c0_516] : memref<3x384x128xbf16, #tpu.memory_space<vmem>>, vector<1x384x128xbf16>
    %660 = vector.shape_cast %659 : vector<1x384x128xbf16> to vector<384x128xbf16>
    %cst_517 = arith.constant dense<0.000000e+00> : vector<64x128xf32>
    %661 = tpu.matmul %658, %660, %cst_517 {dimension_numbers = #tpu.dot_dimension_numbers<[1], [0], [0], [1], [0, 0, 1, 1], [], []>} : vector<64x384xbf16>, vector<384x128xbf16>, vector<64x128xf32> -> vector<64x128xf32>
    %662 = arith.addf %655, %661 : vector<64x128xf32>
    %c0_518 = arith.constant 0 : index
    %c6_519 = arith.constant 6 : index
    %c0_520 = arith.constant 0 : index
    %c0_521 = arith.constant 0 : index
    %663 = vector.load %arg7[%c0_518, %c6_519, %c0_520, %c0_521] : memref<2x10x8x384xf32, #tpu.memory_space<vmem>>, vector<2x4x8x384xf32>
    %664 = arith.truncf %663 : vector<2x4x8x384xf32> to vector<2x4x8x384xbf16>
    %665 = vector.shape_cast %664 : vector<2x4x8x384xbf16> to vector<64x384xbf16>
    %c2_522 = arith.constant 2 : index
    %c0_523 = arith.constant 0 : index
    %c0_524 = arith.constant 0 : index
    %666 = vector.load %arg4[%c2_522, %c0_523, %c0_524] : memref<3x384x128xbf16, #tpu.memory_space<vmem>>, vector<1x384x128xbf16>
    %667 = vector.shape_cast %666 : vector<1x384x128xbf16> to vector<384x128xbf16>
    %cst_525 = arith.constant dense<0.000000e+00> : vector<64x128xf32>
    %668 = tpu.matmul %665, %667, %cst_525 {dimension_numbers = #tpu.dot_dimension_numbers<[1], [0], [0], [1], [0, 0, 1, 1], [], []>} : vector<64x384xbf16>, vector<384x128xbf16>, vector<64x128xf32> -> vector<64x128xf32>
    %669 = arith.addf %662, %668 : vector<64x128xf32>
    %670 = vector.broadcast %3 : vector<1x128xf32> to vector<64x128xf32>
    %671 = arith.addf %669, %670 : vector<64x128xf32>
    %cst_526 = arith.constant 0.000000e+00 : f32
    %672 = vector.broadcast %cst_526 : f32 to vector<64x128xf32>
    %673 = arith.maximumf %671, %672 : vector<64x128xf32>
    %674 = vector.shape_cast %673 : vector<64x128xf32> to vector<2x2x2x8x128xf32>
    %675 = vector.extract_strided_slice %674 {offsets = [0, 0, 0, 0, 0], sizes = [2, 2, 1, 8, 128], strides = [1, 1, 1, 1, 1]} : vector<2x2x2x8x128xf32> to vector<2x2x1x8x128xf32>
    %676 = vector.shape_cast %675 : vector<2x2x1x8x128xf32> to vector<2x2x8x128xf32>
    %677 = vector.extract_strided_slice %674 {offsets = [0, 0, 1, 0, 0], sizes = [2, 2, 1, 8, 128], strides = [1, 1, 1, 1, 1]} : vector<2x2x2x8x128xf32> to vector<2x2x1x8x128xf32>
    %678 = vector.shape_cast %677 : vector<2x2x1x8x128xf32> to vector<2x2x8x128xf32>
    %679 = arith.maximumf %676, %678 : vector<2x2x8x128xf32>
    %680 = vector.extract_strided_slice %679 {offsets = [0, 0, 0, 0], sizes = [2, 2, 1, 128], strides = [1, 1, 1, 1]} : vector<2x2x8x128xf32> to vector<2x2x1x128xf32>
    %681 = vector.shape_cast %680 : vector<2x2x1x128xf32> to vector<2x2x128xf32>
    %682 = vector.extract_strided_slice %679 {offsets = [0, 0, 1, 0], sizes = [2, 2, 1, 128], strides = [1, 1, 1, 1]} : vector<2x2x8x128xf32> to vector<2x2x1x128xf32>
    %683 = vector.shape_cast %682 : vector<2x2x1x128xf32> to vector<2x2x128xf32>
    %684 = arith.maximumf %681, %683 : vector<2x2x128xf32>
    %685 = vector.extract_strided_slice %684 {offsets = [0, 0, 0], sizes = [2, 1, 16], strides = [1, 1, 1]} : vector<2x2x128xf32> to vector<2x1x16xf32>
    %686 = vector.shape_cast %685 : vector<2x1x16xf32> to vector<2x16xf32>
    %c0_527 = arith.constant 0 : index
    %c8_528 = arith.constant 8 : index
    %c0_529 = arith.constant 0 : index
    %687 = vector.load %arg6[%c0_527, %c8_528, %c0_529] : memref<2x16x16xf32, #tpu.memory_space<vmem>>, vector<2x1x16xf32>
    %688 = vector.shape_cast %687 : vector<2x1x16xf32> to vector<2x16xf32>
    %689 = vector.shape_cast %686 : vector<2x16xf32> to vector<2x1x16xf32>
    tpu.vector_store %arg6[%c0_527, %c8_528, %c0_529], %689 {strides = array<i32>} : memref<2x16x16xf32, #tpu.memory_space<vmem>>, vector<2x1x16xf32>,
    %690 = vector.extract_strided_slice %684 {offsets = [0, 1, 0], sizes = [2, 1, 16], strides = [1, 1, 1]} : vector<2x2x128xf32> to vector<2x1x16xf32>
    %691 = vector.shape_cast %690 : vector<2x1x16xf32> to vector<2x16xf32>
    %c0_530 = arith.constant 0 : index
    %c12 = arith.constant 12 : index
    %c0_531 = arith.constant 0 : index
    %692 = vector.load %arg6[%c0_530, %c12, %c0_531] : memref<2x16x16xf32, #tpu.memory_space<vmem>>, vector<2x1x16xf32>
    %693 = vector.shape_cast %692 : vector<2x1x16xf32> to vector<2x16xf32>
    %694 = vector.shape_cast %691 : vector<2x16xf32> to vector<2x1x16xf32>
    tpu.vector_store %arg6[%c0_530, %c12, %c0_531], %694 {strides = array<i32>} : memref<2x16x16xf32, #tpu.memory_space<vmem>>, vector<2x1x16xf32>,
    %695 = vector.extract_strided_slice %679 {offsets = [0, 0, 2, 0], sizes = [2, 2, 1, 128], strides = [1, 1, 1, 1]} : vector<2x2x8x128xf32> to vector<2x2x1x128xf32>
    %696 = vector.shape_cast %695 : vector<2x2x1x128xf32> to vector<2x2x128xf32>
    %697 = vector.extract_strided_slice %679 {offsets = [0, 0, 3, 0], sizes = [2, 2, 1, 128], strides = [1, 1, 1, 1]} : vector<2x2x8x128xf32> to vector<2x2x1x128xf32>
    %698 = vector.shape_cast %697 : vector<2x2x1x128xf32> to vector<2x2x128xf32>
    %699 = arith.maximumf %696, %698 : vector<2x2x128xf32>
    %700 = vector.extract_strided_slice %699 {offsets = [0, 0, 0], sizes = [2, 1, 16], strides = [1, 1, 1]} : vector<2x2x128xf32> to vector<2x1x16xf32>
    %701 = vector.shape_cast %700 : vector<2x1x16xf32> to vector<2x16xf32>
    %c0_532 = arith.constant 0 : index
    %c9_533 = arith.constant 9 : index
    %c0_534 = arith.constant 0 : index
    %702 = vector.load %arg6[%c0_532, %c9_533, %c0_534] : memref<2x16x16xf32, #tpu.memory_space<vmem>>, vector<2x1x16xf32>
    %703 = vector.shape_cast %702 : vector<2x1x16xf32> to vector<2x16xf32>
    %704 = vector.shape_cast %701 : vector<2x16xf32> to vector<2x1x16xf32>
    tpu.vector_store %arg6[%c0_532, %c9_533, %c0_534], %704 {strides = array<i32>} : memref<2x16x16xf32, #tpu.memory_space<vmem>>, vector<2x1x16xf32>,
    %705 = vector.extract_strided_slice %699 {offsets = [0, 1, 0], sizes = [2, 1, 16], strides = [1, 1, 1]} : vector<2x2x128xf32> to vector<2x1x16xf32>
    %706 = vector.shape_cast %705 : vector<2x1x16xf32> to vector<2x16xf32>
    %c0_535 = arith.constant 0 : index
    %c13 = arith.constant 13 : index
    %c0_536 = arith.constant 0 : index
    %707 = vector.load %arg6[%c0_535, %c13, %c0_536] : memref<2x16x16xf32, #tpu.memory_space<vmem>>, vector<2x1x16xf32>
    %708 = vector.shape_cast %707 : vector<2x1x16xf32> to vector<2x16xf32>
    %709 = vector.shape_cast %706 : vector<2x16xf32> to vector<2x1x16xf32>
    tpu.vector_store %arg6[%c0_535, %c13, %c0_536], %709 {strides = array<i32>} : memref<2x16x16xf32, #tpu.memory_space<vmem>>, vector<2x1x16xf32>,
    %710 = vector.extract_strided_slice %679 {offsets = [0, 0, 4, 0], sizes = [2, 2, 1, 128], strides = [1, 1, 1, 1]} : vector<2x2x8x128xf32> to vector<2x2x1x128xf32>
    %711 = vector.shape_cast %710 : vector<2x2x1x128xf32> to vector<2x2x128xf32>
    %712 = vector.extract_strided_slice %679 {offsets = [0, 0, 5, 0], sizes = [2, 2, 1, 128], strides = [1, 1, 1, 1]} : vector<2x2x8x128xf32> to vector<2x2x1x128xf32>
    %713 = vector.shape_cast %712 : vector<2x2x1x128xf32> to vector<2x2x128xf32>
    %714 = arith.maximumf %711, %713 : vector<2x2x128xf32>
    %715 = vector.extract_strided_slice %714 {offsets = [0, 0, 0], sizes = [2, 1, 16], strides = [1, 1, 1]} : vector<2x2x128xf32> to vector<2x1x16xf32>
    %716 = vector.shape_cast %715 : vector<2x1x16xf32> to vector<2x16xf32>
    %c0_537 = arith.constant 0 : index
    %c10_538 = arith.constant 10 : index
    %c0_539 = arith.constant 0 : index
    %717 = vector.load %arg6[%c0_537, %c10_538, %c0_539] : memref<2x16x16xf32, #tpu.memory_space<vmem>>, vector<2x1x16xf32>
    %718 = vector.shape_cast %717 : vector<2x1x16xf32> to vector<2x16xf32>
    %719 = vector.shape_cast %716 : vector<2x16xf32> to vector<2x1x16xf32>
    tpu.vector_store %arg6[%c0_537, %c10_538, %c0_539], %719 {strides = array<i32>} : memref<2x16x16xf32, #tpu.memory_space<vmem>>, vector<2x1x16xf32>,
    %720 = vector.extract_strided_slice %714 {offsets = [0, 1, 0], sizes = [2, 1, 16], strides = [1, 1, 1]} : vector<2x2x128xf32> to vector<2x1x16xf32>
    %721 = vector.shape_cast %720 : vector<2x1x16xf32> to vector<2x16xf32>
    %c0_540 = arith.constant 0 : index
    %c14 = arith.constant 14 : index
    %c0_541 = arith.constant 0 : index
    %722 = vector.load %arg6[%c0_540, %c14, %c0_541] : memref<2x16x16xf32, #tpu.memory_space<vmem>>, vector<2x1x16xf32>
    %723 = vector.shape_cast %722 : vector<2x1x16xf32> to vector<2x16xf32>
    %724 = vector.shape_cast %721 : vector<2x16xf32> to vector<2x1x16xf32>
    tpu.vector_store %arg6[%c0_540, %c14, %c0_541], %724 {strides = array<i32>} : memref<2x16x16xf32, #tpu.memory_space<vmem>>, vector<2x1x16xf32>,
    %725 = vector.extract_strided_slice %679 {offsets = [0, 0, 6, 0], sizes = [2, 2, 1, 128], strides = [1, 1, 1, 1]} : vector<2x2x8x128xf32> to vector<2x2x1x128xf32>
    %726 = vector.shape_cast %725 : vector<2x2x1x128xf32> to vector<2x2x128xf32>
    %727 = vector.extract_strided_slice %679 {offsets = [0, 0, 7, 0], sizes = [2, 2, 1, 128], strides = [1, 1, 1, 1]} : vector<2x2x8x128xf32> to vector<2x2x1x128xf32>
    %728 = vector.shape_cast %727 : vector<2x2x1x128xf32> to vector<2x2x128xf32>
    %729 = arith.maximumf %726, %728 : vector<2x2x128xf32>
    %730 = vector.extract_strided_slice %729 {offsets = [0, 0, 0], sizes = [2, 1, 16], strides = [1, 1, 1]} : vector<2x2x128xf32> to vector<2x1x16xf32>
    %731 = vector.shape_cast %730 : vector<2x1x16xf32> to vector<2x16xf32>
    %c0_542 = arith.constant 0 : index
    %c11 = arith.constant 11 : index
    %c0_543 = arith.constant 0 : index
    %732 = vector.load %arg6[%c0_542, %c11, %c0_543] : memref<2x16x16xf32, #tpu.memory_space<vmem>>, vector<2x1x16xf32>
    %733 = vector.shape_cast %732 : vector<2x1x16xf32> to vector<2x16xf32>
    %734 = vector.shape_cast %731 : vector<2x16xf32> to vector<2x1x16xf32>
    tpu.vector_store %arg6[%c0_542, %c11, %c0_543], %734 {strides = array<i32>} : memref<2x16x16xf32, #tpu.memory_space<vmem>>, vector<2x1x16xf32>,
    %735 = vector.extract_strided_slice %729 {offsets = [0, 1, 0], sizes = [2, 1, 16], strides = [1, 1, 1]} : vector<2x2x128xf32> to vector<2x1x16xf32>
    %736 = vector.shape_cast %735 : vector<2x1x16xf32> to vector<2x16xf32>
    %c0_544 = arith.constant 0 : index
    %c15 = arith.constant 15 : index
    %c0_545 = arith.constant 0 : index
    %737 = vector.load %arg6[%c0_544, %c15, %c0_545] : memref<2x16x16xf32, #tpu.memory_space<vmem>>, vector<2x1x16xf32>
    %738 = vector.shape_cast %737 : vector<2x1x16xf32> to vector<2x16xf32>
    %739 = vector.shape_cast %736 : vector<2x16xf32> to vector<2x1x16xf32>
    tpu.vector_store %arg6[%c0_544, %c15, %c0_545], %739 {strides = array<i32>} : memref<2x16x16xf32, #tpu.memory_space<vmem>>, vector<2x1x16xf32>,
    return
  }
  func.func @transform_0(%arg0: i32) -> (i32, i32, i32, i32) {
    %c0_i32 = arith.constant 0 : i32
    %c0_i32_0 = arith.constant 0 : i32
    %c0_i32_1 = arith.constant 0 : i32
    %c0_i32_2 = arith.constant 0 : i32
    %c0_i32_3 = arith.constant 0 : i32
    return %c0_i32, %c0_i32_0, %c0_i32_1, %c0_i32_2 : i32, i32, i32, i32
  }
  func.func @transform_1(%arg0: i32) -> (i32, i32, i32) {
    %c0_i32 = arith.constant 0 : i32
    %c0_i32_0 = arith.constant 0 : i32
    %c0_i32_1 = arith.constant 0 : i32
    %c0_i32_2 = arith.constant 0 : i32
    return %c0_i32, %c0_i32_0, %c0_i32_1 : i32, i32, i32
  }
  func.func @transform_2(%arg0: i32) -> (i32, i32) {
    %c0_i32 = arith.constant 0 : i32
    %c0_i32_0 = arith.constant 0 : i32
    %c0_i32_1 = arith.constant 0 : i32
    return %c0_i32, %c0_i32_0 : i32, i32
  }
  func.func @transform_3(%arg0: i32) -> (i32, i32, i32) {
    %c0_i32 = arith.constant 0 : i32
    %c0_i32_0 = arith.constant 0 : i32
    %c0_i32_1 = arith.constant 0 : i32
    %c0_i32_2 = arith.constant 0 : i32
    return %c0_i32, %c0_i32_0, %c0_i32_1 : i32, i32, i32
  }
  func.func @transform_4(%arg0: i32) -> (i32, i32) {
    %c0_i32 = arith.constant 0 : i32
    %c0_i32_0 = arith.constant 0 : i32
    %c0_i32_1 = arith.constant 0 : i32
    return %c0_i32, %c0_i32_0 : i32, i32
  }
  func.func @transform_5(%arg0: i32) -> (i32, i32, i32) {
    %c0_i32 = arith.constant 0 : i32
    %c0_i32_0 = arith.constant 0 : i32
    %c0_i32_1 = arith.constant 0 : i32
    %c0_i32_2 = arith.constant 0 : i32
    return %c0_i32, %c0_i32_0, %c0_i32_1 : i32, i32, i32
  }
}

</mosaic_0001>

<bundles_post_ra>
// kernel: convolution_net_forward.3
= control target key start
LH: loop header
LB: loop body
LE: loop exit
PB: predicated region body
PF: predicated region fallthrough
CT: control target
= control target key end

     0   :  { %s6969_s0 = inlined_call_operand.vmem [shape: f32[2,256], index: 0, kind: input, shape index: {}]   ;;  %s6970_s1 = inlined_call_operand.hbm [shape: bf16[256,5120], index: 1, kind: input, shape index: {}]   ;;  %s6971_s2 = inlined_call_operand.hbm [shape: f32[1,5120], index: 2, kind: input, shape index: {}]   ;;  %s6972_s3 = inlined_call_operand.vmem [shape: bf16[5120,128], index: 3, kind: input, shape index: {}]   ;;  %s6973_s4 = inlined_call_operand.hbm [shape: f32[2,1,128], index: 4, kind: input, shape index: {}]   ;;  %s6974_s5 = inlined_call_operand.vmem [shape: f32[2,2,128], index: 5, kind: output, shape index: {}]  }
   0x1   :  { %6979 = sst [smem:[#allocation12_spill]] %s6970_s1 }
   0x2   :  { %6980 = sst [smem:[#allocation13_spill]] %s6971_s2 }
   0x3   :  { %10 = vsyncpa [#allocation3], 0 }
   0x4   :  { %12 = vsyncpa [#allocation3 + $0x1], 0 }
   0x5   :  { %13 = vsyncpa [#allocation5], 0 }
   0x6   :  { %15 = vsyncpa [#allocation5 + $0x1], 0  ;;  %s6183_s18 = smov 0   ;;  %s6185_s19 = smov 0  }
   0x7   :  { %s6187_s20 = smov 0   ;;  %s6189_s21 = smov 0  }
   0x8 LB: > { %6981 = sst [smem:[#allocation9_spill]] %s6141_s20  ;;  %s6202_s22 = sadd.s32 4294967295, %s6145_s21   ;;  %s6145_s21 = sphi %s6189_s21, %s6993_s21   ;;  %s6141_s20 = sphi %s6187_s20, %s6995_s20   ;;  %s6137_s19 = sphi %s6185_s19, %s6997_s19   ;;  %s6133_s18 = sphi %s6183_s18, %s6996_s18  }
   0x9   : > { %s6205_s23 = sadd.s32 1, %s6145_s21   ;;  %s49_s25 = sadd.s32 1, %s6141_s20 }
   0xa   : > { %6982 = sst [smem:[#allocation10_spill]] %s6205_s23  ;;  %s46_s24 = ssub.s32 %s6145_s21, %s6205_s23 }
   0xb   : > { %p47_p0 = scmp.eq.s32.totalorder %s46_s24, 0  ;;  %p56_p1 = scmp.ne.s32.totalorder %s6141_s20, %s6137_s19 }
   0xc   : > { %p57_p2 = scmp.eq.s32.totalorder %s6145_s21, 0  ;;  %p62_p3 = scmp.ne.s32.totalorder %s6137_s19, %s6133_s18 }
   0xd   : > { %s6215_s26 = scalar_select %p47_p0, %s6141_s20, %s49_s25  }
   0xe   : > { %p58_p4 = por %p57_p2, %p56_p1  ;;  %p63_p5 = scmp.eq.s32.totalorder %s6202_s22, 0 }
   0xf   : > { %6983 = sst [smem:[#allocation11_spill]] %s6215_s26  ;;  %p5347_p6 = scmp.lt.s32.totalorder %s6145_s21, 2 }
  0x10   : > { %p6219_p7 = por %p63_p5, %p62_p3  ;;  %s6224_s28 = sand.u32 1, %s6141_s20  }
  0x11   : > { %s5327_s29 = smul.u32 2560, %s6224_s28  ;;  %p6227_p8 = pnand %p5347_p6, %p58_p4 }
  0x12   : > { %s6984_s27 = scalar_select %p6219_p7, 1, 0 }
  0x13   : > { %s214_s6 = sand.u32 1, %s6145_s21   ;;  %s5328_s7 = smul.u32 20, %s6224_s28 }
  0x14   : > { %s5106_s8 = smul.u32 320, %s6145_s21  ;;  %s6986_s2 = sld [smem:[#allocation13_spill]] }
  0x15   : > { %s218_s9 = scalar_lea.vmem [#allocation4], %s5328_s7  ;;  %s6238_s14 = scalar_lea.sflag [#allocation5], %s214_s6 }
  0x16   : > { %s226_s10 = sshll.u32 %s218_s9, 4  ;;  %p6242_p11 = pneg %p6227_p8  ;;  %s227_s10 = int_to_ptr.vmem [resolvable:$true] %s226_s10 }
  0x1a   : > { %s224_s13 = scalar_lea.hbm %s6986_s2, %s5106_s8  ;;  %s6028_s24 = scalar_lea.hbm %s6986_s2, 640 }
  0x1b   : > { %s6023_s15 = scalar_lea.hbm %s224_s13, 320  ;;  %p6029_p0 = scmp.lt.s32.totalorder %s224_s13, %s6986_s2 }
  0x1c   : > { %p6024_p10 = scmp.ne.s32.totalorder %s224_s13, %s6023_s15  ;;  %p6030_p1 = scmp.lt.s32.totalorder %s6028_s24, %s6023_s15 }
  0x1e   : > { %p6026_p12 = pnand %p6242_p11, %p6024_p10  ;;  %p6031_p2 = por %p6030_p1, %p6029_p0 }
  0x20   : > { %p6027_p13 = pneg %p6026_p12 }
  0x22   : > { %p6032_p3 = pnand %p6031_p2, %p6027_p13 }
  0x24   : > { %6035 = shalt.err (!%p6032_p3)
}
  0x25   : > { %s6036_s6 = scalar_lea.vmem %s227_s10, 320  ;;  %s6147_s8 = smov [#allocation4]  }
  0x26   : > { %p6037_p4 = scmp.ne.s32.totalorder %s227_s10, %s6036_s6  ;;  %s6041_s9 = sshll.u32 %s6147_s8, 4  ;;  %s6042_s9 = int_to_ptr.vmem [resolvable:$false] %s6041_s9 }
  0x27   : > { %s6043_s11 = scalar_lea.vmem %s6042_s9, 640  ;;  %p6044_p10 = scmp.lt.s32.totalorder %s227_s10, %s6042_s9 }
  0x28   : > { %p6039_p5 = pnand %p6037_p4, %p6242_p11  ;;  %p6045_p12 = scmp.lt.s32.totalorder %s6043_s11, %s6036_s6 }
  0x2a   : > { %p6040_p6 = pneg %p6039_p5  ;;  %p6046_p9 = por %p6045_p12, %p6044_p10 }
  0x2c   : > { %p6047_p7 = pnand %p6046_p9, %p6040_p6 }
  0x2e   : > { %6050 = shalt.err (!%p6047_p7)
}
  0x2f   : > { %5343 = dma.hbm_to_vmem [thread:$0]  (!%p6227_p8), %s224_s13, 320, %s227_s10, %s6238_s14  }
  0x30   : > { %p257_p13 = scmp.lt.s32.totalorder %s6145_s21, 3  ;;  %s5105_s12 = smul.u32 1280, %s6145_s21 }
  0x31   : > { %p6988_p0 = scmp.ge.s32.totalorder %s6145_s21, 1  ;;  %s197_s17 = scalar_lea.vmem [#allocation2], %s5327_s29 }
  0x32   : > { %s204_s18 = sshll.u32 %s197_s17, 4  ;;  %s6990_s1 = sld [smem:[#allocation12_spill]]  ;;  %s6274_s18 = int_to_ptr.vmem [resolvable:$true] %s204_s18 }
  0x33   : > { %p6263_p1 = pnand %p6988_p0, %p257_p13  ;;  %s194_s10 = scalar_lea.sflag [#allocation3], %s6224_s28 }
  0x35   : > { %s6989_s15 = scalar_select %p6263_p1, 1, 0 }
  0x38   : > { %s6272_s7 = scalar_lea.hbm %s6990_s1, %s5105_s12  ;;  %s6056_s29 = scalar_lea.hbm %s6990_s1, 81920 }
  0x39   : > { %s6051_s13 = scalar_lea.hbm %s6272_s7, 40960  ;;  %p6057_p3 = scmp.lt.s32.totalorder %s6272_s7, %s6990_s1 }
  0x3a   : > { %p6052_p7 = scmp.ne.s32.totalorder %s6272_s7, %s6051_s13  ;;  %p6058_p4 = scmp.lt.s32.totalorder %s6056_s29, %s6051_s13 }
  0x3c   : > { %p6054_p9 = pnand %p6052_p7, %p6242_p11  ;;  %p6059_p5 = por %p6058_p4, %p6057_p3 }
  0x3e   : > { %p6055_p2 = pneg %p6054_p9 }
  0x40   : > { %p6060_p6 = pnand %p6059_p5, %p6055_p2 }
  0x42   : > { %6063 = shalt.err (!%p6060_p6)
}
  0x43   : > { %s6064_s12 = scalar_lea.vmem %s6274_s18, 40960  ;;  %s6148_s17 = smov [#allocation2]  }
  0x44   : > { %p6065_p10 = scmp.ne.s32.totalorder %s6274_s18, %s6064_s12  ;;  %s6069_s24 = sshll.u32 %s6148_s17, 4  ;;  %s6070_s24 = int_to_ptr.vmem [resolvable:$false] %s6069_s24 }
  0x45   : > { %s6071_s25 = scalar_lea.vmem %s6070_s24, 81920  ;;  %p6072_p0 = scmp.lt.s32.totalorder %s6274_s18, %s6070_s24 }
  0x46   : > { %p6067_p12 = pnand %p6065_p10, %p6242_p11  ;;  %p6073_p7 = scmp.lt.s32.totalorder %s6071_s25, %s6064_s12 }
  0x48   : > { %p6068_p13 = pneg %p6067_p12  ;;  %p6074_p9 = por %p6073_p7, %p6072_p0 }
  0x4a   : > { %p6075_p1 = pnand %p6074_p9, %p6068_p13 }
  0x4c   : > { %6078 = shalt.err (!%p6075_p1)
}
  0x4d   : > { %s6149_s13 = smov 2560   ;;  %s6150_s6 = smov 1280  }
  0x4e   : > { %s6151_s8 = smov 80   ;;  %s4617_s29 = sshll.u32 %s6145_s21, 4 }
  0x4f   : > { %5340 = dma.hbm_to_vmem [thread:$0]  (!%p6227_p8), %s6272_s7, 40960, %s6274_s18, %s194_s10, %s6149_s13, %s6150_s6, %s6151_s8  }
  0x50   : > { %s245_s9 = scalar_lea.vmem [#allocation6], %s6224_s28  ;;  %s250_s24 = scalar_lea.hbm %s6973_s4, %s4617_s29 }
  0x51   : > { %s252_s11 = sshll.u32 %s245_s9, 4  ;;  %s6079_s25 = scalar_lea.hbm %s250_s24, 16  ;;  %s253_s11 = int_to_ptr.vmem [resolvable:$true] %s252_s11 }
  0x52   : > { %p6080_p1 = scmp.ne.s32.totalorder %s250_s24, %s6079_s25  ;;  %s6084_s26 = scalar_lea.hbm %s6973_s4, 32 }
  0x53   : > { %p6085_p4 = scmp.lt.s32.totalorder %s250_s24, %s6973_s4  ;;  %p6086_p5 = scmp.lt.s32.totalorder %s6084_s26, %s6079_s25 }
  0x54   : > { %p6082_p2 = pnand %p6080_p1, %p6242_p11 }
  0x55   : > { %p6087_p6 = por %p6086_p5, %p6085_p4 }
  0x56   : > { %p6083_p3 = pneg %p6082_p2 }
  0x58   : > { %p6088_p10 = pnand %p6087_p6, %p6083_p3 }
  0x5a   : > { %6091 = shalt.err (!%p6088_p10)
}
  0x5b   : > { %s6092_s21 = scalar_lea.vmem %s253_s11, 16  ;;  %s6152_s28 = smov [#allocation6]  }
  0x5c   : > { %p6093_p12 = scmp.ne.s32.totalorder %s253_s11, %s6092_s21  ;;  %s6097_s18 = sshll.u32 %s6152_s28, 4  ;;  %s6098_s18 = int_to_ptr.vmem [resolvable:$false] %s6097_s18 }
  0x5d   : > { %s6099_s7 = scalar_lea.vmem %s6098_s18, 32  ;;  %p6100_p7 = scmp.lt.s32.totalorder %s253_s11, %s6098_s18 }
  0x5e   : > { %p6095_p13 = pnand %p6093_p12, %p6242_p11  ;;  %p6101_p9 = scmp.lt.s32.totalorder %s6099_s7, %s6092_s21 }
  0x60   : > { %p6096_p0 = pneg %p6095_p13  ;;  %p6102_p1 = por %p6101_p9, %p6100_p7 }
  0x62   : > { %p6103_p2 = pnand %p6102_p1, %p6096_p0 }
  0x64   : > { %6106 = shalt.err (!%p6103_p2)
}
  0x65   : > { %5346 = dma.hbm_to_vmem [thread:$0]  (!%p6227_p8), %s250_s24, 16, %s253_s11, %s6238_s14  }
  0x66   : > { %p6991_p3 = scmp.ne.s32.totalorder %s6989_s15, 0 }
  0x67   : > { %s6320_s1 = sand.u32 (!%p6991_p3), 1, %s6137_s19   ;;  %p6992_p11 = scmp.ne.s32.totalorder (!%p6991_p3), %s6984_s27, 0 }
  0x68   : > { %261 = sbr.rel (%p6991_p3) target bundleno = 837 (0x345), region = 40  ;;  %s264_s20 = scalar_lea.sflag (!%p6991_p3), [#allocation3], %s6320_s1 }
  0x69   : > { %s5329_s2 = smul.u32 (!%p6991_p3), 2560, %s6320_s1 }
  0x6b   : > { %s6324_s23 = scalar_lea.vmem (!%p6991_p3), [#allocation2], %s5329_s2 }
  0x6d   : > { %6124 = dma.done.wait (%p6992_p11), %s264_s20, 40960  }
  0x6e   : > { %6126 = vsyncadd (%p6992_p11), %s264_s20, 4294926336  ;;  %s272_s26 = sand.u32 1, %s6202_s22   ;;  %s5330_s30 = smul.u32 20, %s6320_s1 }
  0x6f   : > { %s273_s14 = scalar_lea.sflag [#allocation5], %s272_s26 }
  0x70   : > { %s6332_s16 = scalar_lea.vmem [#allocation4], %s5330_s30 }
  0x71   : > { %6128 = dma.done.wait (%p6992_p11), %s273_s14, 336  }
  0x72   : > { %6130 = vsyncadd (%p6992_p11), %s273_s14, 4294966960  ;;  %v5383_v0 = vld [vmem:[%s6324_s23 + $0x464] ss:$80 sps:$4 sm:$0xff]   ;;  %v5385_v1 = vld [vmem:[%s6324_s23 + $0x46c] ss:$80 sps:$4 sm:$0xff]   ;;  %s326_s10 = smul.u32 320, %s6202_s22 }
  0x73   : > { %2377 = vmatprep.subr.bf16.mxu0 %v5383_v0  ;;  %v5387_v2 = vld [vmem:[%s6324_s23 + $0x460] ss:$80 sps:$4 sm:$0xff]   ;;  %v5388_v3 = vld [vmem:[%s6324_s23 + $0x468] ss:$80 sps:$4 sm:$0xff]   ;;  %2418 = vmatprep.subr.bf16.mxu1 %v5385_v1  ;;  %v5389_v4 = vld [vmem:[%s6324_s23 + $0x3c4] ss:$80 sps:$4 sm:$0xff]  }
  0x74   : > { %2378 = vmatpush1.bf16.msra.mxu0 %v5387_v2  ;;  %2419 = vmatpush1.bf16.msra.mxu1 %v5388_v3  ;;  %v5391_v5 = vld [vmem:[%s6324_s23 + $0x3cc] ss:$80 sps:$4 sm:$0xff]   ;;  %v5393_v6 = vld [vmem:[%s6324_s23 + $0x3c0] ss:$80 sps:$4 sm:$0xff]   ;;  %v5394_v7 = vld [vmem:[%s6324_s23 + $0x3c8] ss:$80 sps:$4 sm:$0xff]  }
  0x75   : > { %2379 = vmatprep.subr.bf16.mxu0 %v5389_v4  ;;  %2420 = vmatprep.subr.bf16.mxu1 %v5391_v5  ;;  %v5395_v8 = vld [vmem:[%s6324_s23 + $0x324] ss:$80 sps:$4 sm:$0xff]   ;;  %v5397_v9 = vld [vmem:[%s6324_s23 + $0x32c] ss:$80 sps:$4 sm:$0xff]   ;;  %v5399_v10 = vld [vmem:[%s6324_s23 + $0x320] ss:$80 sps:$4 sm:$0xff]  }
  0x76   : > { %v5400_v11 = vld [vmem:[%s6324_s23 + $0x328] ss:$80 sps:$4 sm:$0xff]   ;;  %v5401_v12 = vld [vmem:[%s6324_s23 + $0x284] ss:$80 sps:$4 sm:$0xff]   ;;  %v5403_v13 = vld [vmem:[%s6324_s23 + $0x28c] ss:$80 sps:$4 sm:$0xff]  }
  0x77   : > { %v5405_v14 = vld [vmem:[%s6324_s23 + $0x280] ss:$80 sps:$4 sm:$0xff]   ;;  %v5406_v15 = vld [vmem:[%s6324_s23 + $0x288] ss:$80 sps:$4 sm:$0xff]   ;;  %v5407_v16 = vld [vmem:[%s6324_s23 + $0x1e4] ss:$80 sps:$4 sm:$0xff]  }
  0x78   : > { %2380 = vmatpush1.bf16.msra.mxu0 %v5393_v6  ;;  %2421 = vmatpush1.bf16.msra.mxu1 %v5394_v7  ;;  %v5409_v17 = vld [vmem:[%s6324_s23 + $0x1ec] ss:$80 sps:$4 sm:$0xff]   ;;  %v5411_v18 = vld [vmem:[%s6324_s23 + $0x1e0] ss:$80 sps:$4 sm:$0xff]   ;;  %v5412_v19 = vld [vmem:[%s6324_s23 + $0x1e8] ss:$80 sps:$4 sm:$0xff]  }
  0x79   : > { %2381 = vmatprep.subr.bf16.mxu0 %v5395_v8  ;;  %2422 = vmatprep.subr.bf16.mxu1 %v5397_v9  ;;  %v5413_v20 = vld [vmem:[%s6324_s23 + $0x144] ss:$80 sps:$4 sm:$0xff]   ;;  %v5415_v21 = vld [vmem:[%s6324_s23 + $0x14c] ss:$80 sps:$4 sm:$0xff]   ;;  %v5417_v22 = vld [vmem:[%s6324_s23 + $0x140] ss:$80 sps:$4 sm:$0xff]  }
  0x7a   : > { %v5418_v23 = vld [vmem:[%s6324_s23 + $0x148] ss:$80 sps:$4 sm:$0xff]   ;;  %v5419_v24 = vld [vmem:[%s6324_s23 + $0xa4] ss:$80 sps:$4 sm:$0xff]   ;;  %v5421_v25 = vld [vmem:[%s6324_s23 + $0xac] ss:$80 sps:$4 sm:$0xff]  }
  0x7b   : > { %v5423_v26 = vld [vmem:[%s6324_s23 + $0xa0] ss:$80 sps:$4 sm:$0xff]   ;;  %v5424_v27 = vld [vmem:[%s6324_s23 + $0xa8] ss:$80 sps:$4 sm:$0xff]   ;;  %v5425_v28 = vld [vmem:[%s6324_s23 + $0x4] ss:$80 sps:$4 sm:$0xff]  }
  0x7c   : > { %2382 = vmatpush1.bf16.msra.mxu0 %v5399_v10  ;;  %2423 = vmatpush1.bf16.msra.mxu1 %v5400_v11  ;;  %v5427_v29 = vld [vmem:[%s6324_s23 + $0xc] ss:$80 sps:$4 sm:$0xff]   ;;  %v5429_v30 = vld [vmem:[%s6324_s23] ss:$80 sps:$4 sm:$0xff]   ;;  %v5430_v31 = vld [vmem:[%s6324_s23 + $0x8] ss:$80 sps:$4 sm:$0xff]  }
  0x7d   : > { %2383 = vmatprep.subr.bf16.mxu0 %v5401_v12  ;;  %2424 = vmatprep.subr.bf16.mxu1 %v5403_v13  ;;  %v5431_v32 = vld [vmem:[%s6324_s23 + $0x964] ss:$80 sps:$4 sm:$0xff]   ;;  %v5433_v33 = vld [vmem:[%s6324_s23 + $0x96c] ss:$80 sps:$4 sm:$0xff]   ;;  %v5435_v34 = vld [vmem:[%s6324_s23 + $0x960] ss:$80 sps:$4 sm:$0xff]  }
  0x7e   : > { %v5436_v35 = vld [vmem:[%s6324_s23 + $0x968] ss:$80 sps:$4 sm:$0xff]   ;;  %v5437_v36 = vld [vmem:[%s6324_s23 + $0x8c4] ss:$80 sps:$4 sm:$0xff]   ;;  %v5439_v37 = vld [vmem:[%s6324_s23 + $0x8cc] ss:$80 sps:$4 sm:$0xff]  }
  0x7f   : > { %v5441_v38 = vld [vmem:[%s6324_s23 + $0x8c0] ss:$80 sps:$4 sm:$0xff]   ;;  %v5442_v39 = vld [vmem:[%s6324_s23 + $0x8c8] ss:$80 sps:$4 sm:$0xff]   ;;  %v5443_v40 = vld [vmem:[%s6324_s23 + $0x824] ss:$80 sps:$4 sm:$0xff]  }
  0x80   : > { %2384 = vmatpush1.bf16.msra.mxu0 %v5405_v14  ;;  %2425 = vmatpush1.bf16.msra.mxu1 %v5406_v15  ;;  %v5445_v41 = vld [vmem:[%s6324_s23 + $0x82c] ss:$80 sps:$4 sm:$0xff]   ;;  %v5447_v42 = vld [vmem:[%s6324_s23 + $0x820] ss:$80 sps:$4 sm:$0xff]   ;;  %v5448_v43 = vld [vmem:[%s6324_s23 + $0x828] ss:$80 sps:$4 sm:$0xff]  }
  0x81   : > { %2385 = vmatprep.subr.bf16.mxu0 %v5407_v16  ;;  %2426 = vmatprep.subr.bf16.mxu1 %v5409_v17  ;;  %v5449_v44 = vld [vmem:[%s6324_s23 + $0x784] ss:$80 sps:$4 sm:$0xff]   ;;  %v5451_v45 = vld [vmem:[%s6324_s23 + $0x78c] ss:$80 sps:$4 sm:$0xff]   ;;  %v5453_v47 = vld [vmem:[%s6324_s23 + $0x780] ss:$80 sps:$4 sm:$0xff]  }
  0x82   : > { %v4621_v46 = vld.sshfl [vmem:[%s6969_s0] sm:$0x33 pattern:$0x76325410]  ;;  %v5454_v48 = vld [vmem:[%s6324_s23 + $0x788] ss:$80 sps:$4 sm:$0xff]  }
  0x83   : > { %v346_v49 = vcombine.high %v4621_v46, %v4621_v46  ;;  %v5455_v50 = vld [vmem:[%s6324_s23 + $0x6e4] ss:$80 sps:$4 sm:$0xff]   ;;  %v5457_v51 = vld [vmem:[%s6324_s23 + $0x6ec] ss:$80 sps:$4 sm:$0xff]   ;;  %v5459_v53 = vld [vmem:[%s6324_s23 + $0x6e0] ss:$80 sps:$4 sm:$0xff]   ;;  %v6411_v5 = vpack.c.bf16 %v4621_v46, %v4621_v46 }
  0x84   : > { %2386 = vmatpush1.bf16.msra.mxu0 %v5411_v18  ;;  %2427 = vmatpush1.bf16.msra.mxu1 %v5412_v19  ;;  %v5460_v54 = vld [vmem:[%s6324_s23 + $0x6e8] ss:$80 sps:$4 sm:$0xff]   ;;  %v5461_v55 = vld [vmem:[%s6324_s23 + $0x644] ss:$80 sps:$4 sm:$0xff]   ;;  %v5463_v56 = vld [vmem:[%s6324_s23 + $0x64c] ss:$80 sps:$4 sm:$0xff]  }
  0x85   : > { %2387 = vmatprep.subr.bf16.mxu0 %v5413_v20  ;;  %2428 = vmatprep.subr.bf16.mxu1 %v5415_v21  ;;  %v6391_v52 = vpack.c.bf16 %v346_v49, %v346_v49  ;;  %v5465_v57 = vld [vmem:[%s6324_s23 + $0x640] ss:$80 sps:$4 sm:$0xff]   ;;  %v5466_v58 = vld [vmem:[%s6324_s23 + $0x648] ss:$80 sps:$4 sm:$0xff]   ;;  %v5467_v59 = vld [vmem:[%s6324_s23 + $0x5a4] ss:$80 sps:$4 sm:$0xff]  }
  0x86   : > { %v5469_v60 = vld [vmem:[%s6324_s23 + $0x5ac] ss:$80 sps:$4 sm:$0xff]   ;;  %v5471_v61 = vld [vmem:[%s6324_s23 + $0x5a0] ss:$80 sps:$4 sm:$0xff]   ;;  %v5472_v62 = vld [vmem:[%s6324_s23 + $0x5a8] ss:$80 sps:$4 sm:$0xff]  }
  0x87   : > { %2409 = vmatprep.mubr.bf16.mxu0 %v6391_v52  ;;  %2450 = vmatprep.mubr.bf16.mxu1 %v6391_v52  ;;  %v5473_v63 = vld [vmem:[%s6324_s23 + $0x504] ss:$80 sps:$4 sm:$0xff]   ;;  %v5475_v0 = vld [vmem:[%s6324_s23 + $0x50c] ss:$80 sps:$4 sm:$0xff]   ;;  %v5477_v1 = vld [vmem:[%s6324_s23 + $0x500] ss:$80 sps:$4 sm:$0xff]  }
  0x88   : > { %2388 = vmatpush1.bf16.msra.mxu0 %v5417_v22  ;;  %2429 = vmatpush1.bf16.msra.mxu1 %v5418_v23  ;;  %v5478_v2 = vld [vmem:[%s6324_s23 + $0x508] ss:$80 sps:$4 sm:$0xff]   ;;  %v5481_v3 = vld [vmem:[%s6324_s23 + $0x474] ss:$80 sps:$4 sm:$0xff]   ;;  %v5484_v4 = vld [vmem:[%s6324_s23 + $0x47c] ss:$80 sps:$4 sm:$0xff]  }
  0x89   : > { %2389 = vmatprep.subr.bf16.mxu0 %v5419_v24  ;;  %2430 = vmatprep.subr.bf16.mxu1 %v5421_v25  ;;  %v5479_v6 = vld [vmem:[%s6324_s23 + $0x470] ss:$80 sps:$4 sm:$0xff]   ;;  %v5482_v7 = vld [vmem:[%s6324_s23 + $0x478] ss:$80 sps:$4 sm:$0xff]   ;;  %v5487_v8 = vld [vmem:[%s6324_s23 + $0x3d4] ss:$80 sps:$4 sm:$0xff]  }
  0x8a   : > { %v5490_v9 = vld [vmem:[%s6324_s23 + $0x3dc] ss:$80 sps:$4 sm:$0xff]   ;;  %v5485_v10 = vld [vmem:[%s6324_s23 + $0x3d0] ss:$80 sps:$4 sm:$0xff]   ;;  %v5488_v11 = vld [vmem:[%s6324_s23 + $0x3d8] ss:$80 sps:$4 sm:$0xff]  }
  0x8b   : > { %v5493_v12 = vld [vmem:[%s6324_s23 + $0x334] ss:$80 sps:$4 sm:$0xff]   ;;  %v5496_v13 = vld [vmem:[%s6324_s23 + $0x33c] ss:$80 sps:$4 sm:$0xff]   ;;  %v5491_v14 = vld [vmem:[%s6324_s23 + $0x330] ss:$80 sps:$4 sm:$0xff]  }
  0x8c   : > { %2390 = vmatpush1.bf16.msra.mxu0 %v5423_v26  ;;  %2431 = vmatpush1.bf16.msra.mxu1 %v5424_v27  ;;  %v5494_v15 = vld [vmem:[%s6324_s23 + $0x338] ss:$80 sps:$4 sm:$0xff]   ;;  %v5499_v16 = vld [vmem:[%s6324_s23 + $0x294] ss:$80 sps:$4 sm:$0xff]   ;;  %v5502_v17 = vld [vmem:[%s6324_s23 + $0x29c] ss:$80 sps:$4 sm:$0xff]  }
  0x8d   : > { %2391 = vmatprep.subr.bf16.mxu0 %v5425_v28  ;;  %2432 = vmatprep.subr.bf16.mxu1 %v5427_v29  ;;  %v5497_v18 = vld [vmem:[%s6324_s23 + $0x290] ss:$80 sps:$4 sm:$0xff]   ;;  %v5500_v19 = vld [vmem:[%s6324_s23 + $0x298] ss:$80 sps:$4 sm:$0xff]   ;;  %v5505_v20 = vld [vmem:[%s6324_s23 + $0x1f4] ss:$80 sps:$4 sm:$0xff]  }
  0x8e   : > { %v5508_v21 = vld [vmem:[%s6324_s23 + $0x1fc] ss:$80 sps:$4 sm:$0xff]   ;;  %v5503_v22 = vld [vmem:[%s6324_s23 + $0x1f0] ss:$80 sps:$4 sm:$0xff]   ;;  %v5506_v23 = vld [vmem:[%s6324_s23 + $0x1f8] ss:$80 sps:$4 sm:$0xff]  }
  0x8f   : > { %v5511_v24 = vld [vmem:[%s6324_s23 + $0x154] ss:$80 sps:$4 sm:$0xff]   ;;  %v5514_v25 = vld [vmem:[%s6324_s23 + $0x15c] ss:$80 sps:$4 sm:$0xff]   ;;  %v5509_v26 = vld [vmem:[%s6324_s23 + $0x150] ss:$80 sps:$4 sm:$0xff]  }
  0x90   : > { %2392 = vmatpush1.bf16.msra.mxu0 %v5429_v30  ;;  %2433 = vmatpush1.bf16.msra.mxu1 %v5430_v31  ;;  %v5512_v27 = vld [vmem:[%s6324_s23 + $0x158] ss:$80 sps:$4 sm:$0xff]   ;;  %v5517_v28 = vld [vmem:[%s6324_s23 + $0xb4] ss:$80 sps:$4 sm:$0xff]   ;;  %v5520_v29 = vld [vmem:[%s6324_s23 + $0xbc] ss:$80 sps:$4 sm:$0xff]  }
  0x91   : > { %2393 = vmatprep.subr.bf16.mxu0 %v5431_v32  ;;  %2434 = vmatprep.subr.bf16.mxu1 %v5433_v33  ;;  %v5515_v30 = vld [vmem:[%s6324_s23 + $0xb0] ss:$80 sps:$4 sm:$0xff]   ;;  %v5518_v31 = vld [vmem:[%s6324_s23 + $0xb8] ss:$80 sps:$4 sm:$0xff]   ;;  %v5523_v32 = vld [vmem:[%s6324_s23 + $0x14] ss:$80 sps:$4 sm:$0xff]  }
  0x92   : > { %v5526_v33 = vld [vmem:[%s6324_s23 + $0x1c] ss:$80 sps:$4 sm:$0xff]   ;;  %v5539_v46 = vld [vmem:[%s6324_s23 + $0x830] ss:$80 sps:$4 sm:$0xff]   ;;  %p327_p8 = scmp.lt.s32.totalorder %s326_s10, 639  ;;  %s284_s9 = scalar_lea.vmem [#allocation6], %s6320_s1 }
  0x93   : > { %v5550_v49 = vld [vmem:[%s6324_s23 + $0x79c] ss:$80 sps:$4 sm:$0xff]   ;;  %p332_p4 = scmp.lt.s32.totalorder %s6202_s22, 1 }
  0x94   : > { %2394 = vmatpush2.bf16.msra.mxu0 %v5435_v34  ;;  %2435 = vmatpush2.bf16.msra.mxu1 %v5436_v35  ;;  %v5521_v34 = vld [vmem:[%s6324_s23 + $0x10] ss:$80 sps:$4 sm:$0xff]   ;;  %v5524_v35 = vld [vmem:[%s6324_s23 + $0x18] ss:$80 sps:$4 sm:$0xff]   ;;  %s6999_s10 = smov (!%p327_p8, %s326_s10), 639 }
  0x95   : > { %2395 = vmatprep.subr.bf16.mxu0 %v5437_v36  ;;  %2436 = vmatprep.subr.bf16.mxu1 %v5439_v37  ;;  %v5529_v36 = vld [vmem:[%s6324_s23 + $0x974] ss:$80 sps:$4 sm:$0xff]   ;;  %v5532_v37 = vld [vmem:[%s6324_s23 + $0x97c] ss:$80 sps:$4 sm:$0xff]   ;;  %s4619_s13 = sshll.u32 %s6999_s10, 2  ;;  %s7001_s22 = smov (!%p332_p4, %s6202_s22), 1 }
  0x96   : > { %s6589_s29 = scalar_lea.vmem %s6972_s3, %s4619_s13  ;;  %s4620_s11 = sshll.u32 %s7001_s22, 1 }
  0x97   : > { %s335_s24 = scalar_lea.vmem %s6974_s5, %s4620_s11 }
  0x98   : > { %2396 = vmatpush2.bf16.msra.mxu0 %v5441_v38  ;;  %2437 = vmatpush2.bf16.msra.mxu1 %v5442_v39  ;;  %v5527_v38 = vld [vmem:[%s6324_s23 + $0x970] ss:$80 sps:$4 sm:$0xff]   ;;  %v5530_v39 = vld [vmem:[%s6324_s23 + $0x978] ss:$80 sps:$4 sm:$0xff]  }
  0x99   : > { %2397 = vmatprep.subr.bf16.mxu0 %v5443_v40  ;;  %2438 = vmatprep.subr.bf16.mxu1 %v5445_v41  ;;  %v5535_v40 = vld [vmem:[%s6324_s23 + $0x8d4] ss:$80 sps:$4 sm:$0xff]   ;;  %v5538_v41 = vld [vmem:[%s6324_s23 + $0x8dc] ss:$80 sps:$4 sm:$0xff]  }
  0x9c   : > { %2398 = vmatpush2.bf16.msra.mxu0 %v5447_v42  ;;  %2439 = vmatpush2.bf16.msra.mxu1 %v5448_v43  ;;  %v5533_v42 = vld [vmem:[%s6324_s23 + $0x8d0] ss:$80 sps:$4 sm:$0xff]   ;;  %v5536_v43 = vld [vmem:[%s6324_s23 + $0x8d8] ss:$80 sps:$4 sm:$0xff]  }
  0x9d   : > { %2399 = vmatprep.subr.bf16.mxu0 %v5449_v44  ;;  %2440 = vmatprep.subr.bf16.mxu1 %v5451_v45  ;;  %v5541_v44 = vld [vmem:[%s6324_s23 + $0x834] ss:$80 sps:$4 sm:$0xff]   ;;  %v5544_v45 = vld [vmem:[%s6324_s23 + $0x83c] ss:$80 sps:$4 sm:$0xff]  }
  0xa0   : > { %2400 = vmatpush2.bf16.msra.mxu0 %v5453_v47  ;;  %2441 = vmatpush2.bf16.msra.mxu1 %v5454_v48  ;;  %v5542_v47 = vld [vmem:[%s6324_s23 + $0x838] ss:$80 sps:$4 sm:$0xff]   ;;  %v5547_v48 = vld [vmem:[%s6324_s23 + $0x794] ss:$80 sps:$4 sm:$0xff]  }
  0xa1   : > { %2401 = vmatprep.subr.bf16.mxu0 %v5455_v50  ;;  %2442 = vmatprep.subr.bf16.mxu1 %v5457_v51  ;;  %v5545_v50 = vld [vmem:[%s6324_s23 + $0x790] ss:$80 sps:$4 sm:$0xff]   ;;  %v5548_v51 = vld [vmem:[%s6324_s23 + $0x798] ss:$80 sps:$4 sm:$0xff]  }
  0xa4   : > { %2402 = vmatpush2.bf16.msra.mxu0 %v5459_v53  ;;  %2443 = vmatpush2.bf16.msra.mxu1 %v5460_v54  ;;  %v5553_v53 = vld [vmem:[%s6324_s23 + $0x6f4] ss:$80 sps:$4 sm:$0xff]   ;;  %v5556_v54 = vld [vmem:[%s6324_s23 + $0x6fc] ss:$80 sps:$4 sm:$0xff]  }
  0xa5   : > { %2403 = vmatprep.subr.bf16.mxu0 %v5461_v55  ;;  %2444 = vmatprep.subr.bf16.mxu1 %v5463_v56  ;;  %v5551_v55 = vld [vmem:[%s6324_s23 + $0x6f0] ss:$80 sps:$4 sm:$0xff]   ;;  %v5554_v56 = vld [vmem:[%s6324_s23 + $0x6f8] ss:$80 sps:$4 sm:$0xff]  }
  0xa8   : > { %2404 = vmatpush2.bf16.msra.mxu0 %v5465_v57  ;;  %2445 = vmatpush2.bf16.msra.mxu1 %v5466_v58  ;;  %v5559_v57 = vld [vmem:[%s6324_s23 + $0x654] ss:$80 sps:$4 sm:$0xff]   ;;  %v5562_v58 = vld [vmem:[%s6324_s23 + $0x65c] ss:$80 sps:$4 sm:$0xff]  }
  0xa9   : > { %2405 = vmatprep.subr.bf16.mxu0 %v5467_v59  ;;  %2446 = vmatprep.subr.bf16.mxu1 %v5469_v60  ;;  %v5557_v59 = vld [vmem:[%s6324_s23 + $0x650] ss:$80 sps:$4 sm:$0xff]   ;;  %v5560_v60 = vld [vmem:[%s6324_s23 + $0x658] ss:$80 sps:$4 sm:$0xff]  }
  0xac   : > { %2406 = vmatpush2.bf16.msra.mxu0 %v5471_v61  ;;  %2447 = vmatpush2.bf16.msra.mxu1 %v5472_v62  ;;  %v5565_v61 = vld [vmem:[%s6324_s23 + $0x5b4] ss:$80 sps:$4 sm:$0xff]   ;;  %v5568_v62 = vld [vmem:[%s6324_s23 + $0x5bc] ss:$80 sps:$4 sm:$0xff]  }
  0xad   : > { %2407 = vmatprep.subr.bf16.mxu0 %v5473_v63  ;;  %2448 = vmatprep.subr.bf16.mxu1 %v5475_v0  ;;  %v5563_v63 = vld [vmem:[%s6324_s23 + $0x5b0] ss:$80 sps:$4 sm:$0xff]   ;;  %v5566_v0 = vld [vmem:[%s6324_s23 + $0x5b8] ss:$80 sps:$4 sm:$0xff]  }
  0xb0   : > { %2408 = vmatpush2.bf16.msra.mxu0 %v5477_v1  ;;  %2449 = vmatpush2.bf16.msra.mxu1 %v5478_v2  ;;  %v5571_v1 = vld [vmem:[%s6324_s23 + $0x514] ss:$80 sps:$4 sm:$0xff]   ;;  %v5574_v2 = vld [vmem:[%s6324_s23 + $0x51c] ss:$80 sps:$4 sm:$0xff]  }
  0xb1   : > { %2459 = vmatprep.subr.bf16.mxu0 %v5481_v3  ;;  %2500 = vmatprep.subr.bf16.mxu1 %v5484_v4  ;;  %v5569_v3 = vld [vmem:[%s6324_s23 + $0x510] ss:$80 sps:$4 sm:$0xff]   ;;  %v5572_v4 = vld [vmem:[%s6324_s23 + $0x518] ss:$80 sps:$4 sm:$0xff]  }
  0xb3   : > { %2410 = vmatmul.mubr.bf16.vlgmr.msra.gmra.mxu0 %v6411_v5  ;;  %2451 = vmatmul.mubr.bf16.vlgmr.msra.gmra.mxu1 %v6411_v5 }
  0xb4   : > { %2460 = vmatpush1.bf16.msra.mxu0 %v5479_v6  ;;  %2501 = vmatpush1.bf16.msra.mxu1 %v5482_v7  ;;  %v5577_v6 = vld [vmem:[%s6324_s23 + $0x484] ss:$80 sps:$4 sm:$0xff]   ;;  %v5580_v7 = vld [vmem:[%s6324_s23 + $0x48c] ss:$80 sps:$4 sm:$0xff]  }
  0xb5   : > { %2461 = vmatprep.subr.bf16.mxu0 %v5487_v8  ;;  %2502 = vmatprep.subr.bf16.mxu1 %v5490_v9  ;;  %v5575_v8 = vld [vmem:[%s6324_s23 + $0x480] ss:$80 sps:$4 sm:$0xff]   ;;  %v5578_v9 = vld [vmem:[%s6324_s23 + $0x488] ss:$80 sps:$4 sm:$0xff]  }
  0xb6   : > { %2491 = vmatprep.mubr.bf16.mxu0 %v6391_v52  ;;  %2532 = vmatprep.mubr.bf16.mxu1 %v6391_v52 }
  0xb8   : > { %2462 = vmatpush1.bf16.msra.mxu0 %v5485_v10  ;;  %2503 = vmatpush1.bf16.msra.mxu1 %v5488_v11  ;;  %v5583_v10 = vld [vmem:[%s6324_s23 + $0x3e4] ss:$80 sps:$4 sm:$0xff]   ;;  %v5586_v11 = vld [vmem:[%s6324_s23 + $0x3ec] ss:$80 sps:$4 sm:$0xff]  }
  0xb9   : > { %2463 = vmatprep.subr.bf16.mxu0 %v5493_v12  ;;  %2504 = vmatprep.subr.bf16.mxu1 %v5496_v13  ;;  %v5581_v12 = vld [vmem:[%s6324_s23 + $0x3e0] ss:$80 sps:$4 sm:$0xff]   ;;  %v5584_v13 = vld [vmem:[%s6324_s23 + $0x3e8] ss:$80 sps:$4 sm:$0xff]  }
  0xbc   : > { %2464 = vmatpush1.bf16.msra.mxu0 %v5491_v14  ;;  %2505 = vmatpush1.bf16.msra.mxu1 %v5494_v15  ;;  %v5589_v14 = vld [vmem:[%s6324_s23 + $0x344] ss:$80 sps:$4 sm:$0xff]   ;;  %v5592_v15 = vld [vmem:[%s6324_s23 + $0x34c] ss:$80 sps:$4 sm:$0xff]  }
  0xbd   : > { %2465 = vmatprep.subr.bf16.mxu0 %v5499_v16  ;;  %2506 = vmatprep.subr.bf16.mxu1 %v5502_v17  ;;  %v5587_v16 = vld [vmem:[%s6324_s23 + $0x340] ss:$80 sps:$4 sm:$0xff]   ;;  %v5590_v17 = vld [vmem:[%s6324_s23 + $0x348] ss:$80 sps:$4 sm:$0xff]  }
  0xc0   : > { %2466 = vmatpush1.bf16.msra.mxu0 %v5497_v18  ;;  %2507 = vmatpush1.bf16.msra.mxu1 %v5500_v19  ;;  %v5595_v18 = vld [vmem:[%s6324_s23 + $0x2a4] ss:$80 sps:$4 sm:$0xff]   ;;  %v5598_v19 = vld [vmem:[%s6324_s23 + $0x2ac] ss:$80 sps:$4 sm:$0xff]  }
  0xc1   : > { %2467 = vmatprep.subr.bf16.mxu0 %v5505_v20  ;;  %2508 = vmatprep.subr.bf16.mxu1 %v5508_v21  ;;  %v5593_v20 = vld [vmem:[%s6324_s23 + $0x2a0] ss:$80 sps:$4 sm:$0xff]   ;;  %v5596_v21 = vld [vmem:[%s6324_s23 + $0x2a8] ss:$80 sps:$4 sm:$0xff]  }
  0xc4   : > { %2468 = vmatpush1.bf16.msra.mxu0 %v5503_v22  ;;  %2509 = vmatpush1.bf16.msra.mxu1 %v5506_v23  ;;  %v5601_v22 = vld [vmem:[%s6324_s23 + $0x204] ss:$80 sps:$4 sm:$0xff]   ;;  %v5604_v23 = vld [vmem:[%s6324_s23 + $0x20c] ss:$80 sps:$4 sm:$0xff]  }
  0xc5   : > { %2469 = vmatprep.subr.bf16.mxu0 %v5511_v24  ;;  %2510 = vmatprep.subr.bf16.mxu1 %v5514_v25  ;;  %v5599_v24 = vld [vmem:[%s6324_s23 + $0x200] ss:$80 sps:$4 sm:$0xff]   ;;  %v5602_v25 = vld [vmem:[%s6324_s23 + $0x208] ss:$80 sps:$4 sm:$0xff]  }
  0xc8   : > { %2470 = vmatpush1.bf16.msra.mxu0 %v5509_v26  ;;  %2511 = vmatpush1.bf16.msra.mxu1 %v5512_v27  ;;  %v5607_v26 = vld [vmem:[%s6324_s23 + $0x164] ss:$80 sps:$4 sm:$0xff]   ;;  %v5610_v27 = vld [vmem:[%s6324_s23 + $0x16c] ss:$80 sps:$4 sm:$0xff]  }
  0xc9   : > { %2471 = vmatprep.subr.bf16.mxu0 %v5517_v28  ;;  %2512 = vmatprep.subr.bf16.mxu1 %v5520_v29  ;;  %v5605_v28 = vld [vmem:[%s6324_s23 + $0x160] ss:$80 sps:$4 sm:$0xff]   ;;  %v5608_v29 = vld [vmem:[%s6324_s23 + $0x168] ss:$80 sps:$4 sm:$0xff]  }
  0xcc   : > { %2472 = vmatpush1.bf16.msra.mxu0 %v5515_v30  ;;  %2513 = vmatpush1.bf16.msra.mxu1 %v5518_v31  ;;  %v5613_v30 = vld [vmem:[%s6324_s23 + $0xc4] ss:$80 sps:$4 sm:$0xff]   ;;  %v5616_v31 = vld [vmem:[%s6324_s23 + $0xcc] ss:$80 sps:$4 sm:$0xff]  }
  0xcd   : > { %2473 = vmatprep.subr.bf16.mxu0 %v5523_v32  ;;  %2514 = vmatprep.subr.bf16.mxu1 %v5526_v33  ;;  %v5611_v32 = vld [vmem:[%s6324_s23 + $0xc0] ss:$80 sps:$4 sm:$0xff]   ;;  %v5614_v33 = vld [vmem:[%s6324_s23 + $0xc8] ss:$80 sps:$4 sm:$0xff]  }
  0xd0   : > { %2474 = vmatpush1.bf16.msra.mxu0 %v5521_v34  ;;  %2515 = vmatpush1.bf16.msra.mxu1 %v5524_v35  ;;  %v5619_v34 = vld [vmem:[%s6324_s23 + $0x24] ss:$80 sps:$4 sm:$0xff]   ;;  %v5622_v35 = vld [vmem:[%s6324_s23 + $0x2c] ss:$80 sps:$4 sm:$0xff]  }
  0xd1   : > { %2475 = vmatprep.subr.bf16.mxu0 %v5529_v36  ;;  %2516 = vmatprep.subr.bf16.mxu1 %v5532_v37  ;;  %v5617_v36 = vld [vmem:[%s6324_s23 + $0x20] ss:$80 sps:$4 sm:$0xff]   ;;  %v5620_v37 = vld [vmem:[%s6324_s23 + $0x28] ss:$80 sps:$4 sm:$0xff]  }
  0xd4   : > { %2476 = vmatpush2.bf16.msra.mxu0 %v5527_v38  ;;  %2517 = vmatpush2.bf16.msra.mxu1 %v5530_v39  ;;  %v5625_v38 = vld [vmem:[%s6324_s23 + $0x984] ss:$80 sps:$4 sm:$0xff]   ;;  %v5628_v39 = vld [vmem:[%s6324_s23 + $0x98c] ss:$80 sps:$4 sm:$0xff]  }
  0xd5   : > { %2477 = vmatprep.subr.bf16.mxu0 %v5535_v40  ;;  %2518 = vmatprep.subr.bf16.mxu1 %v5538_v41  ;;  %v5623_v40 = vld [vmem:[%s6324_s23 + $0x980] ss:$80 sps:$4 sm:$0xff]   ;;  %v5626_v41 = vld [vmem:[%s6324_s23 + $0x988] ss:$80 sps:$4 sm:$0xff]  }
  0xd8   : > { %2478 = vmatpush2.bf16.msra.mxu0 %v5533_v42  ;;  %2519 = vmatpush2.bf16.msra.mxu1 %v5536_v43  ;;  %v5631_v42 = vld [vmem:[%s6324_s23 + $0x8e4] ss:$80 sps:$4 sm:$0xff]   ;;  %v5634_v43 = vld [vmem:[%s6324_s23 + $0x8ec] ss:$80 sps:$4 sm:$0xff]  }
  0xd9   : > { %2479 = vmatprep.subr.bf16.mxu0 %v5541_v44  ;;  %2520 = vmatprep.subr.bf16.mxu1 %v5544_v45  ;;  %v5629_v44 = vld [vmem:[%s6324_s23 + $0x8e0] ss:$80 sps:$4 sm:$0xff]   ;;  %v5632_v45 = vld [vmem:[%s6324_s23 + $0x8e8] ss:$80 sps:$4 sm:$0xff]  }
  0xdc   : > { %2480 = vmatpush2.bf16.msra.mxu0 %v5539_v46  ;;  %2521 = vmatpush2.bf16.msra.mxu1 %v5542_v47  ;;  %v5637_v46 = vld [vmem:[%s6324_s23 + $0x844] ss:$80 sps:$4 sm:$0xff]   ;;  %v5640_v47 = vld [vmem:[%s6324_s23 + $0x84c] ss:$80 sps:$4 sm:$0xff]  }
  0xdd   : > { %2481 = vmatprep.subr.bf16.mxu0 %v5547_v48  ;;  %2522 = vmatprep.subr.bf16.mxu1 %v5550_v49  ;;  %v5635_v48 = vld [vmem:[%s6324_s23 + $0x840] ss:$80 sps:$4 sm:$0xff]   ;;  %v5638_v49 = vld [vmem:[%s6324_s23 + $0x848] ss:$80 sps:$4 sm:$0xff]  }
  0xe0   : > { %2482 = vmatpush2.bf16.msra.mxu0 %v5545_v50  ;;  %2523 = vmatpush2.bf16.msra.mxu1 %v5548_v51  ;;  %v5643_v50 = vld [vmem:[%s6324_s23 + $0x7a4] ss:$80 sps:$4 sm:$0xff]   ;;  %v5646_v51 = vld [vmem:[%s6324_s23 + $0x7ac] ss:$80 sps:$4 sm:$0xff]  }
  0xe1   : > { %2483 = vmatprep.subr.bf16.mxu0 %v5553_v53  ;;  %2524 = vmatprep.subr.bf16.mxu1 %v5556_v54  ;;  %v5641_v53 = vld [vmem:[%s6324_s23 + $0x7a0] ss:$80 sps:$4 sm:$0xff]   ;;  %v5644_v54 = vld [vmem:[%s6324_s23 + $0x7a8] ss:$80 sps:$4 sm:$0xff]  }
  0xe4   : > { %2484 = vmatpush2.bf16.msra.mxu0 %v5551_v55  ;;  %2525 = vmatpush2.bf16.msra.mxu1 %v5554_v56  ;;  %v5649_v55 = vld [vmem:[%s6324_s23 + $0x704] ss:$80 sps:$4 sm:$0xff]   ;;  %v5652_v56 = vld [vmem:[%s6324_s23 + $0x70c] ss:$80 sps:$4 sm:$0xff]  }
  0xe5   : > { %2485 = vmatprep.subr.bf16.mxu0 %v5559_v57  ;;  %2526 = vmatprep.subr.bf16.mxu1 %v5562_v58  ;;  %v5647_v57 = vld [vmem:[%s6324_s23 + $0x700] ss:$80 sps:$4 sm:$0xff]   ;;  %v5650_v58 = vld [vmem:[%s6324_s23 + $0x708] ss:$80 sps:$4 sm:$0xff]  }
  0xe8   : > { %2486 = vmatpush2.bf16.msra.mxu0 %v5557_v59  ;;  %2527 = vmatpush2.bf16.msra.mxu1 %v5560_v60  ;;  %v5655_v59 = vld [vmem:[%s6324_s23 + $0x664] ss:$80 sps:$4 sm:$0xff]   ;;  %v5658_v60 = vld [vmem:[%s6324_s23 + $0x66c] ss:$80 sps:$4 sm:$0xff]  }
  0xe9   : > { %2487 = vmatprep.subr.bf16.mxu0 %v5565_v61  ;;  %2528 = vmatprep.subr.bf16.mxu1 %v5568_v62  ;;  %v5653_v61 = vld [vmem:[%s6324_s23 + $0x660] ss:$80 sps:$4 sm:$0xff]   ;;  %v5656_v62 = vld [vmem:[%s6324_s23 + $0x668] ss:$80 sps:$4 sm:$0xff]  }
  0xec   : > { %2488 = vmatpush2.bf16.msra.mxu0 %v5563_v63  ;;  %2529 = vmatpush2.bf16.msra.mxu1 %v5566_v0  ;;  %v5661_v63 = vld [vmem:[%s6324_s23 + $0x5c4] ss:$80 sps:$4 sm:$0xff]   ;;  %v5664_v0 = vld [vmem:[%s6324_s23 + $0x5cc] ss:$80 sps:$4 sm:$0xff]  }
  0xed   : > { %2489 = vmatprep.subr.bf16.mxu0 %v5571_v1  ;;  %2530 = vmatprep.subr.bf16.mxu1 %v5574_v2  ;;  %v5659_v1 = vld [vmem:[%s6324_s23 + $0x5c0] ss:$80 sps:$4 sm:$0xff]   ;;  %v5662_v2 = vld [vmem:[%s6324_s23 + $0x5c8] ss:$80 sps:$4 sm:$0xff]  }
  0xf0   : > { %2490 = vmatpush2.bf16.msra.mxu0 %v5569_v3  ;;  %2531 = vmatpush2.bf16.msra.mxu1 %v5572_v4  ;;  %v5667_v3 = vld [vmem:[%s6324_s23 + $0x524] ss:$80 sps:$4 sm:$0xff]   ;;  %v5670_v4 = vld [vmem:[%s6324_s23 + $0x52c] ss:$80 sps:$4 sm:$0xff]  }
  0xf1   : > { %2541 = vmatprep.subr.bf16.mxu0 %v5577_v6  ;;  %2582 = vmatprep.subr.bf16.mxu1 %v5580_v7  ;;  %v5665_v6 = vld [vmem:[%s6324_s23 + $0x520] ss:$80 sps:$4 sm:$0xff]   ;;  %v5668_v7 = vld [vmem:[%s6324_s23 + $0x528] ss:$80 sps:$4 sm:$0xff]  }
  0xf3   : > { %2492 = vmatmul.mubr.bf16.vlgmr.msra.gmra.mxu0 %v6411_v5  ;;  %2533 = vmatmul.mubr.bf16.vlgmr.msra.gmra.mxu1 %v6411_v5 }
  0xf4   : > { %2542 = vmatpush1.bf16.msra.mxu0 %v5575_v8  ;;  %2583 = vmatpush1.bf16.msra.mxu1 %v5578_v9  ;;  %v5673_v8 = vld [vmem:[%s6324_s23 + $0x494] ss:$80 sps:$4 sm:$0xff]   ;;  %v5676_v9 = vld [vmem:[%s6324_s23 + $0x49c] ss:$80 sps:$4 sm:$0xff]  }
  0xf5   : > { %2543 = vmatprep.subr.bf16.mxu0 %v5583_v10  ;;  %2584 = vmatprep.subr.bf16.mxu1 %v5586_v11  ;;  %v5671_v10 = vld [vmem:[%s6324_s23 + $0x490] ss:$80 sps:$4 sm:$0xff]   ;;  %v5674_v11 = vld [vmem:[%s6324_s23 + $0x498] ss:$80 sps:$4 sm:$0xff]  }
  0xf6   : > { %2573 = vmatprep.mubr.bf16.mxu0 %v6391_v52  ;;  %2614 = vmatprep.mubr.bf16.mxu1 %v6391_v52 }
  0xf8   : > { %2544 = vmatpush1.bf16.msra.mxu0 %v5581_v12  ;;  %2585 = vmatpush1.bf16.msra.mxu1 %v5584_v13  ;;  %v5679_v12 = vld [vmem:[%s6324_s23 + $0x3f4] ss:$80 sps:$4 sm:$0xff]   ;;  %v5682_v13 = vld [vmem:[%s6324_s23 + $0x3fc] ss:$80 sps:$4 sm:$0xff]  }
  0xf9   : > { %2545 = vmatprep.subr.bf16.mxu0 %v5589_v14  ;;  %2586 = vmatprep.subr.bf16.mxu1 %v5592_v15  ;;  %v5677_v14 = vld [vmem:[%s6324_s23 + $0x3f0] ss:$80 sps:$4 sm:$0xff]   ;;  %v5680_v15 = vld [vmem:[%s6324_s23 + $0x3f8] ss:$80 sps:$4 sm:$0xff]  }
  0xfc   : > { %2546 = vmatpush1.bf16.msra.mxu0 %v5587_v16  ;;  %2587 = vmatpush1.bf16.msra.mxu1 %v5590_v17  ;;  %v5685_v16 = vld [vmem:[%s6324_s23 + $0x354] ss:$80 sps:$4 sm:$0xff]   ;;  %v5688_v17 = vld [vmem:[%s6324_s23 + $0x35c] ss:$80 sps:$4 sm:$0xff]  }
  0xfd   : > { %2547 = vmatprep.subr.bf16.mxu0 %v5595_v18  ;;  %2588 = vmatprep.subr.bf16.mxu1 %v5598_v19  ;;  %v5683_v18 = vld [vmem:[%s6324_s23 + $0x350] ss:$80 sps:$4 sm:$0xff]   ;;  %v5686_v19 = vld [vmem:[%s6324_s23 + $0x358] ss:$80 sps:$4 sm:$0xff]  }
 0x100   : > { %2548 = vmatpush1.bf16.msra.mxu0 %v5593_v20  ;;  %2589 = vmatpush1.bf16.msra.mxu1 %v5596_v21  ;;  %v5691_v20 = vld [vmem:[%s6324_s23 + $0x2b4] ss:$80 sps:$4 sm:$0xff]   ;;  %v5694_v21 = vld [vmem:[%s6324_s23 + $0x2bc] ss:$80 sps:$4 sm:$0xff]  }
 0x101   : > { %2549 = vmatprep.subr.bf16.mxu0 %v5601_v22  ;;  %2590 = vmatprep.subr.bf16.mxu1 %v5604_v23  ;;  %v5689_v22 = vld [vmem:[%s6324_s23 + $0x2b0] ss:$80 sps:$4 sm:$0xff]   ;;  %v5692_v23 = vld [vmem:[%s6324_s23 + $0x2b8] ss:$80 sps:$4 sm:$0xff]  }
 0x104   : > { %2550 = vmatpush1.bf16.msra.mxu0 %v5599_v24  ;;  %2591 = vmatpush1.bf16.msra.mxu1 %v5602_v25  ;;  %v677_v24 = vlaneseq  ;;  %v5697_v25 = vld [vmem:[%s6324_s23 + $0x214] ss:$80 sps:$4 sm:$0xff]  }
 0x105   : > { %2551 = vmatprep.subr.bf16.mxu0 %v5607_v26  ;;  %2592 = vmatprep.subr.bf16.mxu1 %v5610_v27  ;;  %v5700_v26 = vld [vmem:[%s6324_s23 + $0x21c] ss:$80 sps:$4 sm:$0xff]   ;;  %v5695_v27 = vld [vmem:[%s6324_s23 + $0x210] ss:$80 sps:$4 sm:$0xff]  }
 0x108   : > { %2552 = vmatpush1.bf16.msra.mxu0 %v5605_v28  ;;  %2593 = vmatpush1.bf16.msra.mxu1 %v5608_v29  ;;  %v5698_v28 = vld [vmem:[%s6324_s23 + $0x218] ss:$80 sps:$4 sm:$0xff]   ;;  %v6572_v29 = vshrl.u32 %v677_v24, 7  ;;  %v5781_v24 = vld [vmem:[%s6324_s23 + $0x364] ss:$80 sps:$4 sm:$0xff]  }
 0x109   : > { %2553 = vmatprep.subr.bf16.mxu0 %v5613_v30  ;;  %2594 = vmatprep.subr.bf16.mxu1 %v5616_v31  ;;  %v5703_v30 = vld [vmem:[%s6324_s23 + $0x174] ss:$80 sps:$4 sm:$0xff]   ;;  %v5706_v31 = vld [vmem:[%s6324_s23 + $0x17c] ss:$80 sps:$4 sm:$0xff]  }
 0x10c   : > { %2554 = vmatpush1.bf16.msra.mxu0 %v5611_v32  ;;  %2595 = vmatpush1.bf16.msra.mxu1 %v5614_v33  ;;  %v5701_v32 = vld [vmem:[%s6324_s23 + $0x170] ss:$80 sps:$4 sm:$0xff]   ;;  %v5704_v33 = vld [vmem:[%s6324_s23 + $0x178] ss:$80 sps:$4 sm:$0xff]  }
 0x10d   : > { %2555 = vmatprep.subr.bf16.mxu0 %v5619_v34  ;;  %2596 = vmatprep.subr.bf16.mxu1 %v5622_v35  ;;  %v6579_v34 = vsub.s32 1, %v6572_v29  ;;  %v5709_v35 = vld [vmem:[%s6324_s23 + $0xd4] ss:$80 sps:$4 sm:$0xff]  }
 0x110   : > { %2556 = vmatpush1.bf16.msra.mxu0 %v5617_v36  ;;  %2597 = vmatpush1.bf16.msra.mxu1 %v5620_v37  ;;  %v5712_v36 = vld [vmem:[%s6324_s23 + $0xdc] ss:$80 sps:$4 sm:$0xff]   ;;  %v6584_v37 = vsub.s32 3, %v6572_v29 }
 0x111   : > { %2557 = vmatprep.subr.bf16.mxu0 %v5625_v38  ;;  %2598 = vmatprep.subr.bf16.mxu1 %v5628_v39  ;;  %v5707_v38 = vld [vmem:[%s6324_s23 + $0xd0] ss:$80 sps:$4 sm:$0xff]   ;;  %v5710_v39 = vld [vmem:[%s6324_s23 + $0xd8] ss:$80 sps:$4 sm:$0xff]  }
 0x114   : > { %2558 = vmatpush2.bf16.msra.mxu0 %v5623_v40  ;;  %2599 = vmatpush2.bf16.msra.mxu1 %v5626_v41  ;;  %v5715_v40 = vld [vmem:[%s6324_s23 + $0x34] ss:$80 sps:$4 sm:$0xff]   ;;  %v5718_v41 = vld [vmem:[%s6324_s23 + $0x3c] ss:$80 sps:$4 sm:$0xff]  }
 0x115   : > { %2559 = vmatprep.subr.bf16.mxu0 %v5631_v42  ;;  %2600 = vmatprep.subr.bf16.mxu1 %v5634_v43  ;;  %v5713_v42 = vld [vmem:[%s6324_s23 + $0x30] ss:$80 sps:$4 sm:$0xff]   ;;  %v5716_v43 = vld [vmem:[%s6324_s23 + $0x38] ss:$80 sps:$4 sm:$0xff]  }
 0x118   : > { %2560 = vmatpush2.bf16.msra.mxu0 %v5629_v44  ;;  %2601 = vmatpush2.bf16.msra.mxu1 %v5632_v45  ;;  %v5721_v44 = vld [vmem:[%s6324_s23 + $0x994] ss:$80 sps:$4 sm:$0xff]   ;;  %v5724_v45 = vld [vmem:[%s6324_s23 + $0x99c] ss:$80 sps:$4 sm:$0xff]  }
 0x119   : > { %2561 = vmatprep.subr.bf16.mxu0 %v5637_v46  ;;  %2602 = vmatprep.subr.bf16.mxu1 %v5640_v47  ;;  %v5719_v46 = vld [vmem:[%s6324_s23 + $0x990] ss:$80 sps:$4 sm:$0xff]   ;;  %v5722_v47 = vld [vmem:[%s6324_s23 + $0x998] ss:$80 sps:$4 sm:$0xff]  }
 0x11c   : > { %2562 = vmatpush2.bf16.msra.mxu0 %v5635_v48  ;;  %2603 = vmatpush2.bf16.msra.mxu1 %v5638_v49  ;;  %v5727_v48 = vld [vmem:[%s6324_s23 + $0x8f4] ss:$80 sps:$4 sm:$0xff]   ;;  %v5730_v49 = vld [vmem:[%s6324_s23 + $0x8fc] ss:$80 sps:$4 sm:$0xff]  }
 0x11d   : > { %2563 = vmatprep.subr.bf16.mxu0 %v5643_v50  ;;  %2604 = vmatprep.subr.bf16.mxu1 %v5646_v51  ;;  %v5725_v50 = vld [vmem:[%s6324_s23 + $0x8f0] ss:$80 sps:$4 sm:$0xff]   ;;  %v5728_v51 = vld [vmem:[%s6324_s23 + $0x8f8] ss:$80 sps:$4 sm:$0xff]  }
 0x120   : > { %2564 = vmatpush2.bf16.msra.mxu0 %v5641_v53  ;;  %2605 = vmatpush2.bf16.msra.mxu1 %v5644_v54  ;;  %v5733_v53 = vld [vmem:[%s6324_s23 + $0x854] ss:$80 sps:$4 sm:$0xff]   ;;  %v5736_v54 = vld [vmem:[%s6324_s23 + $0x85c] ss:$80 sps:$4 sm:$0xff]  }
 0x121   : > { %2565 = vmatprep.subr.bf16.mxu0 %v5649_v55  ;;  %2606 = vmatprep.subr.bf16.mxu1 %v5652_v56  ;;  %v5731_v55 = vld [vmem:[%s6324_s23 + $0x850] ss:$80 sps:$4 sm:$0xff]   ;;  %v5734_v56 = vld [vmem:[%s6324_s23 + $0x858] ss:$80 sps:$4 sm:$0xff]  }
 0x124   : > { %2566 = vmatpush2.bf16.msra.mxu0 %v5647_v57  ;;  %2607 = vmatpush2.bf16.msra.mxu1 %v5650_v58  ;;  %v5739_v57 = vld [vmem:[%s6324_s23 + $0x7b4] ss:$80 sps:$4 sm:$0xff]   ;;  %v5742_v58 = vld [vmem:[%s6324_s23 + $0x7bc] ss:$80 sps:$4 sm:$0xff]  }
 0x125   : > { %2567 = vmatprep.subr.bf16.mxu0 %v5655_v59  ;;  %2608 = vmatprep.subr.bf16.mxu1 %v5658_v60  ;;  %v5737_v59 = vld [vmem:[%s6324_s23 + $0x7b0] ss:$80 sps:$4 sm:$0xff]   ;;  %v5740_v60 = vld [vmem:[%s6324_s23 + $0x7b8] ss:$80 sps:$4 sm:$0xff]  }
 0x128   : > { %2568 = vmatpush2.bf16.msra.mxu0 %v5653_v61  ;;  %2609 = vmatpush2.bf16.msra.mxu1 %v5656_v62  ;;  %v5745_v61 = vld [vmem:[%s6324_s23 + $0x714] ss:$80 sps:$4 sm:$0xff]   ;;  %v5748_v62 = vld [vmem:[%s6324_s23 + $0x71c] ss:$80 sps:$4 sm:$0xff]  }
 0x129   : > { %2569 = vmatprep.subr.bf16.mxu0 %v5661_v63  ;;  %2610 = vmatprep.subr.bf16.mxu1 %v5664_v0  ;;  %v5743_v63 = vld [vmem:[%s6324_s23 + $0x710] ss:$80 sps:$4 sm:$0xff]   ;;  %v5746_v0 = vld [vmem:[%s6324_s23 + $0x718] ss:$80 sps:$4 sm:$0xff]  }
 0x12c   : > { %2570 = vmatpush2.bf16.msra.mxu0 %v5659_v1  ;;  %2611 = vmatpush2.bf16.msra.mxu1 %v5662_v2  ;;  %v5751_v1 = vld [vmem:[%s6324_s23 + $0x674] ss:$80 sps:$4 sm:$0xff]   ;;  %v5754_v2 = vld [vmem:[%s6324_s23 + $0x67c] ss:$80 sps:$4 sm:$0xff]  }
 0x12d   : > { %2571 = vmatprep.subr.bf16.mxu0 %v5667_v3  ;;  %2612 = vmatprep.subr.bf16.mxu1 %v5670_v4  ;;  %v5749_v3 = vld [vmem:[%s6324_s23 + $0x670] ss:$80 sps:$4 sm:$0xff]   ;;  %v5752_v4 = vld [vmem:[%s6324_s23 + $0x678] ss:$80 sps:$4 sm:$0xff]  }
 0x130   : > { %2572 = vmatpush2.bf16.msra.mxu0 %v5665_v6  ;;  %2613 = vmatpush2.bf16.msra.mxu1 %v5668_v7  ;;  %v5757_v6 = vld [vmem:[%s6324_s23 + $0x5d4] ss:$80 sps:$4 sm:$0xff]   ;;  %v5760_v7 = vld [vmem:[%s6324_s23 + $0x5dc] ss:$80 sps:$4 sm:$0xff]  }
 0x131   : > { %2623 = vmatprep.subr.bf16.mxu0 %v5673_v8  ;;  %2664 = vmatprep.subr.bf16.mxu1 %v5676_v9  ;;  %v5755_v8 = vld [vmem:[%s6324_s23 + $0x5d0] ss:$80 sps:$4 sm:$0xff]   ;;  %v5758_v9 = vld [vmem:[%s6324_s23 + $0x5d8] ss:$80 sps:$4 sm:$0xff]  }
 0x133   : > { %2574 = vmatmul.mubr.bf16.vlgmr.msra.gmra.mxu0 %v6411_v5  ;;  %2615 = vmatmul.mubr.bf16.vlgmr.msra.gmra.mxu1 %v6411_v5 }
 0x134   : > { %2624 = vmatpush1.bf16.msra.mxu0 %v5671_v10  ;;  %2665 = vmatpush1.bf16.msra.mxu1 %v5674_v11  ;;  %v5763_v10 = vld [vmem:[%s6324_s23 + $0x534] ss:$80 sps:$4 sm:$0xff]   ;;  %v5766_v11 = vld [vmem:[%s6324_s23 + $0x53c] ss:$80 sps:$4 sm:$0xff]  }
 0x135   : > { %2625 = vmatprep.subr.bf16.mxu0 %v5679_v12  ;;  %2666 = vmatprep.subr.bf16.mxu1 %v5682_v13  ;;  %v5761_v12 = vld [vmem:[%s6324_s23 + $0x530] ss:$80 sps:$4 sm:$0xff]   ;;  %v5764_v13 = vld [vmem:[%s6324_s23 + $0x538] ss:$80 sps:$4 sm:$0xff]  }
 0x136   : > { %2655 = vmatprep.mubr.bf16.mxu0 %v6391_v52  ;;  %2696 = vmatprep.mubr.bf16.mxu1 %v6391_v52 }
 0x138   : > { %2626 = vmatpush1.bf16.msra.mxu0 %v5677_v14  ;;  %2667 = vmatpush1.bf16.msra.mxu1 %v5680_v15  ;;  %v5769_v14 = vld [vmem:[%s6324_s23 + $0x4a4] ss:$80 sps:$4 sm:$0xff]   ;;  %v5772_v15 = vld [vmem:[%s6324_s23 + $0x4ac] ss:$80 sps:$4 sm:$0xff]  }
 0x139   : > { %2627 = vmatprep.subr.bf16.mxu0 %v5685_v16  ;;  %2668 = vmatprep.subr.bf16.mxu1 %v5688_v17  ;;  %v5767_v16 = vld [vmem:[%s6324_s23 + $0x4a0] ss:$80 sps:$4 sm:$0xff]   ;;  %v5770_v17 = vld [vmem:[%s6324_s23 + $0x4a8] ss:$80 sps:$4 sm:$0xff]  }
 0x13c   : > { %2628 = vmatpush1.bf16.msra.mxu0 %v5683_v18  ;;  %2669 = vmatpush1.bf16.msra.mxu1 %v5686_v19  ;;  %v5775_v18 = vld [vmem:[%s6324_s23 + $0x404] ss:$80 sps:$4 sm:$0xff]   ;;  %v5778_v19 = vld [vmem:[%s6324_s23 + $0x40c] ss:$80 sps:$4 sm:$0xff]  }
 0x13d   : > { %2629 = vmatprep.subr.bf16.mxu0 %v5691_v20  ;;  %2670 = vmatprep.subr.bf16.mxu1 %v5694_v21  ;;  %v5773_v20 = vld [vmem:[%s6324_s23 + $0x400] ss:$80 sps:$4 sm:$0xff]  }
 0x140   : > { %2630 = vmatpush1.bf16.msra.mxu0 %v5689_v22  ;;  %2671 = vmatpush1.bf16.msra.mxu1 %v5692_v23  ;;  %v5776_v23 = vld [vmem:[%s6324_s23 + $0x408] ss:$80 sps:$4 sm:$0xff]  }
 0x141   : > { %2631 = vmatprep.subr.bf16.mxu0 %v5697_v25  ;;  %2672 = vmatprep.subr.bf16.mxu1 %v5700_v26 }
 0x144   : > { %2632 = vmatpush1.bf16.msra.mxu0 %v5695_v27  ;;  %2673 = vmatpush1.bf16.msra.mxu1 %v5698_v28  ;;  %v5784_v27 = vld [vmem:[%s6324_s23 + $0x36c] ss:$80 sps:$4 sm:$0xff]   ;;  %v5779_v28 = vld [vmem:[%s6324_s23 + $0x360] ss:$80 sps:$4 sm:$0xff]  }
 0x145   : > { %2633 = vmatprep.subr.bf16.mxu0 %v5703_v30  ;;  %2674 = vmatprep.subr.bf16.mxu1 %v5706_v31 }
 0x148   : > { %2634 = vmatpush1.bf16.msra.mxu0 %v5701_v32  ;;  %2675 = vmatpush1.bf16.msra.mxu1 %v5704_v33  ;;  %v5782_v32 = vld [vmem:[%s6324_s23 + $0x368] ss:$80 sps:$4 sm:$0xff]   ;;  %v5787_v33 = vld [vmem:[%s6324_s23 + $0x2c4] ss:$80 sps:$4 sm:$0xff]  }
 0x149   : > { %2635 = vmatprep.subr.bf16.mxu0 %v5709_v35  ;;  %2676 = vmatprep.subr.bf16.mxu1 %v5712_v36 }
 0x14c   : > { %2636 = vmatpush1.bf16.msra.mxu0 %v5707_v38  ;;  %2677 = vmatpush1.bf16.msra.mxu1 %v5710_v39  ;;  %v5790_v38 = vld [vmem:[%s6324_s23 + $0x2cc] ss:$80 sps:$4 sm:$0xff]   ;;  %v5785_v39 = vld [vmem:[%s6324_s23 + $0x2c0] ss:$80 sps:$4 sm:$0xff]  }
 0x14d   : > { %2637 = vmatprep.subr.bf16.mxu0 %v5715_v40  ;;  %2678 = vmatprep.subr.bf16.mxu1 %v5718_v41  ;;  %v5788_v40 = vld [vmem:[%s6324_s23 + $0x2c8] ss:$80 sps:$4 sm:$0xff]   ;;  %v5796_v41 = vld [vmem:[%s6324_s23 + $0x22c] ss:$80 sps:$4 sm:$0xff]  }
 0x150   : > { %2638 = vmatpush1.bf16.msra.mxu0 %v5713_v42  ;;  %2679 = vmatpush1.bf16.msra.mxu1 %v5716_v43  ;;  %v5791_v42 = vld [vmem:[%s6324_s23 + $0x220] ss:$80 sps:$4 sm:$0xff]   ;;  %v5794_v43 = vld [vmem:[%s6324_s23 + $0x228] ss:$80 sps:$4 sm:$0xff]  }
 0x151   : > { %2639 = vmatprep.subr.bf16.mxu0 %v5721_v44  ;;  %2680 = vmatprep.subr.bf16.mxu1 %v5724_v45  ;;  %v5799_v44 = vld [vmem:[%s6324_s23 + $0x184] ss:$80 sps:$4 sm:$0xff]   ;;  %v5802_v45 = vld [vmem:[%s6324_s23 + $0x18c] ss:$80 sps:$4 sm:$0xff]  }
 0x154   : > { %2640 = vmatpush2.bf16.msra.mxu0 %v5719_v46  ;;  %2681 = vmatpush2.bf16.msra.mxu1 %v5722_v47  ;;  %v5797_v46 = vld [vmem:[%s6324_s23 + $0x180] ss:$80 sps:$4 sm:$0xff]   ;;  %v5800_v47 = vld [vmem:[%s6324_s23 + $0x188] ss:$80 sps:$4 sm:$0xff]  }
 0x155   : > { %2641 = vmatprep.subr.bf16.mxu0 %v5727_v48  ;;  %2682 = vmatprep.subr.bf16.mxu1 %v5730_v49  ;;  %v5805_v48 = vld [vmem:[%s6324_s23 + $0xe4] ss:$80 sps:$4 sm:$0xff]   ;;  %v5808_v49 = vld [vmem:[%s6324_s23 + $0xec] ss:$80 sps:$4 sm:$0xff]  }
 0x158   : > { %2642 = vmatpush2.bf16.msra.mxu0 %v5725_v50  ;;  %2683 = vmatpush2.bf16.msra.mxu1 %v5728_v51  ;;  %v5803_v50 = vld [vmem:[%s6324_s23 + $0xe0] ss:$80 sps:$4 sm:$0xff]   ;;  %v5806_v51 = vld [vmem:[%s6324_s23 + $0xe8] ss:$80 sps:$4 sm:$0xff]  }
 0x159   : > { %2643 = vmatprep.subr.bf16.mxu0 %v5733_v53  ;;  %2684 = vmatprep.subr.bf16.mxu1 %v5736_v54  ;;  %v5811_v53 = vld [vmem:[%s6324_s23 + $0x44] ss:$80 sps:$4 sm:$0xff]   ;;  %v5814_v54 = vld [vmem:[%s6324_s23 + $0x4c] ss:$80 sps:$4 sm:$0xff]  }
 0x15c   : > { %2644 = vmatpush2.bf16.msra.mxu0 %v5731_v55  ;;  %2685 = vmatpush2.bf16.msra.mxu1 %v5734_v56  ;;  %v5809_v55 = vld [vmem:[%s6324_s23 + $0x40] ss:$80 sps:$4 sm:$0xff]   ;;  %v5812_v56 = vld [vmem:[%s6324_s23 + $0x48] ss:$80 sps:$4 sm:$0xff]  }
 0x15d   : > { %2645 = vmatprep.subr.bf16.mxu0 %v5739_v57  ;;  %2686 = vmatprep.subr.bf16.mxu1 %v5742_v58  ;;  %v5817_v57 = vld [vmem:[%s6324_s23 + $0x9a4] ss:$80 sps:$4 sm:$0xff]   ;;  %v5820_v58 = vld [vmem:[%s6324_s23 + $0x9ac] ss:$80 sps:$4 sm:$0xff]  }
 0x160   : > { %2646 = vmatpush2.bf16.msra.mxu0 %v5737_v59  ;;  %2687 = vmatpush2.bf16.msra.mxu1 %v5740_v60  ;;  %v5815_v59 = vld [vmem:[%s6324_s23 + $0x9a0] ss:$80 sps:$4 sm:$0xff]   ;;  %v5818_v60 = vld [vmem:[%s6324_s23 + $0x9a8] ss:$80 sps:$4 sm:$0xff]  }
 0x161   : > { %2647 = vmatprep.subr.bf16.mxu0 %v5745_v61  ;;  %2688 = vmatprep.subr.bf16.mxu1 %v5748_v62  ;;  %v5823_v61 = vld [vmem:[%s6324_s23 + $0x904] ss:$80 sps:$4 sm:$0xff]   ;;  %v5826_v62 = vld [vmem:[%s6324_s23 + $0x90c] ss:$80 sps:$4 sm:$0xff]  }
 0x164   : > { %2648 = vmatpush2.bf16.msra.mxu0 %v5743_v63  ;;  %2689 = vmatpush2.bf16.msra.mxu1 %v5746_v0  ;;  %v5821_v63 = vld [vmem:[%s6324_s23 + $0x900] ss:$80 sps:$4 sm:$0xff]   ;;  %v5824_v0 = vld [vmem:[%s6324_s23 + $0x908] ss:$80 sps:$4 sm:$0xff]  }
 0x165   : > { %2649 = vmatprep.subr.bf16.mxu0 %v5751_v1  ;;  %2690 = vmatprep.subr.bf16.mxu1 %v5754_v2  ;;  %v5829_v1 = vld [vmem:[%s6324_s23 + $0x864] ss:$80 sps:$4 sm:$0xff]   ;;  %v5832_v2 = vld [vmem:[%s6324_s23 + $0x86c] ss:$80 sps:$4 sm:$0xff]  }
 0x168   : > { %2650 = vmatpush2.bf16.msra.mxu0 %v5749_v3  ;;  %2691 = vmatpush2.bf16.msra.mxu1 %v5752_v4  ;;  %v5827_v3 = vld [vmem:[%s6324_s23 + $0x860] ss:$80 sps:$4 sm:$0xff]   ;;  %v5830_v4 = vld [vmem:[%s6324_s23 + $0x868] ss:$80 sps:$4 sm:$0xff]  }
 0x169   : > { %2651 = vmatprep.subr.bf16.mxu0 %v5757_v6  ;;  %2692 = vmatprep.subr.bf16.mxu1 %v5760_v7  ;;  %v5835_v6 = vld [vmem:[%s6324_s23 + $0x7c4] ss:$80 sps:$4 sm:$0xff]   ;;  %v5838_v7 = vld [vmem:[%s6324_s23 + $0x7cc] ss:$80 sps:$4 sm:$0xff]  }
 0x16c   : > { %2652 = vmatpush2.bf16.msra.mxu0 %v5755_v8  ;;  %2693 = vmatpush2.bf16.msra.mxu1 %v5758_v9  ;;  %v5833_v8 = vld [vmem:[%s6324_s23 + $0x7c0] ss:$80 sps:$4 sm:$0xff]   ;;  %v5836_v9 = vld [vmem:[%s6324_s23 + $0x7c8] ss:$80 sps:$4 sm:$0xff]  }
 0x16d   : > { %2653 = vmatprep.subr.bf16.mxu0 %v5763_v10  ;;  %2694 = vmatprep.subr.bf16.mxu1 %v5766_v11  ;;  %v5841_v10 = vld [vmem:[%s6324_s23 + $0x724] ss:$80 sps:$4 sm:$0xff]   ;;  %v5844_v11 = vld [vmem:[%s6324_s23 + $0x72c] ss:$80 sps:$4 sm:$0xff]  }
 0x170   : > { %2654 = vmatpush2.bf16.msra.mxu0 %v5761_v12  ;;  %2695 = vmatpush2.bf16.msra.mxu1 %v5764_v13  ;;  %v5839_v12 = vld [vmem:[%s6324_s23 + $0x720] ss:$80 sps:$4 sm:$0xff]   ;;  %v5842_v13 = vld [vmem:[%s6324_s23 + $0x728] ss:$80 sps:$4 sm:$0xff]  }
 0x171   : > { %2705 = vmatprep.subr.bf16.mxu0 %v5769_v14  ;;  %2746 = vmatprep.subr.bf16.mxu1 %v5772_v15  ;;  %v5847_v14 = vld [vmem:[%s6324_s23 + $0x684] ss:$80 sps:$4 sm:$0xff]   ;;  %v5850_v15 = vld [vmem:[%s6324_s23 + $0x68c] ss:$80 sps:$4 sm:$0xff]  }
 0x173   : > { %v6636_v21 = vpop.f32.mrf.mxu0  ;;  %v6638_v22 = vpop.f32.mrf.mxu1  ;;  %2656 = vmatmul.mubr.bf16.vlgmr.msra.gmra.mxu0 %v6411_v5  ;;  %2697 = vmatmul.mubr.bf16.vlgmr.msra.gmra.mxu1 %v6411_v5 }
 0x174   : > { %2706 = vmatpush1.bf16.msra.mxu0 %v5767_v16  ;;  %2747 = vmatpush1.bf16.msra.mxu1 %v5770_v17  ;;  %v5845_v16 = vld [vmem:[%s6324_s23 + $0x680] ss:$80 sps:$4 sm:$0xff]   ;;  %v5848_v17 = vld [vmem:[%s6324_s23 + $0x688] ss:$80 sps:$4 sm:$0xff]  }
 0x175   : > { %v6644_v25 = vpop.f32.mrf.mxu0  ;;  %v6646_v26 = vpop.f32.mrf.mxu1  ;;  %2707 = vmatprep.subr.bf16.mxu0 %v5775_v18  ;;  %2748 = vmatprep.subr.bf16.mxu1 %v5778_v19  ;;  %v5853_v18 = vld [vmem:[%s6324_s23 + $0x5e4] ss:$80 sps:$4 sm:$0xff]  }
 0x176   : > { %2737 = vmatprep.mubr.bf16.mxu0 %v6391_v52  ;;  %2778 = vmatprep.mubr.bf16.mxu1 %v6391_v52  ;;  %v5793_v52 = vld [vmem:[%s6324_s23 + $0x224] ss:$80 sps:$4 sm:$0xff]  }
 0x177   : > { %v2415_v30 = vpop.f32.mrf.mxu0  ;;  %v2456_v31 = vpop.f32.mrf.mxu1  ;;  %v6699_v19 = vld [vmem:[%s6332_s16] sm:$0xff] }
 0x178   : > { %2708 = vmatpush1.bf16.msra.mxu0 %v5773_v20  ;;  %2749 = vmatpush1.bf16.msra.mxu1 %v5776_v23  ;;  %v5856_v20 = vld [vmem:[%s6324_s23 + $0x5ec] ss:$80 sps:$4 sm:$0xff]   ;;  %v5851_v23 = vld [vmem:[%s6324_s23 + $0x5e0] ss:$80 sps:$4 sm:$0xff]   ;;  %v684_v30 = vrot.slane %v6699_v19, %v6579_v34 }
 0x179   : > { %v2416_v35 = vpop.f32.mrf.mxu0  ;;  %v2457_v36 = vpop.f32.mrf.mxu1  ;;  %2709 = vmatprep.subr.bf16.mxu0 %v5781_v24  ;;  %2750 = vmatprep.subr.bf16.mxu1 %v5784_v27  ;;  %v5854_v24 = vld [vmem:[%s6324_s23 + $0x5e8] ss:$80 sps:$4 sm:$0xff]   ;;  %v5859_v27 = vld [vmem:[%s6324_s23 + $0x544] ss:$80 sps:$4 sm:$0xff]   ;;  %v5857_v31 = vld [vmem:[%s6324_s23 + $0x540] ss:$80 sps:$4 sm:$0xff]  }
 0x17a   : > { %v5863_v35 = vld [vmem:[%s6589_s29 + $0x78] sm:$0xff]  }
 0x17b   : > { %v5864_v36 = vld [vmem:[%s6589_s29 + $0xf8] sm:$0xff]  }
 0x17c   : > { %2710 = vmatpush1.bf16.msra.mxu0 %v5779_v28  ;;  %2751 = vmatpush1.bf16.msra.mxu1 %v5782_v32  ;;  %v5862_v28 = vld [vmem:[%s6324_s23 + $0x54c] ss:$80 sps:$4 sm:$0xff]   ;;  %v692_v32 = vrot.slane %v6699_v19, %v6584_v37 }
 0x17d   : > { %2711 = vmatprep.subr.bf16.mxu0 %v5787_v33  ;;  %2752 = vmatprep.subr.bf16.mxu1 %v5790_v38  ;;  %v5860_v33 = vld [vmem:[%s6324_s23 + $0x548] ss:$80 sps:$4 sm:$0xff]   ;;  %v2414_v38 = vadd.f32 %v6644_v25, %v684_v30  ;;  %v5869_v25 = vld [vmem:[%s6589_s29 + $0x30] sm:$0xff]  }
 0x180   : > { %2712 = vmatpush1.bf16.msra.mxu0 %v5785_v39  ;;  %2753 = vmatpush1.bf16.msra.mxu1 %v5788_v40  ;;  %v2455_v39 = vadd.f32 %v6646_v26, %v692_v32  ;;  %v5865_v40 = vld [vmem:[%s6589_s29 + $0x38] sm:$0xff]   ;;  %v5870_v26 = vld [vmem:[%s6589_s29 + $0xb0] sm:$0xff]  }
 0x181   : > { %2713 = vmatprep.subr.bf16.mxu0 %v5793_v52  ;;  %2754 = vmatprep.subr.bf16.mxu1 %v5796_v41  ;;  %v5866_v52 = vld [vmem:[%s6589_s29 + $0xb8] sm:$0xff]   ;;  %v5867_v41 = vld [vmem:[%s6589_s29 + $0x70] sm:$0xff]  }
 0x184   : > { %2714 = vmatpush1.bf16.msra.mxu0 %v5791_v42  ;;  %2755 = vmatpush1.bf16.msra.mxu1 %v5794_v43  ;;  %v2788_v42 = vpack.c.bf16 %v2414_v38, %v2414_v38  ;;  %v5868_v43 = vld [vmem:[%s6589_s29 + $0xf0] sm:$0xff]  }
 0x185   : > { %2715 = vmatprep.subr.bf16.mxu0 %v5799_v44  ;;  %2756 = vmatprep.subr.bf16.mxu1 %v5802_v45  ;;  %v2790_v44 = vpack.c.bf16 %v2455_v39, %v2455_v39 }
 0x188   : > { %2716 = vmatpush1.bf16.msra.mxu0 %v5797_v46  ;;  %2757 = vmatpush1.bf16.msra.mxu1 %v5800_v47 }
 0x189   : > { %2717 = vmatprep.subr.bf16.mxu0 %v5805_v48  ;;  %2758 = vmatprep.subr.bf16.mxu1 %v5808_v49  ;;  %v5871_v49 = vld [vmem:[%s6589_s29 + $0x68] sm:$0xff]  }
 0x18c   : > { %2718 = vmatpush1.bf16.msra.mxu0 %v5803_v50  ;;  %2759 = vmatpush1.bf16.msra.mxu1 %v5806_v51  ;;  %v5872_v50 = vld [vmem:[%s6589_s29 + $0xe8] sm:$0xff]  }
 0x18d   : > { %2719 = vmatprep.subr.bf16.mxu0 %v5811_v53  ;;  %2760 = vmatprep.subr.bf16.mxu1 %v5814_v54  ;;  %v5873_v53 = vld [vmem:[%s6589_s29 + $0x28] sm:$0xff]  }
 0x18e   : > { %v5874_v54 = vld [vmem:[%s6589_s29 + $0xa8] sm:$0xff]  }
 0x190   : > { %2720 = vmatpush1.bf16.msra.mxu0 %v5809_v55  ;;  %2761 = vmatpush1.bf16.msra.mxu1 %v5812_v56 }
 0x191   : > { %2721 = vmatprep.subr.bf16.mxu0 %v5817_v57  ;;  %2762 = vmatprep.subr.bf16.mxu1 %v5820_v58  ;;  %v5875_v57 = vld [vmem:[%s6589_s29 + $0x60] sm:$0xff]  }
 0x192   : > { %v5876_v58 = vld [vmem:[%s6589_s29 + $0xe0] sm:$0xff]  }
 0x194   : > { %2722 = vmatpush2.bf16.msra.mxu0 %v5815_v59  ;;  %2763 = vmatpush2.bf16.msra.mxu1 %v5818_v60  ;;  %v5877_v59 = vld [vmem:[%s6589_s29 + $0x20] sm:$0xff]  }
 0x195   : > { %2723 = vmatprep.subr.bf16.mxu0 %v5823_v61  ;;  %2764 = vmatprep.subr.bf16.mxu1 %v5826_v62  ;;  %v5878_v60 = vld [vmem:[%s6589_s29 + $0xa0] sm:$0xff]   ;;  %v5879_v61 = vld [vmem:[%s6589_s29 + $0x58] sm:$0xff]  }
 0x196   : > { %v5880_v62 = vld [vmem:[%s6589_s29 + $0xd8] sm:$0xff]  }
 0x198   : > { %2724 = vmatpush2.bf16.msra.mxu0 %v5821_v63  ;;  %2765 = vmatpush2.bf16.msra.mxu1 %v5824_v0  ;;  %v5881_v63 = vld [vmem:[%s6589_s29 + $0x18] sm:$0xff]  }
 0x199   : > { %2725 = vmatprep.subr.bf16.mxu0 %v5829_v1  ;;  %2766 = vmatprep.subr.bf16.mxu1 %v5832_v2  ;;  %v5882_v0 = vld [vmem:[%s6589_s29 + $0x98] sm:$0xff]   ;;  %v5883_v1 = vld [vmem:[%s6589_s29 + $0x50] sm:$0xff]  }
 0x19a   : > { %v5884_v2 = vld [vmem:[%s6589_s29 + $0xd0] sm:$0xff]  }
 0x19c   : > { %2726 = vmatpush2.bf16.msra.mxu0 %v5827_v3  ;;  %2767 = vmatpush2.bf16.msra.mxu1 %v5830_v4  ;;  %v5885_v3 = vld [vmem:[%s6589_s29 + $0x10] sm:$0xff]  }
 0x19d   : > { %2727 = vmatprep.subr.bf16.mxu0 %v5835_v6  ;;  %2768 = vmatprep.subr.bf16.mxu1 %v5838_v7  ;;  %v5886_v4 = vld [vmem:[%s6589_s29 + $0x90] sm:$0xff]   ;;  %v6749_v6 = vsub.s32 0, %v6572_v29  ;;  %v5887_v7 = vld [vmem:[%s6589_s29 + $0x48] sm:$0xff]  }
 0x1a0   : > { %2728 = vmatpush2.bf16.msra.mxu0 %v5833_v8  ;;  %2769 = vmatpush2.bf16.msra.mxu1 %v5836_v9  ;;  %v6753_v8 = vsub.s32 2, %v6572_v29  ;;  %v5888_v9 = vld [vmem:[%s6589_s29 + $0xc8] sm:$0xff]  }
 0x1a1   : > { %2729 = vmatprep.subr.bf16.mxu0 %v5841_v10  ;;  %2770 = vmatprep.subr.bf16.mxu1 %v5844_v11  ;;  %v699_v10 = vsub.s32 5, %v6572_v29  ;;  %v5889_v11 = vld [vmem:[%s6589_s29 + $0x8] sm:$0xff]  }
 0x1a4   : > { %2730 = vmatpush2.bf16.msra.mxu0 %v5839_v12  ;;  %2771 = vmatpush2.bf16.msra.mxu1 %v5842_v13  ;;  %v707_v12 = vsub.s32 7, %v6572_v29  ;;  %v5890_v13 = vld [vmem:[%s6589_s29 + $0x88] sm:$0xff]  }
 0x1a5   : > { %2731 = vmatprep.subr.bf16.mxu0 %v5847_v14  ;;  %2772 = vmatprep.subr.bf16.mxu1 %v5850_v15  ;;  %v680_v14 = vrot.slane %v6699_v19, %v6749_v6  ;;  %v5891_v15 = vld [vmem:[%s6589_s29 + $0x40] sm:$0xff]  }
 0x1a8   : > { %2732 = vmatpush2.bf16.msra.mxu0 %v5845_v16  ;;  %2773 = vmatpush2.bf16.msra.mxu1 %v5848_v17  ;;  %v688_v16 = vrot.slane %v6699_v19, %v6753_v8  ;;  %v5892_v17 = vld [vmem:[%s6589_s29 + $0xc0] sm:$0xff]  }
 0x1a9   : > { %2733 = vmatprep.subr.bf16.mxu0 %v5853_v18  ;;  %2774 = vmatprep.subr.bf16.mxu1 %v5856_v20  ;;  %v700_v18 = vrot.slane %v6699_v19, %v699_v10  ;;  %v5893_v20 = vld [vmem:[%s6589_s29] sm:$0xff]  }
 0x1aa   : > { %v2453_v30 = vadd.f32 %v6638_v22, %v688_v16  ;;  %v5900_v22 = vld [vmem:[%s6589_s29 + $0x1f0] sm:$0xff]   ;;  %v6823_v16 = vld [vmem:[%s6332_s16 + $0x8] sm:$0xff] }
 0x1ac   : > { %2734 = vmatpush2.bf16.msra.mxu0 %v5851_v23  ;;  %2775 = vmatpush2.bf16.msra.mxu1 %v5854_v24  ;;  %v708_v23 = vrot.slane %v6699_v19, %v707_v12  ;;  %v5894_v24 = vld [vmem:[%s6589_s29 + $0x80] sm:$0xff]   ;;  %v2789_v39 = vpack.c.bf16 %v2453_v30, %v2453_v30  ;;  %v5933_v30 = vld [vmem:[%s6589_s29 + $0x230] sm:$0xff]  }
 0x1ad   : > { %2735 = vmatprep.subr.bf16.mxu0 %v5859_v27  ;;  %2776 = vmatprep.subr.bf16.mxu1 %v5862_v28  ;;  %v2412_v27 = vadd.f32 %v6636_v21, %v680_v14  ;;  %v5895_v28 = vld [vmem:[%s6589_s29 + $0x178] sm:$0xff]   ;;  %v5899_v21 = vld [vmem:[%s6589_s29 + $0x170] sm:$0xff]  }
 0x1af   : > { %v2787_v38 = vpack.c.bf16 %v2412_v27, %v2412_v27 }
 0x1b0   : > { %2736 = vmatpush2.bf16.msra.mxu0 %v5857_v31  ;;  %2777 = vmatpush2.bf16.msra.mxu1 %v5860_v33  ;;  %v5896_v31 = vld [vmem:[%s6589_s29 + $0x1f8] sm:$0xff]  }
 0x1b1   : > { %5107 = vmatprep.subr.bf16.mxu0 %v5863_v35  ;;  %5129 = vmatprep.subr.bf16.mxu1 %v5864_v36  ;;  %v5897_v33 = vld [vmem:[%s6589_s29 + $0x138] sm:$0xff]  }
 0x1b2   : > { %v5898_v36 = vld [vmem:[%s6589_s29 + $0x1b8] sm:$0xff]  }
 0x1b3   : > { %v6720_v45 = vpop.f32.mrf.mxu0  ;;  %v6722_v46 = vpop.f32.mrf.mxu1  ;;  %2738 = vmatmul.mubr.bf16.vlgmr.msra.gmra.mxu0 %v6411_v5  ;;  %2779 = vmatmul.mubr.bf16.vlgmr.msra.gmra.mxu1 %v6411_v5 }
 0x1b4   : > { %5108 = vmatpush3.bf16.msra.mxu0 %v5865_v40  ;;  %4126 = vmatprep.mubr.bf16.mxu0 %v2788_v42  ;;  %v5902_v42 = vld [vmem:[%s6589_s29 + $0x1b0] sm:$0xff]  }
 0x1b5   : > { %5130 = vmatpush3.bf16.msra.mxu1 %v5866_v52  ;;  %4166 = vmatprep.mubr.bf16.mxu1 %v2790_v44  ;;  %v6728_v47 = vpop.f32.mrf.mxu0  ;;  %v6730_v48 = vpop.f32.mrf.mxu1  ;;  %v5901_v52 = vld [vmem:[%s6589_s29 + $0x130] sm:$0xff]   ;;  %v5904_v44 = vld [vmem:[%s6589_s29 + $0x1e8] sm:$0xff]  }
 0x1b6   : > { %5109 = vmatprep.subr.bf16.mxu0 %v5867_v41  ;;  %5131 = vmatprep.subr.bf16.mxu1 %v5868_v43  ;;  %v2496_v32 = vadd.f32 %v6728_v47, %v700_v18  ;;  %v2537_v35 = vadd.f32 %v6730_v48, %v708_v23  ;;  %v5903_v43 = vld [vmem:[%s6589_s29 + $0x168] sm:$0xff]   ;;  %v5907_v47 = vld [vmem:[%s6589_s29 + $0x160] sm:$0xff]   ;;  %v5930_v18 = vld [vmem:[%s6589_s29 + $0x2b8] sm:$0xff]   ;;  %v716_v23 = vrot.slane %v6823_v16, %v6579_v34 }
 0x1b7   : > { %v2497_v51 = vpop.f32.mrf.mxu0  ;;  %v2538_v5 = vpop.f32.mrf.mxu1  ;;  %v5908_v48 = vld [vmem:[%s6589_s29 + $0x1e0] sm:$0xff]  }
 0x1b8   : > { %5110 = vmatpush3.bf16.msra.mxu0 %v5869_v25  ;;  %v2792_v40 = vpack.c.bf16 %v2496_v32, %v2496_v32  ;;  %v2794_v41 = vpack.c.bf16 %v2537_v35, %v2537_v35  ;;  %v5905_v25 = vld [vmem:[%s6589_s29 + $0x128] sm:$0xff]   ;;  %v5911_v51 = vld [vmem:[%s6589_s29 + $0x158] sm:$0xff]  }
 0x1b9   : > { %5132 = vmatpush3.bf16.msra.mxu1 %v5870_v26  ;;  %v2498_v55 = vpop.f32.mrf.mxu0  ;;  %v2539_v56 = vpop.f32.mrf.mxu1  ;;  %5111 = vmatprep.subr.bf16.mxu0 %v5871_v49  ;;  %v5906_v26 = vld [vmem:[%s6589_s29 + $0x1a8] sm:$0xff]   ;;  %v5909_v49 = vld [vmem:[%s6589_s29 + $0x120] sm:$0xff]   ;;  %v5912_v5 = vld [vmem:[%s6589_s29 + $0x1d8] sm:$0xff]  }
 0x1ba   : > { %5133 = vmatprep.subr.bf16.mxu1 %v5872_v50  ;;  %v5910_v50 = vld [vmem:[%s6589_s29 + $0x1a0] sm:$0xff]   ;;  %v5915_v55 = vld [vmem:[%s6589_s29 + $0x150] sm:$0xff]   ;;  %v5935_v35 = vld [vmem:[%s6589_s29 + $0x268] sm:$0xff]  }
 0x1bb   : > { %v5916_v56 = vld [vmem:[%s6589_s29 + $0x1d0] sm:$0xff]  }
 0x1bc   : > { %5112 = vmatpush3.bf16.msra.mxu0 %v5873_v53  ;;  %v5913_v53 = vld [vmem:[%s6589_s29 + $0x118] sm:$0xff]  }
 0x1bd   : > { %5134 = vmatpush3.bf16.msra.mxu1 %v5874_v54  ;;  %5113 = vmatprep.subr.bf16.mxu0 %v5875_v57  ;;  %v5914_v54 = vld [vmem:[%s6589_s29 + $0x198] sm:$0xff]   ;;  %v5917_v57 = vld [vmem:[%s6589_s29 + $0x110] sm:$0xff]  }
 0x1be   : > { %5135 = vmatprep.subr.bf16.mxu1 %v5876_v58  ;;  %v695_v58 = vsub.s32 4, %v6572_v29 }
 0x1c0   : > { %5114 = vmatpush3.bf16.msra.mxu0 %v5877_v59  ;;  %v5918_v59 = vld [vmem:[%s6589_s29 + $0x190] sm:$0xff]  }
 0x1c1   : > { %5136 = vmatpush3.bf16.msra.mxu1 %v5878_v60  ;;  %5115 = vmatprep.subr.bf16.mxu0 %v5879_v61  ;;  %v5919_v60 = vld [vmem:[%s6589_s29 + $0x148] sm:$0xff]   ;;  %v703_v61 = vsub.s32 6, %v6572_v29 }
 0x1c2   : > { %5137 = vmatprep.subr.bf16.mxu1 %v5880_v62  ;;  %v5920_v62 = vld [vmem:[%s6589_s29 + $0x1c8] sm:$0xff]  }
 0x1c4   : > { %5116 = vmatpush3.bf16.msra.mxu0 %v5881_v63  ;;  %v5921_v63 = vld [vmem:[%s6589_s29 + $0x108] sm:$0xff]  }
 0x1c5   : > { %5138 = vmatpush3.bf16.msra.mxu1 %v5882_v0  ;;  %5117 = vmatprep.subr.bf16.mxu0 %v5883_v1  ;;  %v696_v0 = vrot.slane %v6699_v19, %v695_v58  ;;  %v5922_v1 = vld [vmem:[%s6589_s29 + $0x188] sm:$0xff]  }
 0x1c6   : > { %5139 = vmatprep.subr.bf16.mxu1 %v5884_v2  ;;  %v5923_v2 = vld [vmem:[%s6589_s29 + $0x140] sm:$0xff]  }
 0x1c8   : > { %5118 = vmatpush3.bf16.msra.mxu0 %v5885_v3  ;;  %v704_v3 = vrot.slane %v6699_v19, %v703_v61  ;;  %v5929_v19 = vld [vmem:[%s6589_s29 + $0x238] sm:$0xff]  }
 0x1c9   : > { %5140 = vmatpush3.bf16.msra.mxu1 %v5886_v4  ;;  %5119 = vmatprep.subr.bf16.mxu0 %v5887_v7  ;;  %v5924_v4 = vld [vmem:[%s6589_s29 + $0x1c0] sm:$0xff]  }
 0x1ca   : > { %5141 = vmatprep.subr.bf16.mxu1 %v5888_v9  ;;  %v5925_v7 = vld [vmem:[%s6589_s29 + $0x100] sm:$0xff]   ;;  %v2494_v9 = vadd.f32 %v6720_v45, %v696_v0  ;;  %v2535_v14 = vadd.f32 %v6722_v46, %v704_v3  ;;  %v724_v46 = vrot.slane %v6823_v16, %v6584_v37 }
 0x1cb   : > { %v5955_v0 = vld [vmem:[%s6589_s29 + $0x240] sm:$0xff]  }
 0x1cc   : > { %5120 = vmatpush3.bf16.msra.mxu0 %v5889_v11  ;;  %v5926_v11 = vld [vmem:[%s6589_s29 + $0x180] sm:$0xff]   ;;  %v2793_v45 = vpack.c.bf16 %v2535_v14, %v2535_v14  ;;  %v5961_v14 = vld [vmem:[%s6589_s29 + $0x338] sm:$0xff]  }
 0x1cd   : > { %5142 = vmatpush3.bf16.msra.mxu1 %v5890_v13  ;;  %5121 = vmatprep.subr.bf16.mxu0 %v5891_v15  ;;  %v5927_v13 = vld [vmem:[%s6589_s29 + $0x278] sm:$0xff]   ;;  %v5957_v3 = vld [vmem:[%s6589_s29 + $0x200] sm:$0xff]  }
 0x1ce   : > { %5143 = vmatprep.subr.bf16.mxu1 %v5892_v17  ;;  %v5928_v15 = vld [vmem:[%s6589_s29 + $0x2f8] sm:$0xff]   ;;  %v2791_v17 = vpack.c.bf16 %v2494_v9, %v2494_v9 }
 0x1cf   : > { %v5959_v9 = vld [vmem:[%s6589_s29 + $0x378] sm:$0xff]  }
 0x1d0   : > { %5122 = vmatpush3.bf16.msra.mxu0 %v5893_v20  ;;  %v5931_v20 = vld [vmem:[%s6589_s29 + $0x270] sm:$0xff]  }
 0x1d1   : > { %5144 = vmatpush3.bf16.msra.mxu1 %v5894_v24  ;;  %5151 = vmatprep.subr.bf16.mxu0 %v5895_v28  ;;  %v5932_v24 = vld [vmem:[%s6589_s29 + $0x2f0] sm:$0xff]  }
 0x1d2   : > { %5173 = vmatprep.subr.bf16.mxu1 %v5896_v31 }
 0x1d3   : > { %4127 = vmatmul.mubr.bf16.vlgmr.msra.gmra.mxu0 %v2787_v38 }
 0x1d4   : > { %4167 = vmatmul.mubr.bf16.vlgmr.msra.gmra.mxu1 %v2789_v39  ;;  %5152 = vmatpush3.bf16.msra.mxu0 %v5897_v33  ;;  %v5934_v33 = vld [vmem:[%s6589_s29 + $0x2b0] sm:$0xff]  }
 0x1d5   : > { %4206 = vmatprep.mubr.bf16.mxu0 %v2792_v40  ;;  %5174 = vmatpush3.bf16.msra.mxu1 %v5898_v36 }
 0x1d6   : > { %4246 = vmatprep.mubr.bf16.mxu1 %v2794_v41  ;;  %5153 = vmatprep.subr.bf16.mxu0 %v5899_v21  ;;  %v5936_v21 = vld [vmem:[%s6589_s29 + $0x2e8] sm:$0xff]  }
 0x1d7   : > { %5175 = vmatprep.subr.bf16.mxu1 %v5900_v22  ;;  %v5937_v41 = vld [vmem:[%s6589_s29 + $0x228] sm:$0xff]  }
 0x1d8   : > { %5154 = vmatpush3.bf16.msra.mxu0 %v5901_v52 }
 0x1d9   : > { %5176 = vmatpush3.bf16.msra.mxu1 %v5902_v42  ;;  %5155 = vmatprep.subr.bf16.mxu0 %v5903_v43 }
 0x1da   : > { %5177 = vmatprep.subr.bf16.mxu1 %v5904_v44  ;;  %v5938_v44 = vld [vmem:[%s6589_s29 + $0x2a8] sm:$0xff]  }
 0x1dc   : > { %5156 = vmatpush3.bf16.msra.mxu0 %v5905_v25  ;;  %v5939_v25 = vld [vmem:[%s6589_s29 + $0x260] sm:$0xff]  }
 0x1dd   : > { %5178 = vmatpush3.bf16.msra.mxu1 %v5906_v26  ;;  %5157 = vmatprep.subr.bf16.mxu0 %v5907_v47  ;;  %v5940_v26 = vld [vmem:[%s6589_s29 + $0x2e0] sm:$0xff]  }
 0x1de   : > { %5179 = vmatprep.subr.bf16.mxu1 %v5908_v48  ;;  %v5941_v47 = vld [vmem:[%s6589_s29 + $0x220] sm:$0xff]  }
 0x1df   : > { %v5942_v48 = vld [vmem:[%s6589_s29 + $0x2a0] sm:$0xff]  }
 0x1e0   : > { %5158 = vmatpush3.bf16.msra.mxu0 %v5909_v49  ;;  %v5943_v49 = vld [vmem:[%s6589_s29 + $0x258] sm:$0xff]  }
 0x1e1   : > { %5180 = vmatpush3.bf16.msra.mxu1 %v5910_v50  ;;  %5159 = vmatprep.subr.bf16.mxu0 %v5911_v51  ;;  %v5944_v50 = vld [vmem:[%s6589_s29 + $0x2d8] sm:$0xff]  }
 0x1e2   : > { %5181 = vmatprep.subr.bf16.mxu1 %v5912_v5  ;;  %v5945_v51 = vld [vmem:[%s6589_s29 + $0x218] sm:$0xff]  }
 0x1e3   : > { %v5946_v5 = vld [vmem:[%s6589_s29 + $0x298] sm:$0xff]  }
 0x1e4   : > { %5160 = vmatpush3.bf16.msra.mxu0 %v5913_v53  ;;  %v5947_v53 = vld [vmem:[%s6589_s29 + $0x250] sm:$0xff]  }
 0x1e5   : > { %5182 = vmatpush3.bf16.msra.mxu1 %v5914_v54  ;;  %5161 = vmatprep.subr.bf16.mxu0 %v5915_v55  ;;  %v5948_v54 = vld [vmem:[%s6589_s29 + $0x2d0] sm:$0xff]  }
 0x1e6   : > { %5183 = vmatprep.subr.bf16.mxu1 %v5916_v56  ;;  %v5949_v55 = vld [vmem:[%s6589_s29 + $0x210] sm:$0xff]  }
 0x1e7   : > { %v5950_v56 = vld [vmem:[%s6589_s29 + $0x290] sm:$0xff]  }
 0x1e8   : > { %5162 = vmatpush3.bf16.msra.mxu0 %v5917_v57  ;;  %v5951_v57 = vld [vmem:[%s6589_s29 + $0x248] sm:$0xff]  }
 0x1e9   : > { %5184 = vmatpush3.bf16.msra.mxu1 %v5918_v59  ;;  %5163 = vmatprep.subr.bf16.mxu0 %v5919_v60  ;;  %v5952_v59 = vld [vmem:[%s6589_s29 + $0x2c8] sm:$0xff]  }
 0x1ea   : > { %5185 = vmatprep.subr.bf16.mxu1 %v5920_v62  ;;  %v5953_v60 = vld [vmem:[%s6589_s29 + $0x208] sm:$0xff]   ;;  %v712_v62 = vrot.slane %v6823_v16, %v6749_v6 }
 0x1ec   : > { %5164 = vmatpush3.bf16.msra.mxu0 %v5921_v63  ;;  %v5954_v63 = vld [vmem:[%s6589_s29 + $0x288] sm:$0xff]  }
 0x1ed   : > { %5186 = vmatpush3.bf16.msra.mxu1 %v5922_v1  ;;  %5165 = vmatprep.subr.bf16.mxu0 %v5923_v2  ;;  %v720_v1 = vrot.slane %v6823_v16, %v6753_v8  ;;  %v5956_v2 = vld [vmem:[%s6589_s29 + $0x2c0] sm:$0xff]  }
 0x1ee   : > { %5187 = vmatprep.subr.bf16.mxu1 %v5924_v4 }
 0x1f0   : > { %5166 = vmatpush3.bf16.msra.mxu0 %v5925_v7  ;;  %v5958_v7 = vld [vmem:[%s6589_s29 + $0x280] sm:$0xff]  }
 0x1f1   : > { %5188 = vmatpush3.bf16.msra.mxu1 %v5926_v11  ;;  %5195 = vmatprep.subr.bf16.mxu0 %v5927_v13  ;;  %v5960_v13 = vld [vmem:[%s6589_s29 + $0x3f8] sm:$0xff]  }
 0x1f2   : > { %5217 = vmatprep.subr.bf16.mxu1 %v5928_v15 }
 0x1f3   : > { %v6833_v27 = vpop.f32.mrf.mxu0  ;;  %v6835_v28 = vpop.f32.mrf.mxu1  ;;  %4207 = vmatmul.mubr.bf16.vlgmr.msra.gmra.mxu0 %v2791_v17  ;;  %v5963_v17 = vld [vmem:[%s6589_s29 + $0x370] sm:$0xff]  }
 0x1f4   : > { %4247 = vmatmul.mubr.bf16.vlgmr.msra.gmra.mxu1 %v2793_v45  ;;  %5196 = vmatpush3.bf16.msra.mxu0 %v5929_v19  ;;  %v2576_v4 = vadd.f32 %v6833_v27, %v712_v62  ;;  %v2617_v11 = vadd.f32 %v6835_v28, %v720_v1  ;;  %v5962_v19 = vld [vmem:[%s6589_s29 + $0x3b8] sm:$0xff]   ;;  %v5965_v45 = vld [vmem:[%s6589_s29 + $0x330] sm:$0xff]   ;;  %v5969_v27 = vld [vmem:[%s6589_s29 + $0x328] sm:$0xff]  }
 0x1f5   : > { %5218 = vmatpush3.bf16.msra.mxu1 %v5930_v18  ;;  %v2577_v31 = vpop.f32.mrf.mxu0  ;;  %v2618_v32 = vpop.f32.mrf.mxu1  ;;  %5197 = vmatprep.subr.bf16.mxu0 %v5931_v20  ;;  %v5964_v20 = vld [vmem:[%s6589_s29 + $0x3f0] sm:$0xff]   ;;  %v5970_v28 = vld [vmem:[%s6589_s29 + $0x3a8] sm:$0xff]  }
 0x1f6   : > { %v2578_v36 = vadd.f32 %v2577_v31, %v716_v23  ;;  %v2619_v38 = vadd.f32 %v2618_v32, %v724_v46  ;;  %5219 = vmatprep.subr.bf16.mxu1 %v5932_v24  ;;  %v2795_v15 = vpack.c.bf16 %v2576_v4, %v2576_v4  ;;  %v2797_v18 = vpack.c.bf16 %v2617_v11, %v2617_v11  ;;  %v5966_v23 = vld [vmem:[%s6589_s29 + $0x3b0] sm:$0xff]   ;;  %v5967_v46 = vld [vmem:[%s6589_s29 + $0x368] sm:$0xff]   ;;  %v5972_v31 = vld [vmem:[%s6589_s29 + $0x3e0] sm:$0xff]  }
 0x1f7   : > { %v2579_v39 = vpop.f32.mrf.mxu0  ;;  %v2620_v22 = vpop.f32.mrf.mxu1  ;;  %v5968_v24 = vld [vmem:[%s6589_s29 + $0x3e8] sm:$0xff]   ;;  %v5973_v32 = vld [vmem:[%s6589_s29 + $0x320] sm:$0xff]   ;;  %v5997_v11 = vld [vmem:[%s6589_s29 + $0x430] sm:$0xff]  }
 0x1f8   : > { %v2796_v40 = vpack.c.bf16 %v2578_v36, %v2578_v36  ;;  %v2798_v52 = vpack.c.bf16 %v2619_v38, %v2619_v38  ;;  %5198 = vmatpush3.bf16.msra.mxu0 %v5933_v30  ;;  %v5971_v30 = vld [vmem:[%s6589_s29 + $0x360] sm:$0xff]   ;;  %v5976_v36 = vld [vmem:[%s6589_s29 + $0x3d8] sm:$0xff]   ;;  %v5979_v39 = vld [vmem:[%s6589_s29 + $0x350] sm:$0xff]  }
 0x1f9   : > { %5220 = vmatpush3.bf16.msra.mxu1 %v5934_v33  ;;  %v2580_v42 = vpop.f32.mrf.mxu0  ;;  %v2621_v43 = vpop.f32.mrf.mxu1  ;;  %5199 = vmatprep.subr.bf16.mxu0 %v5935_v35  ;;  %v5974_v33 = vld [vmem:[%s6589_s29 + $0x3a0] sm:$0xff]   ;;  %v5975_v35 = vld [vmem:[%s6589_s29 + $0x358] sm:$0xff]   ;;  %v5980_v22 = vld [vmem:[%s6589_s29 + $0x3d0] sm:$0xff]  }
 0x1fa   : > { %4286 = vmatprep.mubr.bf16.mxu0 %v2796_v40  ;;  %5221 = vmatprep.subr.bf16.mxu1 %v5936_v21  ;;  %v5977_v38 = vld [vmem:[%s6589_s29 + $0x318] sm:$0xff]   ;;  %v5981_v40 = vld [vmem:[%s6589_s29 + $0x310] sm:$0xff]   ;;  %v5984_v42 = vld [vmem:[%s6589_s29 + $0x3c8] sm:$0xff]  }
 0x1fb   : > { %4326 = vmatprep.mubr.bf16.mxu1 %v2798_v52  ;;  %v5978_v21 = vld [vmem:[%s6589_s29 + $0x398] sm:$0xff]   ;;  %v5982_v52 = vld [vmem:[%s6589_s29 + $0x390] sm:$0xff]   ;;  %v5985_v43 = vld [vmem:[%s6589_s29 + $0x308] sm:$0xff]  }
 0x1fc   : > { %5200 = vmatpush3.bf16.msra.mxu0 %v5937_v41  ;;  %v5983_v41 = vld [vmem:[%s6589_s29 + $0x348] sm:$0xff]  }
 0x1fd   : > { %5222 = vmatpush3.bf16.msra.mxu1 %v5938_v44  ;;  %5201 = vmatprep.subr.bf16.mxu0 %v5939_v25  ;;  %v5986_v44 = vld [vmem:[%s6589_s29 + $0x388] sm:$0xff]   ;;  %v5987_v25 = vld [vmem:[%s6589_s29 + $0x340] sm:$0xff]  }
 0x1fe   : > { %5223 = vmatprep.subr.bf16.mxu1 %v5940_v26  ;;  %v5988_v26 = vld [vmem:[%s6589_s29 + $0x3c0] sm:$0xff]  }
 0x200   : > { %5202 = vmatpush3.bf16.msra.mxu0 %v5941_v47  ;;  %v5989_v47 = vld [vmem:[%s6589_s29 + $0x300] sm:$0xff]  }
 0x201   : > { %5224 = vmatpush3.bf16.msra.mxu1 %v5942_v48  ;;  %5203 = vmatprep.subr.bf16.mxu0 %v5943_v49  ;;  %v5990_v48 = vld [vmem:[%s6589_s29 + $0x380] sm:$0xff]   ;;  %v5991_v49 = vld [vmem:[%s6589_s29 + $0x478] sm:$0xff]  }
 0x202   : > { %5225 = vmatprep.subr.bf16.mxu1 %v5944_v50  ;;  %v5992_v50 = vld [vmem:[%s6589_s29 + $0x4f8] sm:$0xff]  }
 0x204   : > { %5204 = vmatpush3.bf16.msra.mxu0 %v5945_v51  ;;  %v736_v51 = vrot.slane %v6823_v16, %v703_v61 }
 0x205   : > { %5226 = vmatpush3.bf16.msra.mxu1 %v5946_v5  ;;  %5205 = vmatprep.subr.bf16.mxu0 %v5947_v53  ;;  %v728_v5 = vrot.slane %v6823_v16, %v695_v58  ;;  %v732_v53 = vrot.slane %v6823_v16, %v699_v10 }
 0x206   : > { %5227 = vmatprep.subr.bf16.mxu1 %v5948_v54  ;;  %v740_v54 = vrot.slane %v6823_v16, %v707_v12  ;;  %v5993_v12 = vld [vmem:[%s6589_s29 + $0x438] sm:$0xff]  }
 0x207   : > { %v5994_v16 = vld [vmem:[%s6589_s29 + $0x4b8] sm:$0xff]  }
 0x208   : > { %5206 = vmatpush3.bf16.msra.mxu0 %v5949_v55 }
 0x209   : > { %5228 = vmatpush3.bf16.msra.mxu1 %v5950_v56  ;;  %5207 = vmatprep.subr.bf16.mxu0 %v5951_v57 }
 0x20a   : > { %5229 = vmatprep.subr.bf16.mxu1 %v5952_v59 }
 0x20c   : > { %5208 = vmatpush3.bf16.msra.mxu0 %v5953_v60 }
 0x20d   : > { %5230 = vmatpush3.bf16.msra.mxu1 %v5954_v63  ;;  %5209 = vmatprep.subr.bf16.mxu0 %v5955_v0 }
 0x20e   : > { %5231 = vmatprep.subr.bf16.mxu1 %v5956_v2 }
 0x210   : > { %5210 = vmatpush3.bf16.msra.mxu0 %v5957_v3 }
 0x211   : > { %5232 = vmatpush3.bf16.msra.mxu1 %v5958_v7  ;;  %5239 = vmatprep.subr.bf16.mxu0 %v5959_v9  ;;  %v5995_v7 = vld [vmem:[%s6589_s29 + $0x470] sm:$0xff]  }
 0x212   : > { %5261 = vmatprep.subr.bf16.mxu1 %v5960_v13  ;;  %v5996_v9 = vld [vmem:[%s6589_s29 + $0x4f0] sm:$0xff]  }
 0x213   : > { %4287 = vmatmul.mubr.bf16.vlgmr.msra.gmra.mxu0 %v2795_v15  ;;  %v5998_v13 = vld [vmem:[%s6589_s29 + $0x4b0] sm:$0xff]   ;;  %v6000_v15 = vld [vmem:[%s6589_s29 + $0x4e8] sm:$0xff]  }
 0x214   : > { %4327 = vmatmul.mubr.bf16.vlgmr.msra.gmra.mxu1 %v2797_v18  ;;  %5240 = vmatpush3.bf16.msra.mxu0 %v5961_v14  ;;  %v5999_v14 = vld [vmem:[%s6589_s29 + $0x468] sm:$0xff]   ;;  %v6003_v18 = vld [vmem:[%s6589_s29 + $0x460] sm:$0xff]  }
 0x215   : > { %5262 = vmatpush3.bf16.msra.mxu1 %v5962_v19  ;;  %5241 = vmatprep.subr.bf16.mxu0 %v5963_v17  ;;  %v6001_v19 = vld [vmem:[%s6589_s29 + $0x428] sm:$0xff]  }
 0x216   : > { %5263 = vmatprep.subr.bf16.mxu1 %v5964_v20  ;;  %v6002_v17 = vld [vmem:[%s6589_s29 + $0x4a8] sm:$0xff]   ;;  %v6004_v20 = vld [vmem:[%s6589_s29 + $0x4e0] sm:$0xff]  }
 0x218   : > { %5242 = vmatpush3.bf16.msra.mxu0 %v5965_v45  ;;  %v6005_v45 = vld [vmem:[%s6589_s29 + $0x420] sm:$0xff]  }
 0x219   : > { %5264 = vmatpush3.bf16.msra.mxu1 %v5966_v23  ;;  %5243 = vmatprep.subr.bf16.mxu0 %v5967_v46  ;;  %v6006_v23 = vld [vmem:[%s6589_s29 + $0x4a0] sm:$0xff]   ;;  %v6007_v46 = vld [vmem:[%s6589_s29 + $0x458] sm:$0xff]  }
 0x21a   : > { %5265 = vmatprep.subr.bf16.mxu1 %v5968_v24  ;;  %v6008_v24 = vld [vmem:[%s6589_s29 + $0x4d8] sm:$0xff]  }
 0x21c   : > { %5244 = vmatpush3.bf16.msra.mxu0 %v5969_v27  ;;  %v6009_v27 = vld [vmem:[%s6589_s29 + $0x418] sm:$0xff]  }
 0x21d   : > { %5266 = vmatpush3.bf16.msra.mxu1 %v5970_v28  ;;  %5245 = vmatprep.subr.bf16.mxu0 %v5971_v30  ;;  %v6010_v28 = vld [vmem:[%s6589_s29 + $0x498] sm:$0xff]   ;;  %v6011_v30 = vld [vmem:[%s6589_s29 + $0x450] sm:$0xff]  }
 0x21e   : > { %5267 = vmatprep.subr.bf16.mxu1 %v5972_v31  ;;  %v6012_v31 = vld [vmem:[%s6589_s29 + $0x4d0] sm:$0xff]  }
 0x220   : > { %5246 = vmatpush3.bf16.msra.mxu0 %v5973_v32  ;;  %v6013_v32 = vld [vmem:[%s6589_s29 + $0x410] sm:$0xff]  }
 0x221   : > { %5268 = vmatpush3.bf16.msra.mxu1 %v5974_v33  ;;  %5247 = vmatprep.subr.bf16.mxu0 %v5975_v35  ;;  %v6014_v33 = vld [vmem:[%s6589_s29 + $0x490] sm:$0xff]   ;;  %v6015_v35 = vld [vmem:[%s6589_s29 + $0x448] sm:$0xff]  }
 0x222   : > { %5269 = vmatprep.subr.bf16.mxu1 %v5976_v36  ;;  %v6016_v36 = vld [vmem:[%s6589_s29 + $0x4c8] sm:$0xff]  }
 0x224   : > { %5248 = vmatpush3.bf16.msra.mxu0 %v5977_v38  ;;  %v6017_v38 = vld [vmem:[%s6589_s29 + $0x408] sm:$0xff]  }
 0x225   : > { %5270 = vmatpush3.bf16.msra.mxu1 %v5978_v21  ;;  %5249 = vmatprep.subr.bf16.mxu0 %v5979_v39  ;;  %v6018_v21 = vld [vmem:[%s6589_s29 + $0x488] sm:$0xff]   ;;  %v6019_v39 = vld [vmem:[%s6589_s29 + $0x440] sm:$0xff]  }
 0x226   : > { %5271 = vmatprep.subr.bf16.mxu1 %v5980_v22  ;;  %v6020_v22 = vld [vmem:[%s6589_s29 + $0x4c0] sm:$0xff]  }
 0x228   : > { %5250 = vmatpush3.bf16.msra.mxu0 %v5981_v40  ;;  %v6021_v40 = vld [vmem:[%s6589_s29 + $0x400] sm:$0xff]  }
 0x229   : > { %5272 = vmatpush3.bf16.msra.mxu1 %v5982_v52  ;;  %5251 = vmatprep.subr.bf16.mxu0 %v5983_v41  ;;  %v6022_v52 = vld [vmem:[%s6589_s29 + $0x480] sm:$0xff]  }
 0x22a   : > { %5273 = vmatprep.subr.bf16.mxu1 %v5984_v42  ;;  %v673_v41 = vld [vmem:[%s6332_s16 + $0x10] sm:$0xf] }
 0x22b   : > { %v752_v42 = vrot.slane %v673_v41, %v6753_v8 }
 0x22c   : > { %5252 = vmatpush3.bf16.msra.mxu0 %v5985_v43  ;;  %v744_v43 = vrot.slane %v673_v41, %v6749_v6 }
 0x22d   : > { %5274 = vmatpush3.bf16.msra.mxu1 %v5986_v44  ;;  %5253 = vmatprep.subr.bf16.mxu0 %v5987_v25  ;;  %v748_v44 = vrot.slane %v673_v41, %v6579_v34  ;;  %v756_v25 = vrot.slane %v673_v41, %v6584_v37 }
 0x22e   : > { %5275 = vmatprep.subr.bf16.mxu1 %v5988_v26 }
 0x230   : > { %5254 = vmatpush3.bf16.msra.mxu0 %v5989_v47 }
 0x231   : > { %5276 = vmatpush3.bf16.msra.mxu1 %v5990_v48  ;;  %5283 = vmatprep.subr.bf16.mxu0 %v5991_v49 }
 0x232   : > { %5305 = vmatprep.subr.bf16.mxu1 %v5992_v50 }
 0x233   : > { %v2657_v55 = vpop.f32.mrf.mxu0  ;;  %v2698_v61 = vpop.f32.mrf.mxu1 }
 0x234   : > { %v2699_v56 = vadd.f32 %v2698_v61, %v736_v51  ;;  %v2658_v57 = vadd.f32 %v2657_v55, %v728_v5 }
 0x235   : > { %v2659_v58 = vpop.f32.mrf.mxu0  ;;  %v2700_v59 = vpop.f32.mrf.mxu1 }
 0x236   : > { %v2660_v60 = vadd.f32 %v2659_v58, %v732_v53  ;;  %v2701_v62 = vadd.f32 %v2700_v59, %v740_v54  ;;  %v2801_v63 = vpack.c.bf16 %v2699_v56, %v2699_v56  ;;  %v2799_v2 = vpack.c.bf16 %v2658_v57, %v2658_v57  ;;  %v4942_v59 = vld [vmem:[%s284_s9] ss:$0 sm:$0xff] }
 0x237   : > { %v2661_v0 = vpop.f32.mrf.mxu0  ;;  %v2702_v10 = vpop.f32.mrf.mxu1 }
 0x238   : > { %v2800_v29 = vpack.c.bf16 %v2660_v60, %v2660_v60  ;;  %v2802_v1 = vpack.c.bf16 %v2701_v62, %v2701_v62 }
 0x239   : > { %v2662_v3 = vpop.f32.mrf.mxu0  ;;  %v2703_v4 = vpop.f32.mrf.mxu1 }
 0x23a   : > { %4366 = vmatprep.mubr.bf16.mxu0 %v2800_v29  ;;  %4406 = vmatprep.mubr.bf16.mxu1 %v2802_v1 }
 0x23b   : > { %4367 = vmatmul.mubr.bf16.vlgmr.msra.gmra.mxu0 %v2799_v2  ;;  %4407 = vmatmul.mubr.bf16.vlgmr.msra.gmra.mxu1 %v2801_v63 }
 0x23c   : > { %5284 = vmatpush3.bf16.msra.mxu0 %v5993_v12  ;;  %5306 = vmatpush3.bf16.msra.mxu1 %v5994_v16 }
 0x23d   : > { %5285 = vmatprep.subr.bf16.mxu0 %v5995_v7  ;;  %5307 = vmatprep.subr.bf16.mxu1 %v5996_v9 }
 0x240   : > { %5286 = vmatpush3.bf16.msra.mxu0 %v5997_v11  ;;  %5308 = vmatpush3.bf16.msra.mxu1 %v5998_v13 }
 0x241   : > { %5287 = vmatprep.subr.bf16.mxu0 %v5999_v14  ;;  %5309 = vmatprep.subr.bf16.mxu1 %v6000_v15 }
 0x244   : > { %5288 = vmatpush3.bf16.msra.mxu0 %v6001_v19  ;;  %5310 = vmatpush3.bf16.msra.mxu1 %v6002_v17 }
 0x245   : > { %5289 = vmatprep.subr.bf16.mxu0 %v6003_v18  ;;  %5311 = vmatprep.subr.bf16.mxu1 %v6004_v20 }
 0x248   : > { %5290 = vmatpush3.bf16.msra.mxu0 %v6005_v45  ;;  %5312 = vmatpush3.bf16.msra.mxu1 %v6006_v23 }
 0x249   : > { %5291 = vmatprep.subr.bf16.mxu0 %v6007_v46  ;;  %5313 = vmatprep.subr.bf16.mxu1 %v6008_v24 }
 0x24c   : > { %5292 = vmatpush3.bf16.msra.mxu0 %v6009_v27  ;;  %5314 = vmatpush3.bf16.msra.mxu1 %v6010_v28 }
 0x24d   : > { %5293 = vmatprep.subr.bf16.mxu0 %v6011_v30  ;;  %5315 = vmatprep.subr.bf16.mxu1 %v6012_v31 }
 0x250   : > { %5294 = vmatpush3.bf16.msra.mxu0 %v6013_v32  ;;  %5316 = vmatpush3.bf16.msra.mxu1 %v6014_v33 }
 0x251   : > { %5295 = vmatprep.subr.bf16.mxu0 %v6015_v35  ;;  %5317 = vmatprep.subr.bf16.mxu1 %v6016_v36 }
 0x254   : > { %5296 = vmatpush3.bf16.msra.mxu0 %v6017_v38  ;;  %5318 = vmatpush3.bf16.msra.mxu1 %v6018_v21 }
 0x255   : > { %5297 = vmatprep.subr.bf16.mxu0 %v6019_v39  ;;  %5319 = vmatprep.subr.bf16.mxu1 %v6020_v22 }
 0x258   : > { %5298 = vmatpush3.bf16.msra.mxu0 %v6021_v40  ;;  %5320 = vmatpush3.bf16.msra.mxu1 %v6022_v52 }
 0x273   : > { %v2739_v26 = vpop.f32.mrf.mxu0  ;;  %v2780_v47 = vpop.f32.mrf.mxu1 }
 0x274   : > { %v2781_v48 = vadd.f32 %v2780_v47, %v752_v42  ;;  %v2740_v49 = vadd.f32 %v2739_v26, %v744_v43 }
 0x275   : > { %v2741_v50 = vpop.f32.mrf.mxu0  ;;  %v2782_v51 = vpop.f32.mrf.mxu1 }
 0x276   : > { %v2742_v5 = vadd.f32 %v2741_v50, %v748_v44  ;;  %v2783_v53 = vadd.f32 %v2782_v51, %v756_v25  ;;  %v2805_v54 = vpack.c.bf16 %v2781_v48, %v2781_v48  ;;  %v2803_v57 = vpack.c.bf16 %v2740_v49, %v2740_v49 }
 0x277   : > { %v2743_v55 = vpop.f32.mrf.mxu0  ;;  %v2784_v61 = vpop.f32.mrf.mxu1 }
 0x278   : > { %v2804_v56 = vpack.c.bf16 %v2742_v5, %v2742_v5  ;;  %v2806_v8 = vpack.c.bf16 %v2783_v53, %v2783_v53 }
 0x279   : > { %v2744_v6 = vpop.f32.mrf.mxu0  ;;  %v2785_v58 = vpop.f32.mrf.mxu1 }
 0x27a   : > { %4446 = vmatprep.mubr.bf16.mxu0 %v2804_v56  ;;  %4486 = vmatprep.mubr.bf16.mxu1 %v2806_v8 }
 0x27b   : > { %4447 = vmatmul.mubr.bf16.vlgmr.msra.gmra.mxu0 %v2803_v57  ;;  %4487 = vmatmul.mubr.bf16.vlgmr.msra.gmra.mxu1 %v2805_v54 }
 0x293   : > { %v5123_v34 = vpop.f32.mrf.mxu0 }
 0x294   : > { %v5145_v37 = vpop.f32.mrf.mxu1 }
 0x295   : > { %v5124_v60 = vpop.f32.mrf.mxu0 }
 0x296   : > { %v5125_v62 = vadd.f32 %v5124_v60, %v5123_v34  ;;  %v5146_v63 = vpop.f32.mrf.mxu1 }
 0x297   : > { %v5147_v0 = vadd.f32 %v5146_v63, %v5145_v37  ;;  %v5126_v10 = vpop.f32.mrf.mxu0 }
 0x298   : > { %v4129_v29 = vadd.f32 %v5125_v62, %v4942_v59  ;;  %v5148_v1 = vpop.f32.mrf.mxu1 }
 0x299   : > { %v5127_v12 = vpop.f32.mrf.mxu0 }
 0x29a   : > { %v4169_v16 = vadd.f32 %v5147_v0, %v4129_v29  ;;  %v5149_v2 = vpop.f32.mrf.mxu1 }
 0x2b3   : > { %v5167_v3 = vpop.f32.mrf.mxu0 }
 0x2b4   : > { %v5189_v4 = vpop.f32.mrf.mxu1 }
 0x2b5   : > { %v5168_v7 = vpop.f32.mrf.mxu0 }
 0x2b6   : > { %v5169_v9 = vadd.f32 %v5168_v7, %v5167_v3  ;;  %v5190_v11 = vpop.f32.mrf.mxu1 }
 0x2b7   : > { %v5191_v13 = vadd.f32 %v5190_v11, %v5189_v4  ;;  %v5170_v14 = vpop.f32.mrf.mxu0 }
 0x2b8   : > { %v4209_v15 = vadd.f32 %v5169_v9, %v4169_v16  ;;  %v5192_v19 = vpop.f32.mrf.mxu1 }
 0x2b9   : > { %v5171_v17 = vpop.f32.mrf.mxu0 }
 0x2ba   : > { %v4249_v18 = vadd.f32 %v5191_v13, %v4209_v15  ;;  %v5193_v20 = vpop.f32.mrf.mxu1 }
 0x2d3   : > { %v5211_v45 = vpop.f32.mrf.mxu0 }
 0x2d4   : > { %v5233_v23 = vpop.f32.mrf.mxu1 }
 0x2d5   : > { %v5212_v46 = vpop.f32.mrf.mxu0 }
 0x2d6   : > { %v5213_v24 = vadd.f32 %v5212_v46, %v5211_v45  ;;  %v5234_v27 = vpop.f32.mrf.mxu1 }
 0x2d7   : > { %v5235_v28 = vadd.f32 %v5234_v27, %v5233_v23  ;;  %v5214_v30 = vpop.f32.mrf.mxu0 }
 0x2d8   : > { %v4289_v31 = vadd.f32 %v5213_v24, %v4249_v18  ;;  %v5236_v32 = vpop.f32.mrf.mxu1 }
 0x2d9   : > { %v5215_v33 = vpop.f32.mrf.mxu0 }
 0x2da   : > { %v4329_v35 = vadd.f32 %v5235_v28, %v4289_v31  ;;  %v5237_v36 = vpop.f32.mrf.mxu1 }
 0x2fb   : > { %v5255_v38 = vpop.f32.mrf.mxu0  ;;  %v5277_v21 = vpop.f32.mrf.mxu1 }
 0x2fd   : > { %v5256_v39 = vpop.f32.mrf.mxu0  ;;  %v5278_v22 = vpop.f32.mrf.mxu1 }
 0x2fe   : > { %v5257_v40 = vadd.f32 %v5256_v39, %v5255_v38  ;;  %v5279_v43 = vadd.f32 %v5278_v22, %v5277_v21 }
 0x2ff   : > { %v5258_v52 = vpop.f32.mrf.mxu0  ;;  %v5280_v41 = vpop.f32.mrf.mxu1 }
 0x300   : > { %v4369_v42 = vadd.f32 %v5257_v40, %v4329_v35 }
 0x301   : > { %v5259_v44 = vpop.f32.mrf.mxu0  ;;  %v5281_v25 = vpop.f32.mrf.mxu1 }
 0x302   : > { %v4409_v26 = vadd.f32 %v5279_v43, %v4369_v42 }
 0x33b   : > { %v5299_v47 = vpop.f32.mrf.mxu0  ;;  %v5321_v48 = vpop.f32.mrf.mxu1 }
 0x33d   : > { %v5300_v49 = vpop.f32.mrf.mxu0  ;;  %v5322_v50 = vpop.f32.mrf.mxu1 }
 0x33e   : > { %v5301_v51 = vadd.f32 %v5300_v49, %v5299_v47  ;;  %v5323_v55 = vadd.f32 %v5322_v50, %v5321_v48 }
 0x33f   : > { %v5302_v5 = vpop.f32.mrf.mxu0  ;;  %v5324_v53 = vpop.f32.mrf.mxu1 }
 0x340   : > { %v4449_v54 = vadd.f32 %v5301_v51, %v4409_v26 }
 0x341   : > { %v5303_v61 = vpop.f32.mrf.mxu0  ;;  %v5325_v56 = vpop.f32.mrf.mxu1 }
 0x342   : > { %v4489_v8 = vadd.f32 %v5323_v55, %v4449_v54 }
 0x344   : > { %4494 = vst [vmem:[%s335_s24] sm:$0x3] %v4489_v8 }
 0x345 PF: > { %s6993_s21 = sld [smem:[#allocation10_spill]]  ;;  %s6996_s18 = smov %s6137_s19 }
 0x346   : > { %s6994_s25 = sld [smem:[#allocation9_spill]] }
 0x347   : > { %s6995_s20 = sld [smem:[#allocation11_spill]] }
 0x34b   : > { %p18_p5 = scmp.ge.s32.totalorder %s6993_s21, 4  }
 0x34c   : > { %s6997_s19 = smov %s6994_s25 }
 0x34d   :  { %20 = sbr.rel (!%p18_p5) target bundleno = 8 (0x8), region = 107 }
 0x352   :  { %4514 = vsyncpa [#allocation3], 1 }
 0x353   :  { %4516 = vsyncpa [#allocation3 + $0x1], 1 }
 0x354   :  { %4517 = vsyncpa [#allocation5], 1 }
 0x355   :  { %4519 = vsyncpa [#allocation5 + $0x1], 1 }

// kernel: convolution_net_forward.2
= control target key start
LH: loop header
LB: loop body
LE: loop exit
PB: predicated region body
PF: predicated region fallthrough
CT: control target
= control target key end

     0   :  { %10 = vsyncpa [#allocation4], 0  ;;  %s9380_s0 = inlined_call_operand.vmem [shape: bf16[2,18,16,24], index: 0, kind: input, shape index: {}]   ;;  %s9381_s1 = inlined_call_operand.hbm [shape: bf16[3,24,128], index: 1, kind: input, shape index: {}]   ;;  %s9382_s2 = inlined_call_operand.hbm [shape: f32[1,128], index: 2, kind: input, shape index: {}]   ;;  %s9383_s3 = inlined_call_operand.hbm [shape: bf16[3,384,128], index: 3, kind: input, shape index: {}]   ;;  %s9384_s4 = inlined_call_operand.hbm [shape: f32[1,128], index: 4, kind: input, shape index: {}]   ;;  %s9385_s5 = inlined_call_operand.vmem [shape: f32[2,16,16], index: 5, kind: output, shape index: {}]  }
   0x1   :  { %11 = vsyncpa [#allocation6], 0 }
   0x2   :  { %12 = vsyncpa [#allocation9], 0  ;;  %s8060_s18 = smov [#allocation5]   ;;  %s8061_s20 = smov [#allocation3]  }
   0x3   :  { %s33_s19 = sshll.u32 %s8060_s18, 4  ;;  %s20_s21 = sshll.u32 %s8061_s20, 4  ;;  %s34_s19 = int_to_ptr.vmem [resolvable:$true] %s33_s19  ;;  %s21_s21 = int_to_ptr.vmem [resolvable:$true] %s20_s21 }
   0x4   :  { %s7982_s22 = scalar_lea.vmem %s34_s19, 16  ;;  %s7986_s23 = scalar_lea.vmem %s34_s19, 32 }
   0x5   :  { %p7983_p0 = scmp.ne.s32.totalorder %s34_s19, %s7982_s22  ;;  %p7987_p1 = scmp.lt.s32.totalorder %s34_s19, %s34_s19 }
   0x6   :  { %p7988_p2 = scmp.lt.s32.totalorder %s7986_s23, %s7982_s22 }
   0x8   :  { %p7989_p3 = por %p7988_p2, %p7987_p1 }
   0xa   :  { %p7990_p4 = pnand %p7989_p3, %p7983_p0 }
   0xc   :  { %7993 = shalt.err (!%p7990_p4)
}
   0xd   :  { %36 = dma.hbm_to_vmem [thread:$0]  %s9382_s2, 16, %s34_s19, [#allocation6]  }
   0xe   :  { %s8002_s26 = scalar_lea.vmem %s21_s21, 576  ;;  %p8007_p6 = scmp.lt.s32.totalorder %s21_s21, %s21_s21 }
   0xf   :  { %p8003_p5 = scmp.ne.s32.totalorder %s21_s21, %s8002_s26  ;;  %p8008_p7 = scmp.lt.s32.totalorder %s8002_s26, %s8002_s26 }
  0x11   :  { %p8009_p8 = por %p8008_p7, %p8007_p6 }
  0x13   :  { %p8010_p9 = pnand %p8009_p8, %p8003_p5 }
  0x15   :  { %8013 = shalt.err (!%p8010_p9)
}
  0x16   :  { %s8062_s27 = smov 64   ;;  %s8063_s28 = smov 4  }
  0x17   :  { %26 = dma.hbm_to_vmem [thread:$0]  %s9381_s1, 576, %s21_s21, [#allocation4], %s8062_s27, %s8062_s27, %s8063_s28  }
  0x18   :  { %s8064_s6 = smov [#allocation7]   ;;  %s8065_s8 = smov [#allocation8]  }
  0x19   :  { %s42_s7 = sshll.u32 %s8064_s6, 4  ;;  %s55_s9 = sshll.u32 %s8065_s8, 4  ;;  %s43_s7 = int_to_ptr.vmem [resolvable:$true] %s42_s7  ;;  %s56_s9 = int_to_ptr.vmem [resolvable:$true] %s55_s9 }
  0x1a   :  { %s8022_s2 = scalar_lea.vmem %s43_s7, 9216  ;;  %p8027_p11 = scmp.lt.s32.totalorder %s43_s7, %s43_s7 }
  0x1b   :  { %p8023_p10 = scmp.ne.s32.totalorder %s43_s7, %s8022_s2  ;;  %p8028_p12 = scmp.lt.s32.totalorder %s8022_s2, %s8022_s2 }
  0x1d   :  { %p8029_p13 = por %p8028_p12, %p8027_p11 }
  0x1f   :  { %p8030_p0 = pnand %p8029_p13, %p8023_p10 }
  0x21   :  { %8033 = shalt.err (!%p8030_p0)
}
  0x22   :  { %48 = dma.hbm_to_vmem [thread:$0]  %s9383_s3, 9216, %s43_s7, [#allocation6], %s8062_s27, %s8062_s27, %s8063_s28  }
  0x23   :  { %s8042_s12 = scalar_lea.vmem %s56_s9, 16  ;;  %s8046_s1 = scalar_lea.vmem %s56_s9, 32 }
  0x24   :  { %p8043_p1 = scmp.ne.s32.totalorder %s56_s9, %s8042_s12  ;;  %p8047_p2 = scmp.lt.s32.totalorder %s56_s9, %s56_s9 }
  0x25   :  { %p8048_p3 = scmp.lt.s32.totalorder %s8046_s1, %s8042_s12 }
  0x27   :  { %p8049_p4 = por %p8048_p3, %p8047_p2 }
  0x29   :  { %p8050_p5 = pnand %p8049_p4, %p8043_p1 }
  0x2b   :  { %8053 = shalt.err (!%p8050_p5)
}
  0x2c   :  { %58 = dma.hbm_to_vmem [thread:$0]  %s9384_s4, 16, %s56_s9, [#allocation9]  }
  0x2d   :  { %8054 = dma.done.wait [#allocation4], 576  }
  0x2e   :  { %8055 = vsyncadd [#allocation4], 4294966720 }
  0x2f   :  { %8056 = dma.done.wait [#allocation6], 9232  }
  0x30   :  { %8057 = vsyncadd [#allocation6], 4294958064 }
  0x31   :  { %8058 = dma.done.wait [#allocation9], 16  }
  0x32   :  { %8059 = vsyncadd [#allocation9], 4294967280  ;;  %vm248_vm0 = vcmask 1043456   ;;  %v7707_v0 = vld [vmem:[#allocation3 + $0x14] ss:$0 sps:$4 sm:$0xff]   ;;  %v7708_v1 = vld [vmem:[#allocation3 + $0xc] sm:$0xff]  }
  0x33   :  { %vm223_vm1 = vcmask 195584   ;;  %7687 = vmatprep.subr.msk.bf16.mxu0 %vm248_vm0, %v7707_v0  ;;  %7688 = vmatprep.subr.msk.bf16.mxu1 %vm248_vm0, %v7707_v0  ;;  %v250_v2 = vsel %vm248_vm0, %v7707_v0, 0  ;;  %v7709_v3 = vld [vmem:[%s9380_s0 + $0x8] sm:$0xff]   ;;  %v7710_v4 = vld [vmem:[%s9380_s0 + $0x38] sm:$0xff]   ;;  %v7711_v5 = vld [vmem:[%s9380_s0 + $0x10] sm:$0xff]   ;;  %vm4770_vm2 = vcmask 122880  }
  0x34   :  { %7300 = vmatpush3.bf16.msra.mxu0 %v250_v2  ;;  %7685 = vmatpush3.bf16.msra.mxu1 %v250_v2  ;;  %v7712_v6 = vld [vmem:[%s9380_s0 + $0x40] sm:$0xff]   ;;  %v7713_v7 = vld [vmem:[#allocation3 + $0x8] ss:$0 sps:$4 sm:$0xff]   ;;  %v7716_v12 = vld [vmem:[%s9380_s0 + $0x18] sm:$0xff]   ;;  %vm4775_vm3 = vcmask 124930   ;;  %vm4780_vm4 = vcmask 126980  }
  0x35   :  { %7301 = vmatprep.subr.bf16.mxu0 %v7708_v1  ;;  %7684 = vmatprep.subr.bf16.mxu1 %v7708_v1  ;;  %v7714_v8 = vld [vmem:[#allocation3 + $0x20] ss:$0 sps:$4 sm:$0xff]   ;;  %v423_v10 = vsel %vm248_vm0, %v7713_v7, 0  ;;  %v7719_v15 = vld [vmem:[%s9380_s0 + $0x8] sm:$0xff]   ;;  %v7720_v16 = vld [vmem:[#allocation3 + $0x18] sm:$0xff]   ;;  %vm4785_vm5 = vcmask 129030  }
  0x36   :  { %7303 = vmatprep.mubr.msk.bf16.mxu0 %vm223_vm1, %v7709_v3  ;;  %7315 = vmatprep.mubr.msk.bf16.mxu1 %vm223_vm1, %v7710_v4  ;;  %v7715_v9 = vld [vmem:[#allocation3] sm:$0xff]   ;;  %v617_v11 = vsel %vm248_vm0, %v7714_v8, 0  ;;  %v7721_v17 = vld [vmem:[%s9380_s0 + $0x28] sm:$0xff]   ;;  %v7722_v18 = vld [vmem:[%s9380_s0 + $0x10] sm:$0xff]  }
  0x37   :  { %v7717_v13 = vld [vmem:[%s9380_s0] sm:$0xff]   ;;  %v7725_v19 = vld [vmem:[#allocation3 + $0x14] ss:$0 sps:$4 sm:$0xff]   ;;  %v7724_v22 = vld [vmem:[%s9380_s0 + $0x18] sm:$0xff]  }
  0x38   :  { %7302 = vmatpush3.bf16.msra.mxu0 %v7708_v1  ;;  %7686 = vmatpush3.bf16.msra.mxu1 %v7708_v1  ;;  %v7718_v14 = vld [vmem:[%s9380_s0 + $0x20] sm:$0xff]   ;;  %v1069_v20 = vsel %vm248_vm0, %v7725_v19, 0  ;;  %v7723_v21 = vld [vmem:[%s9380_s0 + $0x30] sm:$0xff]   ;;  %v7730_v24 = vld [vmem:[#allocation3 + $0x8] ss:$0 sps:$4 sm:$0xff]  }
  0x39   :  { %7689 = vmatprep.subr.msk.bf16.mxu1 %vm248_vm0, %v7713_v7  ;;  %7690 = vmatprep.subr.msk.bf16.mxu0 %vm248_vm0, %v7714_v8  ;;  %v7726_v23 = vld [vmem:[%s9380_s0 + $0x20] sm:$0xff]   ;;  %v7727_v25 = vld [vmem:[%s9380_s0 + $0x10] sm:$0xff]   ;;  %v7728_v27 = vld [vmem:[%s9380_s0 + $0x28] sm:$0xff]   ;;  %v1242_v31 = vsel %vm248_vm0, %v7730_v24, 0 }
  0x3a   :  { %v7735_v26 = vld [vmem:[#allocation3 + $0xc] sm:$0xff]   ;;  %v7729_v28 = vld [vmem:[%s9380_s0 + $0x18] sm:$0xff]   ;;  %v7732_v30 = vld [vmem:[%s9380_s0 + $0x20] sm:$0xff]  }
  0x3b   :  { %7304 = vmatmul.mubr.msk.bf16.vlgmr.msra.gmra.mxu0 %vm223_vm1, %v7711_v5  ;;  %7316 = vmatmul.mubr.msk.bf16.vlgmr.msra.gmra.mxu1 %vm223_vm1, %v7712_v6  ;;  %v7731_v29 = vld [vmem:[%s9380_s0 + $0x30] sm:$0xff]   ;;  %v7740_v32 = vld [vmem:[#allocation3] sm:$0xff]   ;;  %v7733_v33 = vld [vmem:[%s9380_s0 + $0x38] sm:$0xff]  }
  0x3c   :  { %7320 = vmatpush3.bf16.msra.mxu1 %v423_v10  ;;  %7340 = vmatpush3.bf16.msra.mxu0 %v617_v11  ;;  %v7734_v34 = vld [vmem:[%s9380_s0 + $0x28] sm:$0xff]   ;;  %v7745_v35 = vld [vmem:[#allocation3 + $0x20] ss:$0 sps:$4 sm:$0xff]   ;;  %v7736_v36 = vld [vmem:[%s9380_s0 + $0x30] sm:$0xff]  }
  0x3d   :  { %7321 = vmatprep.subr.bf16.mxu1 %v7715_v9  ;;  %7307 = vmatprep.mubr.msk.bf16.mxu0 %vm223_vm1, %v7716_v12  ;;  %v7737_v37 = vld [vmem:[%s9380_s0 + $0x48] sm:$0xff]   ;;  %v7750_v38 = vld [vmem:[#allocation3 + $0x14] ss:$0 sps:$4 sm:$0xff]   ;;  %v7738_v39 = vld [vmem:[%s9380_s0 + $0x38] sm:$0xff]   ;;  %v1435_v43 = vsel %vm248_vm0, %v7745_v35, 0 }
  0x3e   :  { %7323 = vmatprep.mubr.msk.bf16.mxu1 %vm223_vm1, %v7717_v13  ;;  %7341 = vmatprep.subr.bf16.mxu0 %v7720_v16  ;;  %v7739_v40 = vld [vmem:[%s9380_s0 + $0x50] sm:$0xff]   ;;  %v7741_v41 = vld [vmem:[%s9380_s0 + $0x40] sm:$0xff]   ;;  %v7742_v42 = vld [vmem:[%s9380_s0 + $0x58] sm:$0xff]   ;;  %v1881_v54 = vsel %vm248_vm0, %v7750_v38, 0 }
  0x3f   :  { %v7755_v44 = vld [vmem:[#allocation3 + $0x18] sm:$0xff]   ;;  %v7743_v45 = vld [vmem:[%s9380_s0 + $0x48] sm:$0xff]   ;;  %v7744_v46 = vld [vmem:[%s9380_s0 + $0x60] sm:$0xff]  }
  0x40   :  { %7322 = vmatpush3.bf16.msra.mxu1 %v7715_v9  ;;  %7342 = vmatpush3.bf16.msra.mxu0 %v7720_v16  ;;  %v7746_v47 = vld [vmem:[%s9380_s0 + $0x68] sm:$0xff]   ;;  %v7747_v48 = vld [vmem:[%s9380_s0 + $0x40] sm:$0xff]   ;;  %v7748_v50 = vld [vmem:[%s9380_s0 + $0x70] sm:$0xff]  }
  0x41   :  { %7691 = vmatprep.subr.msk.bf16.mxu1 %vm248_vm0, %v7725_v19  ;;  %7692 = vmatprep.subr.msk.bf16.mxu0 %vm248_vm0, %v7730_v24  ;;  %v7765_v49 = vld [vmem:[#allocation3 + $0x8] ss:$0 sps:$4 sm:$0xff]   ;;  %v7751_v52 = vld [vmem:[%s9380_s0 + $0x78] sm:$0xff]   ;;  %v7752_v53 = vld [vmem:[%s9380_s0 + $0x50] sm:$0xff]   ;;  %v8066_v19 = vmov 0.0  }
  0x42   :  { %v7749_v51 = vld [vmem:[%s9380_s0 + $0x48] sm:$0xff]   ;;  %v7753_v56 = vld [vmem:[%s9380_s0 + $0x80] sm:$0xff]   ;;  %v7754_v58 = vld [vmem:[%s9380_s0 + $0x58] sm:$0xff]   ;;  %v2054_v1 = vsel %vm248_vm0, %v7765_v49, 0  ;;  %75 = vst [vmem:[#allocation2 + $0x18] sm:$0xff] %v8066_v19 }
  0x43   :  { %7308 = vmatmul.mubr.msk.bf16.gmra.mxu0 %vm223_vm1, %v7718_v14  ;;  %7324 = vmatmul.mubr.msk.bf16.vlgmr.msra.gmra.mxu1 %vm223_vm1, %v7719_v15  ;;  %v7760_v55 = vld [vmem:[#allocation3 + $0xc] sm:$0xff]   ;;  %v7770_v57 = vld [vmem:[#allocation3 + $0x20] ss:$0 sps:$4 sm:$0xff]   ;;  %v7759_v62 = vld [vmem:[%s9380_s0 + $0x58] sm:$0xff]   ;;  %76 = vst [vmem:[#allocation2 + $0x20] sm:$0xff] %v8066_v19 }
  0x44   :  { %7311 = vmatprep.mubr.msk.bf16.mxu0 %vm223_vm1, %v7721_v17  ;;  %7327 = vmatprep.mubr.msk.bf16.mxu1 %vm223_vm1, %v7722_v18  ;;  %v7756_v59 = vld [vmem:[%s9380_s0 + $0x60] sm:$0xff]   ;;  %v7757_v60 = vld [vmem:[%s9380_s0 + $0x50] sm:$0xff]   ;;  %v7758_v61 = vld [vmem:[%s9380_s0 + $0x68] sm:$0xff]   ;;  %v2247_v12 = vsel %vm248_vm0, %v7770_v57, 0  ;;  %77 = vst [vmem:[#allocation2 + $0x28] sm:$0xff] %v8066_v19 }
  0x45   :  { %7360 = vmatpush3.bf16.msra.mxu1 %v1069_v20  ;;  %v7761_v63 = vld [vmem:[%s9380_s0 + $0x70] sm:$0xff]   ;;  %v7762_v0 = vld [vmem:[%s9380_s0 + $0x60] sm:$0xff]   ;;  %v7763_v3 = vld [vmem:[%s9380_s0 + $0x78] sm:$0xff]   ;;  %72 = vst [vmem:[#allocation2] sm:$0xff] %v8066_v19 }
  0x46   :  { %7361 = vmatprep.subr.bf16.mxu1 %v7735_v26  ;;  %v7775_v2 = vld [vmem:[#allocation3] sm:$0xff]   ;;  %v7764_v4 = vld [vmem:[%s9380_s0 + $0x68] sm:$0xff]   ;;  %v8301_v5 = vld [vmem:[#allocation3 + $0x14] ss:$0 sps:$4 sm:$0xff]   ;;  %78 = vst [vmem:[#allocation2 + $0x30] sm:$0xff] %v8066_v19 }
  0x47   :  { %v7766_v6 = vld [vmem:[%s9380_s0 + $0x70] sm:$0xff]   ;;  %v7767_v7 = vld [vmem:[%s9380_s0 + $0x98] sm:$0xff]   ;;  %v7769_v9 = vld [vmem:[%s9380_s0 + $0xa0] sm:$0xff]   ;;  %79 = vst [vmem:[#allocation2 + $0x38] sm:$0xff] %v8066_v19  ;;  %v2693_v24 = vsel %vm248_vm0, %v8301_v5, 0 }
  0x48   :  { %v7768_v8 = vld [vmem:[%s9380_s0 + $0x78] sm:$0xff]   ;;  %v7771_v10 = vld [vmem:[%s9380_s0 + $0x80] sm:$0xff]   ;;  %v7772_v11 = vld [vmem:[%s9380_s0 + $0xa8] sm:$0xff]   ;;  %80 = vst [vmem:[#allocation2 + $0x40] sm:$0xff] %v8066_v19 }
  0x49   :  { %7362 = vmatpush3.bf16.msra.mxu1 %v7735_v26  ;;  %v7780_v13 = vld [vmem:[#allocation3 + $0x18] sm:$0xff]   ;;  %v7773_v14 = vld [vmem:[%s9380_s0 + $0x88] sm:$0xff]   ;;  %v7774_v16 = vld [vmem:[%s9380_s0 + $0xb0] sm:$0xff]   ;;  %81 = vst [vmem:[#allocation2 + $0x48] sm:$0xff] %v8066_v19 }
  0x4a   :  { %7693 = vmatprep.subr.msk.bf16.mxu1 %vm248_vm0, %v7745_v35  ;;  %v8335_v15 = vld [vmem:[#allocation3 + $0x8] ss:$0 sps:$4 sm:$0xff]   ;;  %v7776_v17 = vld [vmem:[%s9380_s0 + $0xb8] sm:$0xff]   ;;  %v7777_v18 = vld [vmem:[%s9380_s0 + $0x90] sm:$0xff]   ;;  %82 = vst [vmem:[#allocation2 + $0x50] sm:$0xff] %v8066_v19 }
  0x4b   :  { %7312 = vmatmul.mubr.msk.bf16.gmra.mxu0 %vm223_vm1, %v7723_v21  ;;  %7328 = vmatmul.mubr.msk.bf16.gmra.mxu1 %vm223_vm1, %v7724_v22  ;;  %83 = vst [vmem:[#allocation2 + $0x58] sm:$0xff] %v8066_v19  ;;  %84 = vst [vmem:[#allocation2 + $0x60] sm:$0xff] %v8066_v19  ;;  %v7778_v20 = vld [vmem:[%s9380_s0 + $0xc0] sm:$0xff]   ;;  %v7779_v21 = vld [vmem:[%s9380_s0 + $0x98] sm:$0xff]   ;;  %v2866_v35 = vsel %vm248_vm0, %v8335_v15, 0 }
  0x4c   :  { %7331 = vmatprep.mubr.msk.bf16.mxu1 %vm223_vm1, %v7726_v23  ;;  %7343 = vmatprep.mubr.msk.bf16.mxu0 %vm223_vm1, %v7727_v25  ;;  %85 = vst [vmem:[#allocation2 + $0x68] sm:$0xff] %v8066_v19  ;;  %86 = vst [vmem:[#allocation2 + $0x70] sm:$0xff] %v8066_v19  ;;  %v7781_v22 = vld [vmem:[%s9380_s0 + $0xc8] sm:$0xff]   ;;  %v7782_v23 = vld [vmem:[%s9380_s0 + $0xa0] sm:$0xff]  }
  0x4d   :  { %87 = vst [vmem:[#allocation2 + $0x78] sm:$0xff] %v8066_v19  ;;  %88 = vst [vmem:[#allocation2 + $0x80] sm:$0xff] %v8066_v19  ;;  %v7794_v25 = vld [vmem:[#allocation3 + $0xc] sm:$0xff]  }
  0x4e   :  { %89 = vst [vmem:[#allocation2 + $0x88] sm:$0xff] %v8066_v19  ;;  %90 = vst [vmem:[#allocation2 + $0x90] sm:$0xff] %v8066_v19  ;;  %v7783_v26 = vld [vmem:[%s9380_s0 + $0xd0] sm:$0xff]  }
  0x4f   :  { %91 = vst [vmem:[#allocation2 + $0x98] sm:$0xff] %v8066_v19  ;;  %92 = vst [vmem:[#allocation2 + $0xa0] sm:$0xff] %v8066_v19 }
  0x50   :  { %93 = vst [vmem:[#allocation2 + $0xa8] sm:$0xff] %v8066_v19  ;;  %94 = vst [vmem:[#allocation2 + $0xb0] sm:$0xff] %v8066_v19 }
  0x51   :  { %95 = vst [vmem:[#allocation2 + $0xb8] sm:$0xff] %v8066_v19  ;;  %96 = vst [vmem:[#allocation2 + $0xc0] sm:$0xff] %v8066_v19 }
  0x52   :  { %97 = vst [vmem:[#allocation2 + $0xc8] sm:$0xff] %v8066_v19  ;;  %98 = vst [vmem:[#allocation2 + $0xd0] sm:$0xff] %v8066_v19 }
  0x53   :  { %7332 = vmatmul.mubr.msk.bf16.gmra.mxu1 %vm223_vm1, %v7728_v27  ;;  %7344 = vmatmul.mubr.msk.bf16.vlgmr.msra.gmra.mxu0 %vm223_vm1, %v7729_v28  ;;  %105 = vst [vmem:[#allocation2 + $0x108] sm:$0xff] %v8066_v19  ;;  %106 = vst [vmem:[#allocation2 + $0x110] sm:$0xff] %v8066_v19  ;;  %v7784_v27 = vld [vmem:[%s9380_s0 + $0xa8] sm:$0xff]   ;;  %v7808_v28 = vld [vmem:[#allocation3 + $0x20] ss:$0 sps:$4 sm:$0xff]  }
  0x54   :  { %7380 = vmatpush3.bf16.msra.mxu0 %v1242_v31  ;;  %7335 = vmatprep.mubr.msk.bf16.mxu1 %vm223_vm1, %v7731_v29  ;;  %107 = vst [vmem:[#allocation2 + $0x118] sm:$0xff] %v8066_v19  ;;  %108 = vst [vmem:[#allocation2 + $0x120] sm:$0xff] %v8066_v19  ;;  %v7785_v29 = vld [vmem:[%s9380_s0 + $0xb0] sm:$0xff]   ;;  %v7787_v31 = vld [vmem:[%s9380_s0 + $0xb8] sm:$0xff]  }
  0x55   :  { %7347 = vmatprep.mubr.msk.bf16.mxu0 %vm223_vm1, %v7732_v30  ;;  %7381 = vmatprep.subr.bf16.mxu0 %v7740_v32  ;;  %109 = vst [vmem:[#allocation2 + $0x128] sm:$0xff] %v8066_v19  ;;  %110 = vst [vmem:[#allocation2 + $0x130] sm:$0xff] %v8066_v19  ;;  %v7786_v30 = vld [vmem:[%s9380_s0 + $0xa0] sm:$0xff]  }
  0x56   :  { %111 = vst [vmem:[#allocation2 + $0x138] sm:$0xff] %v8066_v19  ;;  %112 = vst [vmem:[#allocation2 + $0x140] sm:$0xff] %v8066_v19 }
  0x57   :  { %113 = vst [vmem:[#allocation2 + $0x148] sm:$0xff] %v8066_v19  ;;  %114 = vst [vmem:[#allocation2 + $0x150] sm:$0xff] %v8066_v19 }
  0x58   :  { %7382 = vmatpush3.bf16.msra.mxu0 %v7740_v32  ;;  %115 = vst [vmem:[#allocation2 + $0x158] sm:$0xff] %v8066_v19  ;;  %116 = vst [vmem:[#allocation2 + $0x160] sm:$0xff] %v8066_v19  ;;  %v7788_v32 = vld [vmem:[%s9380_s0 + $0xa8] sm:$0xff]  }
  0x59   :  { %7694 = vmatprep.subr.msk.bf16.mxu0 %vm248_vm0, %v7750_v38  ;;  %117 = vst [vmem:[#allocation2 + $0x168] sm:$0xff] %v8066_v19  ;;  %118 = vst [vmem:[#allocation2 + $0x170] sm:$0xff] %v8066_v19  ;;  %v7792_v38 = vld [vmem:[%s9380_s0 + $0xb8] sm:$0xff]  }
  0x5a   :  { %119 = vst [vmem:[#allocation2 + $0x178] sm:$0xff] %v8066_v19  ;;  %120 = vst [vmem:[#allocation2 + $0x180] sm:$0xff] %v8066_v19 }
  0x5b   :  { %7336 = vmatmul.mubr.msk.bf16.gmra.mxu1 %vm223_vm1, %v7733_v33  ;;  %7348 = vmatmul.mubr.msk.bf16.gmra.mxu0 %vm223_vm1, %v7734_v34  ;;  %121 = vst [vmem:[#allocation2 + $0x188] sm:$0xff] %v8066_v19  ;;  %122 = vst [vmem:[#allocation2 + $0x190] sm:$0xff] %v8066_v19  ;;  %v7789_v33 = vld [vmem:[%s9380_s0 + $0xc0] sm:$0xff]   ;;  %v7790_v34 = vld [vmem:[%s9380_s0 + $0xb0] sm:$0xff]  }
  0x5c   :  { %7351 = vmatprep.mubr.msk.bf16.mxu0 %vm223_vm1, %v7736_v36  ;;  %7363 = vmatprep.mubr.msk.bf16.mxu1 %vm223_vm1, %v7737_v37  ;;  %123 = vst [vmem:[#allocation2 + $0x198] sm:$0xff] %v8066_v19  ;;  %124 = vst [vmem:[#allocation2 + $0x1a0] sm:$0xff] %v8066_v19  ;;  %v7809_v36 = vld [vmem:[#allocation3] sm:$0xff]   ;;  %v7791_v37 = vld [vmem:[%s9380_s0 + $0xc8] sm:$0xff]  }
  0x5d   :  { %125 = vst [vmem:[#allocation2 + $0x1a8] sm:$0xff] %v8066_v19  ;;  %126 = vst [vmem:[#allocation2 + $0x1b0] sm:$0xff] %v8066_v19 }
  0x5e   :  { %127 = vst [vmem:[#allocation2 + $0x1b8] sm:$0xff] %v8066_v19  ;;  %128 = vst [vmem:[#allocation2 + $0x1c0] sm:$0xff] %v8066_v19  ;;  %v7844_v19 = vld [vmem:[#allocation7 + $0x160] sm:$0xff]  }
  0x63   :  { %7352 = vmatmul.mubr.msk.bf16.gmra.mxu0 %vm223_vm1, %v7738_v39  ;;  %7364 = vmatmul.mubr.msk.bf16.vlgmr.msra.gmra.mxu1 %vm223_vm1, %v7739_v40  ;;  %v7827_v39 = vld [vmem:[#allocation7 + $0x138] sm:$0xff]  }
  0x64   :  { %7355 = vmatprep.mubr.msk.bf16.mxu0 %vm223_vm1, %v7741_v41  ;;  %7367 = vmatprep.mubr.msk.bf16.mxu1 %vm223_vm1, %v7742_v42  ;;  %v7795_v40 = vld [vmem:[%s9380_s0 + $0xc0] sm:$0xff]   ;;  %v7796_v41 = vld [vmem:[%s9380_s0 + $0xd8] sm:$0xff]   ;;  %v7797_v42 = vld [vmem:[%s9380_s0 + $0xc8] sm:$0xff]  }
  0x65   :  { %7400 = vmatpush3.bf16.msra.mxu1 %v1435_v43  ;;  %v7798_v43 = vld [vmem:[%s9380_s0 + $0xe0] sm:$0xff]  }
  0x66   :  { %7401 = vmatprep.subr.bf16.mxu1 %v7755_v44 }
  0x69   :  { %7402 = vmatpush3.bf16.msra.mxu1 %v7755_v44  ;;  %v7799_v44 = vld [vmem:[%s9380_s0 + $0xd0] sm:$0xff]  }
  0x6a   :  { %7695 = vmatprep.subr.msk.bf16.mxu1 %vm248_vm0, %v7765_v49  ;;  %v7802_v49 = vld [vmem:[%s9380_s0 + $0xf0] sm:$0xff]  }
  0x6b   :  { %7356 = vmatmul.mubr.msk.bf16.gmra.mxu0 %vm223_vm1, %v7743_v45  ;;  %7368 = vmatmul.mubr.msk.bf16.gmra.mxu1 %vm223_vm1, %v7744_v46  ;;  %v7800_v45 = vld [vmem:[%s9380_s0 + $0xe8] sm:$0xff]   ;;  %v3059_v46 = vsel %vm248_vm0, %v7808_v28, 0 }
  0x6c   :  { %7371 = vmatprep.mubr.msk.bf16.mxu1 %vm223_vm1, %v7746_v47  ;;  %7383 = vmatprep.mubr.msk.bf16.mxu0 %vm223_vm1, %v7747_v48  ;;  %v7810_v47 = vld [vmem:[#allocation3 + $0x18] sm:$0xff]  }
  0x6d   :  { %v7801_v48 = vld [vmem:[%s9380_s0 + $0xd8] sm:$0xff]  }
  0x73   :  { %7372 = vmatmul.mubr.msk.bf16.gmra.mxu1 %vm223_vm1, %v7748_v50  ;;  %7384 = vmatmul.mubr.msk.bf16.vlgmr.msra.gmra.mxu0 %vm223_vm1, %v7749_v51  ;;  %v7803_v50 = vld [vmem:[%s9380_s0 + $0xf8] sm:$0xff]   ;;  %v7811_v51 = vld [vmem:[%s9380_s0 + $0xd0] sm:$0xff]  }
  0x74   :  { %7420 = vmatpush3.bf16.msra.mxu0 %v1881_v54  ;;  %7375 = vmatprep.mubr.msk.bf16.mxu1 %vm223_vm1, %v7751_v52  ;;  %v7835_v52 = vld [vmem:[#allocation7 + $0x178] sm:$0xff]  }
  0x75   :  { %7387 = vmatprep.mubr.msk.bf16.mxu0 %vm223_vm1, %v7752_v53  ;;  %7421 = vmatprep.subr.bf16.mxu0 %v7760_v55  ;;  %v7804_v53 = vld [vmem:[%s9380_s0 + $0x100] sm:$0xff]   ;;  %v7812_v54 = vld [vmem:[%s9380_s0 + $0xd8] sm:$0xff]  }
  0x78   :  { %7422 = vmatpush3.bf16.msra.mxu0 %v7760_v55  ;;  %v7806_v55 = vld [vmem:[%s9380_s0 + $0x108] sm:$0xff]  }
  0x79   :  { %7696 = vmatprep.subr.msk.bf16.mxu0 %vm248_vm0, %v7770_v57  ;;  %v7828_v57 = vld [vmem:[#allocation7 + $0xf8] sm:$0xff]  }
  0x7b   :  { %7376 = vmatmul.mubr.msk.bf16.gmra.mxu1 %vm223_vm1, %v7753_v56  ;;  %7388 = vmatmul.mubr.msk.bf16.gmra.mxu0 %vm223_vm1, %v7754_v58  ;;  %v7815_v56 = vld [vmem:[%s9380_s0 + $0xe0] sm:$0xff]   ;;  %v7829_v58 = vld [vmem:[#allocation7 + $0x130] sm:$0xff]  }
  0x7c   :  { %7391 = vmatprep.mubr.msk.bf16.mxu0 %vm223_vm1, %v7756_v59  ;;  %7403 = vmatprep.mubr.msk.bf16.mxu1 %vm223_vm1, %v7757_v60  ;;  %v7830_v59 = vld [vmem:[#allocation7 + $0xf0] sm:$0xff]   ;;  %v7831_v60 = vld [vmem:[#allocation7 + $0x128] sm:$0xff]  }
  0x83   :  { %7392 = vmatmul.mubr.msk.bf16.gmra.mxu0 %vm223_vm1, %v7758_v61  ;;  %7404 = vmatmul.mubr.msk.bf16.vlgmr.msra.gmra.mxu1 %vm223_vm1, %v7759_v62  ;;  %v7807_v61 = vld [vmem:[%s9380_s0 + $0x110] sm:$0xff]   ;;  %v7816_v62 = vld [vmem:[%s9380_s0 + $0xe8] sm:$0xff]  }
  0x84   :  { %7395 = vmatprep.mubr.msk.bf16.mxu0 %vm223_vm1, %v7761_v63  ;;  %7407 = vmatprep.mubr.msk.bf16.mxu1 %vm223_vm1, %v7762_v0  ;;  %v7813_v63 = vld [vmem:[%s9380_s0 + $0xe0] sm:$0xff]   ;;  %v7819_v0 = vld [vmem:[%s9380_s0 + $0xf0] sm:$0xff]  }
  0x85   :  { %7440 = vmatpush3.bf16.msra.mxu1 %v2054_v1  ;;  %v7832_v1 = vld [vmem:[#allocation7 + $0xe8] sm:$0xff]  }
  0x86   :  { %7441 = vmatprep.subr.bf16.mxu1 %v7775_v2 }
  0x89   :  { %7442 = vmatpush3.bf16.msra.mxu1 %v7775_v2  ;;  %v7833_v2 = vld [vmem:[#allocation7 + $0x120] sm:$0xff]  }
  0x8a   :  { %7697 = vmatprep.subr.msk.bf16.mxu1 %vm248_vm0, %v8301_v5  ;;  %v7814_v5 = vld [vmem:[%s9380_s0 + $0xe8] sm:$0xff]  }
  0x8b   :  { %7396 = vmatmul.mubr.msk.bf16.gmra.mxu0 %vm223_vm1, %v7763_v3  ;;  %7408 = vmatmul.mubr.msk.bf16.gmra.mxu1 %vm223_vm1, %v7764_v4  ;;  %v7834_v3 = vld [vmem:[#allocation7 + $0xe0] sm:$0xff]   ;;  %v7836_v4 = vld [vmem:[#allocation7 + $0x118] sm:$0xff]  }
  0x8c   :  { %7411 = vmatprep.mubr.msk.bf16.mxu1 %vm223_vm1, %v7766_v6  ;;  %7423 = vmatprep.mubr.msk.bf16.mxu0 %vm223_vm1, %v7767_v7  ;;  %v7820_v6 = vld [vmem:[%s9380_s0 + $0xf8] sm:$0xff]   ;;  %v7817_v7 = vld [vmem:[%s9380_s0 + $0xf0] sm:$0xff]  }
  0x93   :  { %7412 = vmatmul.mubr.msk.bf16.gmra.mxu1 %vm223_vm1, %v7768_v8  ;;  %7424 = vmatmul.mubr.msk.bf16.vlgmr.msra.gmra.mxu0 %vm223_vm1, %v7769_v9  ;;  %v7823_v8 = vld [vmem:[%s9380_s0 + $0x100] sm:$0xff]  }
  0x94   :  { %7460 = vmatpush3.bf16.msra.mxu0 %v2247_v12  ;;  %7415 = vmatprep.mubr.msk.bf16.mxu1 %vm223_vm1, %v7771_v10  ;;  %v7837_v9 = vld [vmem:[#allocation7 + $0xd8] sm:$0xff]   ;;  %v7838_v10 = vld [vmem:[#allocation7 + $0x170] sm:$0xff]  }
  0x95   :  { %7427 = vmatprep.mubr.msk.bf16.mxu0 %vm223_vm1, %v7772_v11  ;;  %7461 = vmatprep.subr.bf16.mxu0 %v7780_v13  ;;  %v7839_v11 = vld [vmem:[#allocation7 + $0x110] sm:$0xff]  }
  0x96   :  { %v7840_v12 = vld [vmem:[#allocation7 + $0xd0] sm:$0xff]  }
  0x98   :  { %7462 = vmatpush3.bf16.msra.mxu0 %v7780_v13  ;;  %v7841_v13 = vld [vmem:[#allocation7 + $0x168] sm:$0xff]  }
  0x99   :  { %7698 = vmatprep.subr.msk.bf16.mxu0 %vm248_vm0, %v8335_v15  ;;  %v7818_v15 = vld [vmem:[%s9380_s0 + $0xf8] sm:$0xff]  }
  0x9b   :  { %7416 = vmatmul.mubr.msk.bf16.gmra.mxu1 %vm223_vm1, %v7773_v14  ;;  %7428 = vmatmul.mubr.msk.bf16.gmra.mxu0 %vm223_vm1, %v7774_v16  ;;  %v7842_v14 = vld [vmem:[#allocation7 + $0x108] sm:$0xff]  }
  0x9c   :  { %7431 = vmatprep.mubr.msk.bf16.mxu0 %vm223_vm1, %v7776_v17  ;;  %7443 = vmatprep.mubr.msk.bf16.mxu1 %vm223_vm1, %v7777_v18  ;;  %v7824_v16 = vld [vmem:[%s9380_s0 + $0x108] sm:$0xff]   ;;  %v7821_v17 = vld [vmem:[%s9380_s0 + $0x100] sm:$0xff]  }
  0x9d   :  { %v7843_v18 = vld [vmem:[#allocation7 + $0xc8] sm:$0xff]  }
  0xa3   :  { %7432 = vmatmul.mubr.msk.bf16.gmra.mxu0 %vm223_vm1, %v7778_v20  ;;  %7444 = vmatmul.mubr.msk.bf16.vlgmr.msra.gmra.mxu1 %vm223_vm1, %v7779_v21  ;;  %v7845_v20 = vld [vmem:[#allocation7 + $0x100] sm:$0xff]  }
  0xa4   :  { %7435 = vmatprep.mubr.msk.bf16.mxu0 %vm223_vm1, %v7781_v22  ;;  %7447 = vmatprep.mubr.msk.bf16.mxu1 %vm223_vm1, %v7782_v23  ;;  %v7846_v21 = vld [vmem:[#allocation7 + $0xc0] sm:$0xff]   ;;  %v7847_v22 = vld [vmem:[#allocation7 + $0x158] sm:$0xff]  }
  0xa5   :  { %7480 = vmatpush3.bf16.msra.mxu1 %v2693_v24  ;;  %v7822_v23 = vld [vmem:[%s9380_s0 + $0x108] sm:$0xff]   ;;  %v7825_v24 = vld [vmem:[%s9380_s0 + $0x110] sm:$0xff]  }
  0xa6   :  { %7481 = vmatprep.subr.bf16.mxu1 %v7794_v25 }
  0xa9   :  { %7482 = vmatpush3.bf16.msra.mxu1 %v7794_v25  ;;  %v7848_v25 = vld [vmem:[#allocation7 + $0x150] sm:$0xff]  }
  0xaa   :  { %7699 = vmatprep.subr.msk.bf16.mxu1 %vm248_vm0, %v7808_v28  ;;  %v7850_v28 = vld [vmem:[#allocation7 + $0x140] sm:$0xff]  }
  0xab   :  { %7436 = vmatmul.mubr.msk.bf16.gmra.mxu0 %vm223_vm1, %v7783_v26  ;;  %7448 = vmatmul.mubr.msk.bf16.gmra.mxu1 %vm223_vm1, %v7784_v27  ;;  %v7849_v26 = vld [vmem:[#allocation7 + $0x148] sm:$0xff]   ;;  %v7826_v27 = vld [vmem:[%s9380_s0 + $0x118] sm:$0xff]  }
  0xac   :  { %7451 = vmatprep.mubr.msk.bf16.mxu1 %vm223_vm1, %v7785_v29  ;;  %7463 = vmatprep.mubr.msk.bf16.mxu0 %vm223_vm1, %v7786_v30 }
  0xb3   :  { %7452 = vmatmul.mubr.msk.bf16.gmra.mxu1 %vm223_vm1, %v7787_v31  ;;  %7464 = vmatmul.mubr.msk.bf16.vlgmr.msra.gmra.mxu0 %vm223_vm1, %v7788_v32 }
  0xb4   :  { %7455 = vmatprep.mubr.msk.bf16.mxu1 %vm223_vm1, %v7789_v33  ;;  %7467 = vmatprep.mubr.msk.bf16.mxu0 %vm223_vm1, %v7790_v34 }
  0xb5   :  { %7500 = vmatpush3.bf16.msra.mxu0 %v2866_v35 }
  0xb6   :  { %7501 = vmatprep.subr.bf16.mxu0 %v7809_v36 }
  0xb9   :  { %7502 = vmatpush3.bf16.msra.mxu0 %v7809_v36 }
  0xba   :  { %6987 = vmatprep.subr.bf16.mxu0 %v7827_v39 }
  0xbb   :  { %7456 = vmatmul.mubr.msk.bf16.gmra.mxu1 %vm223_vm1, %v7791_v37  ;;  %7468 = vmatmul.mubr.msk.bf16.gmra.mxu0 %vm223_vm1, %v7792_v38 }
  0xbc   :  { %7471 = vmatprep.mubr.msk.bf16.mxu0 %vm223_vm1, %v7795_v40  ;;  %7483 = vmatprep.mubr.msk.bf16.mxu1 %vm223_vm1, %v7796_v41 }
  0xc3   :  { %7472 = vmatmul.mubr.msk.bf16.gmra.mxu0 %vm223_vm1, %v7797_v42  ;;  %7484 = vmatmul.mubr.msk.bf16.vlgmr.msra.gmra.mxu1 %vm223_vm1, %v7798_v43 }
  0xc4   :  { %7475 = vmatprep.mubr.msk.bf16.mxu0 %vm223_vm1, %v7799_v44  ;;  %7487 = vmatprep.mubr.msk.bf16.mxu1 %vm223_vm1, %v7800_v45 }
  0xc5   :  { %7520 = vmatpush3.bf16.msra.mxu1 %v3059_v46 }
  0xc6   :  { %7521 = vmatprep.subr.bf16.mxu1 %v7810_v47 }
  0xc9   :  { %7522 = vmatpush3.bf16.msra.mxu1 %v7810_v47 }
  0xca   :  { %7539 = vmatprep.subr.bf16.mxu1 %v7835_v52 }
  0xcb   :  { %7476 = vmatmul.mubr.msk.bf16.gmra.mxu0 %vm223_vm1, %v7801_v48  ;;  %7488 = vmatmul.mubr.msk.bf16.gmra.mxu1 %vm223_vm1, %v7802_v49 }
  0xcc   :  { %7491 = vmatprep.mubr.msk.bf16.mxu1 %vm223_vm1, %v7803_v50  ;;  %7503 = vmatprep.mubr.msk.bf16.mxu0 %vm223_vm1, %v7811_v51 }
  0xd3   :  { %7492 = vmatmul.mubr.msk.bf16.gmra.mxu1 %vm223_vm1, %v7804_v53  ;;  %7504 = vmatmul.mubr.msk.bf16.vlgmr.msra.gmra.mxu0 %vm223_vm1, %v7812_v54  ;;  %v8540_v53 = vld [vmem:[#allocation7 + $0xb8] sm:$0xff]  }
  0xd4   :  { %7495 = vmatprep.mubr.msk.bf16.mxu1 %vm223_vm1, %v7806_v55  ;;  %7507 = vmatprep.mubr.msk.bf16.mxu0 %vm223_vm1, %v7815_v56  ;;  %v8542_v56 = vld [vmem:[#allocation5] ss:$0 sm:$0xff] }
  0xd5   :  { %6988 = vmatpush3.bf16.msra.mxu0 %v7828_v57 }
  0xd6   :  { %6989 = vmatprep.subr.bf16.mxu0 %v7829_v58  ;;  %v7852_v58 = vld [vmem:[#allocation7 + $0x78] sm:$0xff]  }
  0xd9   :  { %6990 = vmatpush3.bf16.msra.mxu0 %v7830_v59 }
  0xda   :  { %6991 = vmatprep.subr.bf16.mxu0 %v7831_v60 }
  0xdb   :  { %7496 = vmatmul.mubr.msk.bf16.gmra.mxu1 %vm223_vm1, %v7807_v61  ;;  %7508 = vmatmul.mubr.msk.bf16.gmra.mxu0 %vm223_vm1, %v7816_v62 }
  0xdc   :  { %7523 = vmatprep.mubr.msk.bf16.mxu1 %vm223_vm1, %v7813_v63  ;;  %7511 = vmatprep.mubr.msk.bf16.mxu0 %vm223_vm1, %v7819_v0 }
  0xdd   :  { %6992 = vmatpush3.bf16.msra.mxu0 %v7832_v1 }
  0xde   :  { %6993 = vmatprep.subr.bf16.mxu0 %v7833_v2 }
  0xe1   :  { %6994 = vmatpush3.bf16.msra.mxu0 %v7834_v3 }
  0xe2   :  { %6995 = vmatprep.subr.bf16.mxu0 %v7836_v4 }
  0xe3   :  { %7524 = vmatmul.mubr.msk.bf16.vlgmr.msra.gmra.mxu1 %vm223_vm1, %v7814_v5  ;;  %7512 = vmatmul.mubr.msk.bf16.gmra.mxu0 %vm223_vm1, %v7820_v6 }
  0xe4   :  { %7527 = vmatprep.mubr.msk.bf16.mxu1 %vm223_vm1, %v7817_v7  ;;  %7515 = vmatprep.mubr.msk.bf16.mxu0 %vm223_vm1, %v7823_v8 }
  0xe5   :  { %7540 = vmatpush3.bf16.msra.mxu1 %v7835_v52  ;;  %6996 = vmatpush3.bf16.msra.mxu0 %v7837_v9 }
  0xe6   :  { %7541 = vmatprep.subr.bf16.mxu1 %v7838_v10  ;;  %6997 = vmatprep.subr.bf16.mxu0 %v7839_v11 }
  0xe9   :  { %7542 = vmatpush3.bf16.msra.mxu1 %v7838_v10  ;;  %6998 = vmatpush3.bf16.msra.mxu0 %v7840_v12 }
  0xea   :  { %7543 = vmatprep.subr.bf16.mxu1 %v7841_v13  ;;  %6999 = vmatprep.subr.bf16.mxu0 %v7842_v14 }
  0xeb   :  { %7528 = vmatmul.mubr.msk.bf16.gmra.mxu1 %vm223_vm1, %v7818_v15  ;;  %7516 = vmatmul.mubr.msk.bf16.gmra.mxu0 %vm223_vm1, %v7824_v16 }
  0xec   :  { %7531 = vmatprep.mubr.msk.bf16.mxu1 %vm223_vm1, %v7821_v17 }
  0xed   :  { %7544 = vmatpush3.bf16.msra.mxu1 %v7841_v13  ;;  %7000 = vmatpush3.bf16.msra.mxu0 %v7843_v18 }
  0xee   :  { %7545 = vmatprep.subr.bf16.mxu1 %v7844_v19  ;;  %7001 = vmatprep.subr.bf16.mxu0 %v7845_v20 }
  0xf1   :  { %7546 = vmatpush3.bf16.msra.mxu1 %v7844_v19  ;;  %7002 = vmatpush3.bf16.msra.mxu0 %v7846_v21 }
  0xf2   :  { %7547 = vmatprep.subr.bf16.mxu1 %v7847_v22  ;;  %7039 = vmatprep.subr.bf16.mxu0 %v7852_v58 }
  0xf3   :  { %7532 = vmatmul.mubr.msk.bf16.gmra.mxu1 %vm223_vm1, %v7822_v23 }
  0xf4   :  { %7535 = vmatprep.mubr.msk.bf16.mxu1 %vm223_vm1, %v7825_v24 }
  0xf5   :  { %7548 = vmatpush3.bf16.msra.mxu1 %v7847_v22 }
  0xf6   :  { %7549 = vmatprep.subr.bf16.mxu1 %v7848_v25 }
  0xf9   :  { %7550 = vmatpush3.bf16.msra.mxu1 %v7848_v25 }
  0xfa   :  { %7551 = vmatprep.subr.bf16.mxu1 %v7849_v26 }
  0xfb   :  { %v7305_v29 = vpop.f32.mrf.mxu0  ;;  %v8525_v30 = vpop.f32.mrf.mxu1  ;;  %7536 = vmatmul.mubr.msk.bf16.gmra.mxu1 %vm223_vm1, %v7826_v27 }
  0xfd   :  { %v286_v31 = vpop.f32.mrf.mxu0  ;;  %v8528_v32 = vpop.f32.mrf.mxu1  ;;  %7552 = vmatpush3.bf16.msra.mxu1 %v7849_v26 }
  0xfe   :  { %7553 = vmatprep.subr.bf16.mxu1 %v7850_v28 }
  0xff   :  { %v7306_v33 = vpop.f32.mrf.mxu0  ;;  %v8530_v34 = vpop.f32.mrf.mxu1 }
 0x101   :  { %v289_v35 = vpop.f32.mrf.mxu0  ;;  %v8532_v36 = vpop.f32.mrf.mxu1  ;;  %7554 = vmatpush3.bf16.msra.mxu1 %v7850_v28 }
 0x102   :  { %7563 = vmatprep.subr.bf16.mxu1 %v8540_v53 }
 0x103   :  { %v7309_v37 = vpop.f32.mrf.mxu0  ;;  %v7325_v38 = vpop.f32.mrf.mxu1 }
 0x104   :  { %v468_v54 = vadd.f32 %v7325_v38, %v7305_v29 }
 0x105   :  { %v302_v39 = vpop.f32.mrf.mxu0  ;;  %v459_v40 = vpop.f32.mrf.mxu1 }
 0x106   :  { %v460_v59 = vadd.f32 %v459_v40, %v286_v31 }
 0x107   :  { %v7310_v41 = vpop.f32.mrf.mxu0  ;;  %v7326_v42 = vpop.f32.mrf.mxu1 }
 0x108   :  { %v471_v63 = vadd.f32 %v7326_v42, %v7306_v33 }
 0x109   :  { %v305_v43 = vpop.f32.mrf.mxu0  ;;  %v462_v44 = vpop.f32.mrf.mxu1 }
 0x10a   :  { %v463_v4 = vadd.f32 %v462_v44, %v289_v35 }
 0x10b   :  { %v7313_v45 = vpop.f32.mrf.mxu0  ;;  %v7329_v46 = vpop.f32.mrf.mxu1 }
 0x10c   :  { %v484_v13 = vadd.f32 %v7329_v46, %v7309_v37 }
 0x10d   :  { %v8534_v47 = vpop.f32.mrf.mxu0  ;;  %v475_v48 = vpop.f32.mrf.mxu1 }
 0x10e   :  { %v476_v16 = vadd.f32 %v475_v48, %v302_v39 }
 0x10f   :  { %v8536_v49 = vpop.f32.mrf.mxu0  ;;  %v7330_v50 = vpop.f32.mrf.mxu1 }
 0x110   :  { %v487_v26 = vadd.f32 %v7330_v50, %v7310_v41 }
 0x111   :  { %v8538_v51 = vpop.f32.mrf.mxu0  ;;  %v478_v52 = vpop.f32.mrf.mxu1 }
 0x112   :  { %v479_v37 = vadd.f32 %v478_v52, %v305_v43 }
 0x113   :  { %v7333_v55 = vpop.f32.mrf.mxu1  ;;  %v7345_v57 = vpop.f32.mrf.mxu0 }
 0x114   :  { %v718_v60 = vadd.f32 %v7345_v57, %v468_v54  ;;  %v500_v38 = vadd.f32 %v7333_v55, %v7313_v45 }
 0x115   :  { %v8545_v61 = vpop.f32.mrf.mxu1  ;;  %v653_v62 = vpop.f32.mrf.mxu0 }
 0x116   :  { %v740_v0 = vadd.f32 %v8542_v56, %v718_v60  ;;  %v716_v1 = vadd.f32 %v653_v62, %v460_v59  ;;  %v492_v52 = vadd.f32 %v8545_v61, %v8534_v47 }
 0x117   :  { %v8548_v2 = vpop.f32.mrf.mxu1  ;;  %v7346_v3 = vpop.f32.mrf.mxu0 }
 0x118   :  { %v738_v5 = vadd.f32 %v8542_v56, %v716_v1  ;;  %v719_v6 = vadd.f32 %v7346_v3, %v471_v63  ;;  %v756_v9 = vmax.f32 %v740_v0, 0.0  ;;  %v503_v1 = vadd.f32 %v8548_v2, %v8536_v49 }
 0x119   :  { %v8551_v7 = vpop.f32.mrf.mxu1  ;;  %v656_v8 = vpop.f32.mrf.mxu0 }
 0x11a   :  { %v754_v10 = vmax.f32 %v738_v5, 0.0  ;;  %v741_v11 = vadd.f32 %v8542_v56, %v719_v6  ;;  %v717_v12 = vadd.f32 %v656_v8, %v463_v4 }
 0x11b   :  { %v8554_v14 = vpop.f32.mrf.mxu1  ;;  %v7349_v15 = vpop.f32.mrf.mxu0 }
 0x11c   :  { %v770_v17 = vmax.f32 %v754_v10, %v756_v9  ;;  %v739_v18 = vadd.f32 %v8542_v56, %v717_v12  ;;  %v722_v19 = vadd.f32 %v7349_v15, %v484_v13  ;;  %v757_v23 = vmax.f32 %v741_v11, 0.0 }
 0x11d   :  { %v8557_v20 = vpop.f32.mrf.mxu1  ;;  %v669_v21 = vpop.f32.mrf.mxu0  ;;  %v495_v11 = vadd.f32 %v8551_v7, %v8538_v51  ;;  %v516_v51 = vadd.f32 %v8554_v14, %v8525_v30 }
 0x11e   :  { %v782_v22 = vrot.slane %v770_v17, 1  ;;  %v755_v24 = vmax.f32 %v739_v18, 0.0  ;;  %v720_v25 = vadd.f32 %v669_v21, %v476_v16  ;;  %v744_v27 = vadd.f32 %v8542_v56, %v722_v19 }
 0x11f   :  { %v8560_v28 = vpop.f32.mrf.mxu1  ;;  %v7350_v29 = vpop.f32.mrf.mxu0  ;;  %v508_v7 = vadd.f32 %v8557_v20, %v8528_v32 }
 0x120   :  { %v790_v31 = vmax.f32 %v770_v17, %v782_v22  ;;  %v771_v33 = vmax.f32 %v755_v24, %v757_v23  ;;  %v742_v35 = vadd.f32 %v8542_v56, %v720_v25  ;;  %v723_v39 = vadd.f32 %v7350_v29, %v487_v26 }
 0x121   :  { %v8563_v40 = vpop.f32.mrf.mxu1  ;;  %v672_v42 = vpop.f32.mrf.mxu0  ;;  %v760_v50 = vmax.f32 %v744_v27, 0.0  ;;  %v519_v32 = vadd.f32 %v8560_v28, %v8530_v34 }
 0x122   :  { %795 = vst [vmem:[#allocation2 + $0x19] sm:$0x1] %v790_v31  ;;  %799 = vst [vmem:[#allocation2 + $0x20] sm:$0x1] %v790_v31  ;;  %v807_v44 = vrot.slane %v790_v31, 2  ;;  %v827_v46 = vrot.slane %v790_v31, 4  ;;  %v745_v57 = vadd.f32 %v8542_v56, %v723_v39  ;;  %v721_v58 = vadd.f32 %v672_v42, %v479_v37 }
 0x123   :  { %v847_v41 = vrot.slane %v790_v31, 6  ;;  %v871_v48 = vrot.slane %v771_v33, 1  ;;  %v758_v54 = vmax.f32 %v742_v35, 0.0  ;;  %v7353_v59 = vpop.f32.mrf.mxu0  ;;  %v8566_v60 = vpop.f32.mrf.mxu1  ;;  %v511_v34 = vadd.f32 %v8563_v40, %v8532_v36 }
 0x124   :  { %815 = vst [vmem:[#allocation2 + $0x1a] sm:$0x1] %v807_v44  ;;  %819 = vst [vmem:[#allocation2 + $0x21] sm:$0x1] %v807_v44  ;;  %v726_v45 = vadd.f32 %v7353_v59, %v500_v38  ;;  %v743_v62 = vadd.f32 %v8542_v56, %v721_v58  ;;  %v761_v8 = vmax.f32 %v745_v57, 0.0 }
 0x125   :  { %823 = vst [vmem:[#allocation2 + $0x28] sm:$0x1] %v807_v44  ;;  %835 = vst [vmem:[#allocation2 + $0x1b] sm:$0x1] %v827_v46  ;;  %v879_v43 = vmax.f32 %v771_v33, %v871_v48  ;;  %v772_v55 = vmax.f32 %v758_v54, %v760_v50  ;;  %v685_v63 = vpop.f32.mrf.mxu0  ;;  %v8571_v0 = vpop.f32.mrf.mxu1 }
 0x126   :  { %839 = vst [vmem:[#allocation2 + $0x22] sm:$0x1] %v827_v46  ;;  %843 = vst [vmem:[#allocation2 + $0x29] sm:$0x1] %v827_v46  ;;  %v759_v9 = vmax.f32 %v743_v62, 0.0  ;;  %v724_v10 = vadd.f32 %v685_v63, %v492_v52  ;;  %v748_v49 = vadd.f32 %v8542_v56, %v726_v45 }
 0x127   :  { %855 = vst [vmem:[#allocation2 + $0x1c] sm:$0x1] %v847_v41  ;;  %859 = vst [vmem:[#allocation2 + $0x23] sm:$0x1] %v847_v41  ;;  %v899_v3 = vrot.slane %v879_v43, 2  ;;  %v919_v4 = vrot.slane %v879_v43, 4  ;;  %v7354_v47 = vpop.f32.mrf.mxu0  ;;  %v8575_v61 = vpop.f32.mrf.mxu1 }
 0x128   :  { %863 = vst [vmem:[#allocation2 + $0x2a] sm:$0x1] %v847_v41  ;;  %883 = vst [vmem:[#allocation2 + $0x1d] sm:$0x1] %v879_v43  ;;  %v939_v5 = vrot.slane %v879_v43, 6  ;;  %v783_v6 = vrot.slane %v772_v55, 1  ;;  %v727_v2 = vadd.f32 %v7354_v47, %v503_v1  ;;  %v773_v13 = vmax.f32 %v759_v9, %v761_v8 }
 0x129   :  { %887 = vst [vmem:[#allocation2 + $0x24] sm:$0x1] %v879_v43  ;;  %891 = vst [vmem:[#allocation2 + $0x2b] sm:$0x1] %v879_v43  ;;  %v746_v15 = vadd.f32 %v8542_v56, %v724_v10  ;;  %v688_v16 = vpop.f32.mrf.mxu0  ;;  %v8581_v17 = vpop.f32.mrf.mxu1  ;;  %v764_v27 = vmax.f32 %v748_v49, 0.0 }
 0x12a   :  { %907 = vst [vmem:[#allocation2 + $0x1e] sm:$0x1] %v899_v3  ;;  %911 = vst [vmem:[#allocation2 + $0x25] sm:$0x1] %v899_v3  ;;  %v791_v12 = vmax.f32 %v772_v55, %v783_v6  ;;  %v749_v18 = vadd.f32 %v8542_v56, %v727_v2  ;;  %v725_v19 = vadd.f32 %v688_v16, %v495_v11  ;;  %v872_v24 = vrot.slane %v773_v13, 1 }
 0x12b   :  { %915 = vst [vmem:[#allocation2 + $0x2c] sm:$0x1] %v899_v3  ;;  %927 = vst [vmem:[#allocation2 + $0x1f] sm:$0x1] %v919_v4  ;;  %v7357_v25 = vpop.f32.mrf.mxu0  ;;  %v8588_v26 = vpop.f32.mrf.mxu1  ;;  %v762_v29 = vmax.f32 %v746_v15, 0.0 }
 0x12c   :  { %931 = vst [vmem:[#allocation2 + $0x26] sm:$0x1] %v919_v4  ;;  %935 = vst [vmem:[#allocation2 + $0x2d] sm:$0x1] %v919_v4  ;;  %v808_v21 = vrot.slane %v791_v12, 2  ;;  %v828_v22 = vrot.slane %v791_v12, 4  ;;  %v747_v31 = vadd.f32 %v8542_v56, %v725_v19  ;;  %v730_v30 = vadd.f32 %v7357_v25, %v516_v51 }
 0x12d   :  { %947 = vst [vmem:[#allocation2 + $0x27] sm:$0x1] %v939_v5  ;;  %951 = vst [vmem:[#allocation2 + $0x2e] sm:$0x1] %v939_v5  ;;  %v848_v23 = vrot.slane %v791_v12, 6  ;;  %v880_v14 = vmax.f32 %v773_v13, %v872_v24  ;;  %v701_v20 = vpop.f32.mrf.mxu0  ;;  %v8593_v33 = vpop.f32.mrf.mxu1  ;;  %v774_v35 = vmax.f32 %v762_v29, %v764_v27  ;;  %v765_v37 = vmax.f32 %v749_v18, 0.0 }
 0x12e   :  { %796 = vst [vmem:[#allocation2 + $0x31] sm:$0x1] %v791_v12  ;;  %800 = vst [vmem:[#allocation2 + $0x38] sm:$0x1] %v791_v12  ;;  %v763_v38 = vmax.f32 %v747_v31, 0.0  ;;  %v728_v39 = vadd.f32 %v701_v20, %v508_v7  ;;  %v752_v41 = vadd.f32 %v8542_v56, %v730_v30  ;;  %v7855_v20 = vld [vmem:[#allocation7 + $0x70] sm:$0xff]  }
 0x12f   :  { %816 = vst [vmem:[#allocation2 + $0x32] sm:$0x1] %v808_v21  ;;  %820 = vst [vmem:[#allocation2 + $0x39] sm:$0x1] %v808_v21  ;;  %v900_v42 = vrot.slane %v880_v14, 2  ;;  %v920_v44 = vrot.slane %v880_v14, 4  ;;  %v7358_v48 = vpop.f32.mrf.mxu0  ;;  %v8596_v50 = vpop.f32.mrf.mxu1 }
 0x130   :  { %824 = vst [vmem:[#allocation2 + $0x40] sm:$0x1] %v808_v21  ;;  %836 = vst [vmem:[#allocation2 + $0x33] sm:$0x1] %v828_v22  ;;  %v940_v46 = vrot.slane %v880_v14, 6  ;;  %v784_v28 = vrot.slane %v774_v35, 1  ;;  %v775_v54 = vmax.f32 %v763_v38, %v765_v37  ;;  %v750_v57 = vadd.f32 %v8542_v56, %v728_v39 }
 0x131   :  { %840 = vst [vmem:[#allocation2 + $0x3a] sm:$0x1] %v828_v22  ;;  %844 = vst [vmem:[#allocation2 + $0x41] sm:$0x1] %v828_v22  ;;  %v731_v58 = vadd.f32 %v7358_v48, %v519_v32  ;;  %v704_v59 = vpop.f32.mrf.mxu0  ;;  %v8601_v43 = vpop.f32.mrf.mxu1  ;;  %v768_v40 = vmax.f32 %v752_v41, 0.0  ;;  %v7853_v32 = vld [vmem:[#allocation7 + $0x38] sm:$0xff]  }
 0x132   :  { %856 = vst [vmem:[#allocation2 + $0x34] sm:$0x1] %v848_v23  ;;  %860 = vst [vmem:[#allocation2 + $0x3b] sm:$0x1] %v848_v23  ;;  %v792_v45 = vmax.f32 %v774_v35, %v784_v28  ;;  %v873_v52 = vrot.slane %v775_v54, 1  ;;  %v766_v55 = vmax.f32 %v750_v57, 0.0  ;;  %v729_v36 = vadd.f32 %v704_v59, %v511_v34 }
 0x133   :  { %864 = vst [vmem:[#allocation2 + $0x42] sm:$0x1] %v848_v23  ;;  %884 = vst [vmem:[#allocation2 + $0x35] sm:$0x1] %v880_v14  ;;  %v753_v62 = vadd.f32 %v8542_v56, %v731_v58  ;;  %v8604_v63 = vpop.f32.mrf.mxu1  ;;  %v8606_v1 = vpop.f32.mrf.mxu0  ;;  %v3535_v30 = vld [vmem:[#allocation2 + $0x18] sm:$0xff]  ;;  %v7858_v28 = vld [vmem:[#allocation7 + $0x68] sm:$0xff]  }
 0x134   :  { %888 = vst [vmem:[#allocation2 + $0x3c] sm:$0x1] %v880_v14  ;;  %892 = vst [vmem:[#allocation2 + $0x43] sm:$0x1] %v880_v14  ;;  %v809_v3 = vrot.slane %v792_v45, 2  ;;  %v829_v4 = vrot.slane %v792_v45, 4  ;;  %v881_v6 = vmax.f32 %v775_v54, %v873_v52  ;;  %v776_v8 = vmax.f32 %v766_v55, %v768_v40 }
 0x135   :  { %908 = vst [vmem:[#allocation2 + $0x36] sm:$0x1] %v900_v42  ;;  %912 = vst [vmem:[#allocation2 + $0x3d] sm:$0x1] %v900_v42  ;;  %v849_v5 = vrot.slane %v792_v45, 6  ;;  %v751_v9 = vadd.f32 %v8542_v56, %v729_v36  ;;  %v8609_v10 = vpop.f32.mrf.mxu1  ;;  %v8611_v47 = vpop.f32.mrf.mxu0  ;;  %v769_v13 = vmax.f32 %v753_v62, 0.0  ;;  %v1287_v40 = vadd.f32 %v8606_v1, %v8566_v60 }
 0x136   :  { %916 = vst [vmem:[#allocation2 + $0x44] sm:$0x1] %v900_v42  ;;  %928 = vst [vmem:[#allocation2 + $0x37] sm:$0x1] %v920_v44  ;;  %v901_v11 = vrot.slane %v881_v6, 2  ;;  %v921_v49 = vrot.slane %v881_v6, 4 }
 0x137   :  { %932 = vst [vmem:[#allocation2 + $0x3e] sm:$0x1] %v920_v44  ;;  %936 = vst [vmem:[#allocation2 + $0x45] sm:$0x1] %v920_v44  ;;  %v941_v2 = vrot.slane %v881_v6, 6  ;;  %v785_v12 = vrot.slane %v776_v8, 1  ;;  %v8613_v16 = vpop.f32.mrf.mxu1  ;;  %v8615_v51 = vpop.f32.mrf.mxu0 }
 0x138   :  { %948 = vst [vmem:[#allocation2 + $0x3f] sm:$0x1] %v940_v46  ;;  %952 = vst [vmem:[#allocation2 + $0x46] sm:$0x1] %v940_v46  ;;  %v767_v15 = vmax.f32 %v751_v9, 0.0  ;;  %v3536_v7 = vld [vmem:[#allocation2 + $0x20] sm:$0xff] }
 0x139   :  { %797 = vst [vmem:[#allocation2 + $0x49] sm:$0x1] %v792_v45  ;;  %801 = vst [vmem:[#allocation2 + $0x50] sm:$0x1] %v792_v45  ;;  %v3537_v18 = vld [vmem:[#allocation2 + $0x28] sm:$0xff]  ;;  %v793_v23 = vmax.f32 %v776_v8, %v785_v12  ;;  %v8617_v25 = vpop.f32.mrf.mxu1  ;;  %v8619_v27 = vpop.f32.mrf.mxu0  ;;  %v7856_v34 = vld [vmem:[#allocation7 + $0x30] sm:$0xff]  }
 0x13a   :  { %817 = vst [vmem:[#allocation2 + $0x4a] sm:$0x1] %v809_v3  ;;  %821 = vst [vmem:[#allocation2 + $0x51] sm:$0x1] %v809_v3  ;;  %v777_v24 = vmax.f32 %v767_v15, %v769_v13  ;;  %v7859_v36 = vld [vmem:[#allocation7 + $0x28] sm:$0xff]   ;;  %v7861_v62 = vld [vmem:[#allocation7 + $0x60] sm:$0xff]  }
 0x13b   :  { %825 = vst [vmem:[#allocation2 + $0x58] sm:$0x1] %v809_v3  ;;  %837 = vst [vmem:[#allocation2 + $0x4b] sm:$0x1] %v829_v4  ;;  %v810_v35 = vrot.slane %v793_v23, 2  ;;  %v830_v37 = vrot.slane %v793_v23, 4  ;;  %v8621_v42 = vpop.f32.mrf.mxu1  ;;  %v8623_v44 = vpop.f32.mrf.mxu0 }
 0x13c   :  { %841 = vst [vmem:[#allocation2 + $0x52] sm:$0x1] %v829_v4  ;;  %845 = vst [vmem:[#allocation2 + $0x59] sm:$0x1] %v829_v4  ;;  %v850_v38 = vrot.slane %v793_v23, 6  ;;  %v874_v39 = vrot.slane %v777_v24, 1 }
 0x13d   :  { %857 = vst [vmem:[#allocation2 + $0x4c] sm:$0x1] %v849_v5  ;;  %861 = vst [vmem:[#allocation2 + $0x53] sm:$0x1] %v849_v5  ;;  %v3538_v22 = vld [vmem:[#allocation2 + $0x30] sm:$0xff]  ;;  %v8625_v41 = vpop.f32.mrf.mxu1  ;;  %v8627_v48 = vpop.f32.mrf.mxu0  ;;  %v7864_v1 = vld [vmem:[#allocation7 + $0x58] sm:$0xff]  }
 0x13e   :  { %865 = vst [vmem:[#allocation2 + $0x5a] sm:$0x1] %v849_v5  ;;  %885 = vst [vmem:[#allocation2 + $0x4d] sm:$0x1] %v881_v6  ;;  %v6795_v14 = vpack.c.bf16 %v3538_v22, %v3535_v30  ;;  %v882_v46 = vmax.f32 %v777_v24, %v874_v39  ;;  %v1279_v5 = vadd.f32 %v8611_v47, %v8571_v0  ;;  %v7854_v30 = vld [vmem:[#allocation7 + $0xb0] sm:$0xff]  }
 0x13f   :  { %889 = vst [vmem:[#allocation2 + $0x54] sm:$0x1] %v881_v6  ;;  %893 = vst [vmem:[#allocation2 + $0x5b] sm:$0x1] %v881_v6  ;;  %v3539_v19 = vld [vmem:[#allocation2 + $0x38] sm:$0xff]  ;;  %v3540_v21 = vld [vmem:[#allocation2 + $0x40] sm:$0xff]  ;;  %v8629_v59 = vpop.f32.mrf.mxu1  ;;  %v8631_v45 = vpop.f32.mrf.mxu0  ;;  %v1282_v47 = vadd.f32 %v8619_v27, %v8581_v17 }
 0x140   :  { %909 = vst [vmem:[#allocation2 + $0x4e] sm:$0x1] %v901_v11  ;;  %913 = vst [vmem:[#allocation2 + $0x55] sm:$0x1] %v901_v11  ;;  %v6796_v29 = vpack.c.bf16 %v3539_v19, %v3536_v7  ;;  %v6797_v31 = vpack.c.bf16 %v3540_v21, %v3537_v18  ;;  %v902_v54 = vrot.slane %v882_v46, 2  ;;  %v922_v57 = vrot.slane %v882_v46, 4 }
 0x141   :  { %917 = vst [vmem:[#allocation2 + $0x5c] sm:$0x1] %v901_v11  ;;  %929 = vst [vmem:[#allocation2 + $0x4f] sm:$0x1] %v921_v49  ;;  %v942_v58 = vrot.slane %v882_v46, 6  ;;  %v8633_v52 = vpop.f32.mrf.mxu1  ;;  %v8635_v55 = vpop.f32.mrf.mxu0  ;;  %v7862_v11 = vld [vmem:[#allocation7 + $0x20] sm:$0xff]  }
 0x142   :  { %933 = vst [vmem:[#allocation2 + $0x56] sm:$0x1] %v921_v49  ;;  %937 = vst [vmem:[#allocation2 + $0x5d] sm:$0x1] %v921_v49  ;;  %3880 = vmatprep.mubr.bf16.mxu0 %v6796_v29  ;;  %7555 = vmatprep.mubr.bf16.mxu1 %v6797_v31  ;;  %v1290_v49 = vadd.f32 %v8615_v51, %v8575_v61  ;;  %v7867_v27 = vld [vmem:[#allocation7 + $0x50] sm:$0xff]  }
 0x143   :  { %949 = vst [vmem:[#allocation2 + $0x57] sm:$0x1] %v941_v2  ;;  %953 = vst [vmem:[#allocation2 + $0x5e] sm:$0x1] %v941_v2  ;;  %3881 = vmatmul.mubr.bf16.vlgmr.msra.gmra.mxu0 %v6795_v14  ;;  %v8639_v3 = vpop.f32.mrf.mxu0  ;;  %v7405_v4 = vpop.f32.mrf.mxu1 }
 0x144   :  { %798 = vst [vmem:[#allocation2 + $0x61] sm:$0x1] %v793_v23  ;;  %802 = vst [vmem:[#allocation2 + $0x68] sm:$0x1] %v793_v23  ;;  %7040 = vmatpush3.bf16.msra.mxu0 %v7853_v32  ;;  %v1536_v6 = vadd.f32 %v7405_v4, %v1287_v40  ;;  %v7865_v32 = vld [vmem:[#allocation7 + $0x18] sm:$0xff]  }
 0x145   :  { %818 = vst [vmem:[#allocation2 + $0x62] sm:$0x1] %v810_v35  ;;  %822 = vst [vmem:[#allocation2 + $0x69] sm:$0x1] %v810_v35  ;;  %7041 = vmatprep.subr.bf16.mxu0 %v7855_v20  ;;  %v8643_v8 = vpop.f32.mrf.mxu0  ;;  %v1471_v9 = vpop.f32.mrf.mxu1 }
 0x146   :  { %826 = vst [vmem:[#allocation2 + $0x70] sm:$0x1] %v810_v35  ;;  %838 = vst [vmem:[#allocation2 + $0x63] sm:$0x1] %v830_v37  ;;  %v1552_v2 = vadd.f32 %v8542_v56, %v1536_v6  ;;  %v1534_v60 = vadd.f32 %v1471_v9, %v1279_v5 }
 0x147   :  { %842 = vst [vmem:[#allocation2 + $0x6a] sm:$0x1] %v830_v37  ;;  %846 = vst [vmem:[#allocation2 + $0x71] sm:$0x1] %v830_v37  ;;  %v8648_v12 = vpop.f32.mrf.mxu0  ;;  %v7406_v13 = vpop.f32.mrf.mxu1  ;;  %v1303_v37 = vadd.f32 %v8623_v44, %v8588_v26  ;;  %v7857_v26 = vld [vmem:[#allocation7 + $0xa8] sm:$0xff]   ;;  %v7868_v44 = vld [vmem:[#allocation7 + $0x10] sm:$0xff]  }
 0x148   :  { %858 = vst [vmem:[#allocation2 + $0x64] sm:$0x1] %v850_v38  ;;  %862 = vst [vmem:[#allocation2 + $0x6b] sm:$0x1] %v850_v38  ;;  %7042 = vmatpush3.bf16.msra.mxu0 %v7856_v34  ;;  %v3541_v0 = vld [vmem:[#allocation2 + $0x48] sm:$0xff]  ;;  %v1550_v18 = vadd.f32 %v8542_v56, %v1534_v60  ;;  %v1537_v19 = vadd.f32 %v7406_v13, %v1290_v49  ;;  %v1568_v14 = vmax.f32 %v1552_v2, 0.0 }
 0x149   :  { %866 = vst [vmem:[#allocation2 + $0x72] sm:$0x1] %v850_v38  ;;  %886 = vst [vmem:[#allocation2 + $0x65] sm:$0x1] %v882_v46  ;;  %7043 = vmatprep.subr.bf16.mxu0 %v7858_v28  ;;  %v8653_v51 = vpop.f32.mrf.mxu0  ;;  %v1474_v23 = vpop.f32.mrf.mxu1  ;;  %v1298_v2 = vadd.f32 %v8635_v55, %v8601_v43  ;;  %v1319_v60 = vadd.f32 %v8639_v3, %v8604_v63  ;;  %v7873_v43 = vld [vmem:[#allocation7 + $0x40] sm:$0xff]  }
 0x14a   :  { %890 = vst [vmem:[#allocation2 + $0x6c] sm:$0x1] %v882_v46  ;;  %894 = vst [vmem:[#allocation2 + $0x73] sm:$0x1] %v882_v46  ;;  %v3542_v15 = vld [vmem:[#allocation2 + $0x50] sm:$0xff]  ;;  %v3543_v7 = vld [vmem:[#allocation2 + $0x58] sm:$0xff]  ;;  %v1553_v35 = vadd.f32 %v8542_v56, %v1537_v19  ;;  %v1535_v17 = vadd.f32 %v1474_v23, %v1282_v47  ;;  %v1295_v46 = vadd.f32 %v8627_v48, %v8593_v33 }
 0x14b   :  { %910 = vst [vmem:[#allocation2 + $0x66] sm:$0x1] %v902_v54  ;;  %914 = vst [vmem:[#allocation2 + $0x6d] sm:$0x1] %v902_v54  ;;  %v1566_v20 = vmax.f32 %v1550_v18, 0.0  ;;  %v8658_v38 = vpop.f32.mrf.mxu0  ;;  %v7409_v39 = vpop.f32.mrf.mxu1  ;;  %v7870_v33 = vld [vmem:[#allocation7 + $0x48] sm:$0xff]   ;;  %v1306_v48 = vadd.f32 %v8631_v45, %v8596_v50 }
 0x14c   :  { %918 = vst [vmem:[#allocation2 + $0x74] sm:$0x1] %v902_v54  ;;  %930 = vst [vmem:[#allocation2 + $0x67] sm:$0x1] %v922_v57  ;;  %7044 = vmatpush3.bf16.msra.mxu0 %v7859_v36  ;;  %v1551_v28 = vadd.f32 %v8542_v56, %v1535_v17  ;;  %v1540_v54 = vadd.f32 %v7409_v39, %v1303_v37  ;;  %v1569_v40 = vmax.f32 %v1553_v35, 0.0  ;;  %v8678_v45 = vld [vmem:[#allocation7 + $0xa0] sm:$0xff]  }
 0x14d   :  { %934 = vst [vmem:[#allocation2 + $0x6e] sm:$0x1] %v922_v57  ;;  %938 = vst [vmem:[#allocation2 + $0x75] sm:$0x1] %v922_v57  ;;  %7045 = vmatprep.subr.bf16.mxu0 %v7861_v62  ;;  %v1582_v34 = vmax.f32 %v1566_v20, %v1568_v14  ;;  %v8664_v57 = vpop.f32.mrf.mxu0  ;;  %v7863_v14 = vld [vmem:[#allocation7 + $0x98] sm:$0xff]   ;;  %v7874_v20 = vld [vmem:[#allocation7] sm:$0xff]   ;;  %v1322_v35 = vadd.f32 %v8648_v12, %v8613_v16 }
 0x14e   :  { %950 = vst [vmem:[#allocation2 + $0x6f] sm:$0x1] %v942_v58  ;;  %954 = vst [vmem:[#allocation2 + $0x76] sm:$0x1] %v942_v58  ;;  %v1487_v58 = vpop.f32.mrf.mxu1  ;;  %v1567_v62 = vmax.f32 %v1551_v28, 0.0  ;;  %v1556_v5 = vadd.f32 %v8542_v56, %v1540_v54 }
 0x14f   :  { %v1594_v36 = vrot.slane %v1582_v34, 1  ;;  %v1538_v4 = vadd.f32 %v1487_v58, %v1295_v46  ;;  %v1314_v58 = vadd.f32 %v8653_v51, %v8617_v25  ;;  %v7866_v25 = vld [vmem:[#allocation7 + $0x90] sm:$0xff]   ;;  %v1335_v51 = vadd.f32 %v8658_v38, %v8621_v42 }
 0x150   :  { %7046 = vmatpush3.bf16.msra.mxu0 %v7862_v11  ;;  %v7410_v6 = vpop.f32.mrf.mxu1  ;;  %v1583_v11 = vmax.f32 %v1567_v62, %v1569_v40  ;;  %v1572_v55 = vmax.f32 %v1556_v5, 0.0 }
 0x151   :  { %7047 = vmatprep.subr.bf16.mxu0 %v7864_v1  ;;  %v1602_v9 = vmax.f32 %v1582_v34, %v1594_v36  ;;  %v1554_v49 = vadd.f32 %v8542_v56, %v1538_v4  ;;  %v1541_v1 = vadd.f32 %v7410_v6, %v1306_v48  ;;  %v1327_v4 = vadd.f32 %v8664_v57, %v8625_v41 }
 0x152   :  { %v1490_v50 = vpop.f32.mrf.mxu1  ;;  %v1683_v18 = vrot.slane %v1583_v11, 1 }
 0x153   :  { %v3544_v61 = vld [vmem:[#allocation2 + $0x60] sm:$0xff]  ;;  %1607 = vst [vmem:[#allocation2 + $0x79] sm:$0x1] %v1602_v9  ;;  %1611 = vst [vmem:[#allocation2 + $0x80] sm:$0x1] %v1602_v9  ;;  %v1659_v47 = vrot.slane %v1602_v9, 6  ;;  %v1557_v63 = vadd.f32 %v8542_v56, %v1541_v1  ;;  %v1539_v3 = vadd.f32 %v1490_v50, %v1298_v2 }
 0x154   :  { %v6798_v31 = vpack.c.bf16 %v3544_v61, %v3541_v0  ;;  %7048 = vmatpush3.bf16.msra.mxu0 %v7865_v32  ;;  %v1639_v0 = vrot.slane %v1602_v9, 4  ;;  %v1570_v19 = vmax.f32 %v1554_v49, 0.0  ;;  %v1691_v61 = vmax.f32 %v1583_v11, %v1683_v18 }
 0x155   :  { %v3545_v21 = vld [vmem:[#allocation2 + $0x68] sm:$0xff]  ;;  %v3546_v22 = vld [vmem:[#allocation2 + $0x70] sm:$0xff]  ;;  %7049 = vmatprep.subr.bf16.mxu0 %v7867_v27  ;;  %1667 = vst [vmem:[#allocation2 + $0x7c] sm:$0x1] %v1659_v47  ;;  %1671 = vst [vmem:[#allocation2 + $0x83] sm:$0x1] %v1659_v47 }
 0x156   :  { %v6799_v24 = vpack.c.bf16 %v3545_v21, %v3542_v15  ;;  %v6800_v29 = vpack.c.bf16 %v3546_v22, %v3543_v7  ;;  %v7871_v15 = vld [vmem:[#allocation7 + $0x8] sm:$0xff]   ;;  %v1619_v7 = vrot.slane %v1602_v9, 2  ;;  %v7413_v21 = vpop.f32.mrf.mxu1  ;;  %1647 = vst [vmem:[#allocation2 + $0x7b] sm:$0x1] %v1639_v0  ;;  %1651 = vst [vmem:[#allocation2 + $0x82] sm:$0x1] %v1639_v0 }
 0x157   :  { %1655 = vst [vmem:[#allocation2 + $0x89] sm:$0x1] %v1639_v0  ;;  %1675 = vst [vmem:[#allocation2 + $0x8a] sm:$0x1] %v1659_v47  ;;  %v1544_v23 = vadd.f32 %v7413_v21, %v1319_v60  ;;  %v1711_v17 = vrot.slane %v1691_v61, 2  ;;  %v1731_v27 = vrot.slane %v1691_v61, 4 }
 0x158   :  { %3888 = vmatprep.mubr.bf16.mxu0 %v6799_v24  ;;  %7556 = vmatmul.mubr.bf16.vlgmr.msra.gmra.mxu1 %v6800_v29  ;;  %1627 = vst [vmem:[#allocation2 + $0x7a] sm:$0x1] %v1619_v7  ;;  %1631 = vst [vmem:[#allocation2 + $0x81] sm:$0x1] %v1619_v7  ;;  %v1311_v24 = vadd.f32 %v8643_v8, %v8609_v10  ;;  %v1584_v29 = vmax.f32 %v1570_v19, %v1572_v55  ;;  %v1751_v10 = vrot.slane %v1691_v61, 6  ;;  %v7876_v8 = vld [vmem:[#allocation7 + $0x1f8] sm:$0xff]  }
 0x159   :  { %3889 = vmatmul.mubr.bf16.gmra.mxu0 %v6798_v31  ;;  %7564 = vmatpush3.bf16.msra.mxu1 %v8540_v53  ;;  %v8669_v53 = vpop.f32.mrf.mxu0  ;;  %1635 = vst [vmem:[#allocation2 + $0x88] sm:$0x1] %v1619_v7  ;;  %v1555_v31 = vadd.f32 %v8542_v56, %v1539_v3  ;;  %1695 = vst [vmem:[#allocation2 + $0x7d] sm:$0x1] %v1691_v61  ;;  %v1573_v39 = vmax.f32 %v1557_v63, 0.0  ;;  %v1560_v16 = vadd.f32 %v8542_v56, %v1544_v23 }
 0x15a   :  { %7565 = vmatprep.subr.bf16.mxu1 %v7854_v30  ;;  %7050 = vmatpush3.bf16.msra.mxu0 %v7868_v44  ;;  %1699 = vst [vmem:[#allocation2 + $0x84] sm:$0x1] %v1691_v61  ;;  %1703 = vst [vmem:[#allocation2 + $0x8b] sm:$0x1] %v1691_v61  ;;  %v1595_v37 = vrot.slane %v1584_v29, 1  ;;  %v1338_v41 = vadd.f32 %v8669_v53, %v8629_v59 }
 0x15b   :  { %v8676_v13 = vpop.f32.mrf.mxu0  ;;  %7051 = vmatprep.subr.bf16.mxu0 %v7870_v33  ;;  %v1571_v46 = vmax.f32 %v1555_v31, 0.0  ;;  %1719 = vst [vmem:[#allocation2 + $0x7e] sm:$0x1] %v1711_v17  ;;  %1723 = vst [vmem:[#allocation2 + $0x85] sm:$0x1] %v1711_v17  ;;  %v1576_v60 = vmax.f32 %v1560_v16, 0.0 }
 0x15c   :  { %1727 = vst [vmem:[#allocation2 + $0x8c] sm:$0x1] %v1711_v17  ;;  %1739 = vst [vmem:[#allocation2 + $0x7f] sm:$0x1] %v1731_v27  ;;  %v1330_v53 = vadd.f32 %v8676_v13, %v8633_v52 }
 0x15d   :  { %7566 = vmatpush3.bf16.msra.mxu1 %v7854_v30  ;;  %v8681_v22 = vpop.f32.mrf.mxu0  ;;  %v1503_v30 = vpop.f32.mrf.mxu1  ;;  %1743 = vst [vmem:[#allocation2 + $0x86] sm:$0x1] %v1731_v27  ;;  %1747 = vst [vmem:[#allocation2 + $0x8d] sm:$0x1] %v1731_v27  ;;  %v1585_v44 = vmax.f32 %v1571_v46, %v1573_v39 }
 0x15e   :  { %7567 = vmatprep.subr.bf16.mxu1 %v7857_v26  ;;  %7052 = vmatpush3.bf16.msra.mxu0 %v7871_v15  ;;  %v1542_v34 = vadd.f32 %v1503_v30, %v1311_v24  ;;  %1759 = vst [vmem:[#allocation2 + $0x87] sm:$0x1] %v1751_v10  ;;  %1763 = vst [vmem:[#allocation2 + $0x8e] sm:$0x1] %v1751_v10  ;;  %v7869_v15 = vld [vmem:[#allocation7 + $0x88] sm:$0xff]   ;;  %v7872_v30 = vld [vmem:[#allocation7 + $0x80] sm:$0xff]  }
 0x15f   :  { %v8686_v32 = vpop.f32.mrf.mxu0  ;;  %7053 = vmatprep.subr.bf16.mxu0 %v7873_v43  ;;  %v7414_v28 = vpop.f32.mrf.mxu1  ;;  %v1684_v11 = vrot.slane %v1585_v44, 1 }
 0x160   :  { %v1545_v12 = vadd.f32 %v7414_v28, %v1322_v35  ;;  %v1558_v36 = vadd.f32 %v8542_v56, %v1542_v34 }
 0x161   :  { %7568 = vmatpush3.bf16.msra.mxu1 %v7857_v26  ;;  %v8691_v54 = vpop.f32.mrf.mxu0  ;;  %v1603_v26 = vmax.f32 %v1584_v29, %v1595_v37  ;;  %v1506_v40 = vpop.f32.mrf.mxu1  ;;  %v1692_v57 = vmax.f32 %v1585_v44, %v1684_v11 }
 0x162   :  { %7569 = vmatprep.subr.bf16.mxu1 %v8678_v45  ;;  %7054 = vmatpush3.bf16.msra.mxu0 %v7874_v20  ;;  %v1561_v33 = vadd.f32 %v8542_v56, %v1545_v12  ;;  %v1543_v48 = vadd.f32 %v1506_v40, %v1314_v58  ;;  %v1574_v1 = vmax.f32 %v1558_v36, 0.0  ;;  %v8730_v12 = vld [vmem:[#allocation7 + $0x238] sm:$0xff]  }
 0x163   :  { %v8698_v62 = vpop.f32.mrf.mxu0  ;;  %7091 = vmatprep.subr.bf16.mxu0 %v7876_v8  ;;  %1608 = vst [vmem:[#allocation2 + $0x91] sm:$0x1] %v1603_v26  ;;  %1612 = vst [vmem:[#allocation2 + $0x98] sm:$0x1] %v1603_v26  ;;  %v1620_v5 = vrot.slane %v1603_v26, 2  ;;  %v1640_v6 = vrot.slane %v1603_v26, 4  ;;  %v7417_v49 = vpop.f32.mrf.mxu1 }
 0x164   :  { %v1660_v9 = vrot.slane %v1603_v26, 6  ;;  %v1559_v42 = vadd.f32 %v8542_v56, %v1543_v48  ;;  %v1548_v38 = vadd.f32 %v7417_v49, %v1335_v51  ;;  %v1586_v7 = vmax.f32 %v1574_v1, %v1576_v60  ;;  %1696 = vst [vmem:[#allocation2 + $0x95] sm:$0x1] %v1692_v57  ;;  %1700 = vst [vmem:[#allocation2 + $0x9c] sm:$0x1] %v1692_v57 }
 0x165   :  { %7570 = vmatpush3.bf16.msra.mxu1 %v8678_v45  ;;  %v8705_v2 = vpop.f32.mrf.mxu0  ;;  %1628 = vst [vmem:[#allocation2 + $0x92] sm:$0x1] %v1620_v5  ;;  %1632 = vst [vmem:[#allocation2 + $0x99] sm:$0x1] %v1620_v5  ;;  %v1519_v50 = vpop.f32.mrf.mxu1  ;;  %v1577_v0 = vmax.f32 %v1561_v33, 0.0  ;;  %v1712_v43 = vrot.slane %v1692_v57, 2 }
 0x166   :  { %7571 = vmatprep.subr.bf16.mxu1 %v7863_v14  ;;  %1636 = vst [vmem:[#allocation2 + $0xa0] sm:$0x1] %v1620_v5  ;;  %1648 = vst [vmem:[#allocation2 + $0x93] sm:$0x1] %v1640_v6  ;;  %v1575_v47 = vmax.f32 %v1559_v42, 0.0  ;;  %v1546_v18 = vadd.f32 %v1519_v50, %v1327_v4  ;;  %v1732_v55 = vrot.slane %v1692_v57, 4  ;;  %v1564_v63 = vadd.f32 %v8542_v56, %v1548_v38 }
 0x167   :  { %1652 = vst [vmem:[#allocation2 + $0x9a] sm:$0x1] %v1640_v6  ;;  %1656 = vst [vmem:[#allocation2 + $0xa1] sm:$0x1] %v1640_v6  ;;  %v8710_v45 = vpop.f32.mrf.mxu0  ;;  %v1752_v19 = vrot.slane %v1692_v57, 6  ;;  %v7418_v3 = vpop.f32.mrf.mxu1  ;;  %v1596_v21 = vrot.slane %v1586_v7, 1 }
 0x168   :  { %1668 = vst [vmem:[#allocation2 + $0x94] sm:$0x1] %v1660_v9  ;;  %1672 = vst [vmem:[#allocation2 + $0x9b] sm:$0x1] %v1660_v9  ;;  %v1587_v61 = vmax.f32 %v1575_v47, %v1577_v0  ;;  %v1562_v23 = vadd.f32 %v8542_v56, %v1546_v18  ;;  %v1549_v24 = vadd.f32 %v7418_v3, %v1338_v41  ;;  %v1580_v35 = vmax.f32 %v1564_v63, 0.0 }
 0x169   :  { %7572 = vmatpush3.bf16.msra.mxu1 %v7863_v14  ;;  %1676 = vst [vmem:[#allocation2 + $0xa2] sm:$0x1] %v1660_v9  ;;  %1704 = vst [vmem:[#allocation2 + $0xa3] sm:$0x1] %v1692_v57  ;;  %v8713_v59 = vpop.f32.mrf.mxu0  ;;  %v1522_v29 = vpop.f32.mrf.mxu1  ;;  %v1604_v52 = vmax.f32 %v1586_v7, %v1596_v21 }
 0x16a   :  { %7573 = vmatprep.subr.bf16.mxu1 %v7866_v25  ;;  %1720 = vst [vmem:[#allocation2 + $0x96] sm:$0x1] %v1712_v43  ;;  %1724 = vst [vmem:[#allocation2 + $0x9d] sm:$0x1] %v1712_v43  ;;  %v1685_v13 = vrot.slane %v1587_v61, 1  ;;  %v1578_v14 = vmax.f32 %v1562_v23, 0.0  ;;  %v1547_v20 = vadd.f32 %v1522_v29, %v1330_v53  ;;  %v1565_v17 = vadd.f32 %v8542_v56, %v1549_v24 }
 0x16b   :  { %1728 = vst [vmem:[#allocation2 + $0xa4] sm:$0x1] %v1712_v43  ;;  %1740 = vst [vmem:[#allocation2 + $0x97] sm:$0x1] %v1732_v55  ;;  %v8718_v31 = vpop.f32.mrf.mxu0  ;;  %v8723_v10 = vpop.f32.mrf.mxu1  ;;  %v1621_v8 = vrot.slane %v1604_v52, 2  ;;  %v1641_v37 = vrot.slane %v1604_v52, 4 }
 0x16c   :  { %1744 = vst [vmem:[#allocation2 + $0x9e] sm:$0x1] %v1732_v55  ;;  %1748 = vst [vmem:[#allocation2 + $0xa5] sm:$0x1] %v1732_v55  ;;  %v1661_v39 = vrot.slane %v1604_v52, 6  ;;  %v1693_v46 = vmax.f32 %v1587_v61, %v1685_v13  ;;  %v1588_v34 = vmax.f32 %v1578_v14, %v1580_v35  ;;  %v1563_v28 = vadd.f32 %v8542_v56, %v1547_v20 }
 0x16d   :  { %7574 = vmatpush3.bf16.msra.mxu1 %v7866_v25  ;;  %1760 = vst [vmem:[#allocation2 + $0x9f] sm:$0x1] %v1752_v19  ;;  %1764 = vst [vmem:[#allocation2 + $0xa6] sm:$0x1] %v1752_v19  ;;  %v8721_v27 = vpop.f32.mrf.mxu0  ;;  %v8728_v16 = vpop.f32.mrf.mxu1  ;;  %v1581_v40 = vmax.f32 %v1565_v17, 0.0  ;;  %v2099_v55 = vadd.f32 %v8723_v10, %v8681_v22 }
 0x16e   :  { %7575 = vmatprep.subr.bf16.mxu1 %v7869_v15  ;;  %1609 = vst [vmem:[#allocation2 + $0xa9] sm:$0x1] %v1604_v52  ;;  %1613 = vst [vmem:[#allocation2 + $0xb0] sm:$0x1] %v1604_v52  ;;  %v1713_v56 = vrot.slane %v1693_v46, 2  ;;  %v1733_v26 = vrot.slane %v1693_v46, 4  ;;  %v2091_v3 = vadd.f32 %v8728_v16, %v8686_v32 }
 0x16f   :  { %v8726_v58 = vpop.f32.mrf.mxu0  ;;  %1629 = vst [vmem:[#allocation2 + $0xaa] sm:$0x1] %v1621_v8  ;;  %1633 = vst [vmem:[#allocation2 + $0xb1] sm:$0x1] %v1621_v8  ;;  %v1753_v44 = vrot.slane %v1693_v46, 6  ;;  %v1597_v36 = vrot.slane %v1588_v34, 1  ;;  %v7446_v4 = vpop.f32.mrf.mxu1 }
 0x170   :  { %1637 = vst [vmem:[#allocation2 + $0xb8] sm:$0x1] %v1621_v8  ;;  %1649 = vst [vmem:[#allocation2 + $0xab] sm:$0x1] %v1641_v37  ;;  %v1579_v25 = vmax.f32 %v1563_v28, 0.0  ;;  %v2102_v23 = vadd.f32 %v7446_v4, %v8691_v54 }
 0x171   :  { %7576 = vmatpush3.bf16.msra.mxu1 %v7869_v15  ;;  %1653 = vst [vmem:[#allocation2 + $0xb2] sm:$0x1] %v1641_v37  ;;  %1657 = vst [vmem:[#allocation2 + $0xb9] sm:$0x1] %v1641_v37  ;;  %v8732_v51 = vpop.f32.mrf.mxu0  ;;  %v1605_v33 = vmax.f32 %v1588_v34, %v1597_v36  ;;  %v2093_v6 = vpop.f32.mrf.mxu1  ;;  %v8752_v24 = vld [vmem:[#allocation5] ss:$0 sm:$0xff] }
 0x172   :  { %7577 = vmatprep.subr.bf16.mxu1 %v7872_v30  ;;  %1669 = vst [vmem:[#allocation2 + $0xac] sm:$0x1] %v1661_v39  ;;  %1673 = vst [vmem:[#allocation2 + $0xb3] sm:$0x1] %v1661_v39  ;;  %v1589_v48 = vmax.f32 %v1579_v25, %v1581_v40  ;;  %v2094_v22 = vadd.f32 %v2093_v6, %v8698_v62 }
 0x173   :  { %1677 = vst [vmem:[#allocation2 + $0xba] sm:$0x1] %v1661_v39  ;;  %1697 = vst [vmem:[#allocation2 + $0xad] sm:$0x1] %v1693_v46  ;;  %v8734_v5 = vpop.f32.mrf.mxu0  ;;  %v1622_v9 = vrot.slane %v1605_v33, 2  ;;  %v1642_v11 = vrot.slane %v1605_v33, 4  ;;  %v7449_v42 = vpop.f32.mrf.mxu1 }
 0x174   :  { %1701 = vst [vmem:[#allocation2 + $0xb4] sm:$0x1] %v1693_v46  ;;  %1705 = vst [vmem:[#allocation2 + $0xbb] sm:$0x1] %v1693_v46  ;;  %v1662_v49 = vrot.slane %v1605_v33, 6  ;;  %v1686_v60 = vrot.slane %v1589_v48, 1  ;;  %v2115_v37 = vadd.f32 %v7449_v42, %v8705_v2 }
 0x175   :  { %1721 = vst [vmem:[#allocation2 + $0xae] sm:$0x1] %v1713_v56  ;;  %1725 = vst [vmem:[#allocation2 + $0xb5] sm:$0x1] %v1713_v56  ;;  %7578 = vmatpush3.bf16.msra.mxu1 %v7872_v30  ;;  %v8737_v1 = vpop.f32.mrf.mxu0  ;;  %v2106_v57 = vpop.f32.mrf.mxu1 }
 0x176   :  { %1729 = vst [vmem:[#allocation2 + $0xbc] sm:$0x1] %v1713_v56  ;;  %1741 = vst [vmem:[#allocation2 + $0xaf] sm:$0x1] %v1733_v26  ;;  %7587 = vmatprep.subr.bf16.mxu1 %v8730_v12  ;;  %v1694_v38 = vmax.f32 %v1589_v48, %v1686_v60  ;;  %v2107_v34 = vadd.f32 %v2106_v57, %v8710_v45 }
 0x177   :  { %1745 = vst [vmem:[#allocation2 + $0xb6] sm:$0x1] %v1733_v26  ;;  %1749 = vst [vmem:[#allocation2 + $0xbd] sm:$0x1] %v1733_v26  ;;  %v8739_v41 = vpop.f32.mrf.mxu0  ;;  %v7450_v47 = vpop.f32.mrf.mxu1 }
 0x178   :  { %1761 = vst [vmem:[#allocation2 + $0xb7] sm:$0x1] %v1753_v44  ;;  %1765 = vst [vmem:[#allocation2 + $0xbe] sm:$0x1] %v1753_v44  ;;  %v1714_v50 = vrot.slane %v1694_v38, 2  ;;  %v1734_v15 = vrot.slane %v1694_v38, 4  ;;  %v2118_v4 = vadd.f32 %v7450_v47, %v8713_v59 }
 0x179   :  { %1610 = vst [vmem:[#allocation2 + $0xc1] sm:$0x1] %v1605_v33  ;;  %1614 = vst [vmem:[#allocation2 + $0xc8] sm:$0x1] %v1605_v33  ;;  %v1754_v7 = vrot.slane %v1694_v38, 6  ;;  %v8741_v0 = vpop.f32.mrf.mxu0  ;;  %v2109_v43 = vpop.f32.mrf.mxu1 }
 0x17a   :  { %1630 = vst [vmem:[#allocation2 + $0xc2] sm:$0x1] %v1622_v9  ;;  %1634 = vst [vmem:[#allocation2 + $0xc9] sm:$0x1] %v1622_v9 }
 0x17b   :  { %1638 = vst [vmem:[#allocation2 + $0xd0] sm:$0x1] %v1622_v9  ;;  %1650 = vst [vmem:[#allocation2 + $0xc3] sm:$0x1] %v1642_v11  ;;  %v8743_v18 = vpop.f32.mrf.mxu0  ;;  %v7453_v19 = vpop.f32.mrf.mxu1 }
 0x17c   :  { %1654 = vst [vmem:[#allocation2 + $0xca] sm:$0x1] %v1642_v11  ;;  %1658 = vst [vmem:[#allocation2 + $0xd1] sm:$0x1] %v1642_v11  ;;  %v2110_v11 = vadd.f32 %v2109_v43, %v8718_v31 }
 0x17d   :  { %1670 = vst [vmem:[#allocation2 + $0xc4] sm:$0x1] %v1662_v49  ;;  %1674 = vst [vmem:[#allocation2 + $0xcb] sm:$0x1] %v1662_v49  ;;  %v7465_v63 = vpop.f32.mrf.mxu0  ;;  %v8749_v21 = vpop.f32.mrf.mxu1 }
 0x17e   :  { %1678 = vst [vmem:[#allocation2 + $0xd2] sm:$0x1] %v1662_v49  ;;  %1698 = vst [vmem:[#allocation2 + $0xc5] sm:$0x1] %v1694_v38  ;;  %v2348_v53 = vadd.f32 %v7465_v63, %v2099_v55  ;;  %v2131_v49 = vadd.f32 %v7453_v19, %v8721_v27  ;;  %v2123_v43 = vadd.f32 %v8749_v21, %v8726_v58 }
 0x17f   :  { %1702 = vst [vmem:[#allocation2 + $0xcc] sm:$0x1] %v1694_v38  ;;  %1706 = vst [vmem:[#allocation2 + $0xd3] sm:$0x1] %v1694_v38  ;;  %v2283_v61 = vpop.f32.mrf.mxu0  ;;  %v8755_v52 = vpop.f32.mrf.mxu1 }
 0x180   :  { %1722 = vst [vmem:[#allocation2 + $0xc6] sm:$0x1] %v1714_v50  ;;  %1726 = vst [vmem:[#allocation2 + $0xcd] sm:$0x1] %v1714_v50  ;;  %v2364_v29 = vadd.f32 %v8752_v24, %v2348_v53  ;;  %v2346_v30 = vadd.f32 %v2283_v61, %v2091_v3 }
 0x181   :  { %1730 = vst [vmem:[#allocation2 + $0xd4] sm:$0x1] %v1714_v50  ;;  %1742 = vst [vmem:[#allocation2 + $0xc7] sm:$0x1] %v1734_v15  ;;  %v7466_v13 = vpop.f32.mrf.mxu0  ;;  %v8759_v32 = vpop.f32.mrf.mxu1 }
 0x182   :  { %1746 = vst [vmem:[#allocation2 + $0xce] sm:$0x1] %v1734_v15  ;;  %1750 = vst [vmem:[#allocation2 + $0xd5] sm:$0x1] %v1734_v15  ;;  %v2362_v14 = vadd.f32 %v8752_v24, %v2346_v30  ;;  %v2349_v20 = vadd.f32 %v7466_v13, %v2102_v23  ;;  %v2380_v17 = vmax.f32 %v2364_v29, 0.0  ;;  %v2134_v30 = vadd.f32 %v8755_v52, %v8732_v51 }
 0x183   :  { %1762 = vst [vmem:[#allocation2 + $0xcf] sm:$0x1] %v1754_v7  ;;  %1766 = vst [vmem:[#allocation2 + $0xd6] sm:$0x1] %v1754_v7  ;;  %v2286_v35 = vpop.f32.mrf.mxu0  ;;  %v8763_v39 = vpop.f32.mrf.mxu1 }
 0x184   :  { %v2378_v10 = vmax.f32 %v2362_v14, 0.0  ;;  %v2365_v54 = vadd.f32 %v8752_v24, %v2349_v20  ;;  %v2347_v8 = vadd.f32 %v2286_v35, %v2094_v22 }
 0x185   :  { %v7469_v46 = vpop.f32.mrf.mxu0  ;;  %v8767_v56 = vpop.f32.mrf.mxu1 }
 0x186   :  { %v2394_v28 = vmax.f32 %v2378_v10, %v2380_v17  ;;  %v2363_v62 = vadd.f32 %v8752_v24, %v2347_v8  ;;  %v2352_v16 = vadd.f32 %v7469_v46, %v2115_v37  ;;  %v2381_v36 = vmax.f32 %v2365_v54, 0.0 }
 0x187   :  { %v2299_v26 = vpop.f32.mrf.mxu0  ;;  %v8771_v33 = vpop.f32.mrf.mxu1  ;;  %v2126_v54 = vadd.f32 %v8759_v32, %v8734_v5  ;;  %v2147_v5 = vadd.f32 %v8763_v39, %v8737_v1  ;;  %v2139_v32 = vadd.f32 %v8767_v56, %v8739_v41 }
 0x188   :  { %v2406_v44 = vrot.slane %v2394_v28, 1  ;;  %v2379_v40 = vmax.f32 %v2363_v62, 0.0  ;;  %v2350_v25 = vadd.f32 %v2299_v26, %v2107_v34  ;;  %v2368_v2 = vadd.f32 %v8752_v24, %v2352_v16 }
 0x189   :  { %v7470_v48 = vpop.f32.mrf.mxu0  ;;  %v8776_v42 = vpop.f32.mrf.mxu1  ;;  %v2150_v41 = vadd.f32 %v8771_v33, %v8741_v0 }
 0x18a   :  { %v2414_v6 = vmax.f32 %v2394_v28, %v2406_v44  ;;  %v2395_v45 = vmax.f32 %v2379_v40, %v2381_v36  ;;  %v2366_v9 = vadd.f32 %v8752_v24, %v2350_v25  ;;  %v2353_v60 = vadd.f32 %v7470_v48, %v2118_v4 }
 0x18b   :  { %v2302_v38 = vpop.f32.mrf.mxu0  ;;  %v2384_v7 = vmax.f32 %v2368_v2, 0.0  ;;  %v8779_v53 = vpop.f32.mrf.mxu1  ;;  %v2142_v0 = vadd.f32 %v8776_v42, %v8743_v18 }
 0x18c   :  { %2419 = vst [vmem:[#allocation2 + $0x109] sm:$0x1] %v2414_v6  ;;  %2423 = vst [vmem:[#allocation2 + $0x110] sm:$0x1] %v2414_v6  ;;  %v2431_v59 = vrot.slane %v2414_v6, 2  ;;  %v2451_v57 = vrot.slane %v2414_v6, 4  ;;  %v2369_v55 = vadd.f32 %v8752_v24, %v2353_v60  ;;  %v2351_v63 = vadd.f32 %v2302_v38, %v2110_v11 }
 0x18d   :  { %v2471_v50 = vrot.slane %v2414_v6, 6  ;;  %v2495_v15 = vrot.slane %v2395_v45, 1  ;;  %v2382_v47 = vmax.f32 %v2366_v9, 0.0  ;;  %v7473_v3 = vpop.f32.mrf.mxu0  ;;  %v8784_v29 = vpop.f32.mrf.mxu1 }
 0x18e   :  { %2439 = vst [vmem:[#allocation2 + $0x10a] sm:$0x1] %v2431_v59  ;;  %2443 = vst [vmem:[#allocation2 + $0x111] sm:$0x1] %v2431_v59  ;;  %v2356_v27 = vadd.f32 %v7473_v3, %v2131_v49  ;;  %v2367_v61 = vadd.f32 %v8752_v24, %v2351_v63  ;;  %v2385_v35 = vmax.f32 %v2369_v55, 0.0 }
 0x18f   :  { %2447 = vst [vmem:[#allocation2 + $0x118] sm:$0x1] %v2431_v59  ;;  %2459 = vst [vmem:[#allocation2 + $0x10b] sm:$0x1] %v2451_v57  ;;  %v2503_v31 = vmax.f32 %v2395_v45, %v2495_v15  ;;  %v2396_v19 = vmax.f32 %v2382_v47, %v2384_v7  ;;  %v2315_v23 = vpop.f32.mrf.mxu0  ;;  %v8788_v21 = vpop.f32.mrf.mxu1 }
 0x190   :  { %2463 = vst [vmem:[#allocation2 + $0x112] sm:$0x1] %v2451_v57  ;;  %2467 = vst [vmem:[#allocation2 + $0x119] sm:$0x1] %v2451_v57  ;;  %v2383_v17 = vmax.f32 %v2367_v61, 0.0  ;;  %v2354_v10 = vadd.f32 %v2315_v23, %v2123_v43  ;;  %v2372_v51 = vadd.f32 %v8752_v24, %v2356_v27 }
 0x191   :  { %2479 = vst [vmem:[#allocation2 + $0x10c] sm:$0x1] %v2471_v50  ;;  %2483 = vst [vmem:[#allocation2 + $0x113] sm:$0x1] %v2471_v50  ;;  %v2523_v13 = vrot.slane %v2503_v31, 2  ;;  %v2543_v22 = vrot.slane %v2503_v31, 4  ;;  %v7474_v58 = vpop.f32.mrf.mxu0  ;;  %v8794_v28 = vpop.f32.mrf.mxu1 }
 0x192   :  { %2487 = vst [vmem:[#allocation2 + $0x11a] sm:$0x1] %v2471_v50  ;;  %2507 = vst [vmem:[#allocation2 + $0x10d] sm:$0x1] %v2503_v31  ;;  %v2563_v14 = vrot.slane %v2503_v31, 6  ;;  %v2407_v20 = vrot.slane %v2396_v19, 1  ;;  %v2357_v52 = vadd.f32 %v7474_v58, %v2134_v30  ;;  %v2397_v37 = vmax.f32 %v2383_v17, %v2385_v35 }
 0x193   :  { %2511 = vst [vmem:[#allocation2 + $0x114] sm:$0x1] %v2503_v31  ;;  %2515 = vst [vmem:[#allocation2 + $0x11b] sm:$0x1] %v2503_v31  ;;  %v2370_v46 = vadd.f32 %v8752_v24, %v2354_v10  ;;  %v2318_v34 = vpop.f32.mrf.mxu0  ;;  %v8801_v4 = vpop.f32.mrf.mxu1  ;;  %v2388_v2 = vmax.f32 %v2372_v51, 0.0 }
 0x194   :  { %2531 = vst [vmem:[#allocation2 + $0x10e] sm:$0x1] %v2523_v13  ;;  %2535 = vst [vmem:[#allocation2 + $0x115] sm:$0x1] %v2523_v13  ;;  %v2415_v8 = vmax.f32 %v2396_v19, %v2407_v20  ;;  %v2373_v62 = vadd.f32 %v8752_v24, %v2357_v52  ;;  %v2355_v16 = vadd.f32 %v2318_v34, %v2126_v54  ;;  %v2496_v40 = vrot.slane %v2397_v37, 1 }
 0x195   :  { %2539 = vst [vmem:[#allocation2 + $0x11c] sm:$0x1] %v2523_v13  ;;  %2551 = vst [vmem:[#allocation2 + $0x10f] sm:$0x1] %v2543_v22  ;;  %v7477_v25 = vpop.f32.mrf.mxu0  ;;  %v2386_v48 = vmax.f32 %v2370_v46, 0.0  ;;  %v8806_v45 = vpop.f32.mrf.mxu1 }
 0x196   :  { %2555 = vst [vmem:[#allocation2 + $0x116] sm:$0x1] %v2543_v22  ;;  %2559 = vst [vmem:[#allocation2 + $0x11d] sm:$0x1] %v2543_v22  ;;  %v2432_v26 = vrot.slane %v2415_v8, 2  ;;  %v2452_v44 = vrot.slane %v2415_v8, 4  ;;  %v2371_v6 = vadd.f32 %v8752_v24, %v2355_v16  ;;  %v2360_v1 = vadd.f32 %v7477_v25, %v2147_v5 }
 0x197   :  { %2571 = vst [vmem:[#allocation2 + $0x117] sm:$0x1] %v2563_v14  ;;  %2575 = vst [vmem:[#allocation2 + $0x11e] sm:$0x1] %v2563_v14  ;;  %v2472_v36 = vrot.slane %v2415_v8, 6  ;;  %v2504_v39 = vmax.f32 %v2397_v37, %v2496_v40  ;;  %v2331_v56 = vpop.f32.mrf.mxu0  ;;  %v2398_v9 = vmax.f32 %v2386_v48, %v2388_v2  ;;  %v2389_v11 = vmax.f32 %v2373_v62, 0.0  ;;  %v8809_v7 = vpop.f32.mrf.mxu1 }
 0x198   :  { %2420 = vst [vmem:[#allocation2 + $0x121] sm:$0x1] %v2415_v8  ;;  %2424 = vst [vmem:[#allocation2 + $0x128] sm:$0x1] %v2415_v8  ;;  %v2387_v49 = vmax.f32 %v2371_v6, 0.0  ;;  %v2358_v60 = vadd.f32 %v2331_v56, %v2139_v32  ;;  %v2376_v50 = vadd.f32 %v8752_v24, %v2360_v1 }
 0x199   :  { %2440 = vst [vmem:[#allocation2 + $0x122] sm:$0x1] %v2432_v26  ;;  %2444 = vst [vmem:[#allocation2 + $0x129] sm:$0x1] %v2432_v26  ;;  %v2524_v38 = vrot.slane %v2504_v39, 2  ;;  %v2544_v59 = vrot.slane %v2504_v39, 4  ;;  %v7478_v15 = vpop.f32.mrf.mxu0  ;;  %v8814_v31 = vpop.f32.mrf.mxu1 }
 0x19a   :  { %2448 = vst [vmem:[#allocation2 + $0x130] sm:$0x1] %v2432_v26  ;;  %2460 = vst [vmem:[#allocation2 + $0x123] sm:$0x1] %v2452_v44  ;;  %v2564_v57 = vrot.slane %v2504_v39, 6  ;;  %v2408_v33 = vrot.slane %v2398_v9, 1  ;;  %v2399_v47 = vmax.f32 %v2387_v49, %v2389_v11  ;;  %v2374_v55 = vadd.f32 %v8752_v24, %v2358_v60 }
 0x19b   :  { %2464 = vst [vmem:[#allocation2 + $0x12a] sm:$0x1] %v2452_v44  ;;  %2468 = vst [vmem:[#allocation2 + $0x131] sm:$0x1] %v2452_v44  ;;  %v2361_v63 = vadd.f32 %v7478_v15, %v2150_v41  ;;  %v2334_v3 = vpop.f32.mrf.mxu0  ;;  %v2392_v42 = vmax.f32 %v2376_v50, 0.0  ;;  %v8817_v23 = vpop.f32.mrf.mxu1 }
 0x19c   :  { %2480 = vst [vmem:[#allocation2 + $0x124] sm:$0x1] %v2472_v36  ;;  %2484 = vst [vmem:[#allocation2 + $0x12b] sm:$0x1] %v2472_v36  ;;  %v2416_v27 = vmax.f32 %v2398_v9, %v2408_v33  ;;  %v2497_v43 = vrot.slane %v2399_v47, 1  ;;  %v2390_v19 = vmax.f32 %v2374_v55, 0.0  ;;  %v2359_v18 = vadd.f32 %v2334_v3, %v2142_v0 }
 0x19d   :  { %2488 = vst [vmem:[#allocation2 + $0x132] sm:$0x1] %v2472_v36  ;;  %2508 = vst [vmem:[#allocation2 + $0x125] sm:$0x1] %v2504_v39  ;;  %v2377_v61 = vadd.f32 %v8752_v24, %v2361_v63  ;;  %v8819_v30 = vpop.f32.mrf.mxu0  ;;  %v8822_v10 = vpop.f32.mrf.mxu1  ;;  %v8846_v6 = vld [vmem:[#allocation2 + $0x108] sm:$0xff] }
 0x19e   :  { %2512 = vst [vmem:[#allocation2 + $0x12c] sm:$0x1] %v2504_v39  ;;  %2516 = vst [vmem:[#allocation2 + $0x133] sm:$0x1] %v2504_v39  ;;  %v2433_v13 = vrot.slane %v2416_v27, 2  ;;  %v2453_v22 = vrot.slane %v2416_v27, 4  ;;  %v2505_v20 = vmax.f32 %v2399_v47, %v2497_v43  ;;  %v2400_v35 = vmax.f32 %v2390_v19, %v2392_v42 }
 0x19f   :  { %2532 = vst [vmem:[#allocation2 + $0x126] sm:$0x1] %v2524_v38  ;;  %2536 = vst [vmem:[#allocation2 + $0x12d] sm:$0x1] %v2524_v38  ;;  %v2473_v14 = vrot.slane %v2416_v27, 6  ;;  %v2375_v17 = vadd.f32 %v8752_v24, %v2359_v18  ;;  %v8824_v58 = vpop.f32.mrf.mxu0  ;;  %v2393_v37 = vmax.f32 %v2377_v61, 0.0  ;;  %v8826_v34 = vpop.f32.mrf.mxu1  ;;  %v2911_v55 = vadd.f32 %v8819_v30, %v8779_v53 }
 0x1a0   :  { %2540 = vst [vmem:[#allocation2 + $0x134] sm:$0x1] %v2524_v38  ;;  %2552 = vst [vmem:[#allocation2 + $0x127] sm:$0x1] %v2544_v59  ;;  %v2525_v54 = vrot.slane %v2505_v20, 2  ;;  %v2545_v51 = vrot.slane %v2505_v20, 4 }
 0x1a1   :  { %2556 = vst [vmem:[#allocation2 + $0x12e] sm:$0x1] %v2544_v59  ;;  %2560 = vst [vmem:[#allocation2 + $0x135] sm:$0x1] %v2544_v59  ;;  %v2565_v52 = vrot.slane %v2505_v20, 6  ;;  %v2409_v8 = vrot.slane %v2400_v35, 1  ;;  %v8832_v62 = vpop.f32.mrf.mxu0  ;;  %v8840_v25 = vpop.f32.mrf.mxu1 }
 0x1a2   :  { %2572 = vst [vmem:[#allocation2 + $0x12f] sm:$0x1] %v2564_v57  ;;  %2576 = vst [vmem:[#allocation2 + $0x136] sm:$0x1] %v2564_v57  ;;  %v2391_v46 = vmax.f32 %v2375_v17, 0.0  ;;  %v8828_v5 = vld [vmem:[#allocation2 + $0x110] sm:$0xff]  ;;  %v2914_v53 = vadd.f32 %v8832_v62, %v8788_v21 }
 0x1a3   :  { %2421 = vst [vmem:[#allocation2 + $0x139] sm:$0x1] %v2416_v27  ;;  %2425 = vst [vmem:[#allocation2 + $0x140] sm:$0x1] %v2416_v27  ;;  %v8830_v32 = vld [vmem:[#allocation2 + $0x118] sm:$0xff]  ;;  %v2417_v36 = vmax.f32 %v2400_v35, %v2409_v8  ;;  %v2905_v1 = vpop.f32.mrf.mxu0  ;;  %v8850_v49 = vpop.f32.mrf.mxu1  ;;  %v2903_v27 = vadd.f32 %v8824_v58, %v8784_v29 }
 0x1a4   :  { %2441 = vst [vmem:[#allocation2 + $0x13a] sm:$0x1] %v2433_v13  ;;  %2445 = vst [vmem:[#allocation2 + $0x141] sm:$0x1] %v2433_v13  ;;  %v2401_v40 = vmax.f32 %v2391_v46, %v2393_v37 }
 0x1a5   :  { %2449 = vst [vmem:[#allocation2 + $0x148] sm:$0x1] %v2433_v13  ;;  %2461 = vst [vmem:[#allocation2 + $0x13b] sm:$0x1] %v2453_v22  ;;  %v2434_v39 = vrot.slane %v2417_v36, 2  ;;  %v2454_v56 = vrot.slane %v2417_v36, 4  ;;  %v7509_v60 = vpop.f32.mrf.mxu0  ;;  %v8852_v59 = vpop.f32.mrf.mxu1 }
 0x1a6   :  { %2465 = vst [vmem:[#allocation2 + $0x142] sm:$0x1] %v2453_v22  ;;  %2469 = vst [vmem:[#allocation2 + $0x149] sm:$0x1] %v2453_v22  ;;  %v2474_v9 = vrot.slane %v2417_v36, 6  ;;  %v2498_v11 = vrot.slane %v2401_v40, 1  ;;  %v2906_v22 = vadd.f32 %v2905_v1, %v8794_v28  ;;  %v2927_v8 = vadd.f32 %v7509_v60, %v8801_v4 }
 0x1a7   :  { %2481 = vst [vmem:[#allocation2 + $0x13c] sm:$0x1] %v2473_v14  ;;  %2485 = vst [vmem:[#allocation2 + $0x143] sm:$0x1] %v2473_v14  ;;  %v8838_v44 = vld [vmem:[#allocation2 + $0x120] sm:$0xff]  ;;  %v2918_v57 = vpop.f32.mrf.mxu0  ;;  %v8854_v33 = vpop.f32.mrf.mxu1 }
 0x1a8   :  { %2489 = vst [vmem:[#allocation2 + $0x14a] sm:$0x1] %v2473_v14  ;;  %2509 = vst [vmem:[#allocation2 + $0x13d] sm:$0x1] %v2505_v20  ;;  %v6801_v41 = vpack.c.bf16 %v8838_v44, %v8846_v6  ;;  %v2506_v38 = vmax.f32 %v2401_v40, %v2498_v11  ;;  %v3396_v14 = vld [vmem:[#allocation2 + $0x28] sm:$0xff] }
 0x1a9   :  { %2513 = vst [vmem:[#allocation2 + $0x144] sm:$0x1] %v2505_v20  ;;  %2517 = vst [vmem:[#allocation2 + $0x14b] sm:$0x1] %v2505_v20  ;;  %v8834_v16 = vld [vmem:[#allocation2 + $0x128] sm:$0xff]  ;;  %v8836_v26 = vld [vmem:[#allocation2 + $0x130] sm:$0xff]  ;;  %v7510_v47 = vpop.f32.mrf.mxu0  ;;  %v8858_v63 = vpop.f32.mrf.mxu1 }
 0x1aa   :  { %2533 = vst [vmem:[#allocation2 + $0x13e] sm:$0x1] %v2525_v54  ;;  %2537 = vst [vmem:[#allocation2 + $0x145] sm:$0x1] %v2525_v54  ;;  %v6802_v2 = vpack.c.bf16 %v8834_v16, %v8828_v5  ;;  %v6803_v48 = vpack.c.bf16 %v8836_v26, %v8830_v32  ;;  %v2526_v50 = vrot.slane %v2506_v38, 2  ;;  %v2546_v15 = vrot.slane %v2506_v38, 4 }
 0x1ab   :  { %2541 = vst [vmem:[#allocation2 + $0x14c] sm:$0x1] %v2525_v54  ;;  %2553 = vst [vmem:[#allocation2 + $0x13f] sm:$0x1] %v2545_v51  ;;  %v2566_v0 = vrot.slane %v2506_v38, 6  ;;  %v2921_v3 = vpop.f32.mrf.mxu0  ;;  %v7525_v43 = vpop.f32.mrf.mxu1  ;;  %v3395_v20 = vld [vmem:[#allocation2 + $0x20] sm:$0xff] }
 0x1ac   :  { %2557 = vst [vmem:[#allocation2 + $0x146] sm:$0x1] %v2545_v51  ;;  %2561 = vst [vmem:[#allocation2 + $0x14d] sm:$0x1] %v2545_v51  ;;  %3896 = vmatprep.mubr.bf16.mxu0 %v6802_v2  ;;  %7559 = vmatprep.mubr.bf16.mxu1 %v6803_v48  ;;  %v3160_v18 = vadd.f32 %v7525_v43, %v2911_v55  ;;  %v8890_v48 = vld [vmem:[#allocation2] sm:$0xff]  ;;  %v3402_v55 = vld [vmem:[#allocation2 + $0x58] sm:$0xff]  ;;  %v2930_v43 = vadd.f32 %v7510_v47, %v8809_v7 }
 0x1ad   :  { %2573 = vst [vmem:[#allocation2 + $0x147] sm:$0x1] %v2565_v52  ;;  %2577 = vst [vmem:[#allocation2 + $0x14e] sm:$0x1] %v2565_v52  ;;  %3897 = vmatmul.mubr.bf16.gmra.mxu0 %v6801_v41  ;;  %v7513_v19 = vpop.f32.mrf.mxu0  ;;  %v3095_v42 = vpop.f32.mrf.mxu1  ;;  %v6809_v4 = vpack.c.bf16 %v3396_v14, %v8890_v48  ;;  %v6808_v60 = vpack.c.bf16 %v3395_v20, %v8890_v48  ;;  %v2922_v14 = vadd.f32 %v2921_v3, %v8814_v31 }
 0x1ae   :  { %2422 = vst [vmem:[#allocation2 + $0x151] sm:$0x1] %v2417_v36  ;;  %2426 = vst [vmem:[#allocation2 + $0x158] sm:$0x1] %v2417_v36  ;;  %v3176_v30 = vadd.f32 %v8752_v24, %v3160_v18  ;;  %v3158_v13 = vadd.f32 %v3095_v42, %v2903_v27  ;;  %v3394_v27 = vld [vmem:[#allocation2 + $0x18] sm:$0xff]  ;;  %v2943_v47 = vadd.f32 %v7513_v19, %v8817_v23 }
 0x1af   :  { %2442 = vst [vmem:[#allocation2 + $0x152] sm:$0x1] %v2434_v39  ;;  %2446 = vst [vmem:[#allocation2 + $0x159] sm:$0x1] %v2434_v39  ;;  %v8864_v61 = vpop.f32.mrf.mxu0  ;;  %v7526_v35 = vpop.f32.mrf.mxu1 }
 0x1b0   :  { %2450 = vst [vmem:[#allocation2 + $0x160] sm:$0x1] %v2434_v39  ;;  %2462 = vst [vmem:[#allocation2 + $0x153] sm:$0x1] %v2454_v56  ;;  %v3192_v21 = vmax.f32 %v3176_v30, 0.0  ;;  %v3174_v51 = vadd.f32 %v8752_v24, %v3158_v13  ;;  %v3161_v52 = vadd.f32 %v7526_v35, %v2914_v53  ;;  %v3399_v30 = vld [vmem:[#allocation2 + $0x40] sm:$0xff] }
 0x1b1   :  { %2466 = vst [vmem:[#allocation2 + $0x15a] sm:$0x1] %v2454_v56  ;;  %2470 = vst [vmem:[#allocation2 + $0x161] sm:$0x1] %v2454_v56  ;;  %v8874_v54 = vpop.f32.mrf.mxu0  ;;  %v3098_v62 = vpop.f32.mrf.mxu1  ;;  %v2919_v56 = vadd.f32 %v2918_v57, %v8806_v45  ;;  %v3401_v13 = vld [vmem:[#allocation2 + $0x50] sm:$0xff]  ;;  %v8904_v35 = vpack.c.bf16 %v3402_v55, %v3399_v30 }
 0x1b2   :  { %2482 = vst [vmem:[#allocation2 + $0x154] sm:$0x1] %v2474_v9  ;;  %2486 = vst [vmem:[#allocation2 + $0x15b] sm:$0x1] %v2474_v9  ;;  %v8872_v58 = vld [vmem:[#allocation2 + $0x138] sm:$0xff]  ;;  %v3190_v1 = vmax.f32 %v3174_v51, 0.0  ;;  %v3177_v41 = vadd.f32 %v8752_v24, %v3161_v52  ;;  %v3159_v39 = vadd.f32 %v3098_v62, %v2906_v22  ;;  %v2946_v55 = vadd.f32 %v8874_v54, %v8826_v34 }
 0x1b3   :  { %2490 = vst [vmem:[#allocation2 + $0x162] sm:$0x1] %v2474_v9  ;;  %2510 = vst [vmem:[#allocation2 + $0x155] sm:$0x1] %v2506_v38  ;;  %v8895_v9 = vpop.f32.mrf.mxu0  ;;  %v7529_v11 = vpop.f32.mrf.mxu1  ;;  %v7880_v54 = vld [vmem:[#allocation7 + $0x1b0] sm:$0xff]  }
 0x1b4   :  { %2514 = vst [vmem:[#allocation2 + $0x15c] sm:$0x1] %v2506_v38  ;;  %2518 = vst [vmem:[#allocation2 + $0x163] sm:$0x1] %v2506_v38  ;;  %v8868_v17 = vld [vmem:[#allocation2 + $0x140] sm:$0xff]  ;;  %v8870_v29 = vld [vmem:[#allocation2 + $0x148] sm:$0xff]  ;;  %v3206_v38 = vmax.f32 %v3190_v1, %v3192_v21  ;;  %v6807_v21 = vpack.c.bf16 %v3394_v27, %v8890_v48 }
 0x1b5   :  { %2534 = vst [vmem:[#allocation2 + $0x156] sm:$0x1] %v2526_v50  ;;  %2538 = vst [vmem:[#allocation2 + $0x15d] sm:$0x1] %v2526_v50  ;;  %v3111_v45 = vpop.f32.mrf.mxu1  ;;  %v8901_v22 = vpop.f32.mrf.mxu0 }
 0x1b6   :  { %2542 = vst [vmem:[#allocation2 + $0x164] sm:$0x1] %v2526_v50  ;;  %2554 = vst [vmem:[#allocation2 + $0x157] sm:$0x1] %v2546_v15  ;;  %v3193_v50 = vmax.f32 %v3177_v41, 0.0  ;;  %v3218_v57 = vrot.slane %v3206_v38, 1  ;;  %v3162_v42 = vadd.f32 %v3111_v45, %v2919_v56  ;;  %v2938_v45 = vadd.f32 %v8895_v9, %v8840_v25 }
 0x1b7   :  { %2558 = vst [vmem:[#allocation2 + $0x15e] sm:$0x1] %v2546_v15  ;;  %2562 = vst [vmem:[#allocation2 + $0x165] sm:$0x1] %v2546_v15  ;;  %v3175_v15 = vadd.f32 %v8752_v24, %v3159_v39  ;;  %v7530_v20 = vpop.f32.mrf.mxu1  ;;  %v7877_v39 = vld [vmem:[#allocation7 + $0x1b8] sm:$0xff]   ;;  %v7878_v56 = vld [vmem:[#allocation7 + $0x230] sm:$0xff]  }
 0x1b8   :  { %2574 = vst [vmem:[#allocation2 + $0x15f] sm:$0x1] %v2566_v0  ;;  %2578 = vst [vmem:[#allocation2 + $0x166] sm:$0x1] %v2566_v0  ;;  %v3164_v0 = vadd.f32 %v7529_v11, %v2927_v8  ;;  %v3226_v51 = vmax.f32 %v3206_v38, %v3218_v57  ;;  %v3178_v7 = vadd.f32 %v8752_v24, %v3162_v42  ;;  %v3398_v8 = vld [vmem:[#allocation2 + $0x38] sm:$0xff]  ;;  %v8913_v11 = vpop.f32.mrf.mxu0  ;;  %v7881_v57 = vld [vmem:[#allocation7 + $0x228] sm:$0xff]  }
 0x1b9   :  { %v3191_v18 = vmax.f32 %v3175_v15, 0.0  ;;  %v3397_v9 = vld [vmem:[#allocation2 + $0x30] sm:$0xff] }
 0x1ba   :  { %v3180_v53 = vadd.f32 %v8752_v24, %v3164_v0  ;;  %3231 = vst [vmem:[#allocation2 + $0x169] sm:$0x1] %v3226_v51  ;;  %3235 = vst [vmem:[#allocation2 + $0x170] sm:$0x1] %v3226_v51  ;;  %v3243_v31 = vrot.slane %v3226_v51, 2  ;;  %v3263_v3 = vrot.slane %v3226_v51, 4  ;;  %v8929_v30 = vpop.f32.mrf.mxu0 }
 0x1bb   :  { %v3207_v52 = vmax.f32 %v3191_v18, %v3193_v50  ;;  %v3283_v1 = vrot.slane %v3226_v51, 6  ;;  %v3194_v23 = vmax.f32 %v3178_v7, 0.0  ;;  %v7879_v50 = vld [vmem:[#allocation7 + $0x1f0] sm:$0xff]   ;;  %v3400_v18 = vld [vmem:[#allocation2 + $0x48] sm:$0xff] }
 0x1bc   :  { %v3196_v62 = vmax.f32 %v3180_v53, 0.0  ;;  %3251 = vst [vmem:[#allocation2 + $0x16a] sm:$0x1] %v3243_v31  ;;  %3255 = vst [vmem:[#allocation2 + $0x171] sm:$0x1] %v3243_v31  ;;  %v8933_v7 = vpack.c.bf16 %v3400_v18, %v3397_v9 }
 0x1bd   :  { %v8882_v46 = vld [vmem:[#allocation2 + $0x150] sm:$0xff]  ;;  %v3307_v41 = vrot.slane %v3207_v52, 1  ;;  %3259 = vst [vmem:[#allocation2 + $0x178] sm:$0x1] %v3243_v31  ;;  %3271 = vst [vmem:[#allocation2 + $0x16b] sm:$0x1] %v3263_v3 }
 0x1be   :  { %v6804_v2 = vpack.c.bf16 %v8882_v46, %v8872_v58  ;;  %3275 = vst [vmem:[#allocation2 + $0x172] sm:$0x1] %v3263_v3  ;;  %3279 = vst [vmem:[#allocation2 + $0x179] sm:$0x1] %v3263_v3 }
 0x1bf   :  { %v8878_v37 = vld [vmem:[#allocation2 + $0x158] sm:$0xff]  ;;  %v8880_v28 = vld [vmem:[#allocation2 + $0x160] sm:$0xff]  ;;  %3291 = vst [vmem:[#allocation2 + $0x16c] sm:$0x1] %v3283_v1  ;;  %3295 = vst [vmem:[#allocation2 + $0x173] sm:$0x1] %v3283_v1  ;;  %v3315_v15 = vmax.f32 %v3207_v52, %v3307_v41  ;;  %v2959_v52 = vadd.f32 %v8901_v22, %v8850_v49  ;;  %v2951_v22 = vadd.f32 %v8913_v11, %v8852_v59  ;;  %v2953_v41 = vpop.f32.mrf.mxu0 }
 0x1c0   :  { %v6805_v36 = vpack.c.bf16 %v8878_v37, %v8868_v17  ;;  %v6806_v40 = vpack.c.bf16 %v8880_v28, %v8870_v29  ;;  %3299 = vst [vmem:[#allocation2 + $0x17a] sm:$0x1] %v3283_v1  ;;  %v7884_v1 = vld [vmem:[#allocation7 + $0x220] sm:$0xff]  }
 0x1c1   :  { %3319 = vst [vmem:[#allocation2 + $0x16d] sm:$0x1] %v3315_v15  ;;  %3323 = vst [vmem:[#allocation2 + $0x174] sm:$0x1] %v3315_v15  ;;  %v3355_v53 = vrot.slane %v3315_v15, 4  ;;  %v3375_v42 = vrot.slane %v3315_v15, 6 }
 0x1c2   :  { %3904 = vmatprep.mubr.bf16.mxu0 %v6805_v36  ;;  %7560 = vmatmul.mubr.bf16.gmra.mxu1 %v6806_v40  ;;  %v3165_v36 = vadd.f32 %v7530_v20, %v2930_v43  ;;  %v3114_v40 = vpop.f32.mrf.mxu1  ;;  %3327 = vst [vmem:[#allocation2 + $0x17b] sm:$0x1] %v3315_v15 }
 0x1c3   :  { %3905 = vmatmul.mubr.bf16.gmra.mxu0 %v6804_v2  ;;  %7579 = vmatprep.mubr.bf16.mxu1 %v6809_v4  ;;  %v6815_v2 = vpack.c.bf16 %v8830_v32, %v8890_v48  ;;  %v8911_v4 = vpack.c.bf16 %v3401_v13, %v3398_v8  ;;  %v2935_v32 = vadd.f32 %v8864_v61, %v8822_v10 }
 0x1c4   :  { %4178 = vmatprep.mubr.bf16.mxu0 %v6808_v60  ;;  %v3181_v19 = vadd.f32 %v8752_v24, %v3165_v36  ;;  %v3163_v60 = vadd.f32 %v3114_v40, %v2922_v14  ;;  %v7533_v38 = vpop.f32.mrf.mxu1  ;;  %v3208_v10 = vmax.f32 %v3194_v23, %v3196_v62  ;;  %3363 = vst [vmem:[#allocation2 + $0x16f] sm:$0x1] %v3355_v53  ;;  %3367 = vst [vmem:[#allocation2 + $0x176] sm:$0x1] %v3355_v53 }
 0x1c5   :  { %v3168_v0 = vadd.f32 %v7533_v38, %v2943_v47  ;;  %3371 = vst [vmem:[#allocation2 + $0x17d] sm:$0x1] %v3355_v53  ;;  %3383 = vst [vmem:[#allocation2 + $0x177] sm:$0x1] %v3375_v42  ;;  %v6814_v47 = vpack.c.bf16 %v8828_v5, %v8890_v48  ;;  %v7883_v5 = vld [vmem:[#allocation7 + $0x1a8] sm:$0xff]  }
 0x1c6   :  { %v3197_v61 = vmax.f32 %v3181_v19, 0.0  ;;  %v3179_v27 = vadd.f32 %v8752_v24, %v3163_v60  ;;  %v3127_v43 = vpop.f32.mrf.mxu1  ;;  %v3219_v13 = vrot.slane %v3208_v10, 1  ;;  %3387 = vst [vmem:[#allocation2 + $0x17e] sm:$0x1] %v3375_v42 }
 0x1c7   :  { %v8927_v34 = vadd.f32 %v8752_v24, %v3168_v0  ;;  %v3166_v20 = vadd.f32 %v3127_v43, %v2935_v32  ;;  %v2954_v0 = vadd.f32 %v2953_v41, %v8858_v63 }
 0x1c8   :  { %v3195_v14 = vmax.f32 %v3179_v27, 0.0  ;;  %v7534_v25 = vpop.f32.mrf.mxu1  ;;  %v3227_v8 = vmax.f32 %v3208_v10, %v3219_v13  ;;  %v6813_v13 = vpack.c.bf16 %v8846_v6, %v8890_v48 }
 0x1c9   :  { %v3169_v51 = vadd.f32 %v7534_v25, %v2946_v55  ;;  %v3182_v36 = vadd.f32 %v8752_v24, %v3166_v20  ;;  %v3200_v31 = vmax.f32 %v8927_v34, 0.0  ;;  %v7887_v55 = vld [vmem:[#allocation7 + $0x218] sm:$0xff]  }
 0x1ca   :  { %7580 = vmatmul.mubr.bf16.vlgmr.msra.gmra.mxu1 %v8904_v35  ;;  %v3209_v62 = vmax.f32 %v3195_v14, %v3197_v61  ;;  %v3130_v40 = vpop.f32.mrf.mxu1  ;;  %3232 = vst [vmem:[#allocation2 + $0x181] sm:$0x1] %v3227_v8  ;;  %3236 = vst [vmem:[#allocation2 + $0x188] sm:$0x1] %v3227_v8  ;;  %v3284_v23 = vrot.slane %v3227_v8, 6  ;;  %v7890_v14 = vld [vmem:[#allocation7 + $0x210] sm:$0xff]  }
 0x1cb   :  { %7588 = vmatpush3.bf16.msra.mxu1 %v8730_v12  ;;  %4179 = vmatmul.mubr.bf16.vlgmr.msra.gmra.mxu0 %v6807_v21  ;;  %v3335_v12 = vrot.slane %v3315_v15, 2  ;;  %v7882_v21 = vld [vmem:[#allocation7 + $0x1e8] sm:$0xff]   ;;  %v3185_v3 = vadd.f32 %v8752_v24, %v3169_v51  ;;  %v3167_v49 = vadd.f32 %v3130_v40, %v2938_v45  ;;  %v3198_v60 = vmax.f32 %v3182_v36, 0.0  ;;  %v7886_v45 = vld [vmem:[#allocation7 + $0x1a0] sm:$0xff]   ;;  %v7889_v51 = vld [vmem:[#allocation7 + $0x198] sm:$0xff]  }
 0x1cc   :  { %7583 = vmatprep.mubr.bf16.mxu1 %v6815_v2  ;;  %4186 = vmatprep.mubr.bf16.mxu0 %v8911_v4  ;;  %v8940_v2 = vpack.c.bf16 %v8870_v29, %v8836_v26  ;;  %v3308_v19 = vrot.slane %v3209_v62, 1  ;;  %v7537_v26 = vpop.f32.mrf.mxu1  ;;  %v7885_v29 = vld [vmem:[#allocation7 + $0x1e0] sm:$0xff]   ;;  %3292 = vst [vmem:[#allocation2 + $0x184] sm:$0x1] %v3284_v23  ;;  %3296 = vst [vmem:[#allocation2 + $0x18b] sm:$0x1] %v3284_v23 }
 0x1cd   :  { %7092 = vmatpush3.bf16.msra.mxu0 %v7877_v39  ;;  %7589 = vmatprep.subr.bf16.mxu1 %v7878_v56  ;;  %3343 = vst [vmem:[#allocation2 + $0x16e] sm:$0x1] %v3335_v12  ;;  %3347 = vst [vmem:[#allocation2 + $0x175] sm:$0x1] %v3335_v12  ;;  %v3244_v39 = vrot.slane %v3227_v8, 2  ;;  %v3201_v32 = vmax.f32 %v3185_v3, 0.0  ;;  %v3183_v38 = vadd.f32 %v8752_v24, %v3167_v49 }
 0x1ce   :  { %7093 = vmatprep.subr.bf16.mxu0 %v7879_v50  ;;  %3351 = vst [vmem:[#allocation2 + $0x17c] sm:$0x1] %v3335_v12  ;;  %v3172_v59 = vadd.f32 %v7537_v26, %v2959_v52  ;;  %3300 = vst [vmem:[#allocation2 + $0x192] sm:$0x1] %v3284_v23  ;;  %v3316_v11 = vmax.f32 %v3209_v62, %v3308_v19  ;;  %v2962_v50 = vadd.f32 %v8929_v30, %v8854_v33  ;;  %v3143_v15 = vpop.f32.mrf.mxu1  ;;  %v7888_v33 = vld [vmem:[#allocation7 + $0x1d8] sm:$0xff]   ;;  %v7893_v49 = vld [vmem:[#allocation7 + $0x208] sm:$0xff]  }
 0x1cf   :  { %7590 = vmatpush3.bf16.msra.mxu1 %v7878_v56  ;;  %v3264_v56 = vrot.slane %v3227_v8, 4  ;;  %3252 = vst [vmem:[#allocation2 + $0x182] sm:$0x1] %v3244_v39  ;;  %3256 = vst [vmem:[#allocation2 + $0x189] sm:$0x1] %v3244_v39  ;;  %v3210_v10 = vmax.f32 %v3198_v60, %v3200_v31  ;;  %v3199_v61 = vmax.f32 %v3183_v38, 0.0  ;;  %v3170_v43 = vadd.f32 %v3143_v15, %v2951_v22 }
 0x1d0   :  { %7591 = vmatprep.subr.bf16.mxu1 %v7881_v57  ;;  %3260 = vst [vmem:[#allocation2 + $0x190] sm:$0x1] %v3244_v39  ;;  %v3188_v27 = vadd.f32 %v8752_v24, %v3172_v59  ;;  %3320 = vst [vmem:[#allocation2 + $0x185] sm:$0x1] %v3316_v11  ;;  %v3376_v18 = vrot.slane %v3316_v11, 6  ;;  %v7538_v12 = vpop.f32.mrf.mxu1  ;;  %v7891_v8 = vld [vmem:[#allocation7 + $0x1d0] sm:$0xff]   ;;  %v6816_v26 = vpack.c.bf16 %v8872_v58, %v8838_v44 }
 0x1d1   :  { %7094 = vmatpush3.bf16.msra.mxu0 %v7880_v54  ;;  %3272 = vst [vmem:[#allocation2 + $0x183] sm:$0x1] %v3264_v56  ;;  %3276 = vst [vmem:[#allocation2 + $0x18a] sm:$0x1] %v3264_v56  ;;  %v3220_v53 = vrot.slane %v3210_v10, 1  ;;  %v3211_v63 = vmax.f32 %v3199_v61, %v3201_v32  ;;  %v3186_v42 = vadd.f32 %v8752_v24, %v3170_v43  ;;  %v7894_v39 = vld [vmem:[#allocation7 + $0x1c8] sm:$0xff]  }
 0x1d2   :  { %7584 = vmatmul.mubr.bf16.gmra.mxu1 %v8940_v2  ;;  %7095 = vmatprep.subr.bf16.mxu0 %v7882_v21  ;;  %3280 = vst [vmem:[#allocation2 + $0x191] sm:$0x1] %v3264_v56  ;;  %3324 = vst [vmem:[#allocation2 + $0x18c] sm:$0x1] %v3316_v11  ;;  %v3204_v34 = vmax.f32 %v3188_v27, 0.0  ;;  %v3173_v54 = vadd.f32 %v7538_v12, %v2962_v50  ;;  %v3146_v30 = vpop.f32.mrf.mxu1  ;;  %v7896_v19 = vld [vmem:[#allocation7 + $0x200] sm:$0xff]  }
 0x1d3   :  { %7592 = vmatpush3.bf16.msra.mxu1 %v7881_v57  ;;  %4187 = vmatmul.mubr.bf16.gmra.mxu0 %v8933_v7  ;;  %3328 = vst [vmem:[#allocation2 + $0x193] sm:$0x1] %v3316_v11  ;;  %v3356_v57 = vrot.slane %v3316_v11, 4  ;;  %3384 = vst [vmem:[#allocation2 + $0x18f] sm:$0x1] %v3376_v18  ;;  %v3228_v20 = vmax.f32 %v3210_v10, %v3220_v53  ;;  %v3309_v25 = vrot.slane %v3211_v63, 1 }
 0x1d4   :  { %7603 = vmatprep.mubr.bf16.mxu1 %v8904_v35  ;;  %4194 = vmatprep.mubr.bf16.mxu0 %v6814_v47  ;;  %v3336_v35 = vrot.slane %v3316_v11, 2  ;;  %3388 = vst [vmem:[#allocation2 + $0x196] sm:$0x1] %v3376_v18  ;;  %v3202_v9 = vmax.f32 %v3186_v42, 0.0  ;;  %v3171_v21 = vadd.f32 %v3146_v30, %v2954_v0  ;;  %v3189_v52 = vadd.f32 %v8752_v24, %v3173_v54  ;;  %v7897_v11 = vld [vmem:[#allocation7 + $0x1c0] sm:$0xff]   ;;  %v7899_v50 = vld [vmem:[#allocation7 + $0x178] sm:$0xff]  }
 0x1d5   :  { %7096 = vmatpush3.bf16.msra.mxu0 %v7883_v5  ;;  %7593 = vmatprep.subr.bf16.mxu1 %v7884_v1  ;;  %3364 = vst [vmem:[#allocation2 + $0x187] sm:$0x1] %v3356_v57  ;;  %3368 = vst [vmem:[#allocation2 + $0x18e] sm:$0x1] %v3356_v57  ;;  %v6817_v47 = vpack.c.bf16 %v8868_v17, %v8834_v16  ;;  %v3245_v62 = vrot.slane %v3228_v20, 2  ;;  %v3265_v36 = vrot.slane %v3228_v20, 4 }
 0x1d6   :  { %7097 = vmatprep.subr.bf16.mxu0 %v7885_v29  ;;  %3344 = vst [vmem:[#allocation2 + $0x186] sm:$0x1] %v3336_v35  ;;  %3348 = vst [vmem:[#allocation2 + $0x18d] sm:$0x1] %v3336_v35  ;;  %v3285_v40 = vrot.slane %v3228_v20, 6  ;;  %v3317_v6 = vmax.f32 %v3211_v63, %v3309_v25  ;;  %v3212_v48 = vmax.f32 %v3202_v9, %v3204_v34  ;;  %v3205_v31 = vmax.f32 %v3189_v52, 0.0 }
 0x1d7   :  { %7594 = vmatpush3.bf16.msra.mxu1 %v7884_v1  ;;  %3352 = vst [vmem:[#allocation2 + $0x194] sm:$0x1] %v3336_v35  ;;  %3372 = vst [vmem:[#allocation2 + $0x195] sm:$0x1] %v3356_v57  ;;  %v3187_v3 = vadd.f32 %v8752_v24, %v3171_v21  ;;  %v7892_v24 = vld [vmem:[#allocation7 + $0x190] sm:$0xff]   ;;  %v7895_v29 = vld [vmem:[#allocation7 + $0x188] sm:$0xff]  }
 0x1d8   :  { %7595 = vmatprep.subr.bf16.mxu1 %v7887_v55  ;;  %3233 = vst [vmem:[#allocation2 + $0x199] sm:$0x1] %v3228_v20  ;;  %3237 = vst [vmem:[#allocation2 + $0x1a0] sm:$0x1] %v3228_v20  ;;  %v3337_v16 = vrot.slane %v3317_v6, 2  ;;  %v3357_v22 = vrot.slane %v3317_v6, 4 }
 0x1d9   :  { %7098 = vmatpush3.bf16.msra.mxu0 %v7886_v45  ;;  %3253 = vst [vmem:[#allocation2 + $0x19a] sm:$0x1] %v3245_v62  ;;  %3257 = vst [vmem:[#allocation2 + $0x1a1] sm:$0x1] %v3245_v62  ;;  %v3377_v5 = vrot.slane %v3317_v6, 6  ;;  %v3221_v1 = vrot.slane %v3212_v48, 1 }
 0x1da   :  { %7099 = vmatprep.subr.bf16.mxu0 %v7888_v33  ;;  %3261 = vst [vmem:[#allocation2 + $0x1a8] sm:$0x1] %v3245_v62  ;;  %3273 = vst [vmem:[#allocation2 + $0x19b] sm:$0x1] %v3265_v36  ;;  %v3203_v41 = vmax.f32 %v3187_v3, 0.0  ;;  %v7898_v15 = vld [vmem:[#allocation7 + $0x180] sm:$0xff]  }
 0x1db   :  { %7596 = vmatpush3.bf16.msra.mxu1 %v7887_v55  ;;  %4195 = vmatmul.mubr.bf16.gmra.mxu0 %v6813_v13  ;;  %3277 = vst [vmem:[#allocation2 + $0x1a2] sm:$0x1] %v3265_v36  ;;  %3281 = vst [vmem:[#allocation2 + $0x1a9] sm:$0x1] %v3265_v36  ;;  %v3229_v56 = vmax.f32 %v3212_v48, %v3221_v1  ;;  %v4288_v0 = vld [vmem:[#allocation2 + $0x88] sm:$0xff]  ;;  %v7900_v27 = vld [vmem:[#allocation7 + $0x138] sm:$0xff]  }
 0x1dc   :  { %4202 = vmatprep.mubr.bf16.mxu0 %v6817_v47  ;;  %7597 = vmatprep.subr.bf16.mxu1 %v7890_v14  ;;  %3293 = vst [vmem:[#allocation2 + $0x19c] sm:$0x1] %v3285_v40  ;;  %3297 = vst [vmem:[#allocation2 + $0x1a3] sm:$0x1] %v3285_v40  ;;  %v3213_v23 = vmax.f32 %v3203_v41, %v3205_v31  ;;  %v4285_v43 = vld [vmem:[#allocation2 + $0x70] sm:$0xff]  ;;  %v8966_v45 = vld [vmem:[#allocation2 + $0x80] sm:$0xff] }
 0x1dd   :  { %3301 = vst [vmem:[#allocation2 + $0x1aa] sm:$0x1] %v3285_v40  ;;  %3321 = vst [vmem:[#allocation2 + $0x19d] sm:$0x1] %v3317_v6  ;;  %7100 = vmatpush3.bf16.msra.mxu0 %v7889_v51  ;;  %v3246_v60 = vrot.slane %v3229_v56, 2  ;;  %v3266_v32 = vrot.slane %v3229_v56, 4 }
 0x1de   :  { %3325 = vst [vmem:[#allocation2 + $0x1a4] sm:$0x1] %v3317_v6  ;;  %3329 = vst [vmem:[#allocation2 + $0x1ab] sm:$0x1] %v3317_v6  ;;  %7101 = vmatprep.subr.bf16.mxu0 %v7891_v8  ;;  %v3286_v38 = vrot.slane %v3229_v56, 6  ;;  %v3310_v59 = vrot.slane %v3213_v23, 1 }
 0x1df   :  { %3345 = vst [vmem:[#allocation2 + $0x19e] sm:$0x1] %v3337_v16  ;;  %3349 = vst [vmem:[#allocation2 + $0x1a5] sm:$0x1] %v3337_v16  ;;  %7598 = vmatpush3.bf16.msra.mxu1 %v7890_v14  ;;  %v7902_v35 = vld [vmem:[#allocation7 + $0x170] sm:$0xff]   ;;  %v7901_v57 = vld [vmem:[#allocation7 + $0xf8] sm:$0xff]  }
 0x1e0   :  { %3353 = vst [vmem:[#allocation2 + $0x1ac] sm:$0x1] %v3337_v16  ;;  %3365 = vst [vmem:[#allocation2 + $0x19f] sm:$0x1] %v3357_v22  ;;  %7599 = vmatprep.subr.bf16.mxu1 %v7893_v49  ;;  %v3318_v44 = vmax.f32 %v3213_v23, %v3310_v59  ;;  %v4284_v18 = vld [vmem:[#allocation2 + $0x68] sm:$0xff]  ;;  %v7903_v12 = vld [vmem:[#allocation7 + $0x130] sm:$0xff]  }
 0x1e1   :  { %3369 = vst [vmem:[#allocation2 + $0x1a6] sm:$0x1] %v3357_v22  ;;  %3373 = vst [vmem:[#allocation2 + $0x1ad] sm:$0x1] %v3357_v22  ;;  %7102 = vmatpush3.bf16.msra.mxu0 %v7892_v24  ;;  %v8971_v33 = vpack.c.bf16 %v8966_v45, %v4284_v18  ;;  %v7905_v53 = vld [vmem:[#allocation7 + $0x168] sm:$0xff]   ;;  %v7904_v63 = vld [vmem:[#allocation7 + $0xf0] sm:$0xff]  }
 0x1e2   :  { %3385 = vst [vmem:[#allocation2 + $0x1a7] sm:$0x1] %v3377_v5  ;;  %3389 = vst [vmem:[#allocation2 + $0x1ae] sm:$0x1] %v3377_v5  ;;  %7103 = vmatprep.subr.bf16.mxu0 %v7894_v39  ;;  %v3338_v55 = vrot.slane %v3318_v44, 2  ;;  %v3358_v10 = vrot.slane %v3318_v44, 4 }
 0x1e3   :  { %3234 = vst [vmem:[#allocation2 + $0x1b1] sm:$0x1] %v3229_v56  ;;  %3238 = vst [vmem:[#allocation2 + $0x1b8] sm:$0x1] %v3229_v56  ;;  %7600 = vmatpush3.bf16.msra.mxu1 %v7893_v49  ;;  %4203 = vmatmul.mubr.bf16.gmra.mxu0 %v6816_v26  ;;  %v3378_v61 = vrot.slane %v3318_v44, 6  ;;  %v8975_v42 = vld [vmem:[#allocation2 + $0x178] sm:$0xff] }
 0x1e4   :  { %3254 = vst [vmem:[#allocation2 + $0x1b2] sm:$0x1] %v3246_v60  ;;  %3258 = vst [vmem:[#allocation2 + $0x1b9] sm:$0x1] %v3246_v60  ;;  %4622 = vmatprep.mubr.bf16.mxu0 %v8911_v4  ;;  %7601 = vmatprep.subr.bf16.mxu1 %v7896_v19  ;;  %v8964_v4 = vpack.c.bf16 %v4288_v0, %v4285_v43  ;;  %v8977_v34 = vld [vmem:[#allocation2 + $0xa0] sm:$0xff]  ;;  %v7906_v54 = vld [vmem:[#allocation7 + $0x128] sm:$0xff]   ;;  %v6830_v30 = vpack.c.bf16 %v8975_v42, %v8880_v28 }
 0x1e5   :  { %3262 = vst [vmem:[#allocation2 + $0x1c0] sm:$0x1] %v3246_v60  ;;  %3274 = vst [vmem:[#allocation2 + $0x1b3] sm:$0x1] %v3266_v32  ;;  %7104 = vmatpush3.bf16.msra.mxu0 %v7895_v29  ;;  %v6833_v13 = vpack.c.bf16 %v8977_v34, %v4288_v0  ;;  %v4283_v14 = vld [vmem:[#allocation2 + $0x60] sm:$0xff]  ;;  %v7907_v20 = vld [vmem:[#allocation7 + $0xe8] sm:$0xff]  }
 0x1e6   :  { %3278 = vst [vmem:[#allocation2 + $0x1ba] sm:$0x1] %v3266_v32  ;;  %3282 = vst [vmem:[#allocation2 + $0x1c1] sm:$0x1] %v3266_v32  ;;  %7105 = vmatprep.subr.bf16.mxu0 %v7897_v11  ;;  %v4290_v9 = vld [vmem:[#allocation2 + $0x128] sm:$0xff]  ;;  %v7911_v28 = vld [vmem:[#allocation7 + $0x158] sm:$0xff]  }
 0x1e7   :  { %3294 = vst [vmem:[#allocation2 + $0x1b4] sm:$0x1] %v3286_v38  ;;  %3298 = vst [vmem:[#allocation2 + $0x1bb] sm:$0x1] %v3286_v38  ;;  %7602 = vmatpush3.bf16.msra.mxu1 %v7896_v19  ;;  %v7909_v21 = vld [vmem:[#allocation7 + $0x120] sm:$0xff]   ;;  %v6826_v51 = vpack.c.bf16 %v8868_v17, %v4290_v9  ;;  %v7912_v47 = vld [vmem:[#allocation7 + $0x118] sm:$0xff]  }
 0x1e8   :  { %3302 = vst [vmem:[#allocation2 + $0x1c2] sm:$0x1] %v3286_v38  ;;  %3322 = vst [vmem:[#allocation2 + $0x1b5] sm:$0x1] %v3318_v44  ;;  %7611 = vmatprep.subr.bf16.mxu1 %v7899_v50  ;;  %v7910_v52 = vld [vmem:[#allocation7 + $0xe0] sm:$0xff]   ;;  %v8989_v8 = vld [vmem:[#allocation2 + $0x170] sm:$0xff] }
 0x1e9   :  { %3326 = vst [vmem:[#allocation2 + $0x1bc] sm:$0x1] %v3318_v44  ;;  %3330 = vst [vmem:[#allocation2 + $0x1c3] sm:$0x1] %v3318_v44  ;;  %7106 = vmatpush3.bf16.msra.mxu0 %v7898_v15  ;;  %v7914_v62 = vld [vmem:[#allocation7 + $0x150] sm:$0xff]   ;;  %v4289_v36 = vld [vmem:[#allocation2 + $0x120] sm:$0xff]  ;;  %v6829_v48 = vpack.c.bf16 %v8989_v8, %v8878_v37 }
 0x1ea   :  { %3346 = vst [vmem:[#allocation2 + $0x1b6] sm:$0x1] %v3338_v55  ;;  %3350 = vst [vmem:[#allocation2 + $0x1bd] sm:$0x1] %v3338_v55  ;;  %7604 = vmatmul.mubr.bf16.vlgmr.msra.gmra.mxu1 %v8964_v4  ;;  %7143 = vmatprep.subr.bf16.mxu0 %v7900_v27  ;;  %v7913_v40 = vld [vmem:[#allocation7 + $0xd8] sm:$0xff]   ;;  %v6825_v6 = vpack.c.bf16 %v8872_v58, %v4289_v36  ;;  %v7915_v17 = vld [vmem:[#allocation7 + $0x110] sm:$0xff]  }
 0x1eb   :  { %3354 = vst [vmem:[#allocation2 + $0x1c4] sm:$0x1] %v3338_v55  ;;  %3366 = vst [vmem:[#allocation2 + $0x1b7] sm:$0x1] %v3358_v10  ;;  %7607 = vmatprep.mubr.bf16.mxu1 %v8940_v2  ;;  %7612 = vmatpush3.bf16.msra.mxu1 %v7899_v50  ;;  %v8979_v2 = vld [vmem:[#allocation2 + $0x78] sm:$0xff]  ;;  %v7917_v31 = vld [vmem:[#allocation7 + $0x148] sm:$0xff]  }
 0x1ec   :  { %3370 = vst [vmem:[#allocation2 + $0x1be] sm:$0x1] %v3358_v10  ;;  %3374 = vst [vmem:[#allocation2 + $0x1c5] sm:$0x1] %v3358_v10  ;;  %4623 = vmatmul.mubr.bf16.vlgmr.msra.gmra.mxu0 %v8933_v7  ;;  %7613 = vmatprep.subr.bf16.mxu1 %v7902_v35  ;;  %v7908_v7 = vld [vmem:[#allocation7 + $0x160] sm:$0xff]   ;;  %v8985_v25 = vpack.c.bf16 %v8979_v2, %v4283_v14  ;;  %v7916_v3 = vld [vmem:[#allocation7 + $0xd0] sm:$0xff]  }
 0x1ed   :  { %3386 = vst [vmem:[#allocation2 + $0x1bf] sm:$0x1] %v3378_v61  ;;  %3390 = vst [vmem:[#allocation2 + $0x1c6] sm:$0x1] %v3378_v61  ;;  %4630 = vmatprep.mubr.bf16.mxu0 %v8971_v33  ;;  %7144 = vmatpush3.bf16.msra.mxu0 %v7901_v57  ;;  %v7918_v49 = vld [vmem:[#allocation7 + $0x108] sm:$0xff]   ;;  %v8996_v22 = vld [vmem:[#allocation2 + $0x98] sm:$0xff] }
 0x1ee   :  { %7145 = vmatprep.subr.bf16.mxu0 %v7903_v12  ;;  %v8994_v16 = vld [vmem:[#allocation2 + $0x168] sm:$0xff]  ;;  %v6832_v1 = vpack.c.bf16 %v8996_v22, %v8966_v45  ;;  %v7923_v41 = vld [vmem:[#allocation7 + $0xb8] sm:$0xff]   ;;  %v9002_v56 = vld [vmem:[#allocation2 + $0xd0] sm:$0xff] }
 0x1ef   :  { %7614 = vmatpush3.bf16.msra.mxu1 %v7902_v35  ;;  %v7920_v58 = vld [vmem:[#allocation7 + $0x140] sm:$0xff]   ;;  %v7919_v5 = vld [vmem:[#allocation7 + $0xc8] sm:$0xff]   ;;  %v6828_v37 = vpack.c.bf16 %v8994_v16, %v8882_v46  ;;  %v7924_v19 = vld [vmem:[#allocation7 + $0x78] sm:$0xff]  }
 0x1f0   :  { %7615 = vmatprep.subr.bf16.mxu1 %v7905_v53  ;;  %v7921_v24 = vld [vmem:[#allocation7 + $0x100] sm:$0xff]   ;;  %v9004_v23 = vld [vmem:[#allocation2 + $0x190] sm:$0xff]  ;;  %v9006_v46 = vld [vmem:[#allocation2 + $0xb8] sm:$0xff] }
 0x1f1   :  { %7146 = vmatpush3.bf16.msra.mxu0 %v7904_v63  ;;  %v7922_v39 = vld [vmem:[#allocation7 + $0xc0] sm:$0xff]   ;;  %v9008_v26 = vld [vmem:[#allocation2 + $0x90] sm:$0xff]  ;;  %v6836_v29 = vpack.c.bf16 %v9002_v56, %v9006_v46  ;;  %v6839_v38 = vpack.c.bf16 %v9004_v23, %v8975_v42  ;;  %v7925_v59 = vld [vmem:[#allocation7 + $0x38] sm:$0xff]  }
 0x1f2   :  { %7608 = vmatmul.mubr.bf16.gmra.mxu1 %v6830_v30  ;;  %7147 = vmatprep.subr.bf16.mxu0 %v7906_v54  ;;  %v9012_v60 = vld [vmem:[#allocation2 + $0xc8] sm:$0xff]  ;;  %v7926_v32 = vld [vmem:[#allocation7 + $0xb0] sm:$0xff]   ;;  %v6831_v11 = vpack.c.bf16 %v9008_v26, %v8979_v2  ;;  %v9026_v43 = vld [vmem:[#allocation2 + $0xc0] sm:$0xff] }
 0x1f3   :  { %7616 = vmatpush3.bf16.msra.mxu1 %v7905_v53  ;;  %7627 = vmatprep.mubr.bf16.mxu1 %v6833_v13  ;;  %v9018_v44 = vld [vmem:[#allocation2 + $0xb0] sm:$0xff]  ;;  %v9024_v27 = vld [vmem:[#allocation2 + $0x1a8] sm:$0xff]  ;;  %v7935_v30 = vld [vmem:[#allocation7 + $0x98] sm:$0xff]  }
 0x1f4   :  { %4631 = vmatmul.mubr.bf16.gmra.mxu0 %v8985_v25  ;;  %7617 = vmatprep.subr.bf16.mxu1 %v7908_v7  ;;  %v7927_v50 = vld [vmem:[#allocation7 + $0x70] sm:$0xff]   ;;  %v6835_v15 = vpack.c.bf16 %v9012_v60, %v9018_v44  ;;  %v7929_v0 = vld [vmem:[#allocation7 + $0xa8] sm:$0xff]   ;;  %v9022_v10 = vld [vmem:[#allocation2 + $0x1c0] sm:$0xff] }
 0x1f5   :  { %4638 = vmatprep.mubr.bf16.mxu0 %v6826_v51  ;;  %7148 = vmatpush3.bf16.msra.mxu0 %v7907_v20  ;;  %v7928_v55 = vld [vmem:[#allocation7 + $0x30] sm:$0xff]   ;;  %v7930_v61 = vld [vmem:[#allocation7 + $0x68] sm:$0xff]   ;;  %v6842_v45 = vpack.c.bf16 %v9022_v10, %v9024_v27  ;;  %v7932_v57 = vld [vmem:[#allocation7 + $0xa0] sm:$0xff]  }
 0x1f6   :  { %7149 = vmatprep.subr.bf16.mxu0 %v7909_v21  ;;  %v9030_v35 = vld [vmem:[#allocation2 + $0x188] sm:$0xff]  ;;  %v7936_v20 = vld [vmem:[#allocation7 + $0x58] sm:$0xff]   ;;  %v7938_v21 = vld [vmem:[#allocation7 + $0x90] sm:$0xff]  }
 0x1f7   :  { %7618 = vmatpush3.bf16.msra.mxu1 %v7908_v7  ;;  %v9032_v18 = vld [vmem:[#allocation2 + $0xa8] sm:$0xff]  ;;  %v6838_v2 = vpack.c.bf16 %v9030_v35, %v8989_v8  ;;  %v9041_v9 = vld [vmem:[#allocation2 + $0x180] sm:$0xff] }
 0x1f8   :  { %7619 = vmatprep.subr.bf16.mxu1 %v7911_v28  ;;  %v7931_v12 = vld [vmem:[#allocation7 + $0x28] sm:$0xff]   ;;  %v6834_v53 = vpack.c.bf16 %v9026_v43, %v9032_v18  ;;  %v7933_v63 = vld [vmem:[#allocation7 + $0x60] sm:$0xff]   ;;  %v7937_v51 = vld [vmem:[#allocation7 + $0x18] sm:$0xff]  }
 0x1f9   :  { %7150 = vmatpush3.bf16.msra.mxu0 %v7910_v52  ;;  %v7934_v13 = vld [vmem:[#allocation7 + $0x20] sm:$0xff]   ;;  %v7941_v36 = vld [vmem:[#allocation7 + $0x88] sm:$0xff]  }
 0x1fa   :  { %7151 = vmatprep.subr.bf16.mxu0 %v7912_v47  ;;  %v9047_v52 = vld [vmem:[#allocation2 + $0x1a0] sm:$0xff]  ;;  %v7939_v47 = vld [vmem:[#allocation7 + $0x50] sm:$0xff]  }
 0x1fb   :  { %7620 = vmatpush3.bf16.msra.mxu1 %v7911_v28  ;;  %v6837_v28 = vpack.c.bf16 %v9041_v9, %v8994_v16 }
 0x1fc   :  { %4639 = vmatmul.mubr.bf16.gmra.mxu0 %v6825_v6  ;;  %7621 = vmatprep.subr.bf16.mxu1 %v7914_v62  ;;  %v7940_v6 = vld [vmem:[#allocation7 + $0x10] sm:$0xff]  }
 0x1fd   :  { %4646 = vmatprep.mubr.bf16.mxu0 %v6829_v48  ;;  %7152 = vmatpush3.bf16.msra.mxu0 %v7913_v40  ;;  %v9053_v48 = vld [vmem:[#allocation2 + $0x1b0] sm:$0xff] }
 0x1fe   :  { %7153 = vmatprep.subr.bf16.mxu0 %v7915_v17  ;;  %v7942_v17 = vld [vmem:[#allocation7 + $0x48] sm:$0xff]  }
 0x1ff   :  { %7622 = vmatpush3.bf16.msra.mxu1 %v7914_v62 }
 0x200   :  { %7623 = vmatprep.subr.bf16.mxu1 %v7917_v31 }
 0x201   :  { %7154 = vmatpush3.bf16.msra.mxu0 %v7916_v3 }
 0x202   :  { %7155 = vmatprep.subr.bf16.mxu0 %v7918_v49  ;;  %v9057_v49 = vld [vmem:[#allocation2 + $0x198] sm:$0xff] }
 0x203   :  { %7624 = vmatpush3.bf16.msra.mxu1 %v7917_v31  ;;  %v7003_v54 = vpop.f32.mrf.mxu0  ;;  %v7944_v31 = vld [vmem:[#allocation7 + $0x80] sm:$0xff]  }
 0x204   :  { %4647 = vmatmul.mubr.bf16.gmra.mxu0 %v6828_v37  ;;  %7625 = vmatprep.subr.bf16.mxu1 %v7920_v58  ;;  %v7945_v37 = vld [vmem:[#allocation7 + $0x40] sm:$0xff]  }
 0x205   :  { %7156 = vmatpush3.bf16.msra.mxu0 %v7919_v5  ;;  %5279 = vmatprep.mubr.bf16.mxu0 %v6832_v1  ;;  %v7004_v7 = vpop.f32.mrf.mxu0  ;;  %v6840_v5 = vpack.c.bf16 %v9053_v48, %v9057_v49  ;;  %v7947_v1 = vld [vmem:[#allocation7 + $0x238] sm:$0xff]  }
 0x206   :  { %7157 = vmatprep.subr.bf16.mxu0 %v7921_v24  ;;  %v9039_v14 = vadd.f32 %v7004_v7, %v7003_v54  ;;  %v7965_v54 = vld [vmem:[#allocation7 + $0x208] sm:$0xff]   ;;  %v7968_v7 = vld [vmem:[#allocation7 + $0x200] sm:$0xff]  }
 0x207   :  { %7626 = vmatpush3.bf16.msra.mxu1 %v7920_v58  ;;  %v9051_v40 = vpop.f32.mrf.mxu0  ;;  %v7943_v58 = vld [vmem:[#allocation7 + $0x8] sm:$0xff]  }
 0x208   :  { %7635 = vmatprep.subr.bf16.mxu1 %v7923_v41 }
 0x209   :  { %7158 = vmatpush3.bf16.msra.mxu0 %v7922_v39  ;;  %v9055_v3 = vpop.f32.mrf.mxu0  ;;  %v7946_v39 = vld [vmem:[#allocation7] sm:$0xff]  }
 0x20a   :  { %7628 = vmatmul.mubr.bf16.vlgmr.msra.gmra.mxu1 %v6836_v29  ;;  %7195 = vmatprep.subr.bf16.mxu0 %v7924_v19  ;;  %v7948_v29 = vld [vmem:[#allocation7 + $0x1f8] sm:$0xff]  }
 0x20b   :  { %7631 = vmatprep.mubr.bf16.mxu1 %v6839_v38  ;;  %7636 = vmatpush3.bf16.msra.mxu1 %v7923_v41  ;;  %v4805_v38 = vld [vmem:[#allocation2 + $0x160] sm:$0xff] }
 0x20c   :  { %5280 = vmatmul.mubr.bf16.vlgmr.msra.gmra.mxu0 %v6831_v11  ;;  %7637 = vmatprep.subr.bf16.mxu1 %v7926_v32  ;;  %v6851_v11 = vpack.c.bf16 %v8975_v42, %v4805_v38  ;;  %v6854_v42 = vpack.c.bf16 %v9024_v27, %v9004_v23  ;;  %v7958_v23 = vld [vmem:[#allocation7 + $0x1a0] sm:$0xff]   ;;  %v7960_v27 = vld [vmem:[#allocation7 + $0x1d8] sm:$0xff]  }
 0x20d   :  { %5287 = vmatprep.mubr.bf16.mxu0 %v6835_v15  ;;  %7196 = vmatpush3.bf16.msra.mxu0 %v7925_v59  ;;  %v7950_v59 = vld [vmem:[#allocation7 + $0x230] sm:$0xff]   ;;  %v6847_v15 = vpack.c.bf16 %v9018_v44, %v8996_v22  ;;  %v6846_v22 = vpack.c.bf16 %v9032_v18, %v9008_v26  ;;  %v7957_v44 = vld [vmem:[#allocation7 + $0x1e0] sm:$0xff]   ;;  %v7961_v18 = vld [vmem:[#allocation7 + $0x198] sm:$0xff]  }
 0x20e   :  { %7197 = vmatprep.subr.bf16.mxu0 %v7927_v50  ;;  %v7949_v50 = vld [vmem:[#allocation7 + $0x1b8] sm:$0xff]   ;;  %v4803_v26 = vld [vmem:[#allocation2 + $0x150] sm:$0xff] }
 0x20f   :  { %7638 = vmatpush3.bf16.msra.mxu1 %v7926_v32  ;;  %v6848_v32 = vpack.c.bf16 %v9006_v46, %v8977_v34  ;;  %v7952_v34 = vld [vmem:[#allocation7 + $0x1b0] sm:$0xff]   ;;  %v7954_v46 = vld [vmem:[#allocation7 + $0x1e8] sm:$0xff]  }
 0x210   :  { %7639 = vmatprep.subr.bf16.mxu1 %v7929_v0 }
 0x211   :  { %7198 = vmatpush3.bf16.msra.mxu0 %v7928_v55  ;;  %v7956_v55 = vld [vmem:[#allocation7 + $0x220] sm:$0xff]  }
 0x212   :  { %7632 = vmatmul.mubr.bf16.gmra.mxu1 %v6842_v45  ;;  %7199 = vmatprep.subr.bf16.mxu0 %v7930_v61  ;;  %v7955_v61 = vld [vmem:[#allocation7 + $0x1a8] sm:$0xff]  }
 0x213   :  { %7640 = vmatpush3.bf16.msra.mxu1 %v7929_v0  ;;  %7651 = vmatprep.mubr.bf16.mxu1 %v8964_v4  ;;  %v9043_v4 = vld [vmem:[#allocation2 + $0x1b8] sm:$0xff]  ;;  %v7953_v0 = vld [vmem:[#allocation7 + $0x228] sm:$0xff]  }
 0x214   :  { %5288 = vmatmul.mubr.bf16.gmra.mxu0 %v6834_v53  ;;  %7641 = vmatprep.subr.bf16.mxu1 %v7932_v57  ;;  %v6841_v62 = vpack.c.bf16 %v9043_v4, %v9047_v52  ;;  %v6849_v53 = vpack.c.bf16 %v8994_v16, %v4803_v26  ;;  %v6852_v16 = vpack.c.bf16 %v9057_v49, %v9041_v9 }
 0x215   :  { %5295 = vmatprep.mubr.bf16.mxu0 %v6838_v2  ;;  %7200 = vmatpush3.bf16.msra.mxu0 %v7931_v12  ;;  %v7962_v12 = vld [vmem:[#allocation7 + $0x210] sm:$0xff]  }
 0x216   :  { %7201 = vmatprep.subr.bf16.mxu0 %v7933_v63  ;;  %v7963_v63 = vld [vmem:[#allocation7 + $0x1d0] sm:$0xff]  }
 0x217   :  { %7642 = vmatpush3.bf16.msra.mxu1 %v7932_v57  ;;  %v7959_v57 = vld [vmem:[#allocation7 + $0x218] sm:$0xff]   ;;  %v7964_v2 = vld [vmem:[#allocation7 + $0x190] sm:$0xff]  }
 0x218   :  { %7643 = vmatprep.subr.bf16.mxu1 %v7935_v30 }
 0x219   :  { %7202 = vmatpush3.bf16.msra.mxu0 %v7934_v13  ;;  %v7009_v24 = vpop.f32.mrf.mxu0  ;;  %v7967_v13 = vld [vmem:[#allocation7 + $0x188] sm:$0xff]  }
 0x21a   :  { %7203 = vmatprep.subr.bf16.mxu0 %v7936_v20  ;;  %v7969_v20 = vld [vmem:[#allocation7 + $0x1c0] sm:$0xff]  }
 0x21b   :  { %7644 = vmatpush3.bf16.msra.mxu1 %v7935_v30  ;;  %v7010_v41 = vpop.f32.mrf.mxu0  ;;  %v7966_v30 = vld [vmem:[#allocation7 + $0x1c8] sm:$0xff]  }
 0x21c   :  { %5296 = vmatmul.mubr.bf16.gmra.mxu0 %v6837_v28  ;;  %7645 = vmatprep.subr.bf16.mxu1 %v7938_v21  ;;  %v9062_v19 = vadd.f32 %v7010_v41, %v7009_v24 }
 0x21d   :  { %5303 = vmatprep.mubr.bf16.mxu0 %v6841_v62  ;;  %7204 = vmatpush3.bf16.msra.mxu0 %v7937_v51  ;;  %v9086_v62 = vpop.f32.mrf.mxu0 }
 0x21e   :  { %7205 = vmatprep.subr.bf16.mxu0 %v7939_v47 }
 0x21f   :  { %7646 = vmatpush3.bf16.msra.mxu1 %v7938_v21  ;;  %v7973_v21 = vld [vmem:[#allocation2] sm:$0xff] }
 0x220   :  { %7647 = vmatprep.subr.bf16.mxu1 %v7941_v36  ;;  %v6860_v51 = vpack.c.bf16 %v7973_v21, %v9002_v56  ;;  %v6859_v28 = vpack.c.bf16 %v7973_v21, %v9012_v60  ;;  %v6866_v9 = vpack.c.bf16 %v7973_v21, %v9022_v10  ;;  %v6865_v47 = vpack.c.bf16 %v7973_v21, %v9043_v4 }
 0x221   :  { %7206 = vmatpush3.bf16.msra.mxu0 %v7940_v6  ;;  %v6864_v56 = vpack.c.bf16 %v7973_v21, %v9053_v48  ;;  %v7557_v6 = vpop.f32.mrf.mxu1 }
 0x222   :  { %7207 = vmatprep.subr.bf16.mxu0 %v7942_v17 }
 0x223   :  { %7648 = vmatpush3.bf16.msra.mxu1 %v7941_v36  ;;  %v7013_v36 = vpop.f32.mrf.mxu0  ;;  %v3947_v10 = vpop.f32.mrf.mxu1 }
 0x224   :  { %5304 = vmatmul.mubr.bf16.gmra.mxu0 %v6840_v5  ;;  %7649 = vmatprep.subr.bf16.mxu1 %v7944_v31 }
 0x225   :  { %7208 = vmatpush3.bf16.msra.mxu0 %v7943_v58  ;;  %5577 = vmatprep.mubr.bf16.mxu0 %v8971_v33  ;;  %v7951_v33 = vld [vmem:[#allocation7 + $0x1f0] sm:$0xff]   ;;  %v9090_v49 = vpop.f32.mrf.mxu1 }
 0x226   :  { %7209 = vmatprep.subr.bf16.mxu0 %v7945_v37 }
 0x227   :  { %7650 = vmatpush3.bf16.msra.mxu1 %v7944_v31  ;;  %v3950_v58 = vpop.f32.mrf.mxu1 }
 0x228   :  { %7659 = vmatprep.subr.bf16.mxu1 %v7947_v1 }
 0x229   :  { %7210 = vmatpush3.bf16.msra.mxu0 %v7946_v39 }
 0x22a   :  { %7652 = vmatmul.mubr.bf16.vlgmr.msra.gmra.mxu1 %v6848_v32  ;;  %7247 = vmatprep.subr.bf16.mxu0 %v7948_v29 }
 0x22b   :  { %7655 = vmatprep.mubr.bf16.mxu1 %v6851_v11  ;;  %7660 = vmatpush3.bf16.msra.mxu1 %v7947_v1 }
 0x22c   :  { %5578 = vmatmul.mubr.bf16.vlgmr.msra.gmra.mxu0 %v8985_v25  ;;  %7661 = vmatprep.subr.bf16.mxu1 %v7950_v59  ;;  %v4804_v25 = vld [vmem:[#allocation2 + $0x158] sm:$0xff] }
 0x22d   :  { %5585 = vmatprep.mubr.bf16.mxu0 %v6847_v15  ;;  %7248 = vmatpush3.bf16.msra.mxu0 %v7949_v50  ;;  %v6850_v45 = vpack.c.bf16 %v8989_v8, %v4804_v25  ;;  %v6853_v8 = vpack.c.bf16 %v9047_v52, %v9030_v35  ;;  %v7970_v35 = vld [vmem:[#allocation7 + $0x180] sm:$0xff]   ;;  %v6858_v52 = vpack.c.bf16 %v7973_v21, %v9026_v43 }
 0x22e   :  { %7249 = vmatprep.subr.bf16.mxu0 %v7951_v33 }
 0x22f   :  { %7662 = vmatpush3.bf16.msra.mxu1 %v7950_v59 }
 0x230   :  { %7663 = vmatprep.subr.bf16.mxu1 %v7953_v0 }
 0x231   :  { %7250 = vmatpush3.bf16.msra.mxu0 %v7952_v34 }
 0x232   :  { %7656 = vmatmul.mubr.bf16.gmra.mxu1 %v6854_v42  ;;  %7251 = vmatprep.subr.bf16.mxu0 %v7954_v46 }
 0x233   :  { %7664 = vmatpush3.bf16.msra.mxu1 %v7953_v0  ;;  %7675 = vmatprep.mubr.bf16.mxu1 %v6848_v32 }
 0x234   :  { %5586 = vmatmul.mubr.bf16.gmra.mxu0 %v6846_v22  ;;  %7665 = vmatprep.subr.bf16.mxu1 %v7956_v55 }
 0x235   :  { %5593 = vmatprep.mubr.bf16.mxu0 %v6850_v45  ;;  %7252 = vmatpush3.bf16.msra.mxu0 %v7955_v61 }
 0x236   :  { %7253 = vmatprep.subr.bf16.mxu0 %v7957_v44 }
 0x237   :  { %7666 = vmatpush3.bf16.msra.mxu1 %v7956_v55 }
 0x238   :  { %7667 = vmatprep.subr.bf16.mxu1 %v7959_v57 }
 0x239   :  { %7254 = vmatpush3.bf16.msra.mxu0 %v7958_v23 }
 0x23a   :  { %7255 = vmatprep.subr.bf16.mxu0 %v7960_v27 }
 0x23b   :  { %7668 = vmatpush3.bf16.msra.mxu1 %v7959_v57 }
 0x23c   :  { %5594 = vmatmul.mubr.bf16.gmra.mxu0 %v6849_v53  ;;  %7669 = vmatprep.subr.bf16.mxu1 %v7962_v12 }
 0x23d   :  { %5601 = vmatprep.mubr.bf16.mxu0 %v6853_v8  ;;  %7256 = vmatpush3.bf16.msra.mxu0 %v7961_v18 }
 0x23e   :  { %7257 = vmatprep.subr.bf16.mxu0 %v7963_v63 }
 0x23f   :  { %7670 = vmatpush3.bf16.msra.mxu1 %v7962_v12 }
 0x240   :  { %7671 = vmatprep.subr.bf16.mxu1 %v7965_v54 }
 0x241   :  { %7258 = vmatpush3.bf16.msra.mxu0 %v7964_v2  ;;  %v3948_v2 = vadd.f32 %v9039_v14, %v3947_v10  ;;  %v7014_v14 = vadd.f32 %v7013_v36, %v9086_v62 }
 0x242   :  { %7259 = vmatprep.subr.bf16.mxu0 %v7966_v30 }
 0x243   :  { %7672 = vmatpush3.bf16.msra.mxu1 %v7965_v54 }
 0x244   :  { %5602 = vmatmul.mubr.bf16.gmra.mxu0 %v6852_v16  ;;  %7673 = vmatprep.subr.bf16.mxu1 %v7968_v7 }
 0x245   :  { %7260 = vmatpush3.bf16.msra.mxu0 %v7967_v13  ;;  %6020 = vmatprep.mubr.bf16.mxu0 %v6847_v15  ;;  %v7008_v13 = vadd.f32 %v9055_v3, %v9051_v40 }
 0x246   :  { %7261 = vmatprep.subr.bf16.mxu0 %v7969_v20 }
 0x247   :  { %7674 = vmatpush3.bf16.msra.mxu1 %v7968_v7  ;;  %v3951_v21 = vadd.f32 %v7008_v13, %v3950_v58 }
 0x249   :  { %7262 = vmatpush3.bf16.msra.mxu0 %v7970_v35 }
 0x24a   :  { %7676 = vmatmul.mubr.bf16.vlgmr.msra.gmra.mxu1 %v6860_v51 }
 0x24b   :  { %7679 = vmatprep.mubr.bf16.mxu1 %v6854_v42 }
 0x24c   :  { %6021 = vmatmul.mubr.bf16.vlgmr.msra.gmra.mxu0 %v6846_v22 }
 0x24d   :  { %6028 = vmatprep.mubr.bf16.mxu0 %v6859_v28 }
 0x252   :  { %7680 = vmatmul.mubr.bf16.gmra.mxu1 %v6866_v9 }
 0x254   :  { %6029 = vmatmul.mubr.bf16.gmra.mxu0 %v6858_v52 }
 0x255   :  { %6036 = vmatprep.mubr.bf16.mxu0 %v6853_v8 }
 0x25c   :  { %6037 = vmatmul.mubr.bf16.gmra.mxu0 %v6852_v16 }
 0x25d   :  { %6044 = vmatprep.mubr.bf16.mxu0 %v6865_v47 }
 0x264   :  { %6045 = vmatmul.mubr.bf16.gmra.mxu0 %v6864_v56 }
 0x26d   :  { %v7015_v60 = vpop.f32.mrf.mxu0 }
 0x26f   :  { %v7016_v17 = vpop.f32.mrf.mxu0 }
 0x270   :  { %v9088_v31 = vadd.f32 %v7016_v17, %v7015_v60 }
 0x271   :  { %v9092_v43 = vpop.f32.mrf.mxu0 }
 0x273   :  { %v9094_v4 = vpop.f32.mrf.mxu0 }
 0x282   :  { %v9096_v5 = vpop.f32.mrf.mxu1 }
 0x283   :  { %v7021_v48 = vpop.f32.mrf.mxu0 }
 0x284   :  { %v9098_v37 = vpop.f32.mrf.mxu1 }
 0x285   :  { %v7022_v24 = vpop.f32.mrf.mxu0 }
 0x286   :  { %v9100_v1 = vadd.f32 %v7022_v24, %v7021_v48  ;;  %v9102_v41 = vpop.f32.mrf.mxu1  ;;  %v3956_v48 = vadd.f32 %v7557_v6, %v9062_v19 }
 0x287   :  { %v9104_v39 = vpop.f32.mrf.mxu0 }
 0x288   :  { %v9106_v29 = vpop.f32.mrf.mxu1 }
 0x289   :  { %v9108_v32 = vpop.f32.mrf.mxu0 }
 0x28a   :  { %v7581_v59 = vpop.f32.mrf.mxu1 }
 0x28b   :  { %v7055_v38 = vpop.f32.mrf.mxu0 }
 0x28c   :  { %v4245_v33 = vpop.f32.mrf.mxu1 }
 0x28d   :  { %v7056_v11 = vpop.f32.mrf.mxu0 }
 0x28e   :  { %v9110_v34 = vpop.f32.mrf.mxu1  ;;  %v7057_v63 = vadd.f32 %v7056_v11, %v7055_v38  ;;  %v9133_v38 = vld [vmem:[#allocation8] ss:$0 sm:$0xff] }
 0x28f   :  { %v7058_v50 = vpop.f32.mrf.mxu0 }
 0x290   :  { %v4248_v55 = vpop.f32.mrf.mxu1  ;;  %v4181_v16 = vadd.f32 %v7057_v63, %v3948_v2 }
 0x291   :  { %v7059_v15 = vpop.f32.mrf.mxu0 }
 0x292   :  { %v9112_v25 = vpop.f32.mrf.mxu1  ;;  %v7060_v20 = vadd.f32 %v7059_v15, %v7058_v50  ;;  %v4246_v52 = vadd.f32 %v4245_v33, %v4181_v16  ;;  %v3959_v33 = vadd.f32 %v9090_v49, %v7014_v14  ;;  %v7026_v14 = vadd.f32 %v9108_v32, %v9104_v39 }
 0x293   :  { %v7061_v0 = vpop.f32.mrf.mxu0 }
 0x294   :  { %v9114_v57 = vpop.f32.mrf.mxu1  ;;  %v4184_v47 = vadd.f32 %v7060_v20, %v3951_v21 }
 0x295   :  { %v7062_v46 = vpop.f32.mrf.mxu0 }
 0x296   :  { %v9118_v12 = vpop.f32.mrf.mxu1  ;;  %v7063_v56 = vadd.f32 %v7062_v46, %v7061_v0  ;;  %v4249_v11 = vadd.f32 %v4248_v55, %v4184_v47 }
 0x297   :  { %v7064_v42 = vpop.f32.mrf.mxu0 }
 0x298   :  { %v9124_v53 = vpop.f32.mrf.mxu1  ;;  %v4189_v58 = vadd.f32 %v7063_v56, %v3956_v48  ;;  %v3972_v48 = vadd.f32 %v9096_v5, %v9100_v1 }
 0x299   :  { %v7065_v61 = vpop.f32.mrf.mxu0 }
 0x29a   :  { %v7066_v50 = vadd.f32 %v7065_v61, %v7064_v42  ;;  %v4254_v36 = vadd.f32 %v7581_v59, %v4189_v58  ;;  %v3964_v42 = vadd.f32 %v9088_v31, %v9098_v37  ;;  %v3975_v58 = vadd.f32 %v9102_v41, %v7026_v14 }
 0x29b   :  { %v7067_v22 = vpop.f32.mrf.mxu0 }
 0x29d   :  { %v7068_v44 = vpop.f32.mrf.mxu0 }
 0x29e   :  { %v7069_v19 = vadd.f32 %v7068_v44, %v7067_v22 }
 0x29f   :  { %v7070_v45 = vpop.f32.mrf.mxu0 }
 0x2a0   :  { %v4197_v22 = vadd.f32 %v7069_v19, %v3964_v42 }
 0x2a1   :  { %v7071_v23 = vpop.f32.mrf.mxu0 }
 0x2a3   :  { %v9116_v27 = vpop.f32.mrf.mxu0 }
 0x2a5   :  { %v9120_v26 = vpop.f32.mrf.mxu0 }
 0x2a7   :  { %v9122_v18 = vpop.f32.mrf.mxu0 }
 0x2a9   :  { %v9126_v8 = vpop.f32.mrf.mxu0 }
 0x2aa   :  { %v7605_v54 = vpop.f32.mrf.mxu1 }
 0x2ac   :  { %v7107_v30 = vpop.f32.mrf.mxu0  ;;  %v4689_v7 = vpop.f32.mrf.mxu1 }
 0x2ae   :  { %v7108_v35 = vpop.f32.mrf.mxu0  ;;  %v7606_v28 = vpop.f32.mrf.mxu1 }
 0x2af   :  { %v7109_v51 = vadd.f32 %v7108_v35, %v7107_v30  ;;  %v4192_v30 = vadd.f32 %v7066_v50, %v3959_v33  ;;  %v7020_v35 = vadd.f32 %v9094_v4, %v9092_v43  ;;  %v4262_v43 = vadd.f32 %v9114_v57, %v4197_v22 }
 0x2b0   :  { %v7110_v9 = vpop.f32.mrf.mxu0  ;;  %v4692_v40 = vpop.f32.mrf.mxu1  ;;  %v7075_v4 = vadd.f32 %v9120_v26, %v9116_v27 }
 0x2b1   :  { %v4690_v60 = vadd.f32 %v7109_v51, %v4689_v7  ;;  %v4257_v59 = vadd.f32 %v9110_v34, %v4192_v30  ;;  %v7072_v51 = vadd.f32 %v7071_v23, %v7070_v45 }
 0x2b2   :  { %v7111_v17 = vpop.f32.mrf.mxu0  ;;  %v9137_v6 = vpop.f32.mrf.mxu1  ;;  %v4205_v57 = vadd.f32 %v7075_v4, %v3972_v48 }
 0x2b3   :  { %v4720_v10 = vadd.f32 %v4690_v60, %v4246_v52  ;;  %v7112_v24 = vadd.f32 %v7111_v17, %v7110_v9 }
 0x2b4   :  { %v7113_v3 = vpop.f32.mrf.mxu0  ;;  %v4705_v44 = vpop.f32.mrf.mxu1 }
 0x2b5   :  { %v4693_v15 = vadd.f32 %v7112_v24, %v4692_v40  ;;  %v4734_v0 = vadd.f32 %v9133_v38, %v4720_v10  ;;  %v7078_v40 = vadd.f32 %v9126_v8, %v9122_v18 }
 0x2b6   :  { %v7114_v63 = vpop.f32.mrf.mxu0  ;;  %v7610_v34 = vpop.f32.mrf.mxu1 }
 0x2b7   :  { %v4721_v46 = vadd.f32 %v4693_v15, %v4249_v11  ;;  %v7115_v2 = vadd.f32 %v7114_v63, %v7113_v3  ;;  %v4742_v61 = vmax.f32 %v4734_v0, 0.0  ;;  %v4208_v19 = vadd.f32 %v7078_v40, %v3975_v58 }
 0x2b8   :  { %v7116_v62 = vpop.f32.mrf.mxu0  ;;  %v4708_v27 = vpop.f32.mrf.mxu1 }
 0x2b9   :  { %v4735_v7 = vadd.f32 %v9133_v38, %v4721_v46  ;;  %v4698_v13 = vadd.f32 %v7605_v54, %v7115_v2  ;;  %v3967_v54 = vadd.f32 %v7020_v35, %v9106_v29  ;;  %v4270_v46 = vadd.f32 %v9112_v25, %v4205_v57 }
 0x2ba   :  { %v7117_v55 = vpop.f32.mrf.mxu0 }
 0x2bb   :  { %v4743_v16 = vmax.f32 %v4735_v7, 0.0  ;;  %v4722_v49 = vadd.f32 %v4698_v13, %v4254_v36  ;;  %v7118_v20 = vadd.f32 %v7117_v55, %v7116_v62  ;;  %v4200_v23 = vadd.f32 %v7072_v51, %v3967_v54 }
 0x2bc   :  { %v7119_v21 = vpop.f32.mrf.mxu0  ;;  %v4273_v7 = vadd.f32 %v9118_v12, %v4208_v19 }
 0x2bd   :  { %v4750_v9 = vmax.f32 %v4742_v61, %v4743_v16  ;;  %v4701_v52 = vadd.f32 %v7606_v28, %v7118_v20  ;;  %v4736_v47 = vadd.f32 %v9133_v38, %v4722_v49  ;;  %v4265_v24 = vadd.f32 %v9124_v53, %v4200_v23 }
 0x2be   :  { %v7120_v31 = vpop.f32.mrf.mxu0 }
 0x2bf   :  { %v4758_v37 = vrot.slane %v4750_v9, 1  ;;  %v4723_v56 = vadd.f32 %v4701_v52, %v4257_v59  ;;  %v7121_v60 = vadd.f32 %v7120_v31, %v7119_v21  ;;  %v4744_v5 = vmax.f32 %v4736_v47, 0.0 }
 0x2c0   :  { %v7122_v45 = vpop.f32.mrf.mxu0 }
 0x2c1   :  { %v4766_v28 = vmax.f32 %v4750_v9, %v4758_v37  ;;  %v4737_v29 = vadd.f32 %v9133_v38, %v4723_v56  ;;  %v4706_v17 = vadd.f32 %v7121_v60, %v4705_v44 }
 0x2c2   :  { %v7123_v10 = vpop.f32.mrf.mxu0 }
 0x2c3   :  { %4771 = vst.msk [vmem:[%s9385_s5] sm:$0x1] %vm4770_vm2, %v4766_v28  ;;  %v4745_v1 = vmax.f32 %v4737_v29, 0.0  ;;  %v4724_v39 = vadd.f32 %v4706_v17, %v4262_v43  ;;  %v7124_v32 = vadd.f32 %v7123_v10, %v7122_v45 }
 0x2c4   :  { %4776 = vst.msk [vmem:[%s9385_s5 - $0x1] sm:$0x4] %vm4775_vm3, %v4766_v28  ;;  %v7125_v26 = vpop.f32.mrf.mxu0 }
 0x2c5   :  { %4781 = vst.msk [vmem:[%s9385_s5 - $0x2] sm:$0x10] %vm4780_vm4, %v4766_v28  ;;  %v4751_v3 = vmax.f32 %v4744_v5, %v4745_v1  ;;  %v4709_v11 = vadd.f32 %v7124_v32, %v4708_v27  ;;  %v4738_v63 = vadd.f32 %v9133_v38, %v4724_v39 }
 0x2c6   :  { %4786 = vst.msk [vmem:[%s9385_s5 - $0x3] sm:$0x40] %vm4785_vm5, %v4766_v28  ;;  %v7126_v50 = vpop.f32.mrf.mxu0 }
 0x2c7   :  { %v4759_v15 = vrot.slane %v4751_v3, 1  ;;  %v4725_v33 = vadd.f32 %v4709_v11, %v4265_v24  ;;  %v7127_v0 = vadd.f32 %v7126_v50, %v7125_v26  ;;  %v4746_v41 = vmax.f32 %v4738_v63, 0.0 }
 0x2c8   :  { %v7128_v2 = vpop.f32.mrf.mxu0 }
 0x2c9   :  { %v4767_v62 = vmax.f32 %v4751_v3, %v4759_v15  ;;  %v4739_v53 = vadd.f32 %v9133_v38, %v4725_v33  ;;  %v4714_v36 = vadd.f32 %v9137_v6, %v7127_v0 }
 0x2ca   :  { %v7129_v18 = vpop.f32.mrf.mxu0  ;;  %v9196_v55 = vpop.f32.mrf.mxu1 }
 0x2cb   :  { %4773 = vst.msk [vmem:[%s9385_s5 + $0x4] sm:$0x1] %vm4770_vm2, %v4767_v62  ;;  %v4747_v25 = vmax.f32 %v4739_v53, 0.0  ;;  %v4726_v8 = vadd.f32 %v4714_v36, %v4270_v46  ;;  %v7130_v6 = vadd.f32 %v7129_v18, %v7128_v2 }
 0x2cc   :  { %4778 = vst.msk [vmem:[%s9385_s5 + $0x3] sm:$0x4] %vm4775_vm3, %v4767_v62  ;;  %v7159_v30 = vpop.f32.mrf.mxu0  ;;  %v5346_v59 = vpop.f32.mrf.mxu1 }
 0x2cd   :  { %4783 = vst.msk [vmem:[%s9385_s5 + $0x2] sm:$0x10] %vm4780_vm4, %v4767_v62  ;;  %v4752_v13 = vmax.f32 %v4746_v41, %v4747_v25  ;;  %v4717_v42 = vadd.f32 %v7610_v34, %v7130_v6  ;;  %v4740_v49 = vadd.f32 %v9133_v38, %v4726_v8 }
 0x2ce   :  { %4788 = vst.msk [vmem:[%s9385_s5 + $0x1] sm:$0x40] %vm4785_vm5, %v4767_v62  ;;  %v7160_v61 = vpop.f32.mrf.mxu0  ;;  %v9220_v31 = vpop.f32.mrf.mxu1 }
 0x2cf   :  { %v4760_v16 = vrot.slane %v4752_v13, 1  ;;  %v4727_v20 = vadd.f32 %v4717_v42, %v4273_v7  ;;  %v9199_v35 = vadd.f32 %v7160_v61, %v7159_v30  ;;  %v4748_v12 = vmax.f32 %v4740_v49, 0.0 }
 0x2d0   :  { %v9201_v22 = vpop.f32.mrf.mxu0  ;;  %v5349_v4 = vpop.f32.mrf.mxu1 }
 0x2d1   :  { %v4768_v44 = vmax.f32 %v4752_v13, %v4760_v16  ;;  %v4741_v21 = vadd.f32 %v9133_v38, %v4727_v20  ;;  %v5347_v61 = vadd.f32 %v9199_v35, %v5346_v59 }
 0x2d2   :  { %v7163_v51 = vpop.f32.mrf.mxu0  ;;  %v9242_v23 = vpop.f32.mrf.mxu1 }
 0x2d3   :  { %4772 = vst.msk [vmem:[%s9385_s5 + $0x10] sm:$0x1] %vm4770_vm2, %v4768_v44  ;;  %v4749_v9 = vmax.f32 %v4741_v21, 0.0  ;;  %v7164_v16 = vadd.f32 %v7163_v51, %v9201_v22 }
 0x2d4   :  { %4777 = vst.msk [vmem:[%s9385_s5 + $0xf] sm:$0x4] %vm4775_vm3, %v4768_v44  ;;  %v7165_v52 = vpop.f32.mrf.mxu0  ;;  %v9248_v48 = vpop.f32.mrf.mxu1 }
 0x2d5   :  { %4782 = vst.msk [vmem:[%s9385_s5 + $0xe] sm:$0x10] %vm4780_vm4, %v4768_v44  ;;  %v4753_v54 = vmax.f32 %v4748_v12, %v4749_v9  ;;  %v5350_v9 = vadd.f32 %v7164_v16, %v5349_v4 }
 0x2d6   :  { %4787 = vst.msk [vmem:[%s9385_s5 + $0xd] sm:$0x40] %vm4785_vm5, %v4768_v44  ;;  %v7166_v37 = vpop.f32.mrf.mxu0  ;;  %v9252_v5 = vpop.f32.mrf.mxu1 }
 0x2d7   :  { %v4761_v47 = vrot.slane %v4753_v54, 1  ;;  %v9222_v56 = vadd.f32 %v7166_v37, %v7165_v52 }
 0x2d8   :  { %v9224_v60 = vpop.f32.mrf.mxu0  ;;  %v9258_v57 = vpop.f32.mrf.mxu1 }
 0x2d9   :  { %v4769_v43 = vmax.f32 %v4753_v54, %v4761_v47 }
 0x2da   :  { %v7169_v34 = vpop.f32.mrf.mxu0 }
 0x2db   :  { %4774 = vst.msk [vmem:[%s9385_s5 + $0x14] sm:$0x1] %vm4770_vm2, %v4769_v43  ;;  %v7170_v35 = vadd.f32 %v7169_v34, %v9224_v60 }
 0x2dc   :  { %4779 = vst.msk [vmem:[%s9385_s5 + $0x13] sm:$0x4] %vm4775_vm3, %v4769_v43  ;;  %v7171_v45 = vpop.f32.mrf.mxu0 }
 0x2dd   :  { %4784 = vst.msk [vmem:[%s9385_s5 + $0x12] sm:$0x10] %vm4780_vm4, %v4769_v43 }
 0x2de   :  { %4789 = vst.msk [vmem:[%s9385_s5 + $0x11] sm:$0x40] %vm4785_vm5, %v4769_v43  ;;  %v7172_v28 = vpop.f32.mrf.mxu0 }
 0x2df   :  { %v9244_v29 = vadd.f32 %v7172_v28, %v7171_v45 }
 0x2e0   :  { %v9246_v17 = vpop.f32.mrf.mxu0 }
 0x2e2   :  { %v9250_v14 = vpop.f32.mrf.mxu0 }
 0x2e4   :  { %v7177_v10 = vpop.f32.mrf.mxu0 }
 0x2e6   :  { %v7178_v1 = vpop.f32.mrf.mxu0 }
 0x2e7   :  { %v9254_v39 = vadd.f32 %v7178_v1, %v7177_v10  ;;  %v5355_v1 = vadd.f32 %v9196_v55, %v9222_v56 }
 0x2e8   :  { %v9256_v32 = vpop.f32.mrf.mxu0 }
 0x2ea   :  { %v9260_v27 = vpop.f32.mrf.mxu0  ;;  %v7653_v26 = vpop.f32.mrf.mxu1 }
 0x2ec   :  { %v7211_v24 = vpop.f32.mrf.mxu0  ;;  %v5644_v3 = vpop.f32.mrf.mxu1 }
 0x2ee   :  { %v7212_v40 = vpop.f32.mrf.mxu0  ;;  %v9262_v50 = vpop.f32.mrf.mxu1 }
 0x2ef   :  { %v7213_v7 = vadd.f32 %v7212_v40, %v7211_v24 }
 0x2f0   :  { %v7214_v11 = vpop.f32.mrf.mxu0  ;;  %v5647_v33 = vpop.f32.mrf.mxu1 }
 0x2f1   :  { %v5580_v44 = vadd.f32 %v7213_v7, %v5347_v61 }
 0x2f2   :  { %v7215_v58 = vpop.f32.mrf.mxu0  ;;  %v9264_v2 = vpop.f32.mrf.mxu1 }
 0x2f3   :  { %v7216_v21 = vadd.f32 %v7215_v58, %v7214_v11  ;;  %v5645_v47 = vadd.f32 %v5644_v3, %v5580_v44  ;;  %v5358_v3 = vadd.f32 %v9220_v31, %v7170_v35 }
 0x2f4   :  { %v7217_v15 = vpop.f32.mrf.mxu0  ;;  %v9266_v53 = vpop.f32.mrf.mxu1 }
 0x2f5   :  { %v5583_v43 = vadd.f32 %v7216_v21, %v5350_v9 }
 0x2f6   :  { %v7218_v63 = vpop.f32.mrf.mxu0  ;;  %v9268_v41 = vpop.f32.mrf.mxu1 }
 0x2f7   :  { %v7219_v45 = vadd.f32 %v7218_v63, %v7217_v15  ;;  %v5648_v40 = vadd.f32 %v5647_v33, %v5583_v43  ;;  %v5363_v33 = vadd.f32 %v9244_v29, %v9248_v48 }
 0x2f8   :  { %v7220_v0 = vpop.f32.mrf.mxu0  ;;  %v9274_v6 = vpop.f32.mrf.mxu1 }
 0x2f9   :  { %v5588_v11 = vadd.f32 %v7219_v45, %v5355_v1 }
 0x2fa   :  { %v7221_v46 = vpop.f32.mrf.mxu0 }
 0x2fb   :  { %v7222_v4 = vadd.f32 %v7221_v46, %v7220_v0  ;;  %v5653_v56 = vadd.f32 %v7653_v26, %v5588_v11  ;;  %v7176_v0 = vadd.f32 %v9250_v14, %v9246_v17 }
 0x2fc   :  { %v7223_v19 = vpop.f32.mrf.mxu0 }
 0x2fd   :  { %v5591_v60 = vadd.f32 %v7222_v4, %v5358_v3 }
 0x2fe   :  { %v7224_v62 = vpop.f32.mrf.mxu0 }
 0x2ff   :  { %v7225_v16 = vadd.f32 %v7224_v62, %v7223_v19  ;;  %v5656_v26 = vadd.f32 %v9262_v50, %v5591_v60 }
 0x300   :  { %v7226_v36 = vpop.f32.mrf.mxu0 }
 0x301   :  { %v5596_v19 = vadd.f32 %v7225_v16, %v5363_v33 }
 0x302   :  { %v7227_v18 = vpop.f32.mrf.mxu0 }
 0x303   :  { %v5661_v45 = vadd.f32 %v9266_v53, %v5596_v19 }
 0x304   :  { %v9270_v25 = vpop.f32.mrf.mxu0 }
 0x306   :  { %v9272_v8 = vpop.f32.mrf.mxu0 }
 0x308   :  { %v9276_v30 = vpop.f32.mrf.mxu0 }
 0x30a   :  { %v9278_v13 = vpop.f32.mrf.mxu0  ;;  %v7677_v42 = vpop.f32.mrf.mxu1 }
 0x30c   :  { %v7263_v49 = vpop.f32.mrf.mxu0  ;;  %v6087_v20 = vpop.f32.mrf.mxu1 }
 0x30e   :  { %v7264_v12 = vpop.f32.mrf.mxu0  ;;  %v7678_v54 = vpop.f32.mrf.mxu1 }
 0x30f   :  { %v7265_v52 = vadd.f32 %v7264_v12, %v7263_v49 }
 0x310   :  { %v7266_v37 = vpop.f32.mrf.mxu0  ;;  %v6090_v51 = vpop.f32.mrf.mxu1 }
 0x311   :  { %v6088_v28 = vadd.f32 %v7265_v52, %v6087_v20  ;;  %v7228_v52 = vadd.f32 %v7227_v18, %v7226_v36 }
 0x312   :  { %v7267_v10 = vpop.f32.mrf.mxu0  ;;  %v9287_v49 = vpop.f32.mrf.mxu1 }
 0x313   :  { %v6118_v22 = vadd.f32 %v6088_v28, %v5645_v47  ;;  %v7268_v59 = vadd.f32 %v7267_v10, %v7266_v37  ;;  %v7231_v28 = vadd.f32 %v9272_v8, %v9270_v25 }
 0x314   :  { %v7269_v24 = vpop.f32.mrf.mxu0  ;;  %v6103_v62 = vpop.f32.mrf.mxu1 }
 0x315   :  { %v6091_v58 = vadd.f32 %v7268_v59, %v6090_v51  ;;  %v6126_v15 = vadd.f32 %v9133_v38, %v6118_v22  ;;  %v7234_v51 = vadd.f32 %v9278_v13, %v9276_v30 }
 0x316   :  { %v7270_v7 = vpop.f32.mrf.mxu0  ;;  %v7682_v10 = vpop.f32.mrf.mxu1 }
 0x317   :  { %v6119_v63 = vadd.f32 %v6091_v58, %v5648_v40  ;;  %v7271_v61 = vadd.f32 %v7270_v7, %v7269_v24  ;;  %v6134_v46 = vmax.f32 %v6126_v15, 0.0 }
 0x318   :  { %v7272_v55 = vpop.f32.mrf.mxu0  ;;  %v6106_v25 = vpop.f32.mrf.mxu1 }
 0x319   :  { %v6127_v34 = vadd.f32 %v9133_v38, %v6119_v63  ;;  %v6096_v20 = vadd.f32 %v7677_v42, %v7271_v61  ;;  %v5366_v42 = vadd.f32 %v7176_v0, %v9258_v57  ;;  %v5371_v57 = vadd.f32 %v9242_v23, %v9254_v39 }
 0x31a   :  { %v7273_v31 = vpop.f32.mrf.mxu0 }
 0x31b   :  { %v6135_v44 = vmax.f32 %v6127_v34, 0.0  ;;  %v6120_v21 = vadd.f32 %v6096_v20, %v5653_v56  ;;  %v7274_v12 = vadd.f32 %v7273_v31, %v7272_v55  ;;  %v5599_v35 = vadd.f32 %v7228_v52, %v5366_v42 }
 0x31c   :  { %v7275_v9 = vpop.f32.mrf.mxu0  ;;  %v5604_v53 = vadd.f32 %v7231_v28, %v5371_v57 }
 0x31d   :  { %v6142_v37 = vmax.f32 %v6134_v46, %v6135_v44  ;;  %v6099_v47 = vadd.f32 %v7678_v54, %v7274_v12  ;;  %v6128_v48 = vadd.f32 %v9133_v38, %v6120_v21  ;;  %v7182_v54 = vadd.f32 %v9260_v27, %v9256_v32 }
 0x31e   :  { %v7276_v43 = vpop.f32.mrf.mxu0  ;;  %v5664_v59 = vadd.f32 %v9274_v6, %v5599_v35  ;;  %v5669_v63 = vadd.f32 %v9264_v2, %v5604_v53 }
 0x31f   :  { %v6150_v29 = vrot.slane %v6142_v37, 1  ;;  %v6121_v17 = vadd.f32 %v6099_v47, %v5656_v26  ;;  %v7277_v14 = vadd.f32 %v7276_v43, %v7275_v9  ;;  %v6136_v23 = vmax.f32 %v6128_v48, 0.0 }
 0x320   :  { %v7278_v1 = vpop.f32.mrf.mxu0  ;;  %v5374_v11 = vadd.f32 %v9252_v5, %v7182_v54 }
 0x321   :  { %v6158_v50 = vmax.f32 %v6142_v37, %v6150_v29  ;;  %v6129_v36 = vadd.f32 %v9133_v38, %v6121_v17  ;;  %v6104_v18 = vadd.f32 %v7277_v14, %v6103_v62 }
 0x322   :  { %v7279_v22 = vpop.f32.mrf.mxu0  ;;  %v5607_v16 = vadd.f32 %v7234_v51, %v5374_v11 }
 0x323   :  { %6162 = vst.msk [vmem:[%s9385_s5 + $0x8] sm:$0x1] %vm4770_vm2, %v6158_v50  ;;  %v6137_v39 = vmax.f32 %v6129_v36, 0.0  ;;  %v6122_v32 = vadd.f32 %v6104_v18, %v5661_v45  ;;  %v7280_v27 = vadd.f32 %v7279_v22, %v7278_v1 }
 0x324   :  { %6166 = vst.msk [vmem:[%s9385_s5 + $0x7] sm:$0x4] %vm4775_vm3, %v6158_v50  ;;  %v7281_v8 = vpop.f32.mrf.mxu0  ;;  %v5672_v60 = vadd.f32 %v9268_v41, %v5607_v16 }
 0x325   :  { %6170 = vst.msk [vmem:[%s9385_s5 + $0x6] sm:$0x10] %vm4780_vm4, %v6158_v50  ;;  %v6143_v24 = vmax.f32 %v6136_v23, %v6137_v39  ;;  %v6107_v40 = vadd.f32 %v7280_v27, %v6106_v25  ;;  %v6130_v7 = vadd.f32 %v9133_v38, %v6122_v32 }
 0x326   :  { %6174 = vst.msk [vmem:[%s9385_s5 + $0x5] sm:$0x40] %vm4785_vm5, %v6158_v50  ;;  %v7282_v4 = vpop.f32.mrf.mxu0 }
 0x327   :  { %v6151_v58 = vrot.slane %v6143_v24, 1  ;;  %v6123_v3 = vadd.f32 %v6107_v40, %v5664_v59  ;;  %v7283_v15 = vadd.f32 %v7282_v4, %v7281_v8  ;;  %v6138_v5 = vmax.f32 %v6130_v7, 0.0 }
 0x328   :  { %v7284_v61 = vpop.f32.mrf.mxu0 }
 0x329   :  { %v6159_v55 = vmax.f32 %v6143_v24, %v6151_v58  ;;  %v6131_v6 = vadd.f32 %v9133_v38, %v6123_v3  ;;  %v6112_v56 = vadd.f32 %v9287_v49, %v7283_v15 }
 0x32a   :  { %v7285_v30 = vpop.f32.mrf.mxu0 }
 0x32b   :  { %6164 = vst.msk [vmem:[%s9385_s5 + $0xc] sm:$0x1] %vm4770_vm2, %v6159_v55  ;;  %v6139_v2 = vmax.f32 %v6131_v6, 0.0  ;;  %v6124_v13 = vadd.f32 %v6112_v56, %v5669_v63  ;;  %v7286_v49 = vadd.f32 %v7285_v30, %v7284_v61 }
 0x32c   :  { %6168 = vst.msk [vmem:[%s9385_s5 + $0xb] sm:$0x4] %vm4775_vm3, %v6159_v55 }
 0x32d   :  { %6172 = vst.msk [vmem:[%s9385_s5 + $0xa] sm:$0x10] %vm4780_vm4, %v6159_v55  ;;  %v6144_v34 = vmax.f32 %v6138_v5, %v6139_v2  ;;  %v6115_v20 = vadd.f32 %v7682_v10, %v7286_v49  ;;  %v6132_v0 = vadd.f32 %v9133_v38, %v6124_v13 }
 0x32e   :  { %6176 = vst.msk [vmem:[%s9385_s5 + $0x9] sm:$0x40] %vm4785_vm5, %v6159_v55 }
 0x32f   :  { %v6152_v33 = vrot.slane %v6144_v34, 1  ;;  %v6125_v31 = vadd.f32 %v6115_v20, %v5672_v60 }
 0x331   :  { %v6160_v46 = vmax.f32 %v6144_v34, %v6152_v33  ;;  %v6133_v44 = vadd.f32 %v9133_v38, %v6125_v31  ;;  %v6140_v38 = vmax.f32 %v6132_v0, 0.0 }
 0x333   :  { %6163 = vst.msk [vmem:[%s9385_s5 + $0x18] sm:$0x1] %vm4770_vm2, %v6160_v46  ;;  %v6141_v41 = vmax.f32 %v6133_v44, 0.0 }
 0x334   :  { %6167 = vst.msk [vmem:[%s9385_s5 + $0x17] sm:$0x4] %vm4775_vm3, %v6160_v46 }
 0x335   :  { %6171 = vst.msk [vmem:[%s9385_s5 + $0x16] sm:$0x10] %vm4780_vm4, %v6160_v46  ;;  %v6145_v21 = vmax.f32 %v6140_v38, %v6141_v41 }
 0x336   :  { %6175 = vst.msk [vmem:[%s9385_s5 + $0x15] sm:$0x40] %vm4785_vm5, %v6160_v46 }
 0x337   :  { %v6153_v12 = vrot.slane %v6145_v21, 1 }
 0x339   :  { %v6161_v19 = vmax.f32 %v6145_v21, %v6153_v12 }
 0x33b   :  { %6165 = vst.msk [vmem:[%s9385_s5 + $0x1c] sm:$0x1] %vm4770_vm2, %v6161_v19 }
 0x33c   :  { %6169 = vst.msk [vmem:[%s9385_s5 + $0x1b] sm:$0x4] %vm4775_vm3, %v6161_v19 }
 0x33d   :  { %6173 = vst.msk [vmem:[%s9385_s5 + $0x1a] sm:$0x10] %vm4780_vm4, %v6161_v19 }
 0x33e   :  { %6177 = vst.msk [vmem:[%s9385_s5 + $0x19] sm:$0x40] %vm4785_vm5, %v6161_v19 }
 0x33f   :  { %6182 = vsyncpa [#allocation4], 1 }
 0x340   :  { %6183 = vsyncpa [#allocation6], 1 }
 0x341   :  { %6184 = vsyncpa [#allocation9], 1 }

</bundles_post_ra>
